<compile_context>
chip_gen: v7x
topology: tpu7x:2x2x1
jax: 0.10.0
libtpu: 0.0.40
codegen_flags: <defaults>
</compile_context>

<pallas_src>
import random

import jax
import jax.numpy as jnp
import numpy as np
from jax.experimental import pallas as pl
from jax.experimental.pallas import tpu as pltpu


# ----------------------------------------------------------------------------
# In-kernel helpers (traced inside the Pallas kernels)
# ----------------------------------------------------------------------------
def _im2col_into(p_ref, parts, H, W):
    """Scatter 3x3 'same'-padded patches into the VMEM scratch `p_ref`.

    p_ref : VMEM ref (H, W, 9 * Cz)  with Cz = sum of channel counts of parts
    parts : list of (H, W, C_k) f32 values, logically concatenated along C.
    Column layout: tap-major, i.e. column t*Cz + c  (t = dy*3 + dx).
    """
    cz = sum(int(p.shape[-1]) for p in parts)
    # Zero once per invocation; only the halo positions rely on it.
    p_ref[...] = jnp.zeros(p_ref.shape, p_ref.dtype)
    t = 0
    for dy in range(3):
        for dx in range(3):
            sy, sx = dy - 1, dx - 1
            ya, yb = max(0, -sy), H - max(0, sy)
            xa, xb = max(0, -sx), W - max(0, sx)
            off = t * cz
            for part in parts:
                c = int(part.shape[-1])
                p_ref[ya:yb, xa:xb, off:off + c] = (
                    part[ya + sy:yb + sy, xa + sx:xb + sx, :].astype(p_ref.dtype))
                off += c
            t += 1


def _conv3x3(p_ref, parts, w, b, H, W, relu):
    """3x3 'same' conv as ONE MXU matmul: (H*W, 9*Cin) @ (9*Cin, Cout)."""
    _im2col_into(p_ref, parts, H, W)
    k = w.shape[0]
    y = jnp.dot(p_ref[...].reshape(H * W, k), w,
                preferred_element_type=jnp.float32) + b
    return jnp.maximum(y, 0.0) if relu else y


# ----------------------------------------------------------------------------
# Host-side constants (0/1 selection matrices for stride-2 / nearest-2x)
# ----------------------------------------------------------------------------
def _down2_matrix(H, W):
    """(H//2 * W//2, H*W) selector picking even rows/cols of a row-major grid."""
    Ho, Wo = H // 2, W // 2
    m = np.zeros((Ho * Wo, H * W), np.float32)
    idx = np.arange(Ho * Wo)
    src = (idx // Wo) * (2 * W) + (idx % Wo) * 2
    m[idx, src] = 1.0
    return m


def _up2_matrix(h, w):
    """(2h*2w, h*w) nearest-neighbour 2x upsample selector."""
    H2, W2 = 2 * h, 2 * w
    m = np.zeros((H2 * W2, h * w), np.float32)
    idx = np.arange(H2 * W2)
    src = ((idx // W2) // 2) * w + (idx % W2) // 2
    m[idx, src] = 1.0
    return m


# ----------------------------------------------------------------------------
# Parameter init (deterministic, synthetic) -- matmul-ready layouts
# ----------------------------------------------------------------------------
def _init_conv(key, cin, cout):
    kw, kb = jax.random.split(key)
    scale = 1.0 / jnp.sqrt(9.0 * cin)
    w = jax.random.normal(kw, (3, 3, cin, cout), jnp.float32) * scale
    b = jax.random.normal(kb, (cout,), jnp.float32) * 0.01
    # rows ordered (dy, dx, cin) to match the im2col column layout
    return w.reshape(9 * cin, cout), b.reshape(1, cout)


def _init_lstm(key, cin, ch):
    kw, kb = jax.random.split(key)
    cz = cin + ch
    scale = 1.0 / jnp.sqrt(9.0 * cz)
    # gates fused along the output dim, order [i, f, o, g]
    w = jax.random.normal(kw, (3, 3, cz, 4 * ch), jnp.float32) * scale
    b = jax.random.normal(kb, (4 * ch,), jnp.float32) * 0.01
    return w.reshape(9 * cz, 4 * ch), b.reshape(1, 4 * ch)


# ----------------------------------------------------------------------------
# Model
# ----------------------------------------------------------------------------
class AutoregressiveHeatmapsPallas:
    def __init__(self, key, in_ch=4, enc_layers_ch=(8, 16), n_cells=1,
                 rnn_ch=16, residual_step=True, n_seeds=3,
                 teacher_forcing_ratio=0.0):
        self.in_ch = in_ch
        self.enc_layers_ch = list(enc_layers_ch)
        self.n_cells = n_cells
        self.rnn_ch = rnn_ch
        self.residual_step = residual_step
        self.n_seeds = n_seeds
        self.teacher_forcing_ratio = teacher_forcing_ratio

        if len(self.enc_layers_ch) > 1:
            dec_layers_ch = self.enc_layers_ch[::-1][1:]
        else:
            dec_layers_ch = []
        dec_layers_ch.append(in_ch)
        self.dec_layers_ch = dec_layers_ch

        keys = jax.random.split(key, 16)
        ki = iter(keys)

        self.enc_params = []
        cin = in_ch
        for cout in self.enc_layers_ch:
            self.enc_params.append(_init_conv(next(ki), cin, cout))
            cin = cout

        self.rnn_params = []
        for i in range(n_cells):
            in_size = self.enc_layers_ch[-1] if i == 0 else rnn_ch
            self.rnn_params.append(_init_lstm(next(ki), in_size, rnn_ch))

        self.dec_params = []
        cin = rnn_ch
        for cout in self.dec_layers_ch:
            self.dec_params.append(_init_conv(next(ki), cin, cout))
            cin = cout

        self._built = None

    # ------------------------------------------------------------------ build
    def _build(self, b_size, H, W):
        if self._built == (b_size, H, W):
            return

        ne = len(self.enc_layers_ch)
        nd = len(self.dec_layers_ch)
        nc = self.n_cells
        in_ch = self.in_ch
        rnn_ch = self.rnn_ch
        residual = self.residual_step
        assert H % (2 ** ne) == 0 and W % (2 ** ne) == 0, (
            "spatial dims must be divisible by 2**len(enc_layers_ch)")

        # static per-layer geometry ------------------------------------------
        enc_geo = []                               # (H_l, W_l, Cin, Cout)
        hl, wl, cl = H, W, in_ch
        for cout in self.enc_layers_ch:
            enc_geo.append((hl, wl, cl, cout))
            hl, wl, cl = hl // 2, wl // 2, cout
        he, we = hl, wl                            # embedding resolution

        cell_geo = []                              # (he, we, Cin, Ch)
        cx = self.enc_layers_ch[-1]
        for _ in range(nc):
            cell_geo.append((he, we, cx, rnn_ch))
            cx = rnn_ch

        dec_geo = []                               # (h, w, Cin, Cout, relu)
        hd, wd, cd = he, we, rnn_ch
        for k, cout in enumerate(self.dec_layers_ch):
            dec_geo.append((hd, wd, cd, cout, k < nd - 1))
            hd, wd, cd = hd * 2, wd * 2, cout
        assert (hd, wd, cd) == (H, W, in_ch)

        # constant resampling matrices (host numpy -> safe across re-traces)
        enc_down = [jnp.asarray(_down2_matrix(h_, w_)) for (h_, w_, _, _) in enc_geo]
        dec_up = [jnp.asarray(_up2_matrix(h_, w_)) for (h_, w_, _, _, _) in dec_geo]

        enc_wflat, cell_wflat, dec_wflat = [], [], []
        for (w_, b_), d_ in zip(self.enc_params, enc_down):
            enc_wflat += [w_, b_, d_]
        for (w_, b_) in self.rnn_params:
            cell_wflat += [w_, b_]
        for (w_, b_), u_ in zip(self.dec_params, dec_up):
            dec_wflat += [u_, w_, b_]

        # ------------------------------------------------------------- kernels
        def make_kernel(with_decoder):
            def kernel(*refs):
                it = iter(refs)
                nxt = lambda: next(it)

                enc_frame_ref = nxt()
                res_frame_ref = nxt() if with_decoder else None
                h_refs = [nxt() for _ in range(nc)]
                c_refs = [nxt() for _ in range(nc)]
                enc_w = [(nxt(), nxt(), nxt()) for _ in range(ne)]
                cell_w = [(nxt(), nxt()) for _ in range(nc)]
                dec_w = [(nxt(), nxt(), nxt()) for _ in range(nd)] if with_decoder else []
                out_ref = nxt() if with_decoder else None
                h_out = [nxt() for _ in range(nc)]
                c_out = [nxt() for _ in range(nc)]
                p_enc = [nxt() for _ in range(ne)]
                p_cell = [nxt() for _ in range(nc)]
                p_dec = [nxt() for _ in range(nd)] if with_decoder else []

                # ---------------- encoder (stride-2 conv blocks, ReLU) -------
                a = enc_frame_ref[...].astype(jnp.float32)      # (H, W, in_ch)
                for (hc_, wc_, _, co), (w_r, b_r, d_r), p_r in zip(enc_geo, enc_w, p_enc):
                    y = _conv3x3(p_r, [a], w_r[...], b_r[...], hc_, wc_, relu=True)
                    # stride-2 as an in-VMEM selection matmul
                    y = jnp.dot(d_r[...], y, preferred_element_type=jnp.float32)
                    a = y.reshape(hc_ // 2, wc_ // 2, co)

                # ---------------- ConvLSTM cells (fused gate matmul) ---------
                rnn_in = a                                      # (he, we, C_enc)
                for j, ((hc_, wc_, _, ch), (wl_r, bl_r)) in enumerate(zip(cell_geo, cell_w)):
                    h_prev = h_refs[j][...].astype(jnp.float32)  # (he*we, ch)
                    c_prev = c_refs[j][...].astype(jnp.float32)
                    gates = _conv3x3(
                        p_cell[j],
                        [rnn_in, h_prev.reshape(hc_, wc_, ch)],   # concat in VMEM
                        wl_r[...], bl_r[...], hc_, wc_, relu=False)  # (hw, 4*ch)
                    i_g = jax.nn.sigmoid(gates[:, 0 * ch:1 * ch])
                    f_g = jax.nn.sigmoid(gates[:, 1 * ch:2 * ch])
                    o_g = jax.nn.sigmoid(gates[:, 2 * ch:3 * ch])
                    g_g = jnp.tanh(gates[:, 3 * ch:4 * ch])
                    c_new = f_g * c_prev + i_g * g_g
                    h_new = o_g * jnp.tanh(c_new)
                    h_out[j][...] = h_new.astype(h_out[j].dtype)
                    c_out[j][...] = c_new.astype(c_out[j].dtype)
                    rnn_in = h_new.reshape(hc_, wc_, ch)

                # ---------------- decoder (+ residual) -----------------------
                if with_decoder:
                    d = rnn_in.reshape(he * we, rnn_ch)
                    for (hk, wk, ci, _, relu_k), (u_r, w_r, b_r), p_r in zip(
                            dec_geo, dec_w, p_dec):
                        # nearest-2x upsample as an in-VMEM selection matmul
                        d = jnp.dot(u_r[...], d, preferred_element_type=jnp.float32)
                        d = _conv3x3(p_r, [d.reshape(2 * hk, 2 * wk, ci)],
                                     w_r[...], b_r[...], 2 * hk, 2 * wk,
                                     relu=relu_k)
                    if residual:
                        d = d + res_frame_ref[...].astype(jnp.float32).reshape(H * W, in_ch)
                    out_ref[...] = d.reshape(H, W, in_ch).astype(out_ref.dtype)

            return kernel

        # ------------------------------------------------------------- specs
        def full_spec(arr):
            return pl.BlockSpec(arr.shape, lambda n, _nd=arr.ndim: (0,) * _nd)

        frame_spec = pl.BlockSpec((None, H, W, in_ch), lambda n: (n, 0, 0, 0))
        state_spec = pl.BlockSpec((None, he * we, rnn_ch), lambda n: (n, 0, 0))
        frame_shape = jax.ShapeDtypeStruct((b_size, H, W, in_ch), jnp.float32)
        state_shape = jax.ShapeDtypeStruct((b_size, he * we, rnn_ch), jnp.float32)

        def p_scratches(with_decoder):
            s = [pltpu.VMEM((h_, w_, 9 * ci), jnp.float32)
                 for (h_, w_, ci, _) in enc_geo]
            s += [pltpu.VMEM((h_, w_, 9 * (ci + ch)), jnp.float32)
                  for (h_, w_, ci, ch) in cell_geo]
            if with_decoder:
                s += [pltpu.VMEM((2 * h_, 2 * w_, 9 * ci), jnp.float32)
                      for (h_, w_, ci, _, _) in dec_geo]
            return s

        warm_weights = enc_wflat + cell_wflat
        roll_weights = enc_wflat + cell_wflat + dec_wflat

        warm_call = pl.pallas_call(
            make_kernel(False),
            out_shape=tuple([state_shape] * (2 * nc)),
            grid=(b_size,),
            in_specs=([frame_spec] + [state_spec] * (2 * nc)
                      + [full_spec(a) for a in warm_weights]),
            out_specs=tuple([state_spec] * (2 * nc)),
            scratch_shapes=p_scratches(False),
            compiler_params=pltpu.CompilerParams(
                dimension_semantics=("parallel",)),
        )

        roll_call = pl.pallas_call(
            make_kernel(True),
            out_shape=tuple([frame_shape] + [state_shape] * (2 * nc)),
            grid=(b_size,),
            in_specs=([frame_spec, frame_spec] + [state_spec] * (2 * nc)
                      + [full_spec(a) for a in roll_weights]),
            out_specs=tuple([frame_spec] + [state_spec] * (2 * nc)),
            scratch_shapes=p_scratches(True),
            compiler_params=pltpu.CompilerParams(
                dimension_semantics=("parallel",)),
        )

        def warm_fn(frame, hs, cs):
            outs = warm_call(frame, *hs, *cs, *warm_weights)
            return tuple(outs[:nc]), tuple(outs[nc:])

        def roll_fn(enc_frame, res_frame, hs, cs):
            outs = roll_call(enc_frame, res_frame, *hs, *cs, *roll_weights)
            return outs[0], tuple(outs[1:1 + nc]), tuple(outs[1 + nc:])

        self._warm_fn = warm_fn
        self._roll_fn = roll_fn
        self._emb_hw = (he, we)
        self._built = (b_size, H, W)

    # ---------------------------------------------------------------- forward
    def forward(self, x):
        # x: (B, T, C, H, W) -- PyTorch NCHW-sequence convention
        b_size, n_seqs, n_ch, H, W = x.shape
        assert n_ch == self.in_ch
        self._build(b_size, H, W)
        he, we = self._emb_hw
        nc = self.n_cells

        # NOTE: like the PyTorch reference in eager mode this draws once per
        # forward call; under jax.jit the decision is frozen at trace time.
        use_teacher_forcing = random.random() < self.teacher_forcing_ratio

        xh = jnp.transpose(x, (0, 1, 3, 4, 2)).astype(jnp.float32)  # (B,T,H,W,C)

        # init_state_hm: zero (h, c) at the embedding resolution
        hs = tuple(jnp.zeros((b_size, he * we, self.rnn_ch), jnp.float32)
                   for _ in range(nc))
        cs = tuple(jnp.zeros((b_size, he * we, self.rnn_ch), jnp.float32)
                   for _ in range(nc))

        # warm-up on seed frames 0 .. n_seeds-2 (encoder + LSTM only).
        if self.n_seeds > 1:
            warm_frames = jnp.moveaxis(xh[:, :self.n_seeds - 1], 1, 0)

            def warm_step(carry, frame):
                hs_, cs_ = carry
                hs_, cs_ = self._warm_fn(frame, hs_, cs_)
                return (hs_, cs_), None

            (hs, cs), _ = jax.lax.scan(warm_step, (hs, cs), warm_frames)

        # Rollout.  The first step consumes seed frame n_seeds-1 (its encode +
        # LSTM step is the last warm-up step of the reference) and emits the
        # first output; subsequent steps are autoregressive.
        n_out = n_seqs - self.n_seeds
        if n_out < 1:
            n_out = 1
        seed_frame = xh[:, self.n_seeds - 1]

        if use_teacher_forcing:
            tf_frames = jnp.moveaxis(
                xh[:, self.n_seeds - 1:self.n_seeds - 1 + n_out], 1, 0)

            def roll_step_tf(carry, enc_frame):
                prev, hs_, cs_ = carry
                out, hs_, cs_ = self._roll_fn(enc_frame, prev, hs_, cs_)
                return (out, hs_, cs_), out

            (_, hs, cs), outs = jax.lax.scan(
                roll_step_tf, (seed_frame, hs, cs), tf_frames)
        else:
            def roll_step(carry, _):
                prev, hs_, cs_ = carry
                out, hs_, cs_ = self._roll_fn(prev, prev, hs_, cs_)
                return (out, hs_, cs_), out

            (_, hs, cs), outs = jax.lax.scan(
                roll_step, (seed_frame, hs, cs), xs=None, length=n_out)

        # outs: (T_out, B, H, W, C) -> (B, T_out, C, H, W)
        return jnp.transpose(outs, (1, 0, 4, 2, 3))


# ----------------------------------------------------------------------------
# Demo
# ----------------------------------------------------------------------------
if __name__ == "__main__":
    key = jax.random.PRNGKey(0)
    k_params, k_x = jax.random.split(key)

    batch, n_seqs, in_ch, height, width = 2, 6, 4, 16, 16
    n_seeds = 3

    model = AutoregressiveHeatmapsPallas(
        k_params, in_ch=in_ch, enc_layers_ch=(8, 16), n_cells=1, rnn_ch=16,
        residual_step=True, n_seeds=n_seeds, teacher_forcing_ratio=0.0)

    x = jax.random.normal(k_x, (batch, n_seqs, in_ch, height, width),
                          jnp.float32)

    y = jax.jit(model.forward)(x)
    jax.block_until_ready(y)

    assert y.shape == (batch, n_seqs - n_seeds, in_ch, height, width), y.shape
    assert bool(jnp.all(jnp.isfinite(y)))
    print("KERNEL_OK")
</pallas_src>

<mosaic_0001>
module attributes {stable_mosaic.version = 11 : i64} {
  func.func @kernel(%arg0: i32, %arg1: memref<1x16x16x4xf32, #tpu.memory_space<vmem>>, %arg2: memref<1x16x16xf32, #tpu.memory_space<vmem>>, %arg3: memref<1x16x16xf32, #tpu.memory_space<vmem>>, %arg4: memref<36x8xf32, #tpu.memory_space<vmem>>, %arg5: memref<1x8xf32, #tpu.memory_space<vmem>>, %arg6: memref<64x256xf32, #tpu.memory_space<vmem>>, %arg7: memref<72x16xf32, #tpu.memory_space<vmem>>, %arg8: memref<1x16xf32, #tpu.memory_space<vmem>>, %arg9: memref<16x64xf32, #tpu.memory_space<vmem>>, %arg10: memref<288x64xf32, #tpu.memory_space<vmem>>, %arg11: memref<1x64xf32, #tpu.memory_space<vmem>>, %arg12: memref<1x16x16xf32, #tpu.memory_space<vmem>>, %arg13: memref<1x16x16xf32, #tpu.memory_space<vmem>>, %arg14: memref<16x16x36xf32, #tpu.memory_space<vmem>>, %arg15: memref<8x8x72xf32, #tpu.memory_space<vmem>>, %arg16: memref<4x4x288xf32, #tpu.memory_space<vmem>>) attributes {dimension_semantics = [#tpu.dimension_semantics<parallel>], iteration_bounds = array<i64: 2>, scalar_prefetch = 0 : i64, scratch_operands = 3 : i64, tpu.core_type = #tpu.core_type<tc>, window_params = [{transform_indices = @transform_0, window_bounds = array<i64: 1, 16, 16, 4>}, {transform_indices = @transform_1, window_bounds = array<i64: 1, 16, 16>}, {transform_indices = @transform_2, window_bounds = array<i64: 1, 16, 16>}, {pipeline_mode = #tpu.pipeline_mode<synchronous>, transform_indices = @transform_3, window_bounds = array<i64: 36, 8>}, {pipeline_mode = #tpu.pipeline_mode<synchronous>, transform_indices = @transform_4, window_bounds = array<i64: 1, 8>}, {pipeline_mode = #tpu.pipeline_mode<synchronous>, transform_indices = @transform_5, window_bounds = array<i64: 64, 256>}, {pipeline_mode = #tpu.pipeline_mode<synchronous>, transform_indices = @transform_6, window_bounds = array<i64: 72, 16>}, {pipeline_mode = #tpu.pipeline_mode<synchronous>, transform_indices = @transform_7, window_bounds = array<i64: 1, 16>}, {pipeline_mode = #tpu.pipeline_mode<synchronous>, transform_indices = @transform_8, window_bounds = array<i64: 16, 64>}, {pipeline_mode = #tpu.pipeline_mode<synchronous>, transform_indices = @transform_9, window_bounds = array<i64: 288, 64>}, {pipeline_mode = #tpu.pipeline_mode<synchronous>, transform_indices = @transform_10, window_bounds = array<i64: 1, 64>}, {transform_indices = @transform_11, window_bounds = array<i64: 1, 16, 16>}, {transform_indices = @transform_12, window_bounds = array<i64: 1, 16, 16>}]} {
    %c0 = arith.constant 0 : index
    %c0_0 = arith.constant 0 : index
    %c0_1 = arith.constant 0 : index
    %c0_2 = arith.constant 0 : index
    %0 = vector.load %arg1[%c0, %c0_0, %c0_1, %c0_2] : memref<1x16x16x4xf32, #tpu.memory_space<vmem>>, vector<1x16x16x4xf32>
    %1 = vector.shape_cast %0 : vector<1x16x16x4xf32> to vector<16x16x4xf32>
    %c0_3 = arith.constant 0 : index
    %c0_4 = arith.constant 0 : index
    %2 = vector.load %arg4[%c0_3, %c0_4] : memref<36x8xf32, #tpu.memory_space<vmem>>, vector<36x8xf32>
    %c0_5 = arith.constant 0 : index
    %c0_6 = arith.constant 0 : index
    %3 = vector.load %arg5[%c0_5, %c0_6] : memref<1x8xf32, #tpu.memory_space<vmem>>, vector<1x8xf32>
    %cst = arith.constant 0.000000e+00 : f32
    %4 = vector.broadcast %cst : f32 to vector<16x16x36xf32>
    %c0_7 = arith.constant 0 : index
    %c0_8 = arith.constant 0 : index
    %c0_9 = arith.constant 0 : index
    %5 = vector.load %arg14[%c0_7, %c0_8, %c0_9] : memref<16x16x36xf32, #tpu.memory_space<vmem>>, vector<16x16x36xf32>
    tpu.vector_store %arg14[%c0_7, %c0_8, %c0_9], %4 {strides = array<i32>} : memref<16x16x36xf32, #tpu.memory_space<vmem>>, vector<16x16x36xf32>,
    %6 = vector.extract_strided_slice %1 {offsets = [0, 0, 0], sizes = [15, 15, 4], strides = [1, 1, 1]} : vector<16x16x4xf32> to vector<15x15x4xf32>
    %c1 = arith.constant 1 : index
    %c1_10 = arith.constant 1 : index
    %c0_11 = arith.constant 0 : index
    %7 = vector.load %arg14[%c1, %c1_10, %c0_11] : memref<16x16x36xf32, #tpu.memory_space<vmem>>, vector<15x15x4xf32>
    tpu.vector_store %arg14[%c1, %c1_10, %c0_11], %6 {strides = array<i32>} : memref<16x16x36xf32, #tpu.memory_space<vmem>>, vector<15x15x4xf32>,
    %8 = vector.extract_strided_slice %1 {offsets = [0, 0, 0], sizes = [15, 16, 4], strides = [1, 1, 1]} : vector<16x16x4xf32> to vector<15x16x4xf32>
    %c1_12 = arith.constant 1 : index
    %c0_13 = arith.constant 0 : index
    %c4 = arith.constant 4 : index
    %9 = vector.load %arg14[%c1_12, %c0_13, %c4] : memref<16x16x36xf32, #tpu.memory_space<vmem>>, vector<15x16x4xf32>
    tpu.vector_store %arg14[%c1_12, %c0_13, %c4], %8 {strides = array<i32>} : memref<16x16x36xf32, #tpu.memory_space<vmem>>, vector<15x16x4xf32>,
    %10 = vector.extract_strided_slice %1 {offsets = [0, 1, 0], sizes = [15, 15, 4], strides = [1, 1, 1]} : vector<16x16x4xf32> to vector<15x15x4xf32>
    %c1_14 = arith.constant 1 : index
    %c0_15 = arith.constant 0 : index
    %c8 = arith.constant 8 : index
    %11 = vector.load %arg14[%c1_14, %c0_15, %c8] : memref<16x16x36xf32, #tpu.memory_space<vmem>>, vector<15x15x4xf32>
    tpu.vector_store %arg14[%c1_14, %c0_15, %c8], %10 {strides = array<i32>} : memref<16x16x36xf32, #tpu.memory_space<vmem>>, vector<15x15x4xf32>,
    %12 = vector.extract_strided_slice %1 {offsets = [0, 0, 0], sizes = [16, 15, 4], strides = [1, 1, 1]} : vector<16x16x4xf32> to vector<16x15x4xf32>
    %c0_16 = arith.constant 0 : index
    %c1_17 = arith.constant 1 : index
    %c12 = arith.constant 12 : index
    %13 = vector.load %arg14[%c0_16, %c1_17, %c12] : memref<16x16x36xf32, #tpu.memory_space<vmem>>, vector<16x15x4xf32>
    tpu.vector_store %arg14[%c0_16, %c1_17, %c12], %12 {strides = array<i32>} : memref<16x16x36xf32, #tpu.memory_space<vmem>>, vector<16x15x4xf32>,
    %c0_18 = arith.constant 0 : index
    %c0_19 = arith.constant 0 : index
    %c16 = arith.constant 16 : index
    %14 = vector.load %arg14[%c0_18, %c0_19, %c16] : memref<16x16x36xf32, #tpu.memory_space<vmem>>, vector<16x16x4xf32>
    tpu.vector_store %arg14[%c0_18, %c0_19, %c16], %1 {strides = array<i32>} : memref<16x16x36xf32, #tpu.memory_space<vmem>>, vector<16x16x4xf32>,
    %15 = vector.extract_strided_slice %1 {offsets = [0, 1, 0], sizes = [16, 15, 4], strides = [1, 1, 1]} : vector<16x16x4xf32> to vector<16x15x4xf32>
    %c0_20 = arith.constant 0 : index
    %c0_21 = arith.constant 0 : index
    %c20 = arith.constant 20 : index
    %16 = vector.load %arg14[%c0_20, %c0_21, %c20] : memref<16x16x36xf32, #tpu.memory_space<vmem>>, vector<16x15x4xf32>
    tpu.vector_store %arg14[%c0_20, %c0_21, %c20], %15 {strides = array<i32>} : memref<16x16x36xf32, #tpu.memory_space<vmem>>, vector<16x15x4xf32>,
    %17 = vector.extract_strided_slice %1 {offsets = [1, 0, 0], sizes = [15, 15, 4], strides = [1, 1, 1]} : vector<16x16x4xf32> to vector<15x15x4xf32>
    %c0_22 = arith.constant 0 : index
    %c1_23 = arith.constant 1 : index
    %c24 = arith.constant 24 : index
    %18 = vector.load %arg14[%c0_22, %c1_23, %c24] : memref<16x16x36xf32, #tpu.memory_space<vmem>>, vector<15x15x4xf32>
    tpu.vector_store %arg14[%c0_22, %c1_23, %c24], %17 {strides = array<i32>} : memref<16x16x36xf32, #tpu.memory_space<vmem>>, vector<15x15x4xf32>,
    %19 = vector.extract_strided_slice %1 {offsets = [1, 0, 0], sizes = [15, 16, 4], strides = [1, 1, 1]} : vector<16x16x4xf32> to vector<15x16x4xf32>
    %c0_24 = arith.constant 0 : index
    %c0_25 = arith.constant 0 : index
    %c28 = arith.constant 28 : index
    %20 = vector.load %arg14[%c0_24, %c0_25, %c28] : memref<16x16x36xf32, #tpu.memory_space<vmem>>, vector<15x16x4xf32>
    tpu.vector_store %arg14[%c0_24, %c0_25, %c28], %19 {strides = array<i32>} : memref<16x16x36xf32, #tpu.memory_space<vmem>>, vector<15x16x4xf32>,
    %21 = vector.extract_strided_slice %1 {offsets = [1, 1, 0], sizes = [15, 15, 4], strides = [1, 1, 1]} : vector<16x16x4xf32> to vector<15x15x4xf32>
    %c0_26 = arith.constant 0 : index
    %c0_27 = arith.constant 0 : index
    %c32 = arith.constant 32 : index
    %22 = vector.load %arg14[%c0_26, %c0_27, %c32] : memref<16x16x36xf32, #tpu.memory_space<vmem>>, vector<15x15x4xf32>
    tpu.vector_store %arg14[%c0_26, %c0_27, %c32], %21 {strides = array<i32>} : memref<16x16x36xf32, #tpu.memory_space<vmem>>, vector<15x15x4xf32>,
    %c0_28 = arith.constant 0 : index
    %c0_29 = arith.constant 0 : index
    %c0_30 = arith.constant 0 : index
    %23 = vector.load %arg14[%c0_28, %c0_29, %c0_30] : memref<16x16x36xf32, #tpu.memory_space<vmem>>, vector<16x16x36xf32>
    %24 = vector.shape_cast %23 : vector<16x16x36xf32> to vector<256x36xf32>
    %cst_31 = arith.constant dense<0.000000e+00> : vector<256x8xf32>
    %25 = tpu.matmul %24, %2, %cst_31 {dimension_numbers = #tpu.dot_dimension_numbers<[1], [0], [0], [1], [0, 0, 1, 1], [], []>} : vector<256x36xf32>, vector<36x8xf32>, vector<256x8xf32> -> vector<256x8xf32>
    %26 = vector.broadcast %3 : vector<1x8xf32> to vector<256x8xf32>
    %27 = arith.addf %25, %26 : vector<256x8xf32>
    %cst_32 = arith.constant 0.000000e+00 : f32
    %28 = vector.broadcast %cst_32 : f32 to vector<256x8xf32>
    %29 = arith.maximumf %27, %28 : vector<256x8xf32>
    %c0_33 = arith.constant 0 : index
    %c0_34 = arith.constant 0 : index
    %30 = vector.load %arg6[%c0_33, %c0_34] : memref<64x256xf32, #tpu.memory_space<vmem>>, vector<64x256xf32>
    %cst_35 = arith.constant dense<0.000000e+00> : vector<64x8xf32>
    %31 = tpu.matmul %30, %29, %cst_35 {dimension_numbers = #tpu.dot_dimension_numbers<[1], [0], [0], [1], [0, 0, 1, 1], [], []>} : vector<64x256xf32>, vector<256x8xf32>, vector<64x8xf32> -> vector<64x8xf32>
    %32 = vector.shape_cast %31 : vector<64x8xf32> to vector<8x8x8xf32>
    %c0_36 = arith.constant 0 : index
    %c0_37 = arith.constant 0 : index
    %33 = vector.load %arg7[%c0_36, %c0_37] : memref<72x16xf32, #tpu.memory_space<vmem>>, vector<72x16xf32>
    %c0_38 = arith.constant 0 : index
    %c0_39 = arith.constant 0 : index
    %34 = vector.load %arg8[%c0_38, %c0_39] : memref<1x16xf32, #tpu.memory_space<vmem>>, vector<1x16xf32>
    %cst_40 = arith.constant 0.000000e+00 : f32
    %35 = vector.broadcast %cst_40 : f32 to vector<8x8x72xf32>
    %c0_41 = arith.constant 0 : index
    %c0_42 = arith.constant 0 : index
    %c0_43 = arith.constant 0 : index
    %36 = vector.load %arg15[%c0_41, %c0_42, %c0_43] : memref<8x8x72xf32, #tpu.memory_space<vmem>>, vector<8x8x72xf32>
    tpu.vector_store %arg15[%c0_41, %c0_42, %c0_43], %35 {strides = array<i32>} : memref<8x8x72xf32, #tpu.memory_space<vmem>>, vector<8x8x72xf32>,
    %37 = vector.extract_strided_slice %32 {offsets = [0, 0, 0], sizes = [7, 7, 8], strides = [1, 1, 1]} : vector<8x8x8xf32> to vector<7x7x8xf32>
    %c1_44 = arith.constant 1 : index
    %c1_45 = arith.constant 1 : index
    %c0_46 = arith.constant 0 : index
    %38 = vector.load %arg15[%c1_44, %c1_45, %c0_46] : memref<8x8x72xf32, #tpu.memory_space<vmem>>, vector<7x7x8xf32>
    tpu.vector_store %arg15[%c1_44, %c1_45, %c0_46], %37 {strides = array<i32>} : memref<8x8x72xf32, #tpu.memory_space<vmem>>, vector<7x7x8xf32>,
    %39 = vector.extract_strided_slice %32 {offsets = [0, 0, 0], sizes = [7, 8, 8], strides = [1, 1, 1]} : vector<8x8x8xf32> to vector<7x8x8xf32>
    %c1_47 = arith.constant 1 : index
    %c0_48 = arith.constant 0 : index
    %c8_49 = arith.constant 8 : index
    %40 = vector.load %arg15[%c1_47, %c0_48, %c8_49] : memref<8x8x72xf32, #tpu.memory_space<vmem>>, vector<7x8x8xf32>
    tpu.vector_store %arg15[%c1_47, %c0_48, %c8_49], %39 {strides = array<i32>} : memref<8x8x72xf32, #tpu.memory_space<vmem>>, vector<7x8x8xf32>,
    %41 = vector.extract_strided_slice %32 {offsets = [0, 1, 0], sizes = [7, 7, 8], strides = [1, 1, 1]} : vector<8x8x8xf32> to vector<7x7x8xf32>
    %c1_50 = arith.constant 1 : index
    %c0_51 = arith.constant 0 : index
    %c16_52 = arith.constant 16 : index
    %42 = vector.load %arg15[%c1_50, %c0_51, %c16_52] : memref<8x8x72xf32, #tpu.memory_space<vmem>>, vector<7x7x8xf32>
    tpu.vector_store %arg15[%c1_50, %c0_51, %c16_52], %41 {strides = array<i32>} : memref<8x8x72xf32, #tpu.memory_space<vmem>>, vector<7x7x8xf32>,
    %43 = vector.extract_strided_slice %32 {offsets = [0, 0, 0], sizes = [8, 7, 8], strides = [1, 1, 1]} : vector<8x8x8xf32> to vector<8x7x8xf32>
    %c0_53 = arith.constant 0 : index
    %c1_54 = arith.constant 1 : index
    %c24_55 = arith.constant 24 : index
    %44 = vector.load %arg15[%c0_53, %c1_54, %c24_55] : memref<8x8x72xf32, #tpu.memory_space<vmem>>, vector<8x7x8xf32>
    tpu.vector_store %arg15[%c0_53, %c1_54, %c24_55], %43 {strides = array<i32>} : memref<8x8x72xf32, #tpu.memory_space<vmem>>, vector<8x7x8xf32>,
    %c0_56 = arith.constant 0 : index
    %c0_57 = arith.constant 0 : index
    %c32_58 = arith.constant 32 : index
    %45 = vector.load %arg15[%c0_56, %c0_57, %c32_58] : memref<8x8x72xf32, #tpu.memory_space<vmem>>, vector<8x8x8xf32>
    tpu.vector_store %arg15[%c0_56, %c0_57, %c32_58], %32 {strides = array<i32>} : memref<8x8x72xf32, #tpu.memory_space<vmem>>, vector<8x8x8xf32>,
    %46 = vector.extract_strided_slice %32 {offsets = [0, 1, 0], sizes = [8, 7, 8], strides = [1, 1, 1]} : vector<8x8x8xf32> to vector<8x7x8xf32>
    %c0_59 = arith.constant 0 : index
    %c0_60 = arith.constant 0 : index
    %c40 = arith.constant 40 : index
    %47 = vector.load %arg15[%c0_59, %c0_60, %c40] : memref<8x8x72xf32, #tpu.memory_space<vmem>>, vector<8x7x8xf32>
    tpu.vector_store %arg15[%c0_59, %c0_60, %c40], %46 {strides = array<i32>} : memref<8x8x72xf32, #tpu.memory_space<vmem>>, vector<8x7x8xf32>,
    %48 = vector.extract_strided_slice %32 {offsets = [1, 0, 0], sizes = [7, 7, 8], strides = [1, 1, 1]} : vector<8x8x8xf32> to vector<7x7x8xf32>
    %c0_61 = arith.constant 0 : index
    %c1_62 = arith.constant 1 : index
    %c48 = arith.constant 48 : index
    %49 = vector.load %arg15[%c0_61, %c1_62, %c48] : memref<8x8x72xf32, #tpu.memory_space<vmem>>, vector<7x7x8xf32>
    tpu.vector_store %arg15[%c0_61, %c1_62, %c48], %48 {strides = array<i32>} : memref<8x8x72xf32, #tpu.memory_space<vmem>>, vector<7x7x8xf32>,
    %50 = vector.extract_strided_slice %32 {offsets = [1, 0, 0], sizes = [7, 8, 8], strides = [1, 1, 1]} : vector<8x8x8xf32> to vector<7x8x8xf32>
    %c0_63 = arith.constant 0 : index
    %c0_64 = arith.constant 0 : index
    %c56 = arith.constant 56 : index
    %51 = vector.load %arg15[%c0_63, %c0_64, %c56] : memref<8x8x72xf32, #tpu.memory_space<vmem>>, vector<7x8x8xf32>
    tpu.vector_store %arg15[%c0_63, %c0_64, %c56], %50 {strides = array<i32>} : memref<8x8x72xf32, #tpu.memory_space<vmem>>, vector<7x8x8xf32>,
    %52 = vector.extract_strided_slice %32 {offsets = [1, 1, 0], sizes = [7, 7, 8], strides = [1, 1, 1]} : vector<8x8x8xf32> to vector<7x7x8xf32>
    %c0_65 = arith.constant 0 : index
    %c0_66 = arith.constant 0 : index
    %c64 = arith.constant 64 : index
    %53 = vector.load %arg15[%c0_65, %c0_66, %c64] : memref<8x8x72xf32, #tpu.memory_space<vmem>>, vector<7x7x8xf32>
    tpu.vector_store %arg15[%c0_65, %c0_66, %c64], %52 {strides = array<i32>} : memref<8x8x72xf32, #tpu.memory_space<vmem>>, vector<7x7x8xf32>,
    %c0_67 = arith.constant 0 : index
    %c0_68 = arith.constant 0 : index
    %c0_69 = arith.constant 0 : index
    %54 = vector.load %arg15[%c0_67, %c0_68, %c0_69] : memref<8x8x72xf32, #tpu.memory_space<vmem>>, vector<8x8x72xf32>
    %55 = vector.shape_cast %54 : vector<8x8x72xf32> to vector<64x72xf32>
    %cst_70 = arith.constant dense<0.000000e+00> : vector<64x16xf32>
    %56 = tpu.matmul %55, %33, %cst_70 {dimension_numbers = #tpu.dot_dimension_numbers<[1], [0], [0], [1], [0, 0, 1, 1], [], []>} : vector<64x72xf32>, vector<72x16xf32>, vector<64x16xf32> -> vector<64x16xf32>
    %57 = vector.broadcast %34 : vector<1x16xf32> to vector<64x16xf32>
    %58 = arith.addf %56, %57 : vector<64x16xf32>
    %cst_71 = arith.constant 0.000000e+00 : f32
    %59 = vector.broadcast %cst_71 : f32 to vector<64x16xf32>
    %60 = arith.maximumf %58, %59 : vector<64x16xf32>
    %c0_72 = arith.constant 0 : index
    %c0_73 = arith.constant 0 : index
    %61 = vector.load %arg9[%c0_72, %c0_73] : memref<16x64xf32, #tpu.memory_space<vmem>>, vector<16x64xf32>
    %cst_74 = arith.constant dense<0.000000e+00> : vector<16x16xf32>
    %62 = tpu.matmul %61, %60, %cst_74 {dimension_numbers = #tpu.dot_dimension_numbers<[1], [0], [0], [1], [0, 0, 1, 1], [], []>} : vector<16x64xf32>, vector<64x16xf32>, vector<16x16xf32> -> vector<16x16xf32>
    %63 = vector.shape_cast %62 : vector<16x16xf32> to vector<4x4x16xf32>
    %c0_75 = arith.constant 0 : index
    %c0_76 = arith.constant 0 : index
    %c0_77 = arith.constant 0 : index
    %64 = vector.load %arg2[%c0_75, %c0_76, %c0_77] : memref<1x16x16xf32, #tpu.memory_space<vmem>>, vector<1x16x16xf32>
    %65 = vector.shape_cast %64 : vector<1x16x16xf32> to vector<16x16xf32>
    %c0_78 = arith.constant 0 : index
    %c0_79 = arith.constant 0 : index
    %c0_80 = arith.constant 0 : index
    %66 = vector.load %arg3[%c0_78, %c0_79, %c0_80] : memref<1x16x16xf32, #tpu.memory_space<vmem>>, vector<1x16x16xf32>
    %67 = vector.shape_cast %66 : vector<1x16x16xf32> to vector<16x16xf32>
    %68 = vector.shape_cast %65 : vector<16x16xf32> to vector<4x4x16xf32>
    %c0_81 = arith.constant 0 : index
    %c0_82 = arith.constant 0 : index
    %69 = vector.load %arg10[%c0_81, %c0_82] : memref<288x64xf32, #tpu.memory_space<vmem>>, vector<288x64xf32>
    %c0_83 = arith.constant 0 : index
    %c0_84 = arith.constant 0 : index
    %70 = vector.load %arg11[%c0_83, %c0_84] : memref<1x64xf32, #tpu.memory_space<vmem>>, vector<1x64xf32>
    %cst_85 = arith.constant 0.000000e+00 : f32
    %71 = vector.broadcast %cst_85 : f32 to vector<4x4x288xf32>
    %c0_86 = arith.constant 0 : index
    %c0_87 = arith.constant 0 : index
    %c0_88 = arith.constant 0 : index
    %72 = vector.load %arg16[%c0_86, %c0_87, %c0_88] : memref<4x4x288xf32, #tpu.memory_space<vmem>>, vector<4x4x288xf32>
    tpu.vector_store %arg16[%c0_86, %c0_87, %c0_88], %71 {strides = array<i32>} : memref<4x4x288xf32, #tpu.memory_space<vmem>>, vector<4x4x288xf32>,
    %73 = vector.extract_strided_slice %63 {offsets = [0, 0, 0], sizes = [3, 3, 16], strides = [1, 1, 1]} : vector<4x4x16xf32> to vector<3x3x16xf32>
    %c1_89 = arith.constant 1 : index
    %c1_90 = arith.constant 1 : index
    %c0_91 = arith.constant 0 : index
    %74 = vector.load %arg16[%c1_89, %c1_90, %c0_91] : memref<4x4x288xf32, #tpu.memory_space<vmem>>, vector<3x3x16xf32>
    tpu.vector_store %arg16[%c1_89, %c1_90, %c0_91], %73 {strides = array<i32>} : memref<4x4x288xf32, #tpu.memory_space<vmem>>, vector<3x3x16xf32>,
    %75 = vector.extract_strided_slice %68 {offsets = [0, 0, 0], sizes = [3, 3, 16], strides = [1, 1, 1]} : vector<4x4x16xf32> to vector<3x3x16xf32>
    %c1_92 = arith.constant 1 : index
    %c1_93 = arith.constant 1 : index
    %c16_94 = arith.constant 16 : index
    %76 = vector.load %arg16[%c1_92, %c1_93, %c16_94] : memref<4x4x288xf32, #tpu.memory_space<vmem>>, vector<3x3x16xf32>
    tpu.vector_store %arg16[%c1_92, %c1_93, %c16_94], %75 {strides = array<i32>} : memref<4x4x288xf32, #tpu.memory_space<vmem>>, vector<3x3x16xf32>,
    %77 = vector.extract_strided_slice %63 {offsets = [0, 0, 0], sizes = [3, 4, 16], strides = [1, 1, 1]} : vector<4x4x16xf32> to vector<3x4x16xf32>
    %c1_95 = arith.constant 1 : index
    %c0_96 = arith.constant 0 : index
    %c32_97 = arith.constant 32 : index
    %78 = vector.load %arg16[%c1_95, %c0_96, %c32_97] : memref<4x4x288xf32, #tpu.memory_space<vmem>>, vector<3x4x16xf32>
    tpu.vector_store %arg16[%c1_95, %c0_96, %c32_97], %77 {strides = array<i32>} : memref<4x4x288xf32, #tpu.memory_space<vmem>>, vector<3x4x16xf32>,
    %79 = vector.extract_strided_slice %68 {offsets = [0, 0, 0], sizes = [3, 4, 16], strides = [1, 1, 1]} : vector<4x4x16xf32> to vector<3x4x16xf32>
    %c1_98 = arith.constant 1 : index
    %c0_99 = arith.constant 0 : index
    %c48_100 = arith.constant 48 : index
    %80 = vector.load %arg16[%c1_98, %c0_99, %c48_100] : memref<4x4x288xf32, #tpu.memory_space<vmem>>, vector<3x4x16xf32>
    tpu.vector_store %arg16[%c1_98, %c0_99, %c48_100], %79 {strides = array<i32>} : memref<4x4x288xf32, #tpu.memory_space<vmem>>, vector<3x4x16xf32>,
    %81 = vector.extract_strided_slice %63 {offsets = [0, 1, 0], sizes = [3, 3, 16], strides = [1, 1, 1]} : vector<4x4x16xf32> to vector<3x3x16xf32>
    %c1_101 = arith.constant 1 : index
    %c0_102 = arith.constant 0 : index
    %c64_103 = arith.constant 64 : index
    %82 = vector.load %arg16[%c1_101, %c0_102, %c64_103] : memref<4x4x288xf32, #tpu.memory_space<vmem>>, vector<3x3x16xf32>
    tpu.vector_store %arg16[%c1_101, %c0_102, %c64_103], %81 {strides = array<i32>} : memref<4x4x288xf32, #tpu.memory_space<vmem>>, vector<3x3x16xf32>,
    %83 = vector.extract_strided_slice %68 {offsets = [0, 1, 0], sizes = [3, 3, 16], strides = [1, 1, 1]} : vector<4x4x16xf32> to vector<3x3x16xf32>
    %c1_104 = arith.constant 1 : index
    %c0_105 = arith.constant 0 : index
    %c80 = arith.constant 80 : index
    %84 = vector.load %arg16[%c1_104, %c0_105, %c80] : memref<4x4x288xf32, #tpu.memory_space<vmem>>, vector<3x3x16xf32>
    tpu.vector_store %arg16[%c1_104, %c0_105, %c80], %83 {strides = array<i32>} : memref<4x4x288xf32, #tpu.memory_space<vmem>>, vector<3x3x16xf32>,
    %85 = vector.extract_strided_slice %63 {offsets = [0, 0, 0], sizes = [4, 3, 16], strides = [1, 1, 1]} : vector<4x4x16xf32> to vector<4x3x16xf32>
    %c0_106 = arith.constant 0 : index
    %c1_107 = arith.constant 1 : index
    %c96 = arith.constant 96 : index
    %86 = vector.load %arg16[%c0_106, %c1_107, %c96] : memref<4x4x288xf32, #tpu.memory_space<vmem>>, vector<4x3x16xf32>
    tpu.vector_store %arg16[%c0_106, %c1_107, %c96], %85 {strides = array<i32>} : memref<4x4x288xf32, #tpu.memory_space<vmem>>, vector<4x3x16xf32>,
    %87 = vector.extract_strided_slice %68 {offsets = [0, 0, 0], sizes = [4, 3, 16], strides = [1, 1, 1]} : vector<4x4x16xf32> to vector<4x3x16xf32>
    %c0_108 = arith.constant 0 : index
    %c1_109 = arith.constant 1 : index
    %c112 = arith.constant 112 : index
    %88 = vector.load %arg16[%c0_108, %c1_109, %c112] : memref<4x4x288xf32, #tpu.memory_space<vmem>>, vector<4x3x16xf32>
    tpu.vector_store %arg16[%c0_108, %c1_109, %c112], %87 {strides = array<i32>} : memref<4x4x288xf32, #tpu.memory_space<vmem>>, vector<4x3x16xf32>,
    %c0_110 = arith.constant 0 : index
    %c0_111 = arith.constant 0 : index
    %c128 = arith.constant 128 : index
    %89 = vector.load %arg16[%c0_110, %c0_111, %c128] : memref<4x4x288xf32, #tpu.memory_space<vmem>>, vector<4x4x16xf32>
    tpu.vector_store %arg16[%c0_110, %c0_111, %c128], %63 {strides = array<i32>} : memref<4x4x288xf32, #tpu.memory_space<vmem>>, vector<4x4x16xf32>,
    %c0_112 = arith.constant 0 : index
    %c0_113 = arith.constant 0 : index
    %c144 = arith.constant 144 : index
    %90 = vector.load %arg16[%c0_112, %c0_113, %c144] : memref<4x4x288xf32, #tpu.memory_space<vmem>>, vector<4x4x16xf32>
    tpu.vector_store %arg16[%c0_112, %c0_113, %c144], %68 {strides = array<i32>} : memref<4x4x288xf32, #tpu.memory_space<vmem>>, vector<4x4x16xf32>,
    %91 = vector.extract_strided_slice %63 {offsets = [0, 1, 0], sizes = [4, 3, 16], strides = [1, 1, 1]} : vector<4x4x16xf32> to vector<4x3x16xf32>
    %c0_114 = arith.constant 0 : index
    %c0_115 = arith.constant 0 : index
    %c160 = arith.constant 160 : index
    %92 = vector.load %arg16[%c0_114, %c0_115, %c160] : memref<4x4x288xf32, #tpu.memory_space<vmem>>, vector<4x3x16xf32>
    tpu.vector_store %arg16[%c0_114, %c0_115, %c160], %91 {strides = array<i32>} : memref<4x4x288xf32, #tpu.memory_space<vmem>>, vector<4x3x16xf32>,
    %93 = vector.extract_strided_slice %68 {offsets = [0, 1, 0], sizes = [4, 3, 16], strides = [1, 1, 1]} : vector<4x4x16xf32> to vector<4x3x16xf32>
    %c0_116 = arith.constant 0 : index
    %c0_117 = arith.constant 0 : index
    %c176 = arith.constant 176 : index
    %94 = vector.load %arg16[%c0_116, %c0_117, %c176] : memref<4x4x288xf32, #tpu.memory_space<vmem>>, vector<4x3x16xf32>
    tpu.vector_store %arg16[%c0_116, %c0_117, %c176], %93 {strides = array<i32>} : memref<4x4x288xf32, #tpu.memory_space<vmem>>, vector<4x3x16xf32>,
    %95 = vector.extract_strided_slice %63 {offsets = [1, 0, 0], sizes = [3, 3, 16], strides = [1, 1, 1]} : vector<4x4x16xf32> to vector<3x3x16xf32>
    %c0_118 = arith.constant 0 : index
    %c1_119 = arith.constant 1 : index
    %c192 = arith.constant 192 : index
    %96 = vector.load %arg16[%c0_118, %c1_119, %c192] : memref<4x4x288xf32, #tpu.memory_space<vmem>>, vector<3x3x16xf32>
    tpu.vector_store %arg16[%c0_118, %c1_119, %c192], %95 {strides = array<i32>} : memref<4x4x288xf32, #tpu.memory_space<vmem>>, vector<3x3x16xf32>,
    %97 = vector.extract_strided_slice %68 {offsets = [1, 0, 0], sizes = [3, 3, 16], strides = [1, 1, 1]} : vector<4x4x16xf32> to vector<3x3x16xf32>
    %c0_120 = arith.constant 0 : index
    %c1_121 = arith.constant 1 : index
    %c208 = arith.constant 208 : index
    %98 = vector.load %arg16[%c0_120, %c1_121, %c208] : memref<4x4x288xf32, #tpu.memory_space<vmem>>, vector<3x3x16xf32>
    tpu.vector_store %arg16[%c0_120, %c1_121, %c208], %97 {strides = array<i32>} : memref<4x4x288xf32, #tpu.memory_space<vmem>>, vector<3x3x16xf32>,
    %99 = vector.extract_strided_slice %63 {offsets = [1, 0, 0], sizes = [3, 4, 16], strides = [1, 1, 1]} : vector<4x4x16xf32> to vector<3x4x16xf32>
    %c0_122 = arith.constant 0 : index
    %c0_123 = arith.constant 0 : index
    %c224 = arith.constant 224 : index
    %100 = vector.load %arg16[%c0_122, %c0_123, %c224] : memref<4x4x288xf32, #tpu.memory_space<vmem>>, vector<3x4x16xf32>
    tpu.vector_store %arg16[%c0_122, %c0_123, %c224], %99 {strides = array<i32>} : memref<4x4x288xf32, #tpu.memory_space<vmem>>, vector<3x4x16xf32>,
    %101 = vector.extract_strided_slice %68 {offsets = [1, 0, 0], sizes = [3, 4, 16], strides = [1, 1, 1]} : vector<4x4x16xf32> to vector<3x4x16xf32>
    %c0_124 = arith.constant 0 : index
    %c0_125 = arith.constant 0 : index
    %c240 = arith.constant 240 : index
    %102 = vector.load %arg16[%c0_124, %c0_125, %c240] : memref<4x4x288xf32, #tpu.memory_space<vmem>>, vector<3x4x16xf32>
    tpu.vector_store %arg16[%c0_124, %c0_125, %c240], %101 {strides = array<i32>} : memref<4x4x288xf32, #tpu.memory_space<vmem>>, vector<3x4x16xf32>,
    %103 = vector.extract_strided_slice %63 {offsets = [1, 1, 0], sizes = [3, 3, 16], strides = [1, 1, 1]} : vector<4x4x16xf32> to vector<3x3x16xf32>
    %c0_126 = arith.constant 0 : index
    %c0_127 = arith.constant 0 : index
    %c256 = arith.constant 256 : index
    %104 = vector.load %arg16[%c0_126, %c0_127, %c256] : memref<4x4x288xf32, #tpu.memory_space<vmem>>, vector<3x3x16xf32>
    tpu.vector_store %arg16[%c0_126, %c0_127, %c256], %103 {strides = array<i32>} : memref<4x4x288xf32, #tpu.memory_space<vmem>>, vector<3x3x16xf32>,
    %105 = vector.extract_strided_slice %68 {offsets = [1, 1, 0], sizes = [3, 3, 16], strides = [1, 1, 1]} : vector<4x4x16xf32> to vector<3x3x16xf32>
    %c0_128 = arith.constant 0 : index
    %c0_129 = arith.constant 0 : index
    %c272 = arith.constant 272 : index
    %106 = vector.load %arg16[%c0_128, %c0_129, %c272] : memref<4x4x288xf32, #tpu.memory_space<vmem>>, vector<3x3x16xf32>
    tpu.vector_store %arg16[%c0_128, %c0_129, %c272], %105 {strides = array<i32>} : memref<4x4x288xf32, #tpu.memory_space<vmem>>, vector<3x3x16xf32>,
    %c0_130 = arith.constant 0 : index
    %c0_131 = arith.constant 0 : index
    %c0_132 = arith.constant 0 : index
    %107 = vector.load %arg16[%c0_130, %c0_131, %c0_132] : memref<4x4x288xf32, #tpu.memory_space<vmem>>, vector<4x4x288xf32>
    %108 = vector.shape_cast %107 : vector<4x4x288xf32> to vector<16x288xf32>
    %cst_133 = arith.constant dense<0.000000e+00> : vector<16x64xf32>
    %109 = tpu.matmul %108, %69, %cst_133 {dimension_numbers = #tpu.dot_dimension_numbers<[1], [0], [0], [1], [0, 0, 1, 1], [], []>} : vector<16x288xf32>, vector<288x64xf32>, vector<16x64xf32> -> vector<16x64xf32>
    %110 = vector.broadcast %70 : vector<1x64xf32> to vector<16x64xf32>
    %111 = arith.addf %109, %110 : vector<16x64xf32>
    %112 = vector.extract_strided_slice %111 {offsets = [0, 0], sizes = [16, 16], strides = [1, 1]} : vector<16x64xf32> to vector<16x16xf32>
    %113 = arith.negf %112 : vector<16x16xf32>
    %114 = math.exp %113 : vector<16x16xf32>
    %cst_134 = arith.constant 1.000000e+00 : f32
    %115 = vector.broadcast %cst_134 : f32 to vector<16x16xf32>
    %116 = arith.addf %115, %114 : vector<16x16xf32>
    %117 = arith.divf %115, %116 : vector<16x16xf32>
    %118 = vector.extract_strided_slice %111 {offsets = [0, 16], sizes = [16, 16], strides = [1, 1]} : vector<16x64xf32> to vector<16x16xf32>
    %119 = arith.negf %118 : vector<16x16xf32>
    %120 = math.exp %119 : vector<16x16xf32>
    %cst_135 = arith.constant 1.000000e+00 : f32
    %121 = vector.broadcast %cst_135 : f32 to vector<16x16xf32>
    %122 = arith.addf %121, %120 : vector<16x16xf32>
    %123 = arith.divf %121, %122 : vector<16x16xf32>
    %124 = vector.extract_strided_slice %111 {offsets = [0, 32], sizes = [16, 16], strides = [1, 1]} : vector<16x64xf32> to vector<16x16xf32>
    %125 = arith.negf %124 : vector<16x16xf32>
    %126 = math.exp %125 : vector<16x16xf32>
    %cst_136 = arith.constant 1.000000e+00 : f32
    %127 = vector.broadcast %cst_136 : f32 to vector<16x16xf32>
    %128 = arith.addf %127, %126 : vector<16x16xf32>
    %129 = arith.divf %127, %128 : vector<16x16xf32>
    %130 = vector.extract_strided_slice %111 {offsets = [0, 48], sizes = [16, 16], strides = [1, 1]} : vector<16x64xf32> to vector<16x16xf32>
    %131 = math.tanh %130 : vector<16x16xf32>
    %132 = arith.mulf %123, %67 : vector<16x16xf32>
    %133 = arith.mulf %117, %131 : vector<16x16xf32>
    %134 = arith.addf %132, %133 : vector<16x16xf32>
    %135 = math.tanh %134 : vector<16x16xf32>
    %136 = arith.mulf %129, %135 : vector<16x16xf32>
    %c0_137 = arith.constant 0 : index
    %c0_138 = arith.constant 0 : index
    %c0_139 = arith.constant 0 : index
    %137 = vector.load %arg12[%c0_137, %c0_138, %c0_139] : memref<1x16x16xf32, #tpu.memory_space<vmem>>, vector<1x16x16xf32>
    %138 = vector.shape_cast %137 : vector<1x16x16xf32> to vector<16x16xf32>
    %139 = vector.shape_cast %136 : vector<16x16xf32> to vector<1x16x16xf32>
    tpu.vector_store %arg12[%c0_137, %c0_138, %c0_139], %139 {strides = array<i32>} : memref<1x16x16xf32, #tpu.memory_space<vmem>>, vector<1x16x16xf32>,
    %c0_140 = arith.constant 0 : index
    %c0_141 = arith.constant 0 : index
    %c0_142 = arith.constant 0 : index
    %140 = vector.load %arg13[%c0_140, %c0_141, %c0_142] : memref<1x16x16xf32, #tpu.memory_space<vmem>>, vector<1x16x16xf32>
    %141 = vector.shape_cast %140 : vector<1x16x16xf32> to vector<16x16xf32>
    %142 = vector.shape_cast %134 : vector<16x16xf32> to vector<1x16x16xf32>
    tpu.vector_store %arg13[%c0_140, %c0_141, %c0_142], %142 {strides = array<i32>} : memref<1x16x16xf32, #tpu.memory_space<vmem>>, vector<1x16x16xf32>,
    return
  }
  func.func @transform_0(%arg0: i32) -> (i32, i32, i32, i32) {
    %c0_i32 = arith.constant 0 : i32
    %c0_i32_0 = arith.constant 0 : i32
    %c0_i32_1 = arith.constant 0 : i32
    %c0_i32_2 = arith.constant 0 : i32
    return %arg0, %c0_i32, %c0_i32_0, %c0_i32_1 : i32, i32, i32, i32
  }
  func.func @transform_1(%arg0: i32) -> (i32, i32, i32) {
    %c0_i32 = arith.constant 0 : i32
    %c0_i32_0 = arith.constant 0 : i32
    %c0_i32_1 = arith.constant 0 : i32
    return %arg0, %c0_i32, %c0_i32_0 : i32, i32, i32
  }
  func.func @transform_2(%arg0: i32) -> (i32, i32, i32) {
    %c0_i32 = arith.constant 0 : i32
    %c0_i32_0 = arith.constant 0 : i32
    %c0_i32_1 = arith.constant 0 : i32
    return %arg0, %c0_i32, %c0_i32_0 : i32, i32, i32
  }
  func.func @transform_3(%arg0: i32) -> (i32, i32) {
    %c0_i32 = arith.constant 0 : i32
    %c0_i32_0 = arith.constant 0 : i32
    %c0_i32_1 = arith.constant 0 : i32
    return %c0_i32, %c0_i32_0 : i32, i32
  }
  func.func @transform_4(%arg0: i32) -> (i32, i32) {
    %c0_i32 = arith.constant 0 : i32
    %c0_i32_0 = arith.constant 0 : i32
    %c0_i32_1 = arith.constant 0 : i32
    return %c0_i32, %c0_i32_0 : i32, i32
  }
  func.func @transform_5(%arg0: i32) -> (i32, i32) {
    %c0_i32 = arith.constant 0 : i32
    %c0_i32_0 = arith.constant 0 : i32
    %c0_i32_1 = arith.constant 0 : i32
    return %c0_i32, %c0_i32_0 : i32, i32
  }
  func.func @transform_6(%arg0: i32) -> (i32, i32) {
    %c0_i32 = arith.constant 0 : i32
    %c0_i32_0 = arith.constant 0 : i32
    %c0_i32_1 = arith.constant 0 : i32
    return %c0_i32, %c0_i32_0 : i32, i32
  }
  func.func @transform_7(%arg0: i32) -> (i32, i32) {
    %c0_i32 = arith.constant 0 : i32
    %c0_i32_0 = arith.constant 0 : i32
    %c0_i32_1 = arith.constant 0 : i32
    return %c0_i32, %c0_i32_0 : i32, i32
  }
  func.func @transform_8(%arg0: i32) -> (i32, i32) {
    %c0_i32 = arith.constant 0 : i32
    %c0_i32_0 = arith.constant 0 : i32
    %c0_i32_1 = arith.constant 0 : i32
    return %c0_i32, %c0_i32_0 : i32, i32
  }
  func.func @transform_9(%arg0: i32) -> (i32, i32) {
    %c0_i32 = arith.constant 0 : i32
    %c0_i32_0 = arith.constant 0 : i32
    %c0_i32_1 = arith.constant 0 : i32
    return %c0_i32, %c0_i32_0 : i32, i32
  }
  func.func @transform_10(%arg0: i32) -> (i32, i32) {
    %c0_i32 = arith.constant 0 : i32
    %c0_i32_0 = arith.constant 0 : i32
    %c0_i32_1 = arith.constant 0 : i32
    return %c0_i32, %c0_i32_0 : i32, i32
  }
  func.func @transform_11(%arg0: i32) -> (i32, i32, i32) {
    %c0_i32 = arith.constant 0 : i32
    %c0_i32_0 = arith.constant 0 : i32
    %c0_i32_1 = arith.constant 0 : i32
    return %arg0, %c0_i32, %c0_i32_0 : i32, i32, i32
  }
  func.func @transform_12(%arg0: i32) -> (i32, i32, i32) {
    %c0_i32 = arith.constant 0 : i32
    %c0_i32_0 = arith.constant 0 : i32
    %c0_i32_1 = arith.constant 0 : i32
    return %arg0, %c0_i32, %c0_i32_0 : i32, i32, i32
  }
}

module attributes {stable_mosaic.version = 11 : i64} {
  func.func @kernel(%arg0: i32, %arg1: memref<1x16x16x4xf32, #tpu.memory_space<vmem>>, %arg2: memref<1x16x16x4xf32, #tpu.memory_space<vmem>>, %arg3: memref<1x16x16xf32, #tpu.memory_space<vmem>>, %arg4: memref<1x16x16xf32, #tpu.memory_space<vmem>>, %arg5: memref<36x8xf32, #tpu.memory_space<vmem>>, %arg6: memref<1x8xf32, #tpu.memory_space<vmem>>, %arg7: memref<64x256xf32, #tpu.memory_space<vmem>>, %arg8: memref<72x16xf32, #tpu.memory_space<vmem>>, %arg9: memref<1x16xf32, #tpu.memory_space<vmem>>, %arg10: memref<16x64xf32, #tpu.memory_space<vmem>>, %arg11: memref<288x64xf32, #tpu.memory_space<vmem>>, %arg12: memref<1x64xf32, #tpu.memory_space<vmem>>, %arg13: memref<64x16xf32, #tpu.memory_space<vmem>>, %arg14: memref<144x8xf32, #tpu.memory_space<vmem>>, %arg15: memref<1x8xf32, #tpu.memory_space<vmem>>, %arg16: memref<256x64xf32, #tpu.memory_space<vmem>>, %arg17: memref<72x4xf32, #tpu.memory_space<vmem>>, %arg18: memref<1x4xf32, #tpu.memory_space<vmem>>, %arg19: memref<1x16x16x4xf32, #tpu.memory_space<vmem>>, %arg20: memref<1x16x16xf32, #tpu.memory_space<vmem>>, %arg21: memref<1x16x16xf32, #tpu.memory_space<vmem>>, %arg22: memref<16x16x36xf32, #tpu.memory_space<vmem>>, %arg23: memref<8x8x72xf32, #tpu.memory_space<vmem>>, %arg24: memref<4x4x288xf32, #tpu.memory_space<vmem>>, %arg25: memref<8x8x144xf32, #tpu.memory_space<vmem>>, %arg26: memref<16x16x72xf32, #tpu.memory_space<vmem>>) attributes {dimension_semantics = [#tpu.dimension_semantics<parallel>], iteration_bounds = array<i64: 2>, scalar_prefetch = 0 : i64, scratch_operands = 5 : i64, tpu.core_type = #tpu.core_type<tc>, window_params = [{transform_indices = @transform_0, window_bounds = array<i64: 1, 16, 16, 4>}, {transform_indices = @transform_1, window_bounds = array<i64: 1, 16, 16, 4>}, {transform_indices = @transform_2, window_bounds = array<i64: 1, 16, 16>}, {transform_indices = @transform_3, window_bounds = array<i64: 1, 16, 16>}, {pipeline_mode = #tpu.pipeline_mode<synchronous>, transform_indices = @transform_4, window_bounds = array<i64: 36, 8>}, {pipeline_mode = #tpu.pipeline_mode<synchronous>, transform_indices = @transform_5, window_bounds = array<i64: 1, 8>}, {pipeline_mode = #tpu.pipeline_mode<synchronous>, transform_indices = @transform_6, window_bounds = array<i64: 64, 256>}, {pipeline_mode = #tpu.pipeline_mode<synchronous>, transform_indices = @transform_7, window_bounds = array<i64: 72, 16>}, {pipeline_mode = #tpu.pipeline_mode<synchronous>, transform_indices = @transform_8, window_bounds = array<i64: 1, 16>}, {pipeline_mode = #tpu.pipeline_mode<synchronous>, transform_indices = @transform_9, window_bounds = array<i64: 16, 64>}, {pipeline_mode = #tpu.pipeline_mode<synchronous>, transform_indices = @transform_10, window_bounds = array<i64: 288, 64>}, {pipeline_mode = #tpu.pipeline_mode<synchronous>, transform_indices = @transform_11, window_bounds = array<i64: 1, 64>}, {pipeline_mode = #tpu.pipeline_mode<synchronous>, transform_indices = @transform_12, window_bounds = array<i64: 64, 16>}, {pipeline_mode = #tpu.pipeline_mode<synchronous>, transform_indices = @transform_13, window_bounds = array<i64: 144, 8>}, {pipeline_mode = #tpu.pipeline_mode<synchronous>, transform_indices = @transform_14, window_bounds = array<i64: 1, 8>}, {pipeline_mode = #tpu.pipeline_mode<synchronous>, transform_indices = @transform_15, window_bounds = array<i64: 256, 64>}, {pipeline_mode = #tpu.pipeline_mode<synchronous>, transform_indices = @transform_16, window_bounds = array<i64: 72, 4>}, {pipeline_mode = #tpu.pipeline_mode<synchronous>, transform_indices = @transform_17, window_bounds = array<i64: 1, 4>}, {transform_indices = @transform_18, window_bounds = array<i64: 1, 16, 16, 4>}, {transform_indices = @transform_19, window_bounds = array<i64: 1, 16, 16>}, {transform_indices = @transform_20, window_bounds = array<i64: 1, 16, 16>}]} {
    %c0 = arith.constant 0 : index
    %c0_0 = arith.constant 0 : index
    %c0_1 = arith.constant 0 : index
    %c0_2 = arith.constant 0 : index
    %0 = vector.load %arg1[%c0, %c0_0, %c0_1, %c0_2] : memref<1x16x16x4xf32, #tpu.memory_space<vmem>>, vector<1x16x16x4xf32>
    %1 = vector.shape_cast %0 : vector<1x16x16x4xf32> to vector<16x16x4xf32>
    %c0_3 = arith.constant 0 : index
    %c0_4 = arith.constant 0 : index
    %2 = vector.load %arg5[%c0_3, %c0_4] : memref<36x8xf32, #tpu.memory_space<vmem>>, vector<36x8xf32>
    %c0_5 = arith.constant 0 : index
    %c0_6 = arith.constant 0 : index
    %3 = vector.load %arg6[%c0_5, %c0_6] : memref<1x8xf32, #tpu.memory_space<vmem>>, vector<1x8xf32>
    %cst = arith.constant 0.000000e+00 : f32
    %4 = vector.broadcast %cst : f32 to vector<16x16x36xf32>
    %c0_7 = arith.constant 0 : index
    %c0_8 = arith.constant 0 : index
    %c0_9 = arith.constant 0 : index
    %5 = vector.load %arg22[%c0_7, %c0_8, %c0_9] : memref<16x16x36xf32, #tpu.memory_space<vmem>>, vector<16x16x36xf32>
    tpu.vector_store %arg22[%c0_7, %c0_8, %c0_9], %4 {strides = array<i32>} : memref<16x16x36xf32, #tpu.memory_space<vmem>>, vector<16x16x36xf32>,
    %6 = vector.extract_strided_slice %1 {offsets = [0, 0, 0], sizes = [15, 15, 4], strides = [1, 1, 1]} : vector<16x16x4xf32> to vector<15x15x4xf32>
    %c1 = arith.constant 1 : index
    %c1_10 = arith.constant 1 : index
    %c0_11 = arith.constant 0 : index
    %7 = vector.load %arg22[%c1, %c1_10, %c0_11] : memref<16x16x36xf32, #tpu.memory_space<vmem>>, vector<15x15x4xf32>
    tpu.vector_store %arg22[%c1, %c1_10, %c0_11], %6 {strides = array<i32>} : memref<16x16x36xf32, #tpu.memory_space<vmem>>, vector<15x15x4xf32>,
    %8 = vector.extract_strided_slice %1 {offsets = [0, 0, 0], sizes = [15, 16, 4], strides = [1, 1, 1]} : vector<16x16x4xf32> to vector<15x16x4xf32>
    %c1_12 = arith.constant 1 : index
    %c0_13 = arith.constant 0 : index
    %c4 = arith.constant 4 : index
    %9 = vector.load %arg22[%c1_12, %c0_13, %c4] : memref<16x16x36xf32, #tpu.memory_space<vmem>>, vector<15x16x4xf32>
    tpu.vector_store %arg22[%c1_12, %c0_13, %c4], %8 {strides = array<i32>} : memref<16x16x36xf32, #tpu.memory_space<vmem>>, vector<15x16x4xf32>,
    %10 = vector.extract_strided_slice %1 {offsets = [0, 1, 0], sizes = [15, 15, 4], strides = [1, 1, 1]} : vector<16x16x4xf32> to vector<15x15x4xf32>
    %c1_14 = arith.constant 1 : index
    %c0_15 = arith.constant 0 : index
    %c8 = arith.constant 8 : index
    %11 = vector.load %arg22[%c1_14, %c0_15, %c8] : memref<16x16x36xf32, #tpu.memory_space<vmem>>, vector<15x15x4xf32>
    tpu.vector_store %arg22[%c1_14, %c0_15, %c8], %10 {strides = array<i32>} : memref<16x16x36xf32, #tpu.memory_space<vmem>>, vector<15x15x4xf32>,
    %12 = vector.extract_strided_slice %1 {offsets = [0, 0, 0], sizes = [16, 15, 4], strides = [1, 1, 1]} : vector<16x16x4xf32> to vector<16x15x4xf32>
    %c0_16 = arith.constant 0 : index
    %c1_17 = arith.constant 1 : index
    %c12 = arith.constant 12 : index
    %13 = vector.load %arg22[%c0_16, %c1_17, %c12] : memref<16x16x36xf32, #tpu.memory_space<vmem>>, vector<16x15x4xf32>
    tpu.vector_store %arg22[%c0_16, %c1_17, %c12], %12 {strides = array<i32>} : memref<16x16x36xf32, #tpu.memory_space<vmem>>, vector<16x15x4xf32>,
    %c0_18 = arith.constant 0 : index
    %c0_19 = arith.constant 0 : index
    %c16 = arith.constant 16 : index
    %14 = vector.load %arg22[%c0_18, %c0_19, %c16] : memref<16x16x36xf32, #tpu.memory_space<vmem>>, vector<16x16x4xf32>
    tpu.vector_store %arg22[%c0_18, %c0_19, %c16], %1 {strides = array<i32>} : memref<16x16x36xf32, #tpu.memory_space<vmem>>, vector<16x16x4xf32>,
    %15 = vector.extract_strided_slice %1 {offsets = [0, 1, 0], sizes = [16, 15, 4], strides = [1, 1, 1]} : vector<16x16x4xf32> to vector<16x15x4xf32>
    %c0_20 = arith.constant 0 : index
    %c0_21 = arith.constant 0 : index
    %c20 = arith.constant 20 : index
    %16 = vector.load %arg22[%c0_20, %c0_21, %c20] : memref<16x16x36xf32, #tpu.memory_space<vmem>>, vector<16x15x4xf32>
    tpu.vector_store %arg22[%c0_20, %c0_21, %c20], %15 {strides = array<i32>} : memref<16x16x36xf32, #tpu.memory_space<vmem>>, vector<16x15x4xf32>,
    %17 = vector.extract_strided_slice %1 {offsets = [1, 0, 0], sizes = [15, 15, 4], strides = [1, 1, 1]} : vector<16x16x4xf32> to vector<15x15x4xf32>
    %c0_22 = arith.constant 0 : index
    %c1_23 = arith.constant 1 : index
    %c24 = arith.constant 24 : index
    %18 = vector.load %arg22[%c0_22, %c1_23, %c24] : memref<16x16x36xf32, #tpu.memory_space<vmem>>, vector<15x15x4xf32>
    tpu.vector_store %arg22[%c0_22, %c1_23, %c24], %17 {strides = array<i32>} : memref<16x16x36xf32, #tpu.memory_space<vmem>>, vector<15x15x4xf32>,
    %19 = vector.extract_strided_slice %1 {offsets = [1, 0, 0], sizes = [15, 16, 4], strides = [1, 1, 1]} : vector<16x16x4xf32> to vector<15x16x4xf32>
    %c0_24 = arith.constant 0 : index
    %c0_25 = arith.constant 0 : index
    %c28 = arith.constant 28 : index
    %20 = vector.load %arg22[%c0_24, %c0_25, %c28] : memref<16x16x36xf32, #tpu.memory_space<vmem>>, vector<15x16x4xf32>
    tpu.vector_store %arg22[%c0_24, %c0_25, %c28], %19 {strides = array<i32>} : memref<16x16x36xf32, #tpu.memory_space<vmem>>, vector<15x16x4xf32>,
    %21 = vector.extract_strided_slice %1 {offsets = [1, 1, 0], sizes = [15, 15, 4], strides = [1, 1, 1]} : vector<16x16x4xf32> to vector<15x15x4xf32>
    %c0_26 = arith.constant 0 : index
    %c0_27 = arith.constant 0 : index
    %c32 = arith.constant 32 : index
    %22 = vector.load %arg22[%c0_26, %c0_27, %c32] : memref<16x16x36xf32, #tpu.memory_space<vmem>>, vector<15x15x4xf32>
    tpu.vector_store %arg22[%c0_26, %c0_27, %c32], %21 {strides = array<i32>} : memref<16x16x36xf32, #tpu.memory_space<vmem>>, vector<15x15x4xf32>,
    %c0_28 = arith.constant 0 : index
    %c0_29 = arith.constant 0 : index
    %c0_30 = arith.constant 0 : index
    %23 = vector.load %arg22[%c0_28, %c0_29, %c0_30] : memref<16x16x36xf32, #tpu.memory_space<vmem>>, vector<16x16x36xf32>
    %24 = vector.shape_cast %23 : vector<16x16x36xf32> to vector<256x36xf32>
    %cst_31 = arith.constant dense<0.000000e+00> : vector<256x8xf32>
    %25 = tpu.matmul %24, %2, %cst_31 {dimension_numbers = #tpu.dot_dimension_numbers<[1], [0], [0], [1], [0, 0, 1, 1], [], []>} : vector<256x36xf32>, vector<36x8xf32>, vector<256x8xf32> -> vector<256x8xf32>
    %26 = vector.broadcast %3 : vector<1x8xf32> to vector<256x8xf32>
    %27 = arith.addf %25, %26 : vector<256x8xf32>
    %cst_32 = arith.constant 0.000000e+00 : f32
    %28 = vector.broadcast %cst_32 : f32 to vector<256x8xf32>
    %29 = arith.maximumf %27, %28 : vector<256x8xf32>
    %c0_33 = arith.constant 0 : index
    %c0_34 = arith.constant 0 : index
    %30 = vector.load %arg7[%c0_33, %c0_34] : memref<64x256xf32, #tpu.memory_space<vmem>>, vector<64x256xf32>
    %cst_35 = arith.constant dense<0.000000e+00> : vector<64x8xf32>
    %31 = tpu.matmul %30, %29, %cst_35 {dimension_numbers = #tpu.dot_dimension_numbers<[1], [0], [0], [1], [0, 0, 1, 1], [], []>} : vector<64x256xf32>, vector<256x8xf32>, vector<64x8xf32> -> vector<64x8xf32>
    %32 = vector.shape_cast %31 : vector<64x8xf32> to vector<8x8x8xf32>
    %c0_36 = arith.constant 0 : index
    %c0_37 = arith.constant 0 : index
    %33 = vector.load %arg8[%c0_36, %c0_37] : memref<72x16xf32, #tpu.memory_space<vmem>>, vector<72x16xf32>
    %c0_38 = arith.constant 0 : index
    %c0_39 = arith.constant 0 : index
    %34 = vector.load %arg9[%c0_38, %c0_39] : memref<1x16xf32, #tpu.memory_space<vmem>>, vector<1x16xf32>
    %cst_40 = arith.constant 0.000000e+00 : f32
    %35 = vector.broadcast %cst_40 : f32 to vector<8x8x72xf32>
    %c0_41 = arith.constant 0 : index
    %c0_42 = arith.constant 0 : index
    %c0_43 = arith.constant 0 : index
    %36 = vector.load %arg23[%c0_41, %c0_42, %c0_43] : memref<8x8x72xf32, #tpu.memory_space<vmem>>, vector<8x8x72xf32>
    tpu.vector_store %arg23[%c0_41, %c0_42, %c0_43], %35 {strides = array<i32>} : memref<8x8x72xf32, #tpu.memory_space<vmem>>, vector<8x8x72xf32>,
    %37 = vector.extract_strided_slice %32 {offsets = [0, 0, 0], sizes = [7, 7, 8], strides = [1, 1, 1]} : vector<8x8x8xf32> to vector<7x7x8xf32>
    %c1_44 = arith.constant 1 : index
    %c1_45 = arith.constant 1 : index
    %c0_46 = arith.constant 0 : index
    %38 = vector.load %arg23[%c1_44, %c1_45, %c0_46] : memref<8x8x72xf32, #tpu.memory_space<vmem>>, vector<7x7x8xf32>
    tpu.vector_store %arg23[%c1_44, %c1_45, %c0_46], %37 {strides = array<i32>} : memref<8x8x72xf32, #tpu.memory_space<vmem>>, vector<7x7x8xf32>,
    %39 = vector.extract_strided_slice %32 {offsets = [0, 0, 0], sizes = [7, 8, 8], strides = [1, 1, 1]} : vector<8x8x8xf32> to vector<7x8x8xf32>
    %c1_47 = arith.constant 1 : index
    %c0_48 = arith.constant 0 : index
    %c8_49 = arith.constant 8 : index
    %40 = vector.load %arg23[%c1_47, %c0_48, %c8_49] : memref<8x8x72xf32, #tpu.memory_space<vmem>>, vector<7x8x8xf32>
    tpu.vector_store %arg23[%c1_47, %c0_48, %c8_49], %39 {strides = array<i32>} : memref<8x8x72xf32, #tpu.memory_space<vmem>>, vector<7x8x8xf32>,
    %41 = vector.extract_strided_slice %32 {offsets = [0, 1, 0], sizes = [7, 7, 8], strides = [1, 1, 1]} : vector<8x8x8xf32> to vector<7x7x8xf32>
    %c1_50 = arith.constant 1 : index
    %c0_51 = arith.constant 0 : index
    %c16_52 = arith.constant 16 : index
    %42 = vector.load %arg23[%c1_50, %c0_51, %c16_52] : memref<8x8x72xf32, #tpu.memory_space<vmem>>, vector<7x7x8xf32>
    tpu.vector_store %arg23[%c1_50, %c0_51, %c16_52], %41 {strides = array<i32>} : memref<8x8x72xf32, #tpu.memory_space<vmem>>, vector<7x7x8xf32>,
    %43 = vector.extract_strided_slice %32 {offsets = [0, 0, 0], sizes = [8, 7, 8], strides = [1, 1, 1]} : vector<8x8x8xf32> to vector<8x7x8xf32>
    %c0_53 = arith.constant 0 : index
    %c1_54 = arith.constant 1 : index
    %c24_55 = arith.constant 24 : index
    %44 = vector.load %arg23[%c0_53, %c1_54, %c24_55] : memref<8x8x72xf32, #tpu.memory_space<vmem>>, vector<8x7x8xf32>
    tpu.vector_store %arg23[%c0_53, %c1_54, %c24_55], %43 {strides = array<i32>} : memref<8x8x72xf32, #tpu.memory_space<vmem>>, vector<8x7x8xf32>,
    %c0_56 = arith.constant 0 : index
    %c0_57 = arith.constant 0 : index
    %c32_58 = arith.constant 32 : index
    %45 = vector.load %arg23[%c0_56, %c0_57, %c32_58] : memref<8x8x72xf32, #tpu.memory_space<vmem>>, vector<8x8x8xf32>
    tpu.vector_store %arg23[%c0_56, %c0_57, %c32_58], %32 {strides = array<i32>} : memref<8x8x72xf32, #tpu.memory_space<vmem>>, vector<8x8x8xf32>,
    %46 = vector.extract_strided_slice %32 {offsets = [0, 1, 0], sizes = [8, 7, 8], strides = [1, 1, 1]} : vector<8x8x8xf32> to vector<8x7x8xf32>
    %c0_59 = arith.constant 0 : index
    %c0_60 = arith.constant 0 : index
    %c40 = arith.constant 40 : index
    %47 = vector.load %arg23[%c0_59, %c0_60, %c40] : memref<8x8x72xf32, #tpu.memory_space<vmem>>, vector<8x7x8xf32>
    tpu.vector_store %arg23[%c0_59, %c0_60, %c40], %46 {strides = array<i32>} : memref<8x8x72xf32, #tpu.memory_space<vmem>>, vector<8x7x8xf32>,
    %48 = vector.extract_strided_slice %32 {offsets = [1, 0, 0], sizes = [7, 7, 8], strides = [1, 1, 1]} : vector<8x8x8xf32> to vector<7x7x8xf32>
    %c0_61 = arith.constant 0 : index
    %c1_62 = arith.constant 1 : index
    %c48 = arith.constant 48 : index
    %49 = vector.load %arg23[%c0_61, %c1_62, %c48] : memref<8x8x72xf32, #tpu.memory_space<vmem>>, vector<7x7x8xf32>
    tpu.vector_store %arg23[%c0_61, %c1_62, %c48], %48 {strides = array<i32>} : memref<8x8x72xf32, #tpu.memory_space<vmem>>, vector<7x7x8xf32>,
    %50 = vector.extract_strided_slice %32 {offsets = [1, 0, 0], sizes = [7, 8, 8], strides = [1, 1, 1]} : vector<8x8x8xf32> to vector<7x8x8xf32>
    %c0_63 = arith.constant 0 : index
    %c0_64 = arith.constant 0 : index
    %c56 = arith.constant 56 : index
    %51 = vector.load %arg23[%c0_63, %c0_64, %c56] : memref<8x8x72xf32, #tpu.memory_space<vmem>>, vector<7x8x8xf32>
    tpu.vector_store %arg23[%c0_63, %c0_64, %c56], %50 {strides = array<i32>} : memref<8x8x72xf32, #tpu.memory_space<vmem>>, vector<7x8x8xf32>,
    %52 = vector.extract_strided_slice %32 {offsets = [1, 1, 0], sizes = [7, 7, 8], strides = [1, 1, 1]} : vector<8x8x8xf32> to vector<7x7x8xf32>
    %c0_65 = arith.constant 0 : index
    %c0_66 = arith.constant 0 : index
    %c64 = arith.constant 64 : index
    %53 = vector.load %arg23[%c0_65, %c0_66, %c64] : memref<8x8x72xf32, #tpu.memory_space<vmem>>, vector<7x7x8xf32>
    tpu.vector_store %arg23[%c0_65, %c0_66, %c64], %52 {strides = array<i32>} : memref<8x8x72xf32, #tpu.memory_space<vmem>>, vector<7x7x8xf32>,
    %c0_67 = arith.constant 0 : index
    %c0_68 = arith.constant 0 : index
    %c0_69 = arith.constant 0 : index
    %54 = vector.load %arg23[%c0_67, %c0_68, %c0_69] : memref<8x8x72xf32, #tpu.memory_space<vmem>>, vector<8x8x72xf32>
    %55 = vector.shape_cast %54 : vector<8x8x72xf32> to vector<64x72xf32>
    %cst_70 = arith.constant dense<0.000000e+00> : vector<64x16xf32>
    %56 = tpu.matmul %55, %33, %cst_70 {dimension_numbers = #tpu.dot_dimension_numbers<[1], [0], [0], [1], [0, 0, 1, 1], [], []>} : vector<64x72xf32>, vector<72x16xf32>, vector<64x16xf32> -> vector<64x16xf32>
    %57 = vector.broadcast %34 : vector<1x16xf32> to vector<64x16xf32>
    %58 = arith.addf %56, %57 : vector<64x16xf32>
    %cst_71 = arith.constant 0.000000e+00 : f32
    %59 = vector.broadcast %cst_71 : f32 to vector<64x16xf32>
    %60 = arith.maximumf %58, %59 : vector<64x16xf32>
    %c0_72 = arith.constant 0 : index
    %c0_73 = arith.constant 0 : index
    %61 = vector.load %arg10[%c0_72, %c0_73] : memref<16x64xf32, #tpu.memory_space<vmem>>, vector<16x64xf32>
    %cst_74 = arith.constant dense<0.000000e+00> : vector<16x16xf32>
    %62 = tpu.matmul %61, %60, %cst_74 {dimension_numbers = #tpu.dot_dimension_numbers<[1], [0], [0], [1], [0, 0, 1, 1], [], []>} : vector<16x64xf32>, vector<64x16xf32>, vector<16x16xf32> -> vector<16x16xf32>
    %63 = vector.shape_cast %62 : vector<16x16xf32> to vector<4x4x16xf32>
    %c0_75 = arith.constant 0 : index
    %c0_76 = arith.constant 0 : index
    %c0_77 = arith.constant 0 : index
    %64 = vector.load %arg3[%c0_75, %c0_76, %c0_77] : memref<1x16x16xf32, #tpu.memory_space<vmem>>, vector<1x16x16xf32>
    %65 = vector.shape_cast %64 : vector<1x16x16xf32> to vector<16x16xf32>
    %c0_78 = arith.constant 0 : index
    %c0_79 = arith.constant 0 : index
    %c0_80 = arith.constant 0 : index
    %66 = vector.load %arg4[%c0_78, %c0_79, %c0_80] : memref<1x16x16xf32, #tpu.memory_space<vmem>>, vector<1x16x16xf32>
    %67 = vector.shape_cast %66 : vector<1x16x16xf32> to vector<16x16xf32>
    %68 = vector.shape_cast %65 : vector<16x16xf32> to vector<4x4x16xf32>
    %c0_81 = arith.constant 0 : index
    %c0_82 = arith.constant 0 : index
    %69 = vector.load %arg11[%c0_81, %c0_82] : memref<288x64xf32, #tpu.memory_space<vmem>>, vector<288x64xf32>
    %c0_83 = arith.constant 0 : index
    %c0_84 = arith.constant 0 : index
    %70 = vector.load %arg12[%c0_83, %c0_84] : memref<1x64xf32, #tpu.memory_space<vmem>>, vector<1x64xf32>
    %cst_85 = arith.constant 0.000000e+00 : f32
    %71 = vector.broadcast %cst_85 : f32 to vector<4x4x288xf32>
    %c0_86 = arith.constant 0 : index
    %c0_87 = arith.constant 0 : index
    %c0_88 = arith.constant 0 : index
    %72 = vector.load %arg24[%c0_86, %c0_87, %c0_88] : memref<4x4x288xf32, #tpu.memory_space<vmem>>, vector<4x4x288xf32>
    tpu.vector_store %arg24[%c0_86, %c0_87, %c0_88], %71 {strides = array<i32>} : memref<4x4x288xf32, #tpu.memory_space<vmem>>, vector<4x4x288xf32>,
    %73 = vector.extract_strided_slice %63 {offsets = [0, 0, 0], sizes = [3, 3, 16], strides = [1, 1, 1]} : vector<4x4x16xf32> to vector<3x3x16xf32>
    %c1_89 = arith.constant 1 : index
    %c1_90 = arith.constant 1 : index
    %c0_91 = arith.constant 0 : index
    %74 = vector.load %arg24[%c1_89, %c1_90, %c0_91] : memref<4x4x288xf32, #tpu.memory_space<vmem>>, vector<3x3x16xf32>
    tpu.vector_store %arg24[%c1_89, %c1_90, %c0_91], %73 {strides = array<i32>} : memref<4x4x288xf32, #tpu.memory_space<vmem>>, vector<3x3x16xf32>,
    %75 = vector.extract_strided_slice %68 {offsets = [0, 0, 0], sizes = [3, 3, 16], strides = [1, 1, 1]} : vector<4x4x16xf32> to vector<3x3x16xf32>
    %c1_92 = arith.constant 1 : index
    %c1_93 = arith.constant 1 : index
    %c16_94 = arith.constant 16 : index
    %76 = vector.load %arg24[%c1_92, %c1_93, %c16_94] : memref<4x4x288xf32, #tpu.memory_space<vmem>>, vector<3x3x16xf32>
    tpu.vector_store %arg24[%c1_92, %c1_93, %c16_94], %75 {strides = array<i32>} : memref<4x4x288xf32, #tpu.memory_space<vmem>>, vector<3x3x16xf32>,
    %77 = vector.extract_strided_slice %63 {offsets = [0, 0, 0], sizes = [3, 4, 16], strides = [1, 1, 1]} : vector<4x4x16xf32> to vector<3x4x16xf32>
    %c1_95 = arith.constant 1 : index
    %c0_96 = arith.constant 0 : index
    %c32_97 = arith.constant 32 : index
    %78 = vector.load %arg24[%c1_95, %c0_96, %c32_97] : memref<4x4x288xf32, #tpu.memory_space<vmem>>, vector<3x4x16xf32>
    tpu.vector_store %arg24[%c1_95, %c0_96, %c32_97], %77 {strides = array<i32>} : memref<4x4x288xf32, #tpu.memory_space<vmem>>, vector<3x4x16xf32>,
    %79 = vector.extract_strided_slice %68 {offsets = [0, 0, 0], sizes = [3, 4, 16], strides = [1, 1, 1]} : vector<4x4x16xf32> to vector<3x4x16xf32>
    %c1_98 = arith.constant 1 : index
    %c0_99 = arith.constant 0 : index
    %c48_100 = arith.constant 48 : index
    %80 = vector.load %arg24[%c1_98, %c0_99, %c48_100] : memref<4x4x288xf32, #tpu.memory_space<vmem>>, vector<3x4x16xf32>
    tpu.vector_store %arg24[%c1_98, %c0_99, %c48_100], %79 {strides = array<i32>} : memref<4x4x288xf32, #tpu.memory_space<vmem>>, vector<3x4x16xf32>,
    %81 = vector.extract_strided_slice %63 {offsets = [0, 1, 0], sizes = [3, 3, 16], strides = [1, 1, 1]} : vector<4x4x16xf32> to vector<3x3x16xf32>
    %c1_101 = arith.constant 1 : index
    %c0_102 = arith.constant 0 : index
    %c64_103 = arith.constant 64 : index
    %82 = vector.load %arg24[%c1_101, %c0_102, %c64_103] : memref<4x4x288xf32, #tpu.memory_space<vmem>>, vector<3x3x16xf32>
    tpu.vector_store %arg24[%c1_101, %c0_102, %c64_103], %81 {strides = array<i32>} : memref<4x4x288xf32, #tpu.memory_space<vmem>>, vector<3x3x16xf32>,
    %83 = vector.extract_strided_slice %68 {offsets = [0, 1, 0], sizes = [3, 3, 16], strides = [1, 1, 1]} : vector<4x4x16xf32> to vector<3x3x16xf32>
    %c1_104 = arith.constant 1 : index
    %c0_105 = arith.constant 0 : index
    %c80 = arith.constant 80 : index
    %84 = vector.load %arg24[%c1_104, %c0_105, %c80] : memref<4x4x288xf32, #tpu.memory_space<vmem>>, vector<3x3x16xf32>
    tpu.vector_store %arg24[%c1_104, %c0_105, %c80], %83 {strides = array<i32>} : memref<4x4x288xf32, #tpu.memory_space<vmem>>, vector<3x3x16xf32>,
    %85 = vector.extract_strided_slice %63 {offsets = [0, 0, 0], sizes = [4, 3, 16], strides = [1, 1, 1]} : vector<4x4x16xf32> to vector<4x3x16xf32>
    %c0_106 = arith.constant 0 : index
    %c1_107 = arith.constant 1 : index
    %c96 = arith.constant 96 : index
    %86 = vector.load %arg24[%c0_106, %c1_107, %c96] : memref<4x4x288xf32, #tpu.memory_space<vmem>>, vector<4x3x16xf32>
    tpu.vector_store %arg24[%c0_106, %c1_107, %c96], %85 {strides = array<i32>} : memref<4x4x288xf32, #tpu.memory_space<vmem>>, vector<4x3x16xf32>,
    %87 = vector.extract_strided_slice %68 {offsets = [0, 0, 0], sizes = [4, 3, 16], strides = [1, 1, 1]} : vector<4x4x16xf32> to vector<4x3x16xf32>
    %c0_108 = arith.constant 0 : index
    %c1_109 = arith.constant 1 : index
    %c112 = arith.constant 112 : index
    %88 = vector.load %arg24[%c0_108, %c1_109, %c112] : memref<4x4x288xf32, #tpu.memory_space<vmem>>, vector<4x3x16xf32>
    tpu.vector_store %arg24[%c0_108, %c1_109, %c112], %87 {strides = array<i32>} : memref<4x4x288xf32, #tpu.memory_space<vmem>>, vector<4x3x16xf32>,
    %c0_110 = arith.constant 0 : index
    %c0_111 = arith.constant 0 : index
    %c128 = arith.constant 128 : index
    %89 = vector.load %arg24[%c0_110, %c0_111, %c128] : memref<4x4x288xf32, #tpu.memory_space<vmem>>, vector<4x4x16xf32>
    tpu.vector_store %arg24[%c0_110, %c0_111, %c128], %63 {strides = array<i32>} : memref<4x4x288xf32, #tpu.memory_space<vmem>>, vector<4x4x16xf32>,
    %c0_112 = arith.constant 0 : index
    %c0_113 = arith.constant 0 : index
    %c144 = arith.constant 144 : index
    %90 = vector.load %arg24[%c0_112, %c0_113, %c144] : memref<4x4x288xf32, #tpu.memory_space<vmem>>, vector<4x4x16xf32>
    tpu.vector_store %arg24[%c0_112, %c0_113, %c144], %68 {strides = array<i32>} : memref<4x4x288xf32, #tpu.memory_space<vmem>>, vector<4x4x16xf32>,
    %91 = vector.extract_strided_slice %63 {offsets = [0, 1, 0], sizes = [4, 3, 16], strides = [1, 1, 1]} : vector<4x4x16xf32> to vector<4x3x16xf32>
    %c0_114 = arith.constant 0 : index
    %c0_115 = arith.constant 0 : index
    %c160 = arith.constant 160 : index
    %92 = vector.load %arg24[%c0_114, %c0_115, %c160] : memref<4x4x288xf32, #tpu.memory_space<vmem>>, vector<4x3x16xf32>
    tpu.vector_store %arg24[%c0_114, %c0_115, %c160], %91 {strides = array<i32>} : memref<4x4x288xf32, #tpu.memory_space<vmem>>, vector<4x3x16xf32>,
    %93 = vector.extract_strided_slice %68 {offsets = [0, 1, 0], sizes = [4, 3, 16], strides = [1, 1, 1]} : vector<4x4x16xf32> to vector<4x3x16xf32>
    %c0_116 = arith.constant 0 : index
    %c0_117 = arith.constant 0 : index
    %c176 = arith.constant 176 : index
    %94 = vector.load %arg24[%c0_116, %c0_117, %c176] : memref<4x4x288xf32, #tpu.memory_space<vmem>>, vector<4x3x16xf32>
    tpu.vector_store %arg24[%c0_116, %c0_117, %c176], %93 {strides = array<i32>} : memref<4x4x288xf32, #tpu.memory_space<vmem>>, vector<4x3x16xf32>,
    %95 = vector.extract_strided_slice %63 {offsets = [1, 0, 0], sizes = [3, 3, 16], strides = [1, 1, 1]} : vector<4x4x16xf32> to vector<3x3x16xf32>
    %c0_118 = arith.constant 0 : index
    %c1_119 = arith.constant 1 : index
    %c192 = arith.constant 192 : index
    %96 = vector.load %arg24[%c0_118, %c1_119, %c192] : memref<4x4x288xf32, #tpu.memory_space<vmem>>, vector<3x3x16xf32>
    tpu.vector_store %arg24[%c0_118, %c1_119, %c192], %95 {strides = array<i32>} : memref<4x4x288xf32, #tpu.memory_space<vmem>>, vector<3x3x16xf32>,
    %97 = vector.extract_strided_slice %68 {offsets = [1, 0, 0], sizes = [3, 3, 16], strides = [1, 1, 1]} : vector<4x4x16xf32> to vector<3x3x16xf32>
    %c0_120 = arith.constant 0 : index
    %c1_121 = arith.constant 1 : index
    %c208 = arith.constant 208 : index
    %98 = vector.load %arg24[%c0_120, %c1_121, %c208] : memref<4x4x288xf32, #tpu.memory_space<vmem>>, vector<3x3x16xf32>
    tpu.vector_store %arg24[%c0_120, %c1_121, %c208], %97 {strides = array<i32>} : memref<4x4x288xf32, #tpu.memory_space<vmem>>, vector<3x3x16xf32>,
    %99 = vector.extract_strided_slice %63 {offsets = [1, 0, 0], sizes = [3, 4, 16], strides = [1, 1, 1]} : vector<4x4x16xf32> to vector<3x4x16xf32>
    %c0_122 = arith.constant 0 : index
    %c0_123 = arith.constant 0 : index
    %c224 = arith.constant 224 : index
    %100 = vector.load %arg24[%c0_122, %c0_123, %c224] : memref<4x4x288xf32, #tpu.memory_space<vmem>>, vector<3x4x16xf32>
    tpu.vector_store %arg24[%c0_122, %c0_123, %c224], %99 {strides = array<i32>} : memref<4x4x288xf32, #tpu.memory_space<vmem>>, vector<3x4x16xf32>,
    %101 = vector.extract_strided_slice %68 {offsets = [1, 0, 0], sizes = [3, 4, 16], strides = [1, 1, 1]} : vector<4x4x16xf32> to vector<3x4x16xf32>
    %c0_124 = arith.constant 0 : index
    %c0_125 = arith.constant 0 : index
    %c240 = arith.constant 240 : index
    %102 = vector.load %arg24[%c0_124, %c0_125, %c240] : memref<4x4x288xf32, #tpu.memory_space<vmem>>, vector<3x4x16xf32>
    tpu.vector_store %arg24[%c0_124, %c0_125, %c240], %101 {strides = array<i32>} : memref<4x4x288xf32, #tpu.memory_space<vmem>>, vector<3x4x16xf32>,
    %103 = vector.extract_strided_slice %63 {offsets = [1, 1, 0], sizes = [3, 3, 16], strides = [1, 1, 1]} : vector<4x4x16xf32> to vector<3x3x16xf32>
    %c0_126 = arith.constant 0 : index
    %c0_127 = arith.constant 0 : index
    %c256 = arith.constant 256 : index
    %104 = vector.load %arg24[%c0_126, %c0_127, %c256] : memref<4x4x288xf32, #tpu.memory_space<vmem>>, vector<3x3x16xf32>
    tpu.vector_store %arg24[%c0_126, %c0_127, %c256], %103 {strides = array<i32>} : memref<4x4x288xf32, #tpu.memory_space<vmem>>, vector<3x3x16xf32>,
    %105 = vector.extract_strided_slice %68 {offsets = [1, 1, 0], sizes = [3, 3, 16], strides = [1, 1, 1]} : vector<4x4x16xf32> to vector<3x3x16xf32>
    %c0_128 = arith.constant 0 : index
    %c0_129 = arith.constant 0 : index
    %c272 = arith.constant 272 : index
    %106 = vector.load %arg24[%c0_128, %c0_129, %c272] : memref<4x4x288xf32, #tpu.memory_space<vmem>>, vector<3x3x16xf32>
    tpu.vector_store %arg24[%c0_128, %c0_129, %c272], %105 {strides = array<i32>} : memref<4x4x288xf32, #tpu.memory_space<vmem>>, vector<3x3x16xf32>,
    %c0_130 = arith.constant 0 : index
    %c0_131 = arith.constant 0 : index
    %c0_132 = arith.constant 0 : index
    %107 = vector.load %arg24[%c0_130, %c0_131, %c0_132] : memref<4x4x288xf32, #tpu.memory_space<vmem>>, vector<4x4x288xf32>
    %108 = vector.shape_cast %107 : vector<4x4x288xf32> to vector<16x288xf32>
    %cst_133 = arith.constant dense<0.000000e+00> : vector<16x64xf32>
    %109 = tpu.matmul %108, %69, %cst_133 {dimension_numbers = #tpu.dot_dimension_numbers<[1], [0], [0], [1], [0, 0, 1, 1], [], []>} : vector<16x288xf32>, vector<288x64xf32>, vector<16x64xf32> -> vector<16x64xf32>
    %110 = vector.broadcast %70 : vector<1x64xf32> to vector<16x64xf32>
    %111 = arith.addf %109, %110 : vector<16x64xf32>
    %112 = vector.extract_strided_slice %111 {offsets = [0, 0], sizes = [16, 16], strides = [1, 1]} : vector<16x64xf32> to vector<16x16xf32>
    %113 = arith.negf %112 : vector<16x16xf32>
    %114 = math.exp %113 : vector<16x16xf32>
    %cst_134 = arith.constant 1.000000e+00 : f32
    %115 = vector.broadcast %cst_134 : f32 to vector<16x16xf32>
    %116 = arith.addf %115, %114 : vector<16x16xf32>
    %117 = arith.divf %115, %116 : vector<16x16xf32>
    %118 = vector.extract_strided_slice %111 {offsets = [0, 16], sizes = [16, 16], strides = [1, 1]} : vector<16x64xf32> to vector<16x16xf32>
    %119 = arith.negf %118 : vector<16x16xf32>
    %120 = math.exp %119 : vector<16x16xf32>
    %cst_135 = arith.constant 1.000000e+00 : f32
    %121 = vector.broadcast %cst_135 : f32 to vector<16x16xf32>
    %122 = arith.addf %121, %120 : vector<16x16xf32>
    %123 = arith.divf %121, %122 : vector<16x16xf32>
    %124 = vector.extract_strided_slice %111 {offsets = [0, 32], sizes = [16, 16], strides = [1, 1]} : vector<16x64xf32> to vector<16x16xf32>
    %125 = arith.negf %124 : vector<16x16xf32>
    %126 = math.exp %125 : vector<16x16xf32>
    %cst_136 = arith.constant 1.000000e+00 : f32
    %127 = vector.broadcast %cst_136 : f32 to vector<16x16xf32>
    %128 = arith.addf %127, %126 : vector<16x16xf32>
    %129 = arith.divf %127, %128 : vector<16x16xf32>
    %130 = vector.extract_strided_slice %111 {offsets = [0, 48], sizes = [16, 16], strides = [1, 1]} : vector<16x64xf32> to vector<16x16xf32>
    %131 = math.tanh %130 : vector<16x16xf32>
    %132 = arith.mulf %123, %67 : vector<16x16xf32>
    %133 = arith.mulf %117, %131 : vector<16x16xf32>
    %134 = arith.addf %132, %133 : vector<16x16xf32>
    %135 = math.tanh %134 : vector<16x16xf32>
    %136 = arith.mulf %129, %135 : vector<16x16xf32>
    %c0_137 = arith.constant 0 : index
    %c0_138 = arith.constant 0 : index
    %c0_139 = arith.constant 0 : index
    %137 = vector.load %arg20[%c0_137, %c0_138, %c0_139] : memref<1x16x16xf32, #tpu.memory_space<vmem>>, vector<1x16x16xf32>
    %138 = vector.shape_cast %137 : vector<1x16x16xf32> to vector<16x16xf32>
    %139 = vector.shape_cast %136 : vector<16x16xf32> to vector<1x16x16xf32>
    tpu.vector_store %arg20[%c0_137, %c0_138, %c0_139], %139 {strides = array<i32>} : memref<1x16x16xf32, #tpu.memory_space<vmem>>, vector<1x16x16xf32>,
    %c0_140 = arith.constant 0 : index
    %c0_141 = arith.constant 0 : index
    %c0_142 = arith.constant 0 : index
    %140 = vector.load %arg21[%c0_140, %c0_141, %c0_142] : memref<1x16x16xf32, #tpu.memory_space<vmem>>, vector<1x16x16xf32>
    %141 = vector.shape_cast %140 : vector<1x16x16xf32> to vector<16x16xf32>
    %142 = vector.shape_cast %134 : vector<16x16xf32> to vector<1x16x16xf32>
    tpu.vector_store %arg21[%c0_140, %c0_141, %c0_142], %142 {strides = array<i32>} : memref<1x16x16xf32, #tpu.memory_space<vmem>>, vector<1x16x16xf32>,
    %143 = vector.shape_cast %136 : vector<16x16xf32> to vector<4x4x16xf32>
    %144 = vector.shape_cast %143 : vector<4x4x16xf32> to vector<16x16xf32>
    %c0_143 = arith.constant 0 : index
    %c0_144 = arith.constant 0 : index
    %145 = vector.load %arg13[%c0_143, %c0_144] : memref<64x16xf32, #tpu.memory_space<vmem>>, vector<64x16xf32>
    %cst_145 = arith.constant dense<0.000000e+00> : vector<64x16xf32>
    %146 = tpu.matmul %145, %144, %cst_145 {dimension_numbers = #tpu.dot_dimension_numbers<[1], [0], [0], [1], [0, 0, 1, 1], [], []>} : vector<64x16xf32>, vector<16x16xf32>, vector<64x16xf32> -> vector<64x16xf32>
    %147 = vector.shape_cast %146 : vector<64x16xf32> to vector<8x8x16xf32>
    %c0_146 = arith.constant 0 : index
    %c0_147 = arith.constant 0 : index
    %148 = vector.load %arg14[%c0_146, %c0_147] : memref<144x8xf32, #tpu.memory_space<vmem>>, vector<144x8xf32>
    %c0_148 = arith.constant 0 : index
    %c0_149 = arith.constant 0 : index
    %149 = vector.load %arg15[%c0_148, %c0_149] : memref<1x8xf32, #tpu.memory_space<vmem>>, vector<1x8xf32>
    %cst_150 = arith.constant 0.000000e+00 : f32
    %150 = vector.broadcast %cst_150 : f32 to vector<8x8x144xf32>
    %c0_151 = arith.constant 0 : index
    %c0_152 = arith.constant 0 : index
    %c0_153 = arith.constant 0 : index
    %151 = vector.load %arg25[%c0_151, %c0_152, %c0_153] : memref<8x8x144xf32, #tpu.memory_space<vmem>>, vector<8x8x144xf32>
    tpu.vector_store %arg25[%c0_151, %c0_152, %c0_153], %150 {strides = array<i32>} : memref<8x8x144xf32, #tpu.memory_space<vmem>>, vector<8x8x144xf32>,
    %152 = vector.extract_strided_slice %147 {offsets = [0, 0, 0], sizes = [7, 7, 16], strides = [1, 1, 1]} : vector<8x8x16xf32> to vector<7x7x16xf32>
    %c1_154 = arith.constant 1 : index
    %c1_155 = arith.constant 1 : index
    %c0_156 = arith.constant 0 : index
    %153 = vector.load %arg25[%c1_154, %c1_155, %c0_156] : memref<8x8x144xf32, #tpu.memory_space<vmem>>, vector<7x7x16xf32>
    tpu.vector_store %arg25[%c1_154, %c1_155, %c0_156], %152 {strides = array<i32>} : memref<8x8x144xf32, #tpu.memory_space<vmem>>, vector<7x7x16xf32>,
    %154 = vector.extract_strided_slice %147 {offsets = [0, 0, 0], sizes = [7, 8, 16], strides = [1, 1, 1]} : vector<8x8x16xf32> to vector<7x8x16xf32>
    %c1_157 = arith.constant 1 : index
    %c0_158 = arith.constant 0 : index
    %c16_159 = arith.constant 16 : index
    %155 = vector.load %arg25[%c1_157, %c0_158, %c16_159] : memref<8x8x144xf32, #tpu.memory_space<vmem>>, vector<7x8x16xf32>
    tpu.vector_store %arg25[%c1_157, %c0_158, %c16_159], %154 {strides = array<i32>} : memref<8x8x144xf32, #tpu.memory_space<vmem>>, vector<7x8x16xf32>,
    %156 = vector.extract_strided_slice %147 {offsets = [0, 1, 0], sizes = [7, 7, 16], strides = [1, 1, 1]} : vector<8x8x16xf32> to vector<7x7x16xf32>
    %c1_160 = arith.constant 1 : index
    %c0_161 = arith.constant 0 : index
    %c32_162 = arith.constant 32 : index
    %157 = vector.load %arg25[%c1_160, %c0_161, %c32_162] : memref<8x8x144xf32, #tpu.memory_space<vmem>>, vector<7x7x16xf32>
    tpu.vector_store %arg25[%c1_160, %c0_161, %c32_162], %156 {strides = array<i32>} : memref<8x8x144xf32, #tpu.memory_space<vmem>>, vector<7x7x16xf32>,
    %158 = vector.extract_strided_slice %147 {offsets = [0, 0, 0], sizes = [8, 7, 16], strides = [1, 1, 1]} : vector<8x8x16xf32> to vector<8x7x16xf32>
    %c0_163 = arith.constant 0 : index
    %c1_164 = arith.constant 1 : index
    %c48_165 = arith.constant 48 : index
    %159 = vector.load %arg25[%c0_163, %c1_164, %c48_165] : memref<8x8x144xf32, #tpu.memory_space<vmem>>, vector<8x7x16xf32>
    tpu.vector_store %arg25[%c0_163, %c1_164, %c48_165], %158 {strides = array<i32>} : memref<8x8x144xf32, #tpu.memory_space<vmem>>, vector<8x7x16xf32>,
    %c0_166 = arith.constant 0 : index
    %c0_167 = arith.constant 0 : index
    %c64_168 = arith.constant 64 : index
    %160 = vector.load %arg25[%c0_166, %c0_167, %c64_168] : memref<8x8x144xf32, #tpu.memory_space<vmem>>, vector<8x8x16xf32>
    tpu.vector_store %arg25[%c0_166, %c0_167, %c64_168], %147 {strides = array<i32>} : memref<8x8x144xf32, #tpu.memory_space<vmem>>, vector<8x8x16xf32>,
    %161 = vector.extract_strided_slice %147 {offsets = [0, 1, 0], sizes = [8, 7, 16], strides = [1, 1, 1]} : vector<8x8x16xf32> to vector<8x7x16xf32>
    %c0_169 = arith.constant 0 : index
    %c0_170 = arith.constant 0 : index
    %c80_171 = arith.constant 80 : index
    %162 = vector.load %arg25[%c0_169, %c0_170, %c80_171] : memref<8x8x144xf32, #tpu.memory_space<vmem>>, vector<8x7x16xf32>
    tpu.vector_store %arg25[%c0_169, %c0_170, %c80_171], %161 {strides = array<i32>} : memref<8x8x144xf32, #tpu.memory_space<vmem>>, vector<8x7x16xf32>,
    %163 = vector.extract_strided_slice %147 {offsets = [1, 0, 0], sizes = [7, 7, 16], strides = [1, 1, 1]} : vector<8x8x16xf32> to vector<7x7x16xf32>
    %c0_172 = arith.constant 0 : index
    %c1_173 = arith.constant 1 : index
    %c96_174 = arith.constant 96 : index
    %164 = vector.load %arg25[%c0_172, %c1_173, %c96_174] : memref<8x8x144xf32, #tpu.memory_space<vmem>>, vector<7x7x16xf32>
    tpu.vector_store %arg25[%c0_172, %c1_173, %c96_174], %163 {strides = array<i32>} : memref<8x8x144xf32, #tpu.memory_space<vmem>>, vector<7x7x16xf32>,
    %165 = vector.extract_strided_slice %147 {offsets = [1, 0, 0], sizes = [7, 8, 16], strides = [1, 1, 1]} : vector<8x8x16xf32> to vector<7x8x16xf32>
    %c0_175 = arith.constant 0 : index
    %c0_176 = arith.constant 0 : index
    %c112_177 = arith.constant 112 : index
    %166 = vector.load %arg25[%c0_175, %c0_176, %c112_177] : memref<8x8x144xf32, #tpu.memory_space<vmem>>, vector<7x8x16xf32>
    tpu.vector_store %arg25[%c0_175, %c0_176, %c112_177], %165 {strides = array<i32>} : memref<8x8x144xf32, #tpu.memory_space<vmem>>, vector<7x8x16xf32>,
    %167 = vector.extract_strided_slice %147 {offsets = [1, 1, 0], sizes = [7, 7, 16], strides = [1, 1, 1]} : vector<8x8x16xf32> to vector<7x7x16xf32>
    %c0_178 = arith.constant 0 : index
    %c0_179 = arith.constant 0 : index
    %c128_180 = arith.constant 128 : index
    %168 = vector.load %arg25[%c0_178, %c0_179, %c128_180] : memref<8x8x144xf32, #tpu.memory_space<vmem>>, vector<7x7x16xf32>
    tpu.vector_store %arg25[%c0_178, %c0_179, %c128_180], %167 {strides = array<i32>} : memref<8x8x144xf32, #tpu.memory_space<vmem>>, vector<7x7x16xf32>,
    %c0_181 = arith.constant 0 : index
    %c0_182 = arith.constant 0 : index
    %c0_183 = arith.constant 0 : index
    %169 = vector.load %arg25[%c0_181, %c0_182, %c0_183] : memref<8x8x144xf32, #tpu.memory_space<vmem>>, vector<8x8x144xf32>
    %170 = vector.shape_cast %169 : vector<8x8x144xf32> to vector<64x144xf32>
    %cst_184 = arith.constant dense<0.000000e+00> : vector<64x8xf32>
    %171 = tpu.matmul %170, %148, %cst_184 {dimension_numbers = #tpu.dot_dimension_numbers<[1], [0], [0], [1], [0, 0, 1, 1], [], []>} : vector<64x144xf32>, vector<144x8xf32>, vector<64x8xf32> -> vector<64x8xf32>
    %172 = vector.broadcast %149 : vector<1x8xf32> to vector<64x8xf32>
    %173 = arith.addf %171, %172 : vector<64x8xf32>
    %cst_185 = arith.constant 0.000000e+00 : f32
    %174 = vector.broadcast %cst_185 : f32 to vector<64x8xf32>
    %175 = arith.maximumf %173, %174 : vector<64x8xf32>
    %c0_186 = arith.constant 0 : index
    %c0_187 = arith.constant 0 : index
    %176 = vector.load %arg16[%c0_186, %c0_187] : memref<256x64xf32, #tpu.memory_space<vmem>>, vector<256x64xf32>
    %cst_188 = arith.constant dense<0.000000e+00> : vector<256x8xf32>
    %177 = tpu.matmul %176, %175, %cst_188 {dimension_numbers = #tpu.dot_dimension_numbers<[1], [0], [0], [1], [0, 0, 1, 1], [], []>} : vector<256x64xf32>, vector<64x8xf32>, vector<256x8xf32> -> vector<256x8xf32>
    %178 = vector.shape_cast %177 : vector<256x8xf32> to vector<16x16x8xf32>
    %c0_189 = arith.constant 0 : index
    %c0_190 = arith.constant 0 : index
    %179 = vector.load %arg17[%c0_189, %c0_190] : memref<72x4xf32, #tpu.memory_space<vmem>>, vector<72x4xf32>
    %c0_191 = arith.constant 0 : index
    %c0_192 = arith.constant 0 : index
    %180 = vector.load %arg18[%c0_191, %c0_192] : memref<1x4xf32, #tpu.memory_space<vmem>>, vector<1x4xf32>
    %cst_193 = arith.constant 0.000000e+00 : f32
    %181 = vector.broadcast %cst_193 : f32 to vector<16x16x72xf32>
    %c0_194 = arith.constant 0 : index
    %c0_195 = arith.constant 0 : index
    %c0_196 = arith.constant 0 : index
    %182 = vector.load %arg26[%c0_194, %c0_195, %c0_196] : memref<16x16x72xf32, #tpu.memory_space<vmem>>, vector<16x16x72xf32>
    tpu.vector_store %arg26[%c0_194, %c0_195, %c0_196], %181 {strides = array<i32>} : memref<16x16x72xf32, #tpu.memory_space<vmem>>, vector<16x16x72xf32>,
    %183 = vector.extract_strided_slice %178 {offsets = [0, 0, 0], sizes = [15, 15, 8], strides = [1, 1, 1]} : vector<16x16x8xf32> to vector<15x15x8xf32>
    %c1_197 = arith.constant 1 : index
    %c1_198 = arith.constant 1 : index
    %c0_199 = arith.constant 0 : index
    %184 = vector.load %arg26[%c1_197, %c1_198, %c0_199] : memref<16x16x72xf32, #tpu.memory_space<vmem>>, vector<15x15x8xf32>
    tpu.vector_store %arg26[%c1_197, %c1_198, %c0_199], %183 {strides = array<i32>} : memref<16x16x72xf32, #tpu.memory_space<vmem>>, vector<15x15x8xf32>,
    %185 = vector.extract_strided_slice %178 {offsets = [0, 0, 0], sizes = [15, 16, 8], strides = [1, 1, 1]} : vector<16x16x8xf32> to vector<15x16x8xf32>
    %c1_200 = arith.constant 1 : index
    %c0_201 = arith.constant 0 : index
    %c8_202 = arith.constant 8 : index
    %186 = vector.load %arg26[%c1_200, %c0_201, %c8_202] : memref<16x16x72xf32, #tpu.memory_space<vmem>>, vector<15x16x8xf32>
    tpu.vector_store %arg26[%c1_200, %c0_201, %c8_202], %185 {strides = array<i32>} : memref<16x16x72xf32, #tpu.memory_space<vmem>>, vector<15x16x8xf32>,
    %187 = vector.extract_strided_slice %178 {offsets = [0, 1, 0], sizes = [15, 15, 8], strides = [1, 1, 1]} : vector<16x16x8xf32> to vector<15x15x8xf32>
    %c1_203 = arith.constant 1 : index
    %c0_204 = arith.constant 0 : index
    %c16_205 = arith.constant 16 : index
    %188 = vector.load %arg26[%c1_203, %c0_204, %c16_205] : memref<16x16x72xf32, #tpu.memory_space<vmem>>, vector<15x15x8xf32>
    tpu.vector_store %arg26[%c1_203, %c0_204, %c16_205], %187 {strides = array<i32>} : memref<16x16x72xf32, #tpu.memory_space<vmem>>, vector<15x15x8xf32>,
    %189 = vector.extract_strided_slice %178 {offsets = [0, 0, 0], sizes = [16, 15, 8], strides = [1, 1, 1]} : vector<16x16x8xf32> to vector<16x15x8xf32>
    %c0_206 = arith.constant 0 : index
    %c1_207 = arith.constant 1 : index
    %c24_208 = arith.constant 24 : index
    %190 = vector.load %arg26[%c0_206, %c1_207, %c24_208] : memref<16x16x72xf32, #tpu.memory_space<vmem>>, vector<16x15x8xf32>
    tpu.vector_store %arg26[%c0_206, %c1_207, %c24_208], %189 {strides = array<i32>} : memref<16x16x72xf32, #tpu.memory_space<vmem>>, vector<16x15x8xf32>,
    %c0_209 = arith.constant 0 : index
    %c0_210 = arith.constant 0 : index
    %c32_211 = arith.constant 32 : index
    %191 = vector.load %arg26[%c0_209, %c0_210, %c32_211] : memref<16x16x72xf32, #tpu.memory_space<vmem>>, vector<16x16x8xf32>
    tpu.vector_store %arg26[%c0_209, %c0_210, %c32_211], %178 {strides = array<i32>} : memref<16x16x72xf32, #tpu.memory_space<vmem>>, vector<16x16x8xf32>,
    %192 = vector.extract_strided_slice %178 {offsets = [0, 1, 0], sizes = [16, 15, 8], strides = [1, 1, 1]} : vector<16x16x8xf32> to vector<16x15x8xf32>
    %c0_212 = arith.constant 0 : index
    %c0_213 = arith.constant 0 : index
    %c40_214 = arith.constant 40 : index
    %193 = vector.load %arg26[%c0_212, %c0_213, %c40_214] : memref<16x16x72xf32, #tpu.memory_space<vmem>>, vector<16x15x8xf32>
    tpu.vector_store %arg26[%c0_212, %c0_213, %c40_214], %192 {strides = array<i32>} : memref<16x16x72xf32, #tpu.memory_space<vmem>>, vector<16x15x8xf32>,
    %194 = vector.extract_strided_slice %178 {offsets = [1, 0, 0], sizes = [15, 15, 8], strides = [1, 1, 1]} : vector<16x16x8xf32> to vector<15x15x8xf32>
    %c0_215 = arith.constant 0 : index
    %c1_216 = arith.constant 1 : index
    %c48_217 = arith.constant 48 : index
    %195 = vector.load %arg26[%c0_215, %c1_216, %c48_217] : memref<16x16x72xf32, #tpu.memory_space<vmem>>, vector<15x15x8xf32>
    tpu.vector_store %arg26[%c0_215, %c1_216, %c48_217], %194 {strides = array<i32>} : memref<16x16x72xf32, #tpu.memory_space<vmem>>, vector<15x15x8xf32>,
    %196 = vector.extract_strided_slice %178 {offsets = [1, 0, 0], sizes = [15, 16, 8], strides = [1, 1, 1]} : vector<16x16x8xf32> to vector<15x16x8xf32>
    %c0_218 = arith.constant 0 : index
    %c0_219 = arith.constant 0 : index
    %c56_220 = arith.constant 56 : index
    %197 = vector.load %arg26[%c0_218, %c0_219, %c56_220] : memref<16x16x72xf32, #tpu.memory_space<vmem>>, vector<15x16x8xf32>
    tpu.vector_store %arg26[%c0_218, %c0_219, %c56_220], %196 {strides = array<i32>} : memref<16x16x72xf32, #tpu.memory_space<vmem>>, vector<15x16x8xf32>,
    %198 = vector.extract_strided_slice %178 {offsets = [1, 1, 0], sizes = [15, 15, 8], strides = [1, 1, 1]} : vector<16x16x8xf32> to vector<15x15x8xf32>
    %c0_221 = arith.constant 0 : index
    %c0_222 = arith.constant 0 : index
    %c64_223 = arith.constant 64 : index
    %199 = vector.load %arg26[%c0_221, %c0_222, %c64_223] : memref<16x16x72xf32, #tpu.memory_space<vmem>>, vector<15x15x8xf32>
    tpu.vector_store %arg26[%c0_221, %c0_222, %c64_223], %198 {strides = array<i32>} : memref<16x16x72xf32, #tpu.memory_space<vmem>>, vector<15x15x8xf32>,
    %c0_224 = arith.constant 0 : index
    %c0_225 = arith.constant 0 : index
    %c0_226 = arith.constant 0 : index
    %200 = vector.load %arg26[%c0_224, %c0_225, %c0_226] : memref<16x16x72xf32, #tpu.memory_space<vmem>>, vector<16x16x72xf32>
    %201 = vector.shape_cast %200 : vector<16x16x72xf32> to vector<256x72xf32>
    %cst_227 = arith.constant dense<0.000000e+00> : vector<256x4xf32>
    %202 = tpu.matmul %201, %179, %cst_227 {dimension_numbers = #tpu.dot_dimension_numbers<[1], [0], [0], [1], [0, 0, 1, 1], [], []>} : vector<256x72xf32>, vector<72x4xf32>, vector<256x4xf32> -> vector<256x4xf32>
    %203 = vector.broadcast %180 : vector<1x4xf32> to vector<256x4xf32>
    %204 = arith.addf %202, %203 : vector<256x4xf32>
    %c0_228 = arith.constant 0 : index
    %c0_229 = arith.constant 0 : index
    %c0_230 = arith.constant 0 : index
    %c0_231 = arith.constant 0 : index
    %205 = vector.load %arg2[%c0_228, %c0_229, %c0_230, %c0_231] : memref<1x16x16x4xf32, #tpu.memory_space<vmem>>, vector<1x16x16x4xf32>
    %206 = vector.shape_cast %205 : vector<1x16x16x4xf32> to vector<16x16x4xf32>
    %207 = vector.shape_cast %206 : vector<16x16x4xf32> to vector<256x4xf32>
    %208 = arith.addf %204, %207 : vector<256x4xf32>
    %209 = vector.shape_cast %208 : vector<256x4xf32> to vector<16x16x4xf32>
    %c0_232 = arith.constant 0 : index
    %c0_233 = arith.constant 0 : index
    %c0_234 = arith.constant 0 : index
    %c0_235 = arith.constant 0 : index
    %210 = vector.load %arg19[%c0_232, %c0_233, %c0_234, %c0_235] : memref<1x16x16x4xf32, #tpu.memory_space<vmem>>, vector<1x16x16x4xf32>
    %211 = vector.shape_cast %210 : vector<1x16x16x4xf32> to vector<16x16x4xf32>
    %212 = vector.shape_cast %209 : vector<16x16x4xf32> to vector<1x16x16x4xf32>
    tpu.vector_store %arg19[%c0_232, %c0_233, %c0_234, %c0_235], %212 {strides = array<i32>} : memref<1x16x16x4xf32, #tpu.memory_space<vmem>>, vector<1x16x16x4xf32>,
    return
  }
  func.func @transform_0(%arg0: i32) -> (i32, i32, i32, i32) {
    %c0_i32 = arith.constant 0 : i32
    %c0_i32_0 = arith.constant 0 : i32
    %c0_i32_1 = arith.constant 0 : i32
    %c0_i32_2 = arith.constant 0 : i32
    return %arg0, %c0_i32, %c0_i32_0, %c0_i32_1 : i32, i32, i32, i32
  }
  func.func @transform_1(%arg0: i32) -> (i32, i32, i32, i32) {
    %c0_i32 = arith.constant 0 : i32
    %c0_i32_0 = arith.constant 0 : i32
    %c0_i32_1 = arith.constant 0 : i32
    %c0_i32_2 = arith.constant 0 : i32
    return %arg0, %c0_i32, %c0_i32_0, %c0_i32_1 : i32, i32, i32, i32
  }
  func.func @transform_2(%arg0: i32) -> (i32, i32, i32) {
    %c0_i32 = arith.constant 0 : i32
    %c0_i32_0 = arith.constant 0 : i32
    %c0_i32_1 = arith.constant 0 : i32
    return %arg0, %c0_i32, %c0_i32_0 : i32, i32, i32
  }
  func.func @transform_3(%arg0: i32) -> (i32, i32, i32) {
    %c0_i32 = arith.constant 0 : i32
    %c0_i32_0 = arith.constant 0 : i32
    %c0_i32_1 = arith.constant 0 : i32
    return %arg0, %c0_i32, %c0_i32_0 : i32, i32, i32
  }
  func.func @transform_4(%arg0: i32) -> (i32, i32) {
    %c0_i32 = arith.constant 0 : i32
    %c0_i32_0 = arith.constant 0 : i32
    %c0_i32_1 = arith.constant 0 : i32
    return %c0_i32, %c0_i32_0 : i32, i32
  }
  func.func @transform_5(%arg0: i32) -> (i32, i32) {
    %c0_i32 = arith.constant 0 : i32
    %c0_i32_0 = arith.constant 0 : i32
    %c0_i32_1 = arith.constant 0 : i32
    return %c0_i32, %c0_i32_0 : i32, i32
  }
  func.func @transform_6(%arg0: i32) -> (i32, i32) {
    %c0_i32 = arith.constant 0 : i32
    %c0_i32_0 = arith.constant 0 : i32
    %c0_i32_1 = arith.constant 0 : i32
    return %c0_i32, %c0_i32_0 : i32, i32
  }
  func.func @transform_7(%arg0: i32) -> (i32, i32) {
    %c0_i32 = arith.constant 0 : i32
    %c0_i32_0 = arith.constant 0 : i32
    %c0_i32_1 = arith.constant 0 : i32
    return %c0_i32, %c0_i32_0 : i32, i32
  }
  func.func @transform_8(%arg0: i32) -> (i32, i32) {
    %c0_i32 = arith.constant 0 : i32
    %c0_i32_0 = arith.constant 0 : i32
    %c0_i32_1 = arith.constant 0 : i32
    return %c0_i32, %c0_i32_0 : i32, i32
  }
  func.func @transform_9(%arg0: i32) -> (i32, i32) {
    %c0_i32 = arith.constant 0 : i32
    %c0_i32_0 = arith.constant 0 : i32
    %c0_i32_1 = arith.constant 0 : i32
    return %c0_i32, %c0_i32_0 : i32, i32
  }
  func.func @transform_10(%arg0: i32) -> (i32, i32) {
    %c0_i32 = arith.constant 0 : i32
    %c0_i32_0 = arith.constant 0 : i32
    %c0_i32_1 = arith.constant 0 : i32
    return %c0_i32, %c0_i32_0 : i32, i32
  }
  func.func @transform_11(%arg0: i32) -> (i32, i32) {
    %c0_i32 = arith.constant 0 : i32
    %c0_i32_0 = arith.constant 0 : i32
    %c0_i32_1 = arith.constant 0 : i32
    return %c0_i32, %c0_i32_0 : i32, i32
  }
  func.func @transform_12(%arg0: i32) -> (i32, i32) {
    %c0_i32 = arith.constant 0 : i32
    %c0_i32_0 = arith.constant 0 : i32
    %c0_i32_1 = arith.constant 0 : i32
    return %c0_i32, %c0_i32_0 : i32, i32
  }
  func.func @transform_13(%arg0: i32) -> (i32, i32) {
    %c0_i32 = arith.constant 0 : i32
    %c0_i32_0 = arith.constant 0 : i32
    %c0_i32_1 = arith.constant 0 : i32
    return %c0_i32, %c0_i32_0 : i32, i32
  }
  func.func @transform_14(%arg0: i32) -> (i32, i32) {
    %c0_i32 = arith.constant 0 : i32
    %c0_i32_0 = arith.constant 0 : i32
    %c0_i32_1 = arith.constant 0 : i32
    return %c0_i32, %c0_i32_0 : i32, i32
  }
  func.func @transform_15(%arg0: i32) -> (i32, i32) {
    %c0_i32 = arith.constant 0 : i32
    %c0_i32_0 = arith.constant 0 : i32
    %c0_i32_1 = arith.constant 0 : i32
    return %c0_i32, %c0_i32_0 : i32, i32
  }
  func.func @transform_16(%arg0: i32) -> (i32, i32) {
    %c0_i32 = arith.constant 0 : i32
    %c0_i32_0 = arith.constant 0 : i32
    %c0_i32_1 = arith.constant 0 : i32
    return %c0_i32, %c0_i32_0 : i32, i32
  }
  func.func @transform_17(%arg0: i32) -> (i32, i32) {
    %c0_i32 = arith.constant 0 : i32
    %c0_i32_0 = arith.constant 0 : i32
    %c0_i32_1 = arith.constant 0 : i32
    return %c0_i32, %c0_i32_0 : i32, i32
  }
  func.func @transform_18(%arg0: i32) -> (i32, i32, i32, i32) {
    %c0_i32 = arith.constant 0 : i32
    %c0_i32_0 = arith.constant 0 : i32
    %c0_i32_1 = arith.constant 0 : i32
    %c0_i32_2 = arith.constant 0 : i32
    return %arg0, %c0_i32, %c0_i32_0, %c0_i32_1 : i32, i32, i32, i32
  }
  func.func @transform_19(%arg0: i32) -> (i32, i32, i32) {
    %c0_i32 = arith.constant 0 : i32
    %c0_i32_0 = arith.constant 0 : i32
    %c0_i32_1 = arith.constant 0 : i32
    return %arg0, %c0_i32, %c0_i32_0 : i32, i32, i32
  }
  func.func @transform_20(%arg0: i32) -> (i32, i32, i32) {
    %c0_i32 = arith.constant 0 : i32
    %c0_i32_0 = arith.constant 0 : i32
    %c0_i32_1 = arith.constant 0 : i32
    return %arg0, %c0_i32, %c0_i32_0 : i32, i32, i32
  }
}

</mosaic_0001>

<bundles_post_ra>
// kernel: custom-call
= control target key start
LH: loop header
LB: loop body
LE: loop exit
PB: predicated region body
PF: predicated region fallthrough
CT: control target
= control target key end

     0   :  { %s6_s0 = inlined_call_operand.hbm [shape: f32[3,2,16,16,4], index: 0, kind: output, shape index: {}]  }

// kernel: closed_call.19
= control target key start
LH: loop header
LB: loop body
LE: loop exit
PB: predicated region body
PF: predicated region fallthrough
CT: control target
= control target key end

     0   :  { %s3948_s21 = smov 0   ;;  %s5610_s0 = inlined_call_operand.vmem [shape: f32[2,16,16,4], index: 0, kind: input, shape index: {}]   ;;  %s5611_s1 = inlined_call_operand.vmem [shape: f32[2,16,16], index: 1, kind: input, shape index: {}]   ;;  %s5612_s2 = inlined_call_operand.vmem [shape: f32[2,16,16], index: 2, kind: input, shape index: {}]   ;;  %s5613_s3 = inlined_call_operand.vmem [shape: f32[36,8], index: 3, kind: input, shape index: {}]   ;;  %s5614_s4 = inlined_call_operand.vmem [shape: f32[1,8], index: 4, kind: input, shape index: {}]   ;;  %s5615_s5 = inlined_call_operand.vmem [shape: f32[64,256], index: 5, kind: input, shape index: {}]   ;;  %s5616_s6 = inlined_call_operand.vmem [shape: f32[72,16], index: 6, kind: input, shape index: {}]   ;;  %s5617_s7 = inlined_call_operand.vmem [shape: f32[1,16], index: 7, kind: input, shape index: {}]   ;;  %s5618_s8 = inlined_call_operand.vmem [shape: f32[16,64], index: 8, kind: input, shape index: {}]   ;;  %s5619_s9 = inlined_call_operand.vmem [shape: f32[288,64], index: 9, kind: input, shape index: {}]   ;;  %s5620_s10 = inlined_call_operand.vmem [shape: f32[1,64], index: 10, kind: input, shape index: {}]   ;;  %s5621_s11 = inlined_call_operand.vmem [shape: f32[2,16,16], index: 11, kind: output, shape index: {0}]   ;;  %s5622_s12 = inlined_call_operand.vmem [shape: f32[2,16,16], index: 12, kind: output, shape index: {1}]  }
   0x1 LB: > { %s3326_s22 = sadd.s32 4294967295, %s3865_s21   ;;  %p3330_p0 = scmp.ge.s32.totalorder %s3865_s21, 1  ;;  %s3865_s21 = sphi %s3948_s21, %s23_s21  }
   0x2   : > { %p385_p1 = scmp.lt.s32.totalorder %s3865_s21, 3 }
   0x4   : > { %p386_p2 = pnand %p3330_p0, %p385_p1 }
   0x5   : > { %p3958_p3 = scmp.lt.s32.totalorder (!%p386_p2), %s3326_s22, 1  ;;  %vm505_vm0 = vcmask (!%p386_p2), 293888   ;;  %v3867_v0 = vmov (!%p386_p2), 0.0   ;;  %vm539_vm1 = vcmask (!%p386_p2), 31744   ;;  %vm541_vm2 = vcmask (!%p386_p2), 30720   ;;  %s3868_s28 = smov (!%p386_p2), 16  }
   0x6   : > { %389 = sbr.rel (%p386_p2) target bundleno = 2628 (0xa44), region = 64  ;;  %506 = vst.msk [vmem:[#allocation2] sm:$0xff] (!%p386_p2), %vm505_vm0, %v3867_v0  ;;  %507 = vst.msk [vmem:[#allocation2 + $0x8] sm:$0xff] (!%p386_p2), %vm505_vm0, %v3867_v0  ;;  %s3869_s29 = smov (!%p386_p2), 12   ;;  %v499_v13 = vld [vmem:[%s5613_s3] sm:$0xff] (!%p386_p2)  ;;  %v500_v14 = vld [vmem:[%s5613_s3 + $0x8] sm:$0xff] (!%p386_p2) }
   0x7   : > { %508 = vst.msk [vmem:[#allocation2 + $0x10] sm:$0xff] (!%p386_p2), %vm505_vm0, %v3867_v0  ;;  %509 = vst.msk [vmem:[#allocation2 + $0x18] sm:$0xff] (!%p386_p2), %vm505_vm0, %v3867_v0  ;;  %s3870_s30 = smov (!%p386_p2), 4   ;;  %s3871_s13 = smov (!%p386_p2), 20   ;;  %v3680_v15 = vpack.c.bf16 (!%p386_p2), %v500_v14, %v499_v13  ;;  %v501_v16 = vld [vmem:[%s5613_s3 + $0x10] sm:$0xff] (!%p386_p2)  ;;  %v502_v17 = vld [vmem:[%s5613_s3 + $0x18] sm:$0xff] (!%p386_p2) }
   0x8   : > { %510 = vst.msk [vmem:[#allocation2 + $0x20] sm:$0xff] (!%p386_p2), %vm505_vm0, %v3867_v0  ;;  %511 = vst.msk [vmem:[#allocation2 + $0x28] sm:$0xff] (!%p386_p2), %vm505_vm0, %v3867_v0  ;;  %s3872_s14 = smov (!%p386_p2), 8   ;;  %s3873_s17 = smov (!%p386_p2), 24   ;;  %v3684_v18 = vpack.c.bf16 (!%p386_p2), %v502_v17, %v501_v16  ;;  %v503_v19 = vld [vmem:[%s5613_s3 + $0x20] sm:$0xf] (!%p386_p2) }
   0x9   : > { %512 = vst.msk [vmem:[#allocation2 + $0x30] sm:$0xff] (!%p386_p2), %vm505_vm0, %v3867_v0  ;;  %513 = vst.msk [vmem:[#allocation2 + $0x38] sm:$0xff] (!%p386_p2), %vm505_vm0, %v3867_v0  ;;  %3681 = vmatprep.subr.bf16.mxu0 (!%p386_p2), %v3680_v15  ;;  %s3874_s26 = smov (!%p386_p2), 28   ;;  %vm1734_vm3 = vcmask (!%p386_p2), 1043456   ;;  %s3875_s18 = smov (!%p386_p2), 32   ;;  %vm942_vm4 = vcmask (!%p386_p2), 130144  }
   0xa   : > { %514 = vst.msk [vmem:[#allocation2 + $0x40] sm:$0xff] (!%p386_p2), %vm505_vm0, %v3867_v0  ;;  %515 = vst.msk [vmem:[#allocation2 + $0x48] sm:$0xff] (!%p386_p2), %vm505_vm0, %v3867_v0  ;;  %3683 = vmatpush3.bf16.msra.mxu0 (!%p386_p2), %v3680_v15  ;;  %vm1072_vm5 = vcmask (!%p386_p2), 162944   ;;  %vm944_vm6 = vcmask (!%p386_p2), 129120   ;;  %vm691_vm7 = vcmask (!%p386_p2), 64544   ;;  %vm1203_vm8 = vcmask (!%p386_p2), 195744  }
   0xb   : > { %516 = vst.msk [vmem:[#allocation2 + $0x50] sm:$0xff] (!%p386_p2), %vm505_vm0, %v3867_v0  ;;  %517 = vst.msk [vmem:[#allocation2 + $0x58] sm:$0xff] (!%p386_p2), %vm505_vm0, %v3867_v0  ;;  %3685 = vmatprep.subr.bf16.mxu0 (!%p386_p2), %v3684_v18  ;;  %vm1201_vm9 = vcmask (!%p386_p2), 195745   ;;  %vm814_vm10 = vcmask (!%p386_p2), 97344   ;;  %vm812_vm11 = vcmask (!%p386_p2), 97345   ;;  %vm1327_vm12 = vcmask (!%p386_p2), 227520  }
   0xc   : > { %518 = vst.msk [vmem:[#allocation2 + $0x60] sm:$0xff] (!%p386_p2), %vm505_vm0, %v3867_v0  ;;  %519 = vst.msk [vmem:[#allocation2 + $0x68] sm:$0xff] (!%p386_p2), %vm505_vm0, %v3867_v0  ;;  %vm1325_vm13 = vcmask (!%p386_p2), 228544   ;;  %vm1447_vm14 = vcmask (!%p386_p2), 261344   ;;  %vm1570_vm15 = vcmask (!%p386_p2), 294144   ;;  %s3876_s15 = smov (!%p386_p2), 40  }
   0xd   : > { %520 = vst.msk [vmem:[#allocation2 + $0x70] sm:$0xff] %vm505_vm0, %v3867_v0  ;;  %521 = vst.msk [vmem:[#allocation2 + $0x78] sm:$0xff] %vm505_vm0, %v3867_v0  ;;  %s5625_s22 = smov (!%p3958_p3, %s3326_s22), 1  ;;  %s3877_s16 = smov 48  }
   0xe   : > { %522 = vst.msk [vmem:[#allocation2 + $0x80] sm:$0xff] %vm505_vm0, %v3867_v0  ;;  %523 = vst.msk [vmem:[#allocation2 + $0x88] sm:$0xff] %vm505_vm0, %v3867_v0  ;;  %s3393_s24 = sshll.u32 %s5625_s22, 8  ;;  %3687 = vmatpush3.bf16.msra.mxu0 %v3684_v18  ;;  %s3878_s19 = smov 56  }
   0xf   : > { %524 = vst.msk [vmem:[#allocation2 + $0x90] sm:$0xff] %vm505_vm0, %v3867_v0  ;;  %525 = vst.msk [vmem:[#allocation2 + $0x98] sm:$0xff] %vm505_vm0, %v3867_v0  ;;  %s4004_s27 = scalar_lea.vmem %s5610_s0, %s3393_s24  ;;  %3570 = vmatprep.subr.msk.mxu0 %vm1734_vm3, %v503_v19  ;;  %s3879_s20 = smov 64  }
  0x10   : > { %526 = vst.msk [vmem:[#allocation2 + $0xa0] sm:$0xff] %vm505_vm0, %v3867_v0  ;;  %527 = vst.msk [vmem:[#allocation2 + $0xa8] sm:$0xff] %vm505_vm0, %v3867_v0  ;;  %v467_v1 = vld [vmem:[%s4004_s27] sm:$0xff]  ;;  %v468_v2 = vld [vmem:[%s4004_s27 + $0x8] sm:$0xff]  ;;  %s3881_s23 = smov 112  }
  0x11   : > { %528 = vst.msk [vmem:[#allocation2 + $0xb0] sm:$0xff] %vm505_vm0, %v3867_v0  ;;  %529 = vst.msk [vmem:[#allocation2 + $0xb8] sm:$0xff] %vm505_vm0, %v3867_v0  ;;  %v4009_v3 = vld [vmem:[%s4004_s27 + $0x18] sm:$0xff]  ;;  %976 = vrot.lane.b32.xlu1 %v467_v1, %s3868_s28  ;;  %846 = vrot.lane.b32.xlu0 %v467_v1, %s3869_s29  ;;  %v4014_v4 = vld [vmem:[%s4004_s27 + $0x10] sm:$0xff] }
  0x12   : > { %530 = vst.msk [vmem:[#allocation2 + $0xc0] sm:$0xff] %vm505_vm0, %v3867_v0  ;;  %531 = vst.msk [vmem:[#allocation2 + $0xc8] sm:$0xff] %vm505_vm0, %v3867_v0  ;;  %v4017_v5 = vld [vmem:[%s4004_s27 + $0x28] sm:$0xff]  ;;  %v4024_v6 = vld [vmem:[%s4004_s27 + $0x20] sm:$0xff]  ;;  %3571 = vmatpush3.msk.msra.mxu0 %vm1734_vm3, %v503_v19  ;;  %vm1568_vm3 = vcmask 294145  }
  0x13   : > { %532 = vst.msk [vmem:[#allocation2 + $0xd0] sm:$0xff] %vm505_vm0, %v3867_v0  ;;  %533 = vst.msk [vmem:[#allocation2 + $0xd8] sm:$0xff] %vm505_vm0, %v3867_v0  ;;  %v4027_v7 = vld [vmem:[%s4004_s27 + $0x38] sm:$0xff]  ;;  %v4030_v8 = vld [vmem:[%s4004_s27 + $0x30] sm:$0xff] }
  0x14   : > { %534 = vst.msk [vmem:[#allocation2 + $0xe0] sm:$0xff] %vm505_vm0, %v3867_v0  ;;  %535 = vst.msk [vmem:[#allocation2 + $0xe8] sm:$0xff] %vm505_vm0, %v3867_v0  ;;  %v4037_v9 = vld [vmem:[%s4004_s27 + $0x48] sm:$0xff]  ;;  %v4040_v10 = vld [vmem:[%s4004_s27 + $0x40] sm:$0xff] }
  0x15   : > { %536 = vst.msk [vmem:[#allocation2 + $0xf0] sm:$0xff] %vm505_vm0, %v3867_v0  ;;  %537 = vst.msk [vmem:[#allocation2 + $0xf8] sm:$0xff] %vm505_vm0, %v3867_v0  ;;  %978 = vrot.lane.b32.xlu1 %v468_v2, %s3868_s28  ;;  %848 = vrot.lane.b32.xlu0 %v468_v2, %s3869_s29  ;;  %v4061_v11 = vld [vmem:[%s4004_s27 + $0x58] sm:$0xff]  ;;  %v4064_v12 = vld [vmem:[%s4004_s27 + $0x50] sm:$0xff] }
  0x16   : > { %2682 = vst [vmem:[#allocation4] sm:$0xff] %v3867_v0  ;;  %2685 = vst [vmem:[#allocation4 + $0xc] sm:$0xff] %v3867_v0  ;;  %v4118_v20 = vld [vmem:[%s4004_s27 + $0x68] sm:$0xff]  ;;  %v4127_v21 = vld [vmem:[%s4004_s27 + $0x60] sm:$0xff] }
  0x17   : > { %2687 = vst [vmem:[#allocation4 + $0x18] sm:$0xff] %v3867_v0  ;;  %2689 = vst [vmem:[#allocation4 + $0x24] sm:$0xff] %v3867_v0  ;;  %v4160_v22 = vld [vmem:[%s4004_s27 + $0x78] sm:$0xff]  ;;  %v4169_v23 = vld [vmem:[%s4004_s27 + $0x70] sm:$0xff] }
  0x18   : > { %542 = vst.msk [vmem:[#allocation2 + $0x19] sm:$0x7f] %vm541_vm2, %v468_v2  ;;  %544 = vst.msk [vmem:[#allocation2 + $0x29] sm:$0x7f] %vm541_vm2, %v4009_v3  ;;  %v4203_v26 = vld [vmem:[%s4004_s27 + $0x88] sm:$0xff]  ;;  %v4213_v27 = vld [vmem:[%s4004_s27 + $0x80] sm:$0xff] }
  0x19   : > { %540 = vst.msk [vmem:[#allocation2 + $0x11] sm:$0xff] %vm539_vm1, %v467_v1  ;;  %543 = vst.msk [vmem:[#allocation2 + $0x21] sm:$0xff] %vm539_vm1, %v4014_v4  ;;  %603 = vrot.lane.b32.xlu1 %v468_v2, %s3870_s30  ;;  %601 = vrot.lane.b32.xlu0 %v467_v1, %s3870_s30  ;;  %v4262_v44 = vld [vmem:[%s4004_s27 + $0x98] sm:$0xff]  ;;  %v4271_v45 = vld [vmem:[%s4004_s27 + $0x90] sm:$0xff] }
  0x1a   : > { %546 = vst.msk [vmem:[#allocation2 + $0x39] sm:$0x7f] %vm541_vm2, %v4017_v5  ;;  %548 = vst.msk [vmem:[#allocation2 + $0x49] sm:$0x7f] %vm541_vm2, %v4027_v7  ;;  %v4322_v0 = vld [vmem:[%s4004_s27 + $0xa8] sm:$0xff] }
  0x1b   : > { %545 = vst.msk [vmem:[#allocation2 + $0x31] sm:$0xff] %vm539_vm1, %v4024_v6  ;;  %547 = vst.msk [vmem:[#allocation2 + $0x41] sm:$0xff] %vm539_vm1, %v4030_v8 }
  0x1c   : > { %549 = vst.msk [vmem:[#allocation2 + $0x51] sm:$0xff] %vm539_vm1, %v4040_v10  ;;  %551 = vst.msk [vmem:[#allocation2 + $0x61] sm:$0xff] %vm539_vm1, %v4064_v12 }
  0x1d   : > { %550 = vst.msk [vmem:[#allocation2 + $0x59] sm:$0x7f] %vm541_vm2, %v4037_v9  ;;  %1107 = vrot.lane.b32.xlu1 %v468_v2, %s3871_s13  ;;  %1105 = vrot.lane.b32.xlu0 %v467_v1, %s3871_s13  ;;  %552 = vst.msk [vmem:[#allocation2 + $0x69] sm:$0x7f] %vm541_vm2, %v4061_v11 }
  0x1e   : > { %554 = vst.msk [vmem:[#allocation2 + $0x79] sm:$0x7f] %vm541_vm2, %v4118_v20  ;;  %556 = vst.msk [vmem:[#allocation2 + $0x89] sm:$0x7f] %vm541_vm2, %v4160_v22 }
  0x1f   : > { %553 = vst.msk [vmem:[#allocation2 + $0x71] sm:$0xff] %vm539_vm1, %v4127_v21  ;;  %555 = vst.msk [vmem:[#allocation2 + $0x81] sm:$0xff] %vm539_vm1, %v4169_v23 }
  0x20   : > { %558 = vst.msk [vmem:[#allocation2 + $0x99] sm:$0x7f] %vm541_vm2, %v4203_v26  ;;  %560 = vst.msk [vmem:[#allocation2 + $0xa9] sm:$0x7f] %vm541_vm2, %v4262_v44 }
  0x21   : > { %724 = vrot.lane.b32.xlu1 %v468_v2, %s3872_s14  ;;  %722 = vrot.lane.b32.xlu0 %v467_v1, %s3872_s14  ;;  %557 = vst.msk [vmem:[#allocation2 + $0x91] sm:$0xff] %vm539_vm1, %v4213_v27  ;;  %559 = vst.msk [vmem:[#allocation2 + $0xa1] sm:$0xff] %vm539_vm1, %v4271_v45  ;;  %v4331_v1 = vld [vmem:[%s4004_s27 + $0xa0] sm:$0xff] }
  0x22   : > { %562 = vst.msk [vmem:[#allocation2 + $0xb9] sm:$0x7f] %vm541_vm2, %v4322_v0 }
  0x23   : > { %561 = vst.msk [vmem:[#allocation2 + $0xb1] sm:$0xff] %vm539_vm1, %v4331_v1 }
  0x25   : > { %1237 = vrot.lane.b32.xlu1 %v4009_v3, %s3873_s17  ;;  %1235 = vrot.lane.b32.xlu0 %v4014_v4, %s3873_s17 }
  0x29   : > { %852 = vrot.lane.b32.xlu1 %v4009_v3, %s3869_s29  ;;  %850 = vrot.lane.b32.xlu0 %v4014_v4, %s3869_s29 }
  0x2d   : > { %1359 = vrot.lane.b32.xlu1 %v4009_v3, %s3874_s26  ;;  %1357 = vrot.lane.b32.xlu0 %v4014_v4, %s3874_s26 }
  0x31   : > { %982 = vrot.lane.b32.xlu1 %v4009_v3, %s3868_s28  ;;  %980 = vrot.lane.b32.xlu0 %v4014_v4, %s3868_s28 }
  0x35   : > { %1480 = vrot.lane.b32.xlu1 %v4009_v3, %s3875_s18  ;;  %1478 = vrot.lane.b32.xlu0 %v4014_v4, %s3875_s18 }
  0x39   : > { %607 = vrot.lane.b32.xlu1 %v4009_v3, %s3870_s30  ;;  %605 = vrot.lane.b32.xlu0 %v4014_v4, %s3870_s30 }
  0x3d   : > { %1111 = vrot.lane.b32.xlu1 %v4009_v3, %s3871_s13  ;;  %1109 = vrot.lane.b32.xlu0 %v4014_v4, %s3871_s13 }
  0x41   : > { %728 = vrot.lane.b32.xlu1 %v4009_v3, %s3872_s14  ;;  %726 = vrot.lane.b32.xlu0 %v4014_v4, %s3872_s14 }
  0x45   : > { %1241 = vrot.lane.b32.xlu1 %v4017_v5, %s3873_s17  ;;  %1239 = vrot.lane.b32.xlu0 %v4024_v6, %s3873_s17 }
  0x49   : > { %856 = vrot.lane.b32.xlu1 %v4017_v5, %s3869_s29  ;;  %854 = vrot.lane.b32.xlu0 %v4024_v6, %s3869_s29 }
  0x4d   : > { %1363 = vrot.lane.b32.xlu1 %v4017_v5, %s3874_s26  ;;  %1361 = vrot.lane.b32.xlu0 %v4024_v6, %s3874_s26 }
  0x51   : > { %986 = vrot.lane.b32.xlu1 %v4017_v5, %s3868_s28  ;;  %984 = vrot.lane.b32.xlu0 %v4024_v6, %s3868_s28 }
  0x55   : > { %1484 = vrot.lane.b32.xlu1 %v4017_v5, %s3875_s18  ;;  %1482 = vrot.lane.b32.xlu0 %v4024_v6, %s3875_s18 }
  0x59   : > { %611 = vrot.lane.b32.xlu1 %v4017_v5, %s3870_s30  ;;  %609 = vrot.lane.b32.xlu0 %v4024_v6, %s3870_s30 }
  0x5d   : > { %1115 = vrot.lane.b32.xlu1 %v4017_v5, %s3871_s13  ;;  %1113 = vrot.lane.b32.xlu0 %v4024_v6, %s3871_s13 }
  0x61   : > { %732 = vrot.lane.b32.xlu1 %v4017_v5, %s3872_s14  ;;  %730 = vrot.lane.b32.xlu0 %v4024_v6, %s3872_s14 }
  0x65   : > { %1245 = vrot.lane.b32.xlu1 %v4027_v7, %s3873_s17  ;;  %1243 = vrot.lane.b32.xlu0 %v4030_v8, %s3873_s17 }
  0x69   : > { %860 = vrot.lane.b32.xlu1 %v4027_v7, %s3869_s29  ;;  %858 = vrot.lane.b32.xlu0 %v4030_v8, %s3869_s29 }
  0x6d   : > { %1367 = vrot.lane.b32.xlu1 %v4027_v7, %s3874_s26  ;;  %1365 = vrot.lane.b32.xlu0 %v4030_v8, %s3874_s26 }
  0x71   : > { %990 = vrot.lane.b32.xlu1 %v4027_v7, %s3868_s28  ;;  %988 = vrot.lane.b32.xlu0 %v4030_v8, %s3868_s28 }
  0x75   : > { %1488 = vrot.lane.b32.xlu1 %v4027_v7, %s3875_s18  ;;  %1486 = vrot.lane.b32.xlu0 %v4030_v8, %s3875_s18 }
  0x79   : > { %615 = vrot.lane.b32.xlu1 %v4027_v7, %s3870_s30  ;;  %613 = vrot.lane.b32.xlu0 %v4030_v8, %s3870_s30 }
  0x7d   : > { %1119 = vrot.lane.b32.xlu1 %v4027_v7, %s3871_s13  ;;  %1117 = vrot.lane.b32.xlu0 %v4030_v8, %s3871_s13 }
  0x81   : > { %736 = vrot.lane.b32.xlu1 %v4027_v7, %s3872_s14  ;;  %734 = vrot.lane.b32.xlu0 %v4030_v8, %s3872_s14 }
  0x83   : > { %v977_v24 = vpop.permute.xlu1 %976  ;;  %v847_v25 = vpop.permute.xlu0 %846 }
  0x84   : > { %943 = vst.msk [vmem:[#allocation2 + $0x1] sm:$0xff] %vm942_vm4, %v847_v25 }
  0x85   : > { %1249 = vrot.lane.b32.xlu1 %v4037_v9, %s3873_s17  ;;  %1247 = vrot.lane.b32.xlu0 %v4040_v10, %s3873_s17  ;;  %1073 = vst.msk [vmem:[#allocation2] sm:$0xff] %vm1072_vm5, %v977_v24  ;;  %v4382_v24 = vld [vmem:[%s4004_s27 + $0xb8] sm:$0xff] }
  0x86   : > { %564 = vst.msk [vmem:[#allocation2 + $0xc9] sm:$0x7f] %vm541_vm2, %v4382_v24 }
  0x87   : > { %v979_v28 = vpop.permute.xlu1 %978  ;;  %v849_v29 = vpop.permute.xlu0 %848 }
  0x88   : > { %945 = vst.msk [vmem:[#allocation2 + $0x9] sm:$0x7f] %vm944_vm6, %v849_v29 }
  0x89   : > { %1074 = vst.msk [vmem:[#allocation2 + $0x8] sm:$0xff] %vm1072_vm5, %v979_v28  ;;  %864 = vrot.lane.b32.xlu1 %v4037_v9, %s3869_s29  ;;  %862 = vrot.lane.b32.xlu0 %v4040_v10, %s3869_s29 }
  0x8b   : > { %v604_v30 = vpop.permute.xlu1 %603  ;;  %v602_v31 = vpop.permute.xlu0 %601 }
  0x8c   : > { %693 = vst.msk [vmem:[#allocation2 + $0x18] sm:$0xff] %vm691_vm7, %v604_v30  ;;  %692 = vst.msk [vmem:[#allocation2 + $0x10] sm:$0xff] %vm691_vm7, %v602_v31 }
  0x8d   : > { %1371 = vrot.lane.b32.xlu1 %v4037_v9, %s3874_s26  ;;  %1369 = vrot.lane.b32.xlu0 %v4040_v10, %s3874_s26 }
  0x8f   : > { %v1108_v32 = vpop.permute.xlu1 %1107  ;;  %v1106_v33 = vpop.permute.xlu0 %1105 }
  0x90   : > { %1204 = vst.msk [vmem:[#allocation2 + $0x7] sm:$0xff] %vm1203_vm8, %v1108_v32 }
  0x91   : > { %1202 = vst.msk [vmem:[#allocation2 - $0x1] sm:$0xfe] %vm1201_vm9, %v1106_v33  ;;  %994 = vrot.lane.b32.xlu1 %v4037_v9, %s3868_s28  ;;  %992 = vrot.lane.b32.xlu0 %v4040_v10, %s3868_s28 }
  0x93   : > { %v725_v34 = vpop.permute.xlu1 %724  ;;  %v723_v35 = vpop.permute.xlu0 %722 }
  0x94   : > { %815 = vst.msk [vmem:[#allocation2 + $0x17] sm:$0xff] %vm814_vm10, %v725_v34 }
  0x95   : > { %813 = vst.msk [vmem:[#allocation2 + $0xf] sm:$0xfe] %vm812_vm11, %v723_v35  ;;  %1492 = vrot.lane.b32.xlu1 %v4037_v9, %s3875_s18  ;;  %1490 = vrot.lane.b32.xlu0 %v4040_v10, %s3875_s18 }
  0x97   : > { %v1238_v36 = vpop.permute.xlu1 %1237  ;;  %v1236_v37 = vpop.permute.xlu0 %1235 }
  0x98   : > { %1328 = vst.msk [vmem:[#allocation2 + $0x9] sm:$0x7f] %vm1327_vm12, %v1238_v36 }
  0x99   : > { %1326 = vst.msk [vmem:[#allocation2 + $0x1] sm:$0xff] %vm1325_vm13, %v1236_v37  ;;  %619 = vrot.lane.b32.xlu1 %v4037_v9, %s3870_s30  ;;  %617 = vrot.lane.b32.xlu0 %v4040_v10, %s3870_s30 }
  0x9b   : > { %v853_v38 = vpop.permute.xlu1 %852  ;;  %v851_v39 = vpop.permute.xlu0 %850 }
  0x9c   : > { %947 = vst.msk [vmem:[#allocation2 + $0x19] sm:$0x7f] %vm944_vm6, %v853_v38 }
  0x9d   : > { %946 = vst.msk [vmem:[#allocation2 + $0x11] sm:$0xff] %vm942_vm4, %v851_v39  ;;  %1123 = vrot.lane.b32.xlu1 %v4037_v9, %s3871_s13  ;;  %1121 = vrot.lane.b32.xlu0 %v4040_v10, %s3871_s13 }
  0x9f   : > { %v1360_v40 = vpop.permute.xlu1 %1359  ;;  %v1358_v41 = vpop.permute.xlu0 %1357 }
  0xa0   : > { %1449 = vst.msk [vmem:[#allocation2 + $0x8] sm:$0xff] %vm1447_vm14, %v1360_v40  ;;  %1448 = vst.msk [vmem:[#allocation2] sm:$0xff] %vm1447_vm14, %v1358_v41 }
  0xa1   : > { %740 = vrot.lane.b32.xlu1 %v4037_v9, %s3872_s14  ;;  %738 = vrot.lane.b32.xlu0 %v4040_v10, %s3872_s14 }
  0xa3   : > { %v983_v42 = vpop.permute.xlu1 %982  ;;  %v981_v43 = vpop.permute.xlu0 %980 }
  0xa4   : > { %1076 = vst.msk [vmem:[#allocation2 + $0x18] sm:$0xff] %vm1072_vm5, %v983_v42  ;;  %1075 = vst.msk [vmem:[#allocation2 + $0x10] sm:$0xff] %vm1072_vm5, %v981_v43 }
  0xa5   : > { %1253 = vrot.lane.b32.xlu1 %v4061_v11, %s3873_s17  ;;  %1251 = vrot.lane.b32.xlu0 %v4064_v12, %s3873_s17 }
  0xa7   : > { %v1481_v46 = vpop.permute.xlu1 %1480  ;;  %v1479_v47 = vpop.permute.xlu0 %1478 }
  0xa8   : > { %1571 = vst.msk [vmem:[#allocation2 + $0x7] sm:$0xff] %vm1570_vm15, %v1481_v46  ;;  %v4446_v46 = vld [vmem:[%s4004_s27 + $0xc8] sm:$0xff] }
  0xa9   : > { %1569 = vst.msk [vmem:[#allocation2 - $0x1] sm:$0xfe] %vm1568_vm3, %v1479_v47  ;;  %868 = vrot.lane.b32.xlu1 %v4061_v11, %s3869_s29  ;;  %866 = vrot.lane.b32.xlu0 %v4064_v12, %s3869_s29 }
  0xaa   : > { %566 = vst.msk [vmem:[#allocation2 + $0xd9] sm:$0x7f] %vm541_vm2, %v4446_v46 }
  0xab   : > { %v608_v48 = vpop.permute.xlu1 %607  ;;  %v606_v49 = vpop.permute.xlu0 %605 }
  0xac   : > { %695 = vst.msk [vmem:[#allocation2 + $0x28] sm:$0xff] %vm691_vm7, %v608_v48  ;;  %694 = vst.msk [vmem:[#allocation2 + $0x20] sm:$0xff] %vm691_vm7, %v606_v49 }
  0xad   : > { %1375 = vrot.lane.b32.xlu1 %v4061_v11, %s3874_s26  ;;  %1373 = vrot.lane.b32.xlu0 %v4064_v12, %s3874_s26 }
  0xaf   : > { %v1112_v50 = vpop.permute.xlu1 %1111  ;;  %v1110_v51 = vpop.permute.xlu0 %1109  ;;  %v1601_v53 = vld [vmem:[#allocation2 + $0x8] sm:$0xff] }
  0xb0   : > { %v1600_v52 = vld [vmem:[#allocation2] sm:$0xff]  ;;  %1206 = vst.msk [vmem:[#allocation2 + $0x17] sm:$0xff] %vm1203_vm8, %v1112_v50 }
  0xb1   : > { %1205 = vst.msk [vmem:[#allocation2 + $0xf] sm:$0xfe] %vm1201_vm9, %v1110_v51  ;;  %3572 = vmatprep.mubr.msk.f32.mxu0 %vm505_vm0, %v1600_v52  ;;  %998 = vrot.lane.b32.xlu1 %v4061_v11, %s3868_s28 }
  0xb2   : > { %996 = vrot.lane.b32.xlu0 %v4064_v12, %s3868_s28  ;;  %3573 = vmatmul.mubr.msk.f32.vlgmr.msra.gmra.mrb[0].mxu0 %vm505_vm0, %v1601_v53 }
  0xb3   : > { %v729_v54 = vpop.permute.xlu1 %728  ;;  %v727_v55 = vpop.permute.xlu0 %726 }
  0xb4   : > { %817 = vst.msk [vmem:[#allocation2 + $0x27] sm:$0xff] %vm814_vm10, %v729_v54 }
  0xb5   : > { %816 = vst.msk [vmem:[#allocation2 + $0x1f] sm:$0xfe] %vm812_vm11, %v727_v55  ;;  %1496 = vrot.lane.b32.xlu1 %v4061_v11, %s3875_s18 }
  0xb6   : > { %1494 = vrot.lane.b32.xlu0 %v4064_v12, %s3875_s18 }
  0xb7   : > { %v1242_v56 = vpop.permute.xlu1 %1241  ;;  %v1240_v57 = vpop.permute.xlu0 %1239 }
  0xb8   : > { %1330 = vst.msk [vmem:[#allocation2 + $0x19] sm:$0x7f] %vm1327_vm12, %v1242_v56 }
  0xb9   : > { %1329 = vst.msk [vmem:[#allocation2 + $0x11] sm:$0xff] %vm1325_vm13, %v1240_v57  ;;  %623 = vrot.lane.b32.xlu1 %v4061_v11, %s3870_s30 }
  0xba   : > { %621 = vrot.lane.b32.xlu0 %v4064_v12, %s3870_s30 }
  0xbb   : > { %v857_v58 = vpop.permute.xlu1 %856  ;;  %v855_v59 = vpop.permute.xlu0 %854 }
  0xbc   : > { %949 = vst.msk [vmem:[#allocation2 + $0x29] sm:$0x7f] %vm944_vm6, %v857_v58 }
  0xbd   : > { %948 = vst.msk [vmem:[#allocation2 + $0x21] sm:$0xff] %vm942_vm4, %v855_v59  ;;  %1127 = vrot.lane.b32.xlu1 %v4061_v11, %s3871_s13 }
  0xbe   : > { %1125 = vrot.lane.b32.xlu0 %v4064_v12, %s3871_s13 }
  0xbf   : > { %v1364_v60 = vpop.permute.xlu1 %1363  ;;  %v1362_v61 = vpop.permute.xlu0 %1361 }
  0xc0   : > { %1451 = vst.msk [vmem:[#allocation2 + $0x18] sm:$0xff] %vm1447_vm14, %v1364_v60  ;;  %1450 = vst.msk [vmem:[#allocation2 + $0x10] sm:$0xff] %vm1447_vm14, %v1362_v61 }
  0xc1   : > { %744 = vrot.lane.b32.xlu1 %v4061_v11, %s3872_s14 }
  0xc2   : > { %742 = vrot.lane.b32.xlu0 %v4064_v12, %s3872_s14 }
  0xc3   : > { %v987_v62 = vpop.permute.xlu1 %986  ;;  %v985_v63 = vpop.permute.xlu0 %984 }
  0xc4   : > { %1078 = vst.msk [vmem:[#allocation2 + $0x28] sm:$0xff] %vm1072_vm5, %v987_v62  ;;  %1077 = vst.msk [vmem:[#allocation2 + $0x20] sm:$0xff] %vm1072_vm5, %v985_v63 }
  0xc5   : > { %1257 = vrot.lane.b32.xlu1 %v4118_v20, %s3873_s17 }
  0xc6   : > { %1255 = vrot.lane.b32.xlu0 %v4127_v21, %s3873_s17 }
  0xc7   : > { %v1485_v2 = vpop.permute.xlu1 %1484  ;;  %v1483_v3 = vpop.permute.xlu0 %1482 }
  0xc8   : > { %1573 = vst.msk [vmem:[#allocation2 + $0x17] sm:$0xff] %vm1570_vm15, %v1485_v2  ;;  %v4506_v2 = vld [vmem:[%s4004_s27 + $0xd8] sm:$0xff] }
  0xc9   : > { %1572 = vst.msk [vmem:[#allocation2 + $0xf] sm:$0xfe] %vm1568_vm3, %v1483_v3  ;;  %872 = vrot.lane.b32.xlu1 %v4118_v20, %s3869_s29  ;;  %v4509_v3 = vld [vmem:[%s4004_s27 + $0xd0] sm:$0xff] }
  0xca   : > { %870 = vrot.lane.b32.xlu0 %v4127_v21, %s3869_s29  ;;  %568 = vst.msk [vmem:[#allocation2 + $0xe9] sm:$0x7f] %vm541_vm2, %v4506_v2 }
  0xcb   : > { %v612_v4 = vpop.permute.xlu1 %611  ;;  %v610_v5 = vpop.permute.xlu0 %609  ;;  %567 = vst.msk [vmem:[#allocation2 + $0xe1] sm:$0xff] %vm539_vm1, %v4509_v3 }
  0xcc   : > { %697 = vst.msk [vmem:[#allocation2 + $0x38] sm:$0xff] %vm691_vm7, %v612_v4  ;;  %696 = vst.msk [vmem:[#allocation2 + $0x30] sm:$0xff] %vm691_vm7, %v610_v5 }
  0xcd   : > { %1379 = vrot.lane.b32.xlu1 %v4118_v20, %s3874_s26 }
  0xce   : > { %1377 = vrot.lane.b32.xlu0 %v4127_v21, %s3874_s26 }
  0xcf   : > { %v1116_v6 = vpop.permute.xlu1 %1115  ;;  %v1114_v7 = vpop.permute.xlu0 %1113  ;;  %v1603_v9 = vld [vmem:[#allocation2 + $0x18] sm:$0xff] }
  0xd0   : > { %v1602_v8 = vld [vmem:[#allocation2 + $0x10] sm:$0xff]  ;;  %1208 = vst.msk [vmem:[#allocation2 + $0x27] sm:$0xff] %vm1203_vm8, %v1116_v6 }
  0xd1   : > { %1207 = vst.msk [vmem:[#allocation2 + $0x1f] sm:$0xfe] %vm1201_vm9, %v1114_v7  ;;  %3575 = vmatprep.mubr.msk.f32.mxu0 %vm505_vm0, %v1602_v8  ;;  %1002 = vrot.lane.b32.xlu1 %v4118_v20, %s3868_s28 }
  0xd2   : > { %1000 = vrot.lane.b32.xlu0 %v4127_v21, %s3868_s28  ;;  %3576 = vmatmul.mubr.msk.f32.gmra.mrb[2].mxu0 %vm505_vm0, %v1603_v9 }
  0xd3   : > { %v733_v10 = vpop.permute.xlu1 %732  ;;  %v731_v11 = vpop.permute.xlu0 %730 }
  0xd4   : > { %819 = vst.msk [vmem:[#allocation2 + $0x37] sm:$0xff] %vm814_vm10, %v733_v10 }
  0xd5   : > { %818 = vst.msk [vmem:[#allocation2 + $0x2f] sm:$0xfe] %vm812_vm11, %v731_v11  ;;  %1500 = vrot.lane.b32.xlu1 %v4118_v20, %s3875_s18 }
  0xd6   : > { %1498 = vrot.lane.b32.xlu0 %v4127_v21, %s3875_s18 }
  0xd7   : > { %v1246_v12 = vpop.permute.xlu1 %1245  ;;  %v1244_v13 = vpop.permute.xlu0 %1243 }
  0xd8   : > { %1332 = vst.msk [vmem:[#allocation2 + $0x29] sm:$0x7f] %vm1327_vm12, %v1246_v12 }
  0xd9   : > { %1331 = vst.msk [vmem:[#allocation2 + $0x21] sm:$0xff] %vm1325_vm13, %v1244_v13  ;;  %627 = vrot.lane.b32.xlu1 %v4118_v20, %s3870_s30 }
  0xda   : > { %625 = vrot.lane.b32.xlu0 %v4127_v21, %s3870_s30 }
  0xdb   : > { %v861_v14 = vpop.permute.xlu1 %860  ;;  %v859_v15 = vpop.permute.xlu0 %858 }
  0xdc   : > { %951 = vst.msk [vmem:[#allocation2 + $0x39] sm:$0x7f] %vm944_vm6, %v861_v14 }
  0xdd   : > { %950 = vst.msk [vmem:[#allocation2 + $0x31] sm:$0xff] %vm942_vm4, %v859_v15  ;;  %1131 = vrot.lane.b32.xlu1 %v4118_v20, %s3871_s13 }
  0xde   : > { %1129 = vrot.lane.b32.xlu0 %v4127_v21, %s3871_s13 }
  0xdf   : > { %v1368_v16 = vpop.permute.xlu1 %1367  ;;  %v1366_v17 = vpop.permute.xlu0 %1365 }
  0xe0   : > { %1453 = vst.msk [vmem:[#allocation2 + $0x28] sm:$0xff] %vm1447_vm14, %v1368_v16  ;;  %1452 = vst.msk [vmem:[#allocation2 + $0x20] sm:$0xff] %vm1447_vm14, %v1366_v17 }
  0xe1   : > { %748 = vrot.lane.b32.xlu1 %v4118_v20, %s3872_s14  ;;  %v4391_v20 = vld [vmem:[%s4004_s27 + $0xb0] sm:$0xff] }
  0xe2   : > { %746 = vrot.lane.b32.xlu0 %v4127_v21, %s3872_s14  ;;  %563 = vst.msk [vmem:[#allocation2 + $0xc1] sm:$0xff] %vm539_vm1, %v4391_v20 }
  0xe3   : > { %v991_v18 = vpop.permute.xlu1 %990  ;;  %v989_v19 = vpop.permute.xlu0 %988 }
  0xe4   : > { %1080 = vst.msk [vmem:[#allocation2 + $0x38] sm:$0xff] %vm1072_vm5, %v991_v18  ;;  %1079 = vst.msk [vmem:[#allocation2 + $0x30] sm:$0xff] %vm1072_vm5, %v989_v19 }
  0xe5   : > { %1261 = vrot.lane.b32.xlu1 %v4160_v22, %s3873_s17 }
  0xe6   : > { %1259 = vrot.lane.b32.xlu0 %v4169_v23, %s3873_s17 }
  0xe7   : > { %v1489_v21 = vpop.permute.xlu1 %1488  ;;  %v1487_v25 = vpop.permute.xlu0 %1486 }
  0xe8   : > { %1575 = vst.msk [vmem:[#allocation2 + $0x27] sm:$0xff] %vm1570_vm15, %v1489_v21  ;;  %v4566_v21 = vld [vmem:[%s4004_s27 + $0xe8] sm:$0xff] }
  0xe9   : > { %1574 = vst.msk [vmem:[#allocation2 + $0x1f] sm:$0xfe] %vm1568_vm3, %v1487_v25  ;;  %876 = vrot.lane.b32.xlu1 %v4160_v22, %s3869_s29  ;;  %v4569_v25 = vld [vmem:[%s4004_s27 + $0xe0] sm:$0xff] }
  0xea   : > { %874 = vrot.lane.b32.xlu0 %v4169_v23, %s3869_s29  ;;  %570 = vst.msk [vmem:[#allocation2 + $0xf9] sm:$0x7f] %vm541_vm2, %v4566_v21  ;;  %vm2172_vm2 = vcmask 130112  }
  0xeb   : > { %v616_v28 = vpop.permute.xlu1 %615  ;;  %v614_v29 = vpop.permute.xlu0 %613  ;;  %569 = vst.msk [vmem:[#allocation2 + $0xf1] sm:$0xff] %vm539_vm1, %v4569_v25 }
  0xec   : > { %699 = vst.msk [vmem:[#allocation2 + $0x48] sm:$0xff] %vm691_vm7, %v616_v28  ;;  %698 = vst.msk [vmem:[#allocation2 + $0x40] sm:$0xff] %vm691_vm7, %v614_v29 }
  0xed   : > { %1383 = vrot.lane.b32.xlu1 %v4160_v22, %s3874_s26 }
  0xee   : > { %1381 = vrot.lane.b32.xlu0 %v4169_v23, %s3874_s26 }
  0xef   : > { %v1120_v30 = vpop.permute.xlu1 %1119  ;;  %v1118_v31 = vpop.permute.xlu0 %1117  ;;  %v1605_v33 = vld [vmem:[#allocation2 + $0x28] sm:$0xff] }
  0xf0   : > { %v1604_v32 = vld [vmem:[#allocation2 + $0x20] sm:$0xff]  ;;  %1210 = vst.msk [vmem:[#allocation2 + $0x37] sm:$0xff] %vm1203_vm8, %v1120_v30 }
  0xf1   : > { %1209 = vst.msk [vmem:[#allocation2 + $0x2f] sm:$0xfe] %vm1201_vm9, %v1118_v31  ;;  %3578 = vmatprep.mubr.msk.f32.mxu0 %vm505_vm0, %v1604_v32  ;;  %1006 = vrot.lane.b32.xlu1 %v4160_v22, %s3868_s28 }
  0xf2   : > { %1004 = vrot.lane.b32.xlu0 %v4169_v23, %s3868_s28  ;;  %3579 = vmatmul.mubr.msk.f32.gmra.mrb[4].mxu0 %vm505_vm0, %v1605_v33 }
  0xf3   : > { %v737_v34 = vpop.permute.xlu1 %736  ;;  %v735_v35 = vpop.permute.xlu0 %734 }
  0xf4   : > { %821 = vst.msk [vmem:[#allocation2 + $0x47] sm:$0xff] %vm814_vm10, %v737_v34 }
  0xf5   : > { %820 = vst.msk [vmem:[#allocation2 + $0x3f] sm:$0xfe] %vm812_vm11, %v735_v35  ;;  %1504 = vrot.lane.b32.xlu1 %v4160_v22, %s3875_s18 }
  0xf6   : > { %1502 = vrot.lane.b32.xlu0 %v4169_v23, %s3875_s18 }
  0xf7   : > { %v1250_v36 = vpop.permute.xlu1 %1249  ;;  %v1248_v37 = vpop.permute.xlu0 %1247 }
  0xf8   : > { %1334 = vst.msk [vmem:[#allocation2 + $0x39] sm:$0x7f] %vm1327_vm12, %v1250_v36 }
  0xf9   : > { %1333 = vst.msk [vmem:[#allocation2 + $0x31] sm:$0xff] %vm1325_vm13, %v1248_v37  ;;  %631 = vrot.lane.b32.xlu1 %v4160_v22, %s3870_s30 }
  0xfa   : > { %629 = vrot.lane.b32.xlu0 %v4169_v23, %s3870_s30 }
  0xfb   : > { %v865_v38 = vpop.permute.xlu1 %864  ;;  %v863_v39 = vpop.permute.xlu0 %862 }
  0xfc   : > { %953 = vst.msk [vmem:[#allocation2 + $0x49] sm:$0x7f] %vm944_vm6, %v865_v38 }
  0xfd   : > { %952 = vst.msk [vmem:[#allocation2 + $0x41] sm:$0xff] %vm942_vm4, %v863_v39  ;;  %1135 = vrot.lane.b32.xlu1 %v4160_v22, %s3871_s13 }
  0xfe   : > { %1133 = vrot.lane.b32.xlu0 %v4169_v23, %s3871_s13 }
  0xff   : > { %v1372_v40 = vpop.permute.xlu1 %1371  ;;  %v1370_v41 = vpop.permute.xlu0 %1369 }
 0x100   : > { %1455 = vst.msk [vmem:[#allocation2 + $0x38] sm:$0xff] %vm1447_vm14, %v1372_v40  ;;  %1454 = vst.msk [vmem:[#allocation2 + $0x30] sm:$0xff] %vm1447_vm14, %v1370_v41 }
 0x101   : > { %752 = vrot.lane.b32.xlu1 %v4160_v22, %s3872_s14  ;;  %v4451_v22 = vld [vmem:[%s4004_s27 + $0xc0] sm:$0xff] }
 0x102   : > { %750 = vrot.lane.b32.xlu0 %v4169_v23, %s3872_s14  ;;  %565 = vst.msk [vmem:[#allocation2 + $0xd1] sm:$0xff] %vm539_vm1, %v4451_v22  ;;  %vm2136_vm1 = vcmask 63488  }
 0x103   : > { %v995_v42 = vpop.permute.xlu1 %994  ;;  %v993_v43 = vpop.permute.xlu0 %992 }
 0x104   : > { %1082 = vst.msk [vmem:[#allocation2 + $0x48] sm:$0xff] %vm1072_vm5, %v995_v42  ;;  %1081 = vst.msk [vmem:[#allocation2 + $0x40] sm:$0xff] %vm1072_vm5, %v993_v43 }
 0x105   : > { %1265 = vrot.lane.b32.xlu1 %v4203_v26, %s3873_s17 }
 0x106   : > { %1263 = vrot.lane.b32.xlu0 %v4213_v27, %s3873_s17 }
 0x107   : > { %v1493_v23 = vpop.permute.xlu1 %1492  ;;  %v1491_v47 = vpop.permute.xlu0 %1490 }
 0x108   : > { %1577 = vst.msk [vmem:[#allocation2 + $0x37] sm:$0xff] %vm1570_vm15, %v1493_v23 }
 0x109   : > { %1576 = vst.msk [vmem:[#allocation2 + $0x2f] sm:$0xfe] %vm1568_vm3, %v1491_v47  ;;  %880 = vrot.lane.b32.xlu1 %v4203_v26, %s3869_s29 }
 0x10a   : > { %878 = vrot.lane.b32.xlu0 %v4213_v27, %s3869_s29 }
 0x10b   : > { %v620_v48 = vpop.permute.xlu1 %619  ;;  %v618_v49 = vpop.permute.xlu0 %617 }
 0x10c   : > { %701 = vst.msk [vmem:[#allocation2 + $0x58] sm:$0xff] %vm691_vm7, %v620_v48  ;;  %700 = vst.msk [vmem:[#allocation2 + $0x50] sm:$0xff] %vm691_vm7, %v618_v49 }
 0x10d   : > { %1387 = vrot.lane.b32.xlu1 %v4203_v26, %s3874_s26 }
 0x10e   : > { %1385 = vrot.lane.b32.xlu0 %v4213_v27, %s3874_s26 }
 0x10f   : > { %v1124_v50 = vpop.permute.xlu1 %1123  ;;  %v1122_v51 = vpop.permute.xlu0 %1121  ;;  %v1607_v53 = vld [vmem:[#allocation2 + $0x38] sm:$0xff] }
 0x110   : > { %v1606_v52 = vld [vmem:[#allocation2 + $0x30] sm:$0xff]  ;;  %1212 = vst.msk [vmem:[#allocation2 + $0x47] sm:$0xff] %vm1203_vm8, %v1124_v50 }
 0x111   : > { %1211 = vst.msk [vmem:[#allocation2 + $0x3f] sm:$0xfe] %vm1201_vm9, %v1122_v51  ;;  %3581 = vmatprep.mubr.msk.f32.mxu0 %vm505_vm0, %v1606_v52  ;;  %1010 = vrot.lane.b32.xlu1 %v4203_v26, %s3868_s28 }
 0x112   : > { %1008 = vrot.lane.b32.xlu0 %v4213_v27, %s3868_s28  ;;  %3582 = vmatmul.mubr.msk.f32.gmra.mrb[6].mxu0 %vm505_vm0, %v1607_v53 }
 0x113   : > { %v741_v54 = vpop.permute.xlu1 %740  ;;  %v739_v55 = vpop.permute.xlu0 %738 }
 0x114   : > { %823 = vst.msk [vmem:[#allocation2 + $0x57] sm:$0xff] %vm814_vm10, %v741_v54 }
 0x115   : > { %822 = vst.msk [vmem:[#allocation2 + $0x4f] sm:$0xfe] %vm812_vm11, %v739_v55  ;;  %1508 = vrot.lane.b32.xlu1 %v4203_v26, %s3875_s18 }
 0x116   : > { %1506 = vrot.lane.b32.xlu0 %v4213_v27, %s3875_s18 }
 0x117   : > { %v1254_v56 = vpop.permute.xlu1 %1253  ;;  %v1252_v57 = vpop.permute.xlu0 %1251 }
 0x118   : > { %1336 = vst.msk [vmem:[#allocation2 + $0x49] sm:$0x7f] %vm1327_vm12, %v1254_v56 }
 0x119   : > { %1335 = vst.msk [vmem:[#allocation2 + $0x41] sm:$0xff] %vm1325_vm13, %v1252_v57  ;;  %635 = vrot.lane.b32.xlu1 %v4203_v26, %s3870_s30 }
 0x11a   : > { %633 = vrot.lane.b32.xlu0 %v4213_v27, %s3870_s30 }
 0x11b   : > { %v869_v58 = vpop.permute.xlu1 %868  ;;  %v867_v59 = vpop.permute.xlu0 %866 }
 0x11c   : > { %955 = vst.msk [vmem:[#allocation2 + $0x59] sm:$0x7f] %vm944_vm6, %v869_v58 }
 0x11d   : > { %954 = vst.msk [vmem:[#allocation2 + $0x51] sm:$0xff] %vm942_vm4, %v867_v59  ;;  %1139 = vrot.lane.b32.xlu1 %v4203_v26, %s3871_s13 }
 0x11e   : > { %1137 = vrot.lane.b32.xlu0 %v4213_v27, %s3871_s13 }
 0x11f   : > { %v1376_v60 = vpop.permute.xlu1 %1375  ;;  %v1374_v61 = vpop.permute.xlu0 %1373 }
 0x120   : > { %1457 = vst.msk [vmem:[#allocation2 + $0x48] sm:$0xff] %vm1447_vm14, %v1376_v60  ;;  %1456 = vst.msk [vmem:[#allocation2 + $0x40] sm:$0xff] %vm1447_vm14, %v1374_v61 }
 0x121   : > { %756 = vrot.lane.b32.xlu1 %v4203_v26, %s3872_s14 }
 0x122   : > { %754 = vrot.lane.b32.xlu0 %v4213_v27, %s3872_s14 }
 0x123   : > { %v999_v62 = vpop.permute.xlu1 %998 }
 0x124   : > { %v997_v63 = vpop.permute.xlu0 %996  ;;  %1084 = vst.msk [vmem:[#allocation2 + $0x58] sm:$0xff] %vm1072_vm5, %v999_v62  ;;  %v4672_v62 = vld [vmem:[%s5614_s4] ss:$0 sm:$0xff] }
 0x125   : > { %1083 = vst.msk [vmem:[#allocation2 + $0x50] sm:$0xff] %vm1072_vm5, %v997_v63  ;;  %1269 = vrot.lane.b32.xlu1 %v4262_v44, %s3873_s17 }
 0x126   : > { %1267 = vrot.lane.b32.xlu0 %v4271_v45, %s3873_s17 }
 0x127   : > { %v1497_v26 = vpop.permute.xlu1 %1496 }
 0x128   : > { %v1495_v27 = vpop.permute.xlu0 %1494  ;;  %1579 = vst.msk [vmem:[#allocation2 + $0x47] sm:$0xff] %vm1570_vm15, %v1497_v26 }
 0x129   : > { %1578 = vst.msk [vmem:[#allocation2 + $0x3f] sm:$0xfe] %vm1568_vm3, %v1495_v27  ;;  %884 = vrot.lane.b32.xlu1 %v4262_v44, %s3869_s29 }
 0x12a   : > { %882 = vrot.lane.b32.xlu0 %v4271_v45, %s3869_s29 }
 0x12b   : > { %v624_v4 = vpop.permute.xlu1 %623 }
 0x12c   : > { %v622_v5 = vpop.permute.xlu0 %621  ;;  %703 = vst.msk [vmem:[#allocation2 + $0x68] sm:$0xff] %vm691_vm7, %v624_v4 }
 0x12d   : > { %702 = vst.msk [vmem:[#allocation2 + $0x60] sm:$0xff] %vm691_vm7, %v622_v5  ;;  %1391 = vrot.lane.b32.xlu1 %v4262_v44, %s3874_s26 }
 0x12e   : > { %1389 = vrot.lane.b32.xlu0 %v4271_v45, %s3874_s26 }
 0x12f   : > { %v1128_v6 = vpop.permute.xlu1 %1127  ;;  %v1609_v9 = vld [vmem:[#allocation2 + $0x48] sm:$0xff] }
 0x130   : > { %v1126_v7 = vpop.permute.xlu0 %1125  ;;  %v1608_v8 = vld [vmem:[#allocation2 + $0x40] sm:$0xff]  ;;  %1214 = vst.msk [vmem:[#allocation2 + $0x57] sm:$0xff] %vm1203_vm8, %v1128_v6 }
 0x131   : > { %1213 = vst.msk [vmem:[#allocation2 + $0x4f] sm:$0xfe] %vm1201_vm9, %v1126_v7  ;;  %3584 = vmatprep.mubr.msk.f32.mxu0 %vm505_vm0, %v1608_v8  ;;  %1014 = vrot.lane.b32.xlu1 %v4262_v44, %s3868_s28 }
 0x132   : > { %1012 = vrot.lane.b32.xlu0 %v4271_v45, %s3868_s28  ;;  %3585 = vmatmul.mubr.msk.f32.gmra.mrb[8].mxu0 %vm505_vm0, %v1609_v9 }
 0x133   : > { %v745_v10 = vpop.permute.xlu1 %744 }
 0x134   : > { %v743_v11 = vpop.permute.xlu0 %742  ;;  %825 = vst.msk [vmem:[#allocation2 + $0x67] sm:$0xff] %vm814_vm10, %v745_v10 }
 0x135   : > { %824 = vst.msk [vmem:[#allocation2 + $0x5f] sm:$0xfe] %vm812_vm11, %v743_v11  ;;  %1512 = vrot.lane.b32.xlu1 %v4262_v44, %s3875_s18 }
 0x136   : > { %1510 = vrot.lane.b32.xlu0 %v4271_v45, %s3875_s18 }
 0x137   : > { %v1258_v12 = vpop.permute.xlu1 %1257 }
 0x138   : > { %v1256_v13 = vpop.permute.xlu0 %1255  ;;  %1338 = vst.msk [vmem:[#allocation2 + $0x59] sm:$0x7f] %vm1327_vm12, %v1258_v12 }
 0x139   : > { %1337 = vst.msk [vmem:[#allocation2 + $0x51] sm:$0xff] %vm1325_vm13, %v1256_v13  ;;  %639 = vrot.lane.b32.xlu1 %v4262_v44, %s3870_s30 }
 0x13a   : > { %637 = vrot.lane.b32.xlu0 %v4271_v45, %s3870_s30 }
 0x13b   : > { %v873_v14 = vpop.permute.xlu1 %872 }
 0x13c   : > { %v871_v15 = vpop.permute.xlu0 %870  ;;  %957 = vst.msk [vmem:[#allocation2 + $0x69] sm:$0x7f] %vm944_vm6, %v873_v14 }
 0x13d   : > { %956 = vst.msk [vmem:[#allocation2 + $0x61] sm:$0xff] %vm942_vm4, %v871_v15  ;;  %1143 = vrot.lane.b32.xlu1 %v4262_v44, %s3871_s13 }
 0x13e   : > { %1141 = vrot.lane.b32.xlu0 %v4271_v45, %s3871_s13 }
 0x13f   : > { %v1380_v16 = vpop.permute.xlu1 %1379 }
 0x140   : > { %v1378_v17 = vpop.permute.xlu0 %1377  ;;  %1459 = vst.msk [vmem:[#allocation2 + $0x58] sm:$0xff] %vm1447_vm14, %v1380_v16 }
 0x141   : > { %1458 = vst.msk [vmem:[#allocation2 + $0x50] sm:$0xff] %vm1447_vm14, %v1378_v17  ;;  %760 = vrot.lane.b32.xlu1 %v4262_v44, %s3872_s14 }
 0x142   : > { %758 = vrot.lane.b32.xlu0 %v4271_v45, %s3872_s14 }
 0x143   : > { %v1003_v18 = vpop.permute.xlu1 %1002 }
 0x144   : > { %v1001_v19 = vpop.permute.xlu0 %1000  ;;  %1086 = vst.msk [vmem:[#allocation2 + $0x68] sm:$0xff] %vm1072_vm5, %v1003_v18 }
 0x145   : > { %1085 = vst.msk [vmem:[#allocation2 + $0x60] sm:$0xff] %vm1072_vm5, %v1001_v19  ;;  %1273 = vrot.lane.b32.xlu1 %v4322_v0, %s3873_s17 }
 0x146   : > { %1271 = vrot.lane.b32.xlu0 %v4331_v1, %s3873_s17 }
 0x147   : > { %v1501_v44 = vpop.permute.xlu1 %1500 }
 0x148   : > { %v1499_v45 = vpop.permute.xlu0 %1498  ;;  %1581 = vst.msk [vmem:[#allocation2 + $0x57] sm:$0xff] %vm1570_vm15, %v1501_v44 }
 0x149   : > { %1580 = vst.msk [vmem:[#allocation2 + $0x4f] sm:$0xfe] %vm1568_vm3, %v1499_v45  ;;  %888 = vrot.lane.b32.xlu1 %v4322_v0, %s3869_s29 }
 0x14a   : > { %886 = vrot.lane.b32.xlu0 %v4331_v1, %s3869_s29 }
 0x14b   : > { %v628_v28 = vpop.permute.xlu1 %627 }
 0x14c   : > { %v626_v29 = vpop.permute.xlu0 %625  ;;  %705 = vst.msk [vmem:[#allocation2 + $0x78] sm:$0xff] %vm691_vm7, %v628_v28 }
 0x14d   : > { %704 = vst.msk [vmem:[#allocation2 + $0x70] sm:$0xff] %vm691_vm7, %v626_v29  ;;  %1395 = vrot.lane.b32.xlu1 %v4322_v0, %s3874_s26 }
 0x14e   : > { %1393 = vrot.lane.b32.xlu0 %v4331_v1, %s3874_s26 }
 0x14f   : > { %v1132_v30 = vpop.permute.xlu1 %1131  ;;  %v1611_v33 = vld [vmem:[#allocation2 + $0x58] sm:$0xff] }
 0x150   : > { %v1130_v31 = vpop.permute.xlu0 %1129  ;;  %v1610_v32 = vld [vmem:[#allocation2 + $0x50] sm:$0xff]  ;;  %1216 = vst.msk [vmem:[#allocation2 + $0x67] sm:$0xff] %vm1203_vm8, %v1132_v30 }
 0x151   : > { %1215 = vst.msk [vmem:[#allocation2 + $0x5f] sm:$0xfe] %vm1201_vm9, %v1130_v31  ;;  %3587 = vmatprep.mubr.msk.f32.mxu0 %vm505_vm0, %v1610_v32  ;;  %1018 = vrot.lane.b32.xlu1 %v4322_v0, %s3868_s28 }
 0x152   : > { %1016 = vrot.lane.b32.xlu0 %v4331_v1, %s3868_s28  ;;  %3588 = vmatmul.mubr.msk.f32.gmra.mrb[10].mxu0 %vm505_vm0, %v1611_v33 }
 0x153   : > { %v749_v34 = vpop.permute.xlu1 %748 }
 0x154   : > { %v747_v35 = vpop.permute.xlu0 %746  ;;  %827 = vst.msk [vmem:[#allocation2 + $0x77] sm:$0xff] %vm814_vm10, %v749_v34 }
 0x155   : > { %826 = vst.msk [vmem:[#allocation2 + $0x6f] sm:$0xfe] %vm812_vm11, %v747_v35  ;;  %1516 = vrot.lane.b32.xlu1 %v4322_v0, %s3875_s18 }
 0x156   : > { %1514 = vrot.lane.b32.xlu0 %v4331_v1, %s3875_s18 }
 0x157   : > { %v1262_v36 = vpop.permute.xlu1 %1261 }
 0x158   : > { %v1260_v37 = vpop.permute.xlu0 %1259  ;;  %1340 = vst.msk [vmem:[#allocation2 + $0x69] sm:$0x7f] %vm1327_vm12, %v1262_v36 }
 0x159   : > { %1339 = vst.msk [vmem:[#allocation2 + $0x61] sm:$0xff] %vm1325_vm13, %v1260_v37  ;;  %643 = vrot.lane.b32.xlu1 %v4322_v0, %s3870_s30 }
 0x15a   : > { %641 = vrot.lane.b32.xlu0 %v4331_v1, %s3870_s30 }
 0x15b   : > { %v877_v38 = vpop.permute.xlu1 %876 }
 0x15c   : > { %v875_v39 = vpop.permute.xlu0 %874  ;;  %959 = vst.msk [vmem:[#allocation2 + $0x79] sm:$0x7f] %vm944_vm6, %v877_v38 }
 0x15d   : > { %958 = vst.msk [vmem:[#allocation2 + $0x71] sm:$0xff] %vm942_vm4, %v875_v39  ;;  %1147 = vrot.lane.b32.xlu1 %v4322_v0, %s3871_s13 }
 0x15e   : > { %1145 = vrot.lane.b32.xlu0 %v4331_v1, %s3871_s13 }
 0x15f   : > { %v1384_v40 = vpop.permute.xlu1 %1383 }
 0x160   : > { %v1382_v41 = vpop.permute.xlu0 %1381  ;;  %1461 = vst.msk [vmem:[#allocation2 + $0x68] sm:$0xff] %vm1447_vm14, %v1384_v40 }
 0x161   : > { %1460 = vst.msk [vmem:[#allocation2 + $0x60] sm:$0xff] %vm1447_vm14, %v1382_v41  ;;  %764 = vrot.lane.b32.xlu1 %v4322_v0, %s3872_s14 }
 0x162   : > { %762 = vrot.lane.b32.xlu0 %v4331_v1, %s3872_s14 }
 0x163   : > { %v1007_v42 = vpop.permute.xlu1 %1006 }
 0x164   : > { %v1005_v43 = vpop.permute.xlu0 %1004  ;;  %1088 = vst.msk [vmem:[#allocation2 + $0x78] sm:$0xff] %vm1072_vm5, %v1007_v42 }
 0x165   : > { %1087 = vst.msk [vmem:[#allocation2 + $0x70] sm:$0xff] %vm1072_vm5, %v1005_v43  ;;  %1277 = vrot.lane.b32.xlu1 %v4382_v24, %s3873_s17 }
 0x166   : > { %1275 = vrot.lane.b32.xlu0 %v4391_v20, %s3873_s17 }
 0x167   : > { %v1505_v23 = vpop.permute.xlu1 %1504 }
 0x168   : > { %v1503_v47 = vpop.permute.xlu0 %1502  ;;  %1583 = vst.msk [vmem:[#allocation2 + $0x67] sm:$0xff] %vm1570_vm15, %v1505_v23 }
 0x169   : > { %1582 = vst.msk [vmem:[#allocation2 + $0x5f] sm:$0xfe] %vm1568_vm3, %v1503_v47  ;;  %892 = vrot.lane.b32.xlu1 %v4382_v24, %s3869_s29 }
 0x16a   : > { %890 = vrot.lane.b32.xlu0 %v4391_v20, %s3869_s29 }
 0x16b   : > { %v632_v0 = vpop.permute.xlu1 %631 }
 0x16c   : > { %v630_v1 = vpop.permute.xlu0 %629  ;;  %707 = vst.msk [vmem:[#allocation2 + $0x88] sm:$0xff] %vm691_vm7, %v632_v0 }
 0x16d   : > { %706 = vst.msk [vmem:[#allocation2 + $0x80] sm:$0xff] %vm691_vm7, %v630_v1  ;;  %1399 = vrot.lane.b32.xlu1 %v4382_v24, %s3874_s26 }
 0x16e   : > { %1397 = vrot.lane.b32.xlu0 %v4391_v20, %s3874_s26 }
 0x16f   : > { %v1136_v48 = vpop.permute.xlu1 %1135  ;;  %v1613_v51 = vld [vmem:[#allocation2 + $0x68] sm:$0xff] }
 0x170   : > { %v1134_v49 = vpop.permute.xlu0 %1133  ;;  %v1612_v50 = vld [vmem:[#allocation2 + $0x60] sm:$0xff]  ;;  %1218 = vst.msk [vmem:[#allocation2 + $0x77] sm:$0xff] %vm1203_vm8, %v1136_v48 }
 0x171   : > { %1217 = vst.msk [vmem:[#allocation2 + $0x6f] sm:$0xfe] %vm1201_vm9, %v1134_v49  ;;  %3590 = vmatprep.mubr.msk.f32.mxu0 %vm505_vm0, %v1612_v50  ;;  %1022 = vrot.lane.b32.xlu1 %v4382_v24, %s3868_s28 }
 0x172   : > { %1020 = vrot.lane.b32.xlu0 %v4391_v20, %s3868_s28  ;;  %3591 = vmatmul.mubr.msk.f32.gmra.mrb[12].mxu0 %vm505_vm0, %v1613_v51 }
 0x173   : > { %v753_v52 = vpop.permute.xlu1 %752 }
 0x174   : > { %v751_v53 = vpop.permute.xlu0 %750  ;;  %829 = vst.msk [vmem:[#allocation2 + $0x87] sm:$0xff] %vm814_vm10, %v753_v52 }
 0x175   : > { %828 = vst.msk [vmem:[#allocation2 + $0x7f] sm:$0xfe] %vm812_vm11, %v751_v53  ;;  %1520 = vrot.lane.b32.xlu1 %v4382_v24, %s3875_s18 }
 0x176   : > { %1518 = vrot.lane.b32.xlu0 %v4391_v20, %s3875_s18 }
 0x177   : > { %v1266_v54 = vpop.permute.xlu1 %1265 }
 0x178   : > { %v1264_v55 = vpop.permute.xlu0 %1263  ;;  %1342 = vst.msk [vmem:[#allocation2 + $0x79] sm:$0x7f] %vm1327_vm12, %v1266_v54 }
 0x179   : > { %1341 = vst.msk [vmem:[#allocation2 + $0x71] sm:$0xff] %vm1325_vm13, %v1264_v55  ;;  %647 = vrot.lane.b32.xlu1 %v4382_v24, %s3870_s30 }
 0x17a   : > { %645 = vrot.lane.b32.xlu0 %v4391_v20, %s3870_s30 }
 0x17b   : > { %v881_v56 = vpop.permute.xlu1 %880 }
 0x17c   : > { %v879_v57 = vpop.permute.xlu0 %878  ;;  %961 = vst.msk [vmem:[#allocation2 + $0x89] sm:$0x7f] %vm944_vm6, %v881_v56 }
 0x17d   : > { %960 = vst.msk [vmem:[#allocation2 + $0x81] sm:$0xff] %vm942_vm4, %v879_v57  ;;  %1151 = vrot.lane.b32.xlu1 %v4382_v24, %s3871_s13 }
 0x17e   : > { %1149 = vrot.lane.b32.xlu0 %v4391_v20, %s3871_s13 }
 0x17f   : > { %v1388_v58 = vpop.permute.xlu1 %1387 }
 0x180   : > { %v1386_v59 = vpop.permute.xlu0 %1385  ;;  %1463 = vst.msk [vmem:[#allocation2 + $0x78] sm:$0xff] %vm1447_vm14, %v1388_v58 }
 0x181   : > { %1462 = vst.msk [vmem:[#allocation2 + $0x70] sm:$0xff] %vm1447_vm14, %v1386_v59  ;;  %768 = vrot.lane.b32.xlu1 %v4382_v24, %s3872_s14 }
 0x182   : > { %766 = vrot.lane.b32.xlu0 %v4391_v20, %s3872_s14 }
 0x183   : > { %v1011_v60 = vpop.permute.xlu1 %1010 }
 0x184   : > { %v1009_v61 = vpop.permute.xlu0 %1008  ;;  %1090 = vst.msk [vmem:[#allocation2 + $0x88] sm:$0xff] %vm1072_vm5, %v1011_v60 }
 0x185   : > { %1089 = vst.msk [vmem:[#allocation2 + $0x80] sm:$0xff] %vm1072_vm5, %v1009_v61  ;;  %v3574_v63 = vpop.f32.mrb[0].mxu0  ;;  %1281 = vrot.lane.b32.xlu1 %v4446_v46, %s3873_s17 }
 0x186   : > { %1279 = vrot.lane.b32.xlu0 %v4451_v22, %s3873_s17  ;;  %v1810_v24 = vadd.f32 %v3574_v63, %v4672_v62  ;;  %v1804_v20 = vpop.f32.mrb[1].mxu0 }
 0x187   : > { %v1805_v26 = vadd.f32 %v4672_v62, %v1804_v20  ;;  %v1509_v27 = vpop.permute.xlu1 %1508 }
 0x188   : > { %v1507_v4 = vpop.permute.xlu0 %1506  ;;  %v1964_v5 = vmax.f32 %v1810_v24, 0.0  ;;  %1585 = vst.msk [vmem:[#allocation2 + $0x77] sm:$0xff] %vm1570_vm15, %v1509_v27 }
 0x189   : > { %1584 = vst.msk [vmem:[#allocation2 + $0x6f] sm:$0xfe] %vm1568_vm3, %v1507_v4  ;;  %v1963_v6 = vmax.f32 %v1805_v26, 0.0  ;;  %896 = vrot.lane.b32.xlu1 %v4446_v46, %s3869_s29 }
 0x18a   : > { %894 = vrot.lane.b32.xlu0 %v4451_v22, %s3869_s29 }
 0x18b   : > { %v4688_v7 = vpack.c.bf16 %v1964_v5, %v1963_v6  ;;  %v636_v8 = vpop.permute.xlu1 %635 }
 0x18c   : > { %v634_v9 = vpop.permute.xlu0 %633  ;;  %709 = vst.msk [vmem:[#allocation2 + $0x98] sm:$0xff] %vm691_vm7, %v636_v8  ;;  %v498_v8 = vld [vmem:[%s4004_s27 + $0xf8] sm:$0xff] }
 0x18d   : > { %708 = vst.msk [vmem:[#allocation2 + $0x90] sm:$0xff] %vm691_vm7, %v634_v9  ;;  %1403 = vrot.lane.b32.xlu1 %v4446_v46, %s3874_s26  ;;  %v497_v9 = vld [vmem:[%s4004_s27 + $0xf0] sm:$0xff] }
 0x18e   : > { %1401 = vrot.lane.b32.xlu0 %v4451_v22, %s3874_s26 }
 0x18f   : > { %v1140_v10 = vpop.permute.xlu1 %1139  ;;  %v1615_v13 = vld [vmem:[#allocation2 + $0x78] sm:$0xff] }
 0x190   : > { %v1138_v11 = vpop.permute.xlu0 %1137  ;;  %v1614_v12 = vld [vmem:[#allocation2 + $0x70] sm:$0xff]  ;;  %1220 = vst.msk [vmem:[#allocation2 + $0x87] sm:$0xff] %vm1203_vm8, %v1140_v10 }
 0x191   : > { %1219 = vst.msk [vmem:[#allocation2 + $0x7f] sm:$0xfe] %vm1201_vm9, %v1138_v11  ;;  %3593 = vmatprep.mubr.msk.f32.mxu0 %vm505_vm0, %v1614_v12  ;;  %1026 = vrot.lane.b32.xlu1 %v4446_v46, %s3868_s28 }
 0x192   : > { %1024 = vrot.lane.b32.xlu0 %v4451_v22, %s3868_s28  ;;  %3594 = vmatmul.mubr.msk.f32.gmra.mrb[14].mxu0 %vm505_vm0, %v1615_v13 }
 0x193   : > { %v757_v14 = vpop.permute.xlu1 %756 }
 0x194   : > { %v755_v15 = vpop.permute.xlu0 %754  ;;  %831 = vst.msk [vmem:[#allocation2 + $0x97] sm:$0xff] %vm814_vm10, %v757_v14 }
 0x195   : > { %830 = vst.msk [vmem:[#allocation2 + $0x8f] sm:$0xfe] %vm812_vm11, %v755_v15  ;;  %1524 = vrot.lane.b32.xlu1 %v4446_v46, %s3875_s18 }
 0x196   : > { %1522 = vrot.lane.b32.xlu0 %v4451_v22, %s3875_s18 }
 0x197   : > { %v1270_v16 = vpop.permute.xlu1 %1269 }
 0x198   : > { %v1268_v17 = vpop.permute.xlu0 %1267  ;;  %1344 = vst.msk [vmem:[#allocation2 + $0x89] sm:$0x7f] %vm1327_vm12, %v1270_v16 }
 0x199   : > { %1343 = vst.msk [vmem:[#allocation2 + $0x81] sm:$0xff] %vm1325_vm13, %v1268_v17  ;;  %651 = vrot.lane.b32.xlu1 %v4446_v46, %s3870_s30 }
 0x19a   : > { %649 = vrot.lane.b32.xlu0 %v4451_v22, %s3870_s30 }
 0x19b   : > { %v885_v18 = vpop.permute.xlu1 %884 }
 0x19c   : > { %v883_v19 = vpop.permute.xlu0 %882  ;;  %963 = vst.msk [vmem:[#allocation2 + $0x99] sm:$0x7f] %vm944_vm6, %v885_v18 }
 0x19d   : > { %962 = vst.msk [vmem:[#allocation2 + $0x91] sm:$0xff] %vm942_vm4, %v883_v19  ;;  %1155 = vrot.lane.b32.xlu1 %v4446_v46, %s3871_s13 }
 0x19e   : > { %1153 = vrot.lane.b32.xlu0 %v4451_v22, %s3871_s13 }
 0x19f   : > { %v1392_v44 = vpop.permute.xlu1 %1391 }
 0x1a0   : > { %v1390_v45 = vpop.permute.xlu0 %1389  ;;  %1465 = vst.msk [vmem:[#allocation2 + $0x88] sm:$0xff] %vm1447_vm14, %v1392_v44 }
 0x1a1   : > { %1464 = vst.msk [vmem:[#allocation2 + $0x80] sm:$0xff] %vm1447_vm14, %v1390_v45  ;;  %772 = vrot.lane.b32.xlu1 %v4446_v46, %s3872_s14 }
 0x1a2   : > { %770 = vrot.lane.b32.xlu0 %v4451_v22, %s3872_s14 }
 0x1a3   : > { %v1015_v28 = vpop.permute.xlu1 %1014 }
 0x1a4   : > { %v1013_v29 = vpop.permute.xlu0 %1012  ;;  %1092 = vst.msk [vmem:[#allocation2 + $0x98] sm:$0xff] %vm1072_vm5, %v1015_v28 }
 0x1a5   : > { %1091 = vst.msk [vmem:[#allocation2 + $0x90] sm:$0xff] %vm1072_vm5, %v1013_v29  ;;  %v3577_v30 = vpop.f32.mrb[2].mxu0  ;;  %1285 = vrot.lane.b32.xlu1 %v4506_v2, %s3873_s17 }
 0x1a6   : > { %1283 = vrot.lane.b32.xlu0 %v4509_v3, %s3873_s17  ;;  %v1820_v31 = vadd.f32 %v3577_v30, %v4672_v62  ;;  %v1814_v32 = vpop.f32.mrb[3].mxu0 }
 0x1a7   : > { %v1815_v46 = vadd.f32 %v4672_v62, %v1814_v32  ;;  %v1513_v33 = vpop.permute.xlu1 %1512 }
 0x1a8   : > { %v1511_v22 = vpop.permute.xlu0 %1510  ;;  %v1966_v34 = vmax.f32 %v1820_v31, 0.0  ;;  %1587 = vst.msk [vmem:[#allocation2 + $0x87] sm:$0xff] %vm1570_vm15, %v1513_v33 }
 0x1a9   : > { %1586 = vst.msk [vmem:[#allocation2 + $0x7f] sm:$0xfe] %vm1568_vm3, %v1511_v22  ;;  %v1965_v35 = vmax.f32 %v1815_v46, 0.0  ;;  %900 = vrot.lane.b32.xlu1 %v4506_v2, %s3869_s29 }
 0x1aa   : > { %898 = vrot.lane.b32.xlu0 %v4509_v3, %s3869_s29 }
 0x1ab   : > { %v4742_v36 = vpack.c.bf16 %v1966_v34, %v1965_v35  ;;  %v640_v37 = vpop.permute.xlu1 %639 }
 0x1ac   : > { %v638_v38 = vpop.permute.xlu0 %637  ;;  %711 = vst.msk [vmem:[#allocation2 + $0xa8] sm:$0xff] %vm691_vm7, %v640_v37 }
 0x1ad   : > { %710 = vst.msk [vmem:[#allocation2 + $0xa0] sm:$0xff] %vm691_vm7, %v638_v38  ;;  %1407 = vrot.lane.b32.xlu1 %v4506_v2, %s3874_s26 }
 0x1ae   : > { %1405 = vrot.lane.b32.xlu0 %v4509_v3, %s3874_s26 }
 0x1af   : > { %v1144_v39 = vpop.permute.xlu1 %1143  ;;  %v1617_v42 = vld [vmem:[#allocation2 + $0x88] sm:$0xff] }
 0x1b0   : > { %v1142_v40 = vpop.permute.xlu0 %1141  ;;  %v1616_v41 = vld [vmem:[#allocation2 + $0x80] sm:$0xff]  ;;  %1222 = vst.msk [vmem:[#allocation2 + $0x97] sm:$0xff] %vm1203_vm8, %v1144_v39 }
 0x1b1   : > { %1221 = vst.msk [vmem:[#allocation2 + $0x8f] sm:$0xfe] %vm1201_vm9, %v1142_v40  ;;  %3596 = vmatprep.mubr.msk.f32.mxu0 %vm505_vm0, %v1616_v41  ;;  %1030 = vrot.lane.b32.xlu1 %v4506_v2, %s3868_s28 }
 0x1b2   : > { %1028 = vrot.lane.b32.xlu0 %v4509_v3, %s3868_s28  ;;  %3597 = vmatmul.mubr.msk.f32.gmra.mrb[16].mxu0 %vm505_vm0, %v1617_v42 }
 0x1b3   : > { %v761_v43 = vpop.permute.xlu1 %760 }
 0x1b4   : > { %v759_v23 = vpop.permute.xlu0 %758  ;;  %833 = vst.msk [vmem:[#allocation2 + $0xa7] sm:$0xff] %vm814_vm10, %v761_v43 }
 0x1b5   : > { %832 = vst.msk [vmem:[#allocation2 + $0x9f] sm:$0xfe] %vm812_vm11, %v759_v23  ;;  %1528 = vrot.lane.b32.xlu1 %v4506_v2, %s3875_s18 }
 0x1b6   : > { %1526 = vrot.lane.b32.xlu0 %v4509_v3, %s3875_s18 }
 0x1b7   : > { %v1274_v47 = vpop.permute.xlu1 %1273 }
 0x1b8   : > { %v1272_v0 = vpop.permute.xlu0 %1271  ;;  %1346 = vst.msk [vmem:[#allocation2 + $0x99] sm:$0x7f] %vm1327_vm12, %v1274_v47 }
 0x1b9   : > { %1345 = vst.msk [vmem:[#allocation2 + $0x91] sm:$0xff] %vm1325_vm13, %v1272_v0  ;;  %655 = vrot.lane.b32.xlu1 %v4506_v2, %s3870_s30 }
 0x1ba   : > { %653 = vrot.lane.b32.xlu0 %v4509_v3, %s3870_s30 }
 0x1bb   : > { %v889_v1 = vpop.permute.xlu1 %888 }
 0x1bc   : > { %v887_v48 = vpop.permute.xlu0 %886  ;;  %965 = vst.msk [vmem:[#allocation2 + $0xa9] sm:$0x7f] %vm944_vm6, %v889_v1 }
 0x1bd   : > { %964 = vst.msk [vmem:[#allocation2 + $0xa1] sm:$0xff] %vm942_vm4, %v887_v48  ;;  %1159 = vrot.lane.b32.xlu1 %v4506_v2, %s3871_s13 }
 0x1be   : > { %1157 = vrot.lane.b32.xlu0 %v4509_v3, %s3871_s13 }
 0x1bf   : > { %v1396_v49 = vpop.permute.xlu1 %1395 }
 0x1c0   : > { %v1394_v50 = vpop.permute.xlu0 %1393  ;;  %1467 = vst.msk [vmem:[#allocation2 + $0x98] sm:$0xff] %vm1447_vm14, %v1396_v49 }
 0x1c1   : > { %1466 = vst.msk [vmem:[#allocation2 + $0x90] sm:$0xff] %vm1447_vm14, %v1394_v50  ;;  %776 = vrot.lane.b32.xlu1 %v4506_v2, %s3872_s14 }
 0x1c2   : > { %774 = vrot.lane.b32.xlu0 %v4509_v3, %s3872_s14 }
 0x1c3   : > { %v1019_v51 = vpop.permute.xlu1 %1018 }
 0x1c4   : > { %v1017_v52 = vpop.permute.xlu0 %1016  ;;  %1094 = vst.msk [vmem:[#allocation2 + $0xa8] sm:$0xff] %vm1072_vm5, %v1019_v51 }
 0x1c5   : > { %1093 = vst.msk [vmem:[#allocation2 + $0xa0] sm:$0xff] %vm1072_vm5, %v1017_v52  ;;  %v3580_v53 = vpop.f32.mrb[4].mxu0  ;;  %1289 = vrot.lane.b32.xlu1 %v4566_v21, %s3873_s17 }
 0x1c6   : > { %1287 = vrot.lane.b32.xlu0 %v4569_v25, %s3873_s17  ;;  %v1830_v54 = vadd.f32 %v3580_v53, %v4672_v62  ;;  %v1824_v55 = vpop.f32.mrb[5].mxu0 }
 0x1c7   : > { %v1825_v2 = vadd.f32 %v4672_v62, %v1824_v55  ;;  %v1517_v56 = vpop.permute.xlu1 %1516 }
 0x1c8   : > { %v1515_v3 = vpop.permute.xlu0 %1514  ;;  %v1968_v57 = vmax.f32 %v1830_v54, 0.0  ;;  %1589 = vst.msk [vmem:[#allocation2 + $0x97] sm:$0xff] %vm1570_vm15, %v1517_v56 }
 0x1c9   : > { %1588 = vst.msk [vmem:[#allocation2 + $0x8f] sm:$0xfe] %vm1568_vm3, %v1515_v3  ;;  %v1967_v58 = vmax.f32 %v1825_v2, 0.0  ;;  %904 = vrot.lane.b32.xlu1 %v4566_v21, %s3869_s29 }
 0x1ca   : > { %902 = vrot.lane.b32.xlu0 %v4569_v25, %s3869_s29 }
 0x1cb   : > { %v4796_v59 = vpack.c.bf16 %v1968_v57, %v1967_v58  ;;  %v644_v60 = vpop.permute.xlu1 %643 }
 0x1cc   : > { %v642_v61 = vpop.permute.xlu0 %641  ;;  %713 = vst.msk [vmem:[#allocation2 + $0xb8] sm:$0xff] %vm691_vm7, %v644_v60 }
 0x1cd   : > { %712 = vst.msk [vmem:[#allocation2 + $0xb0] sm:$0xff] %vm691_vm7, %v642_v61  ;;  %1411 = vrot.lane.b32.xlu1 %v4566_v21, %s3874_s26 }
 0x1ce   : > { %1409 = vrot.lane.b32.xlu0 %v4569_v25, %s3874_s26 }
 0x1cf   : > { %v1148_v63 = vpop.permute.xlu1 %1147  ;;  %v1619_v26 = vld [vmem:[#allocation2 + $0x98] sm:$0xff] }
 0x1d0   : > { %v1146_v24 = vpop.permute.xlu0 %1145  ;;  %v1618_v20 = vld [vmem:[#allocation2 + $0x90] sm:$0xff]  ;;  %1224 = vst.msk [vmem:[#allocation2 + $0xa7] sm:$0xff] %vm1203_vm8, %v1148_v63 }
 0x1d1   : > { %1223 = vst.msk [vmem:[#allocation2 + $0x9f] sm:$0xfe] %vm1201_vm9, %v1146_v24  ;;  %3599 = vmatprep.mubr.msk.f32.mxu0 %vm505_vm0, %v1618_v20  ;;  %1034 = vrot.lane.b32.xlu1 %v4566_v21, %s3868_s28 }
 0x1d2   : > { %1032 = vrot.lane.b32.xlu0 %v4569_v25, %s3868_s28  ;;  %3600 = vmatmul.mubr.msk.f32.gmra.mrb[18].mxu0 %vm505_vm0, %v1619_v26 }
 0x1d3   : > { %v765_v27 = vpop.permute.xlu1 %764 }
 0x1d4   : > { %v763_v4 = vpop.permute.xlu0 %762  ;;  %835 = vst.msk [vmem:[#allocation2 + $0xb7] sm:$0xff] %vm814_vm10, %v765_v27 }
 0x1d5   : > { %834 = vst.msk [vmem:[#allocation2 + $0xaf] sm:$0xfe] %vm812_vm11, %v763_v4  ;;  %1532 = vrot.lane.b32.xlu1 %v4566_v21, %s3875_s18 }
 0x1d6   : > { %1530 = vrot.lane.b32.xlu0 %v4569_v25, %s3875_s18 }
 0x1d7   : > { %v1278_v5 = vpop.permute.xlu1 %1277 }
 0x1d8   : > { %v1276_v6 = vpop.permute.xlu0 %1275  ;;  %1348 = vst.msk [vmem:[#allocation2 + $0xa9] sm:$0x7f] %vm1327_vm12, %v1278_v5 }
 0x1d9   : > { %1347 = vst.msk [vmem:[#allocation2 + $0xa1] sm:$0xff] %vm1325_vm13, %v1276_v6  ;;  %1163 = vrot.lane.b32.xlu1 %v4566_v21, %s3871_s13 }
 0x1da   : > { %1161 = vrot.lane.b32.xlu0 %v4569_v25, %s3871_s13 }
 0x1db   : > { %v893_v10 = vpop.permute.xlu1 %892 }
 0x1dc   : > { %v891_v11 = vpop.permute.xlu0 %890  ;;  %967 = vst.msk [vmem:[#allocation2 + $0xb9] sm:$0x7f] %vm944_vm6, %v893_v10 }
 0x1dd   : > { %966 = vst.msk [vmem:[#allocation2 + $0xb1] sm:$0xff] %vm942_vm4, %v891_v11  ;;  %1293 = vrot.lane.b32.xlu1 %v498_v8, %s3873_s17 }
 0x1de   : > { %1291 = vrot.lane.b32.xlu0 %v497_v9, %s3873_s17 }
 0x1df   : > { %v1400_v12 = vpop.permute.xlu1 %1399 }
 0x1e0   : > { %v1398_v13 = vpop.permute.xlu0 %1397  ;;  %1469 = vst.msk [vmem:[#allocation2 + $0xa8] sm:$0xff] %vm1447_vm14, %v1400_v12 }
 0x1e1   : > { %1468 = vst.msk [vmem:[#allocation2 + $0xa0] sm:$0xff] %vm1447_vm14, %v1398_v13  ;;  %1415 = vrot.lane.b32.xlu1 %v498_v8, %s3874_s26 }
 0x1e2   : > { %1413 = vrot.lane.b32.xlu0 %v497_v9, %s3874_s26 }
 0x1e3   : > { %v1023_v14 = vpop.permute.xlu1 %1022 }
 0x1e4   : > { %v1021_v15 = vpop.permute.xlu0 %1020  ;;  %1096 = vst.msk [vmem:[#allocation2 + $0xb8] sm:$0xff] %vm1072_vm5, %v1023_v14 }
 0x1e5   : > { %1095 = vst.msk [vmem:[#allocation2 + $0xb0] sm:$0xff] %vm1072_vm5, %v1021_v15  ;;  %v3583_v16 = vpop.f32.mrb[6].mxu0  ;;  %659 = vrot.lane.b32.xlu1 %v4566_v21, %s3870_s30 }
 0x1e6   : > { %657 = vrot.lane.b32.xlu0 %v4569_v25, %s3870_s30  ;;  %v1840_v17 = vadd.f32 %v3583_v16, %v4672_v62  ;;  %v1834_v18 = vpop.f32.mrb[7].mxu0 }
 0x1e7   : > { %v1835_v19 = vadd.f32 %v4672_v62, %v1834_v18  ;;  %v1521_v44 = vpop.permute.xlu1 %1520 }
 0x1e8   : > { %v1519_v45 = vpop.permute.xlu0 %1518  ;;  %v1970_v28 = vmax.f32 %v1840_v17, 0.0  ;;  %1591 = vst.msk [vmem:[#allocation2 + $0xa7] sm:$0xff] %vm1570_vm15, %v1521_v44 }
 0x1e9   : > { %1590 = vst.msk [vmem:[#allocation2 + $0x9f] sm:$0xfe] %vm1568_vm3, %v1519_v45  ;;  %v1969_v29 = vmax.f32 %v1835_v19, 0.0  ;;  %1536 = vrot.lane.b32.xlu1 %v498_v8, %s3875_s18 }
 0x1ea   : > { %1534 = vrot.lane.b32.xlu0 %v497_v9, %s3875_s18 }
 0x1eb   : > { %v4846_v30 = vpack.c.bf16 %v1970_v28, %v1969_v29  ;;  %v648_v31 = vpop.permute.xlu1 %647 }
 0x1ec   : > { %v646_v32 = vpop.permute.xlu0 %645  ;;  %715 = vst.msk [vmem:[#allocation2 + $0xc8] sm:$0xff] %vm691_vm7, %v648_v31 }
 0x1ed   : > { %714 = vst.msk [vmem:[#allocation2 + $0xc0] sm:$0xff] %vm691_vm7, %v646_v32  ;;  %780 = vrot.lane.b32.xlu1 %v4566_v21, %s3872_s14 }
 0x1ee   : > { %778 = vrot.lane.b32.xlu0 %v4569_v25, %s3872_s14 }
 0x1ef   : > { %v1152_v46 = vpop.permute.xlu1 %1151  ;;  %v1621_v34 = vld [vmem:[#allocation2 + $0xa8] sm:$0xff] }
 0x1f0   : > { %v1150_v33 = vpop.permute.xlu0 %1149  ;;  %v1620_v22 = vld [vmem:[#allocation2 + $0xa0] sm:$0xff]  ;;  %1226 = vst.msk [vmem:[#allocation2 + $0xb7] sm:$0xff] %vm1203_vm8, %v1152_v46 }
 0x1f1   : > { %1225 = vst.msk [vmem:[#allocation2 + $0xaf] sm:$0xfe] %vm1201_vm9, %v1150_v33  ;;  %3602 = vmatprep.mubr.msk.f32.mxu0 %vm505_vm0, %v1620_v22  ;;  %908 = vrot.lane.b32.xlu1 %v498_v8, %s3869_s29 }
 0x1f2   : > { %906 = vrot.lane.b32.xlu0 %v497_v9, %s3869_s29  ;;  %3603 = vmatmul.mubr.msk.f32.gmra.mrb[20].mxu0 %vm505_vm0, %v1621_v34  ;;  %s3882_s29 = smov 96  }
 0x1f3   : > { %v769_v21 = vpop.permute.xlu1 %768 }
 0x1f4   : > { %v767_v35 = vpop.permute.xlu0 %766  ;;  %837 = vst.msk [vmem:[#allocation2 + $0xc7] sm:$0xff] %vm814_vm10, %v769_v21 }
 0x1f5   : > { %836 = vst.msk [vmem:[#allocation2 + $0xbf] sm:$0xfe] %vm812_vm11, %v767_v35  ;;  %1038 = vrot.lane.b32.xlu1 %v498_v8, %s3868_s28 }
 0x1f6   : > { %1036 = vrot.lane.b32.xlu0 %v497_v9, %s3868_s28 }
 0x1f7   : > { %v1282_v25 = vpop.permute.xlu1 %1281 }
 0x1f8   : > { %v1280_v37 = vpop.permute.xlu0 %1279  ;;  %1350 = vst.msk [vmem:[#allocation2 + $0xb9] sm:$0x7f] %vm1327_vm12, %v1282_v25 }
 0x1f9   : > { %1349 = vst.msk [vmem:[#allocation2 + $0xb1] sm:$0xff] %vm1325_vm13, %v1280_v37  ;;  %1167 = vrot.lane.b32.xlu1 %v498_v8, %s3871_s13 }
 0x1fa   : > { %1165 = vrot.lane.b32.xlu0 %v497_v9, %s3871_s13 }
 0x1fb   : > { %v897_v38 = vpop.permute.xlu1 %896 }
 0x1fc   : > { %v895_v39 = vpop.permute.xlu0 %894  ;;  %969 = vst.msk [vmem:[#allocation2 + $0xc9] sm:$0x7f] %vm944_vm6, %v897_v38 }
 0x1fd   : > { %968 = vst.msk [vmem:[#allocation2 + $0xc1] sm:$0xff] %vm942_vm4, %v895_v39 }
 0x1ff   : > { %v1404_v40 = vpop.permute.xlu1 %1403 }
 0x200   : > { %v1402_v41 = vpop.permute.xlu0 %1401  ;;  %1471 = vst.msk [vmem:[#allocation2 + $0xb8] sm:$0xff] %vm1447_vm14, %v1404_v40 }
 0x201   : > { %1470 = vst.msk [vmem:[#allocation2 + $0xb0] sm:$0xff] %vm1447_vm14, %v1402_v41 }
 0x203   : > { %v1027_v42 = vpop.permute.xlu1 %1026 }
 0x204   : > { %v1025_v43 = vpop.permute.xlu0 %1024  ;;  %1098 = vst.msk [vmem:[#allocation2 + $0xc8] sm:$0xff] %vm1072_vm5, %v1027_v42 }
 0x205   : > { %1097 = vst.msk [vmem:[#allocation2 + $0xc0] sm:$0xff] %vm1072_vm5, %v1025_v43  ;;  %v3586_v23 = vpop.f32.mrb[8].mxu0 }
 0x206   : > { %v1850_v47 = vadd.f32 %v3586_v23, %v4672_v62  ;;  %v1844_v0 = vpop.f32.mrb[9].mxu0 }
 0x207   : > { %v1845_v1 = vadd.f32 %v4672_v62, %v1844_v0  ;;  %v1525_v48 = vpop.permute.xlu1 %1524 }
 0x208   : > { %v1523_v49 = vpop.permute.xlu0 %1522  ;;  %v1972_v50 = vmax.f32 %v1850_v47, 0.0  ;;  %1593 = vst.msk [vmem:[#allocation2 + $0xb7] sm:$0xff] %vm1570_vm15, %v1525_v48 }
 0x209   : > { %1592 = vst.msk [vmem:[#allocation2 + $0xaf] sm:$0xfe] %vm1568_vm3, %v1523_v49  ;;  %v1971_v51 = vmax.f32 %v1845_v1, 0.0 }
 0x20b   : > { %v4878_v52 = vpack.c.bf16 %v1972_v50, %v1971_v51  ;;  %v652_v53 = vpop.permute.xlu1 %651 }
 0x20c   : > { %v650_v54 = vpop.permute.xlu0 %649  ;;  %717 = vst.msk [vmem:[#allocation2 + $0xd8] sm:$0xff] %vm691_vm7, %v652_v53 }
 0x20d   : > { %716 = vst.msk [vmem:[#allocation2 + $0xd0] sm:$0xff] %vm691_vm7, %v650_v54 }
 0x20f   : > { %v1156_v55 = vpop.permute.xlu1 %1155  ;;  %v1623_v3 = vld [vmem:[#allocation2 + $0xb8] sm:$0xff] }
 0x210   : > { %v1154_v2 = vpop.permute.xlu0 %1153  ;;  %v1622_v56 = vld [vmem:[#allocation2 + $0xb0] sm:$0xff]  ;;  %1228 = vst.msk [vmem:[#allocation2 + $0xc7] sm:$0xff] %vm1203_vm8, %v1156_v55 }
 0x211   : > { %1227 = vst.msk [vmem:[#allocation2 + $0xbf] sm:$0xfe] %vm1201_vm9, %v1154_v2  ;;  %3605 = vmatprep.mubr.msk.f32.mxu0 %vm505_vm0, %v1622_v56 }
 0x212   : > { %3606 = vmatmul.mubr.msk.f32.gmra.mrb[22].mxu0 %vm505_vm0, %v1623_v3 }
 0x213   : > { %v773_v57 = vpop.permute.xlu1 %772 }
 0x214   : > { %v771_v58 = vpop.permute.xlu0 %770  ;;  %839 = vst.msk [vmem:[#allocation2 + $0xd7] sm:$0xff] %vm814_vm10, %v773_v57 }
 0x215   : > { %838 = vst.msk [vmem:[#allocation2 + $0xcf] sm:$0xfe] %vm812_vm11, %v771_v58 }
 0x217   : > { %v1286_v60 = vpop.permute.xlu1 %1285 }
 0x218   : > { %v1284_v61 = vpop.permute.xlu0 %1283  ;;  %1352 = vst.msk [vmem:[#allocation2 + $0xc9] sm:$0x7f] %vm1327_vm12, %v1286_v60 }
 0x219   : > { %1351 = vst.msk [vmem:[#allocation2 + $0xc1] sm:$0xff] %vm1325_vm13, %v1284_v61 }
 0x21b   : > { %v901_v63 = vpop.permute.xlu1 %900 }
 0x21c   : > { %v899_v24 = vpop.permute.xlu0 %898  ;;  %971 = vst.msk [vmem:[#allocation2 + $0xd9] sm:$0x7f] %vm944_vm6, %v901_v63 }
 0x21d   : > { %970 = vst.msk [vmem:[#allocation2 + $0xd1] sm:$0xff] %vm942_vm4, %v899_v24 }
 0x21f   : > { %v1408_v20 = vpop.permute.xlu1 %1407 }
 0x220   : > { %v1406_v26 = vpop.permute.xlu0 %1405  ;;  %1473 = vst.msk [vmem:[#allocation2 + $0xc8] sm:$0xff] %vm1447_vm14, %v1408_v20 }
 0x221   : > { %1472 = vst.msk [vmem:[#allocation2 + $0xc0] sm:$0xff] %vm1447_vm14, %v1406_v26 }
 0x223   : > { %v1031_v27 = vpop.permute.xlu1 %1030 }
 0x224   : > { %v1029_v4 = vpop.permute.xlu0 %1028  ;;  %1100 = vst.msk [vmem:[#allocation2 + $0xd8] sm:$0xff] %vm1072_vm5, %v1031_v27 }
 0x225   : > { %1099 = vst.msk [vmem:[#allocation2 + $0xd0] sm:$0xff] %vm1072_vm5, %v1029_v4  ;;  %v3589_v5 = vpop.f32.mrb[10].mxu0 }
 0x226   : > { %v1860_v6 = vadd.f32 %v3589_v5, %v4672_v62  ;;  %v1854_v8 = vpop.f32.mrb[11].mxu0 }
 0x227   : > { %v1855_v9 = vadd.f32 %v4672_v62, %v1854_v8  ;;  %v1529_v10 = vpop.permute.xlu1 %1528 }
 0x228   : > { %v1527_v11 = vpop.permute.xlu0 %1526  ;;  %v1974_v12 = vmax.f32 %v1860_v6, 0.0  ;;  %1595 = vst.msk [vmem:[#allocation2 + $0xc7] sm:$0xff] %vm1570_vm15, %v1529_v10 }
 0x229   : > { %1594 = vst.msk [vmem:[#allocation2 + $0xbf] sm:$0xfe] %vm1568_vm3, %v1527_v11  ;;  %v1973_v13 = vmax.f32 %v1855_v9, 0.0 }
 0x22b   : > { %v4900_v14 = vpack.c.bf16 %v1974_v12, %v1973_v13  ;;  %v656_v15 = vpop.permute.xlu1 %655 }
 0x22c   : > { %v654_v16 = vpop.permute.xlu0 %653  ;;  %719 = vst.msk [vmem:[#allocation2 + $0xe8] sm:$0xff] %vm691_vm7, %v656_v15 }
 0x22d   : > { %718 = vst.msk [vmem:[#allocation2 + $0xe0] sm:$0xff] %vm691_vm7, %v654_v16 }
 0x22f   : > { %v1160_v17 = vpop.permute.xlu1 %1159  ;;  %v1625_v44 = vld [vmem:[#allocation2 + $0xc8] sm:$0xff] }
 0x230   : > { %v1158_v18 = vpop.permute.xlu0 %1157  ;;  %v1624_v19 = vld [vmem:[#allocation2 + $0xc0] sm:$0xff]  ;;  %1230 = vst.msk [vmem:[#allocation2 + $0xd7] sm:$0xff] %vm1203_vm8, %v1160_v17 }
 0x231   : > { %1229 = vst.msk [vmem:[#allocation2 + $0xcf] sm:$0xfe] %vm1201_vm9, %v1158_v18  ;;  %3608 = vmatprep.mubr.msk.f32.mxu0 %vm505_vm0, %v1624_v19 }
 0x232   : > { %3609 = vmatmul.mubr.msk.f32.gmra.mrb[24].mxu0 %vm505_vm0, %v1625_v44 }
 0x233   : > { %v777_v45 = vpop.permute.xlu1 %776 }
 0x234   : > { %v775_v28 = vpop.permute.xlu0 %774  ;;  %841 = vst.msk [vmem:[#allocation2 + $0xe7] sm:$0xff] %vm814_vm10, %v777_v45 }
 0x235   : > { %840 = vst.msk [vmem:[#allocation2 + $0xdf] sm:$0xfe] %vm812_vm11, %v775_v28 }
 0x237   : > { %v1290_v29 = vpop.permute.xlu1 %1289 }
 0x238   : > { %v1288_v31 = vpop.permute.xlu0 %1287  ;;  %1354 = vst.msk [vmem:[#allocation2 + $0xd9] sm:$0x7f] %vm1327_vm12, %v1290_v29 }
 0x239   : > { %1353 = vst.msk [vmem:[#allocation2 + $0xd1] sm:$0xff] %vm1325_vm13, %v1288_v31 }
 0x23b   : > { %v905_v32 = vpop.permute.xlu1 %904 }
 0x23c   : > { %v903_v46 = vpop.permute.xlu0 %902  ;;  %973 = vst.msk [vmem:[#allocation2 + $0xe9] sm:$0x7f] %vm944_vm6, %v905_v32 }
 0x23d   : > { %972 = vst.msk [vmem:[#allocation2 + $0xe1] sm:$0xff] %vm942_vm4, %v903_v46 }
 0x23f   : > { %v1412_v33 = vpop.permute.xlu1 %1411 }
 0x240   : > { %v1410_v22 = vpop.permute.xlu0 %1409  ;;  %1475 = vst.msk [vmem:[#allocation2 + $0xd8] sm:$0xff] %vm1447_vm14, %v1412_v33 }
 0x241   : > { %1474 = vst.msk [vmem:[#allocation2 + $0xd0] sm:$0xff] %vm1447_vm14, %v1410_v22 }
 0x243   : > { %v1035_v34 = vpop.permute.xlu1 %1034 }
 0x244   : > { %v1033_v21 = vpop.permute.xlu0 %1032  ;;  %1102 = vst.msk [vmem:[#allocation2 + $0xe8] sm:$0xff] %vm1072_vm5, %v1035_v34 }
 0x245   : > { %1101 = vst.msk [vmem:[#allocation2 + $0xe0] sm:$0xff] %vm1072_vm5, %v1033_v21  ;;  %v3592_v35 = vpop.f32.mrb[12].mxu0 }
 0x246   : > { %v1870_v25 = vadd.f32 %v3592_v35, %v4672_v62  ;;  %v1864_v37 = vpop.f32.mrb[13].mxu0 }
 0x247   : > { %v1865_v38 = vadd.f32 %v4672_v62, %v1864_v37  ;;  %v1533_v39 = vpop.permute.xlu1 %1532 }
 0x248   : > { %v1531_v40 = vpop.permute.xlu0 %1530  ;;  %v1976_v41 = vmax.f32 %v1870_v25, 0.0  ;;  %1597 = vst.msk [vmem:[#allocation2 + $0xd7] sm:$0xff] %vm1570_vm15, %v1533_v39 }
 0x249   : > { %1596 = vst.msk [vmem:[#allocation2 + $0xcf] sm:$0xfe] %vm1568_vm3, %v1531_v40  ;;  %v1975_v42 = vmax.f32 %v1865_v38, 0.0  ;;  %v1996_v38 = vld [vmem:[%s5615_s5 + $0x8] sm:$0xff] }
 0x24b   : > { %v4922_v43 = vpack.c.bf16 %v1976_v41, %v1975_v42  ;;  %v1164_v23 = vpop.permute.xlu1 %1163 }
 0x24c   : > { %v1162_v47 = vpop.permute.xlu0 %1161  ;;  %1232 = vst.msk [vmem:[#allocation2 + $0xe7] sm:$0xff] %vm1203_vm8, %v1164_v23 }
 0x24d   : > { %1231 = vst.msk [vmem:[#allocation2 + $0xdf] sm:$0xfe] %vm1201_vm9, %v1162_v47 }
 0x24f   : > { %v1294_v0 = vpop.permute.xlu1 %1293  ;;  %v1627_v49 = vld [vmem:[#allocation2 + $0xd8] sm:$0xff] }
 0x250   : > { %v1292_v1 = vpop.permute.xlu0 %1291  ;;  %v1626_v48 = vld [vmem:[#allocation2 + $0xd0] sm:$0xff]  ;;  %1356 = vst.msk [vmem:[#allocation2 + $0xe9] sm:$0x7f] %vm1327_vm12, %v1294_v0  ;;  %vm2683_vm12 = vcmask 257024  }
 0x251   : > { %1355 = vst.msk [vmem:[#allocation2 + $0xe1] sm:$0xff] %vm1325_vm13, %v1292_v1  ;;  %3611 = vmatprep.mubr.msk.f32.mxu0 %vm505_vm0, %v1626_v48  ;;  %vm2818_vm13 = vcmask 125952  }
 0x252   : > { %3612 = vmatmul.mubr.msk.f32.gmra.mrb[26].mxu0 %vm505_vm0, %v1627_v49 }
 0x253   : > { %v1416_v50 = vpop.permute.xlu1 %1415 }
 0x254   : > { %v1414_v51 = vpop.permute.xlu0 %1413  ;;  %1477 = vst.msk [vmem:[#allocation2 + $0xe8] sm:$0xff] %vm1447_vm14, %v1416_v50 }
 0x255   : > { %1476 = vst.msk [vmem:[#allocation2 + $0xe0] sm:$0xff] %vm1447_vm14, %v1414_v51  ;;  %vm2698_vm14 = vcmask 125953  }
 0x257   : > { %v660_v53 = vpop.permute.xlu1 %659 }
 0x258   : > { %v658_v54 = vpop.permute.xlu0 %657  ;;  %721 = vst.msk [vmem:[#allocation2 + $0xf8] sm:$0xff] %vm691_vm7, %v660_v53 }
 0x259   : > { %720 = vst.msk [vmem:[#allocation2 + $0xf0] sm:$0xff] %vm691_vm7, %v658_v54  ;;  %vm2300_vm7 = vcmask 392513  }
 0x25b   : > { %v1537_v55 = vpop.permute.xlu1 %1536 }
 0x25c   : > { %v1535_v2 = vpop.permute.xlu0 %1534  ;;  %1599 = vst.msk [vmem:[#allocation2 + $0xe7] sm:$0xff] %vm1570_vm15, %v1537_v55  ;;  %vm2835_vm15 = vcmask 257152  }
 0x25d   : > { %1598 = vst.msk [vmem:[#allocation2 + $0xdf] sm:$0xfe] %vm1568_vm3, %v1535_v2  ;;  %vm2714_vm3 = vcmask 257153  }
 0x25f   : > { %v781_v56 = vpop.permute.xlu1 %780 }
 0x260   : > { %v779_v3 = vpop.permute.xlu0 %778  ;;  %843 = vst.msk [vmem:[#allocation2 + $0xf7] sm:$0xff] %vm814_vm10, %v781_v56  ;;  %vm2388_vm10 = vcmask 589313  }
 0x261   : > { %842 = vst.msk [vmem:[#allocation2 + $0xef] sm:$0xfe] %vm812_vm11, %v779_v3  ;;  %vm2549_vm11 = vcmask 523264  }
 0x263   : > { %v909_v57 = vpop.permute.xlu1 %908  ;;  %v1629_v61 = vld [vmem:[#allocation2 + $0xe8] sm:$0xff] }
 0x264   : > { %v907_v58 = vpop.permute.xlu0 %906  ;;  %v1628_v60 = vld [vmem:[#allocation2 + $0xe0] sm:$0xff]  ;;  %975 = vst.msk [vmem:[#allocation2 + $0xf9] sm:$0x7f] %vm944_vm6, %v909_v57  ;;  %vm2267_vm6 = vcmask 326912  }
 0x265   : > { %974 = vst.msk [vmem:[#allocation2 + $0xf1] sm:$0xff] %vm942_vm4, %v907_v58  ;;  %3614 = vmatprep.mubr.msk.f32.mxu0 %vm505_vm0, %v1628_v60  ;;  %v3595_v63 = vpop.f32.mrb[14].mxu0  ;;  %vm2201_vm4 = vcmask 195713  }
 0x266   : > { %3615 = vmatmul.mubr.msk.f32.gmra.mrb[28].mxu0 %vm505_vm0, %v1629_v61  ;;  %v1880_v24 = vadd.f32 %v3595_v63, %v4672_v62  ;;  %v1874_v20 = vpop.f32.mrb[15].mxu0 }
 0x267   : > { %v1875_v26 = vadd.f32 %v4672_v62, %v1874_v20  ;;  %v1039_v27 = vpop.permute.xlu1 %1038 }
 0x268   : > { %v1037_v4 = vpop.permute.xlu0 %1036  ;;  %v1978_v5 = vmax.f32 %v1880_v24, 0.0  ;;  %1104 = vst.msk [vmem:[#allocation2 + $0xf8] sm:$0xff] %vm1072_vm5, %v1039_v27 }
 0x269   : > { %1103 = vst.msk [vmem:[#allocation2 + $0xf0] sm:$0xff] %vm1072_vm5, %v1037_v4  ;;  %v1977_v6 = vmax.f32 %v1875_v26, 0.0  ;;  %vm2234_vm5 = vcmask 260288  }
 0x26b   : > { %v4946_v8 = vpack.c.bf16 %v1978_v5, %v1977_v6  ;;  %v1168_v9 = vpop.permute.xlu1 %1167 }
 0x26c   : > { %v1166_v10 = vpop.permute.xlu0 %1165  ;;  %1234 = vst.msk [vmem:[#allocation2 + $0xf7] sm:$0xff] %vm1203_vm8, %v1168_v9  ;;  %vm2330_vm8 = vcmask 457088  }
 0x26d   : > { %1233 = vst.msk [vmem:[#allocation2 + $0xef] sm:$0xfe] %vm1201_vm9, %v1166_v10  ;;  %v1995_v10 = vld [vmem:[%s5615_s5] sm:$0xff]  ;;  %vm2359_vm9 = vcmask 523712  }
 0x273   : > { %v1631_v12 = vld [vmem:[#allocation2 + $0xf8] sm:$0xff] }
 0x274   : > { %v1630_v11 = vld [vmem:[#allocation2 + $0xf0] sm:$0xff] }
 0x275   : > { %3617 = vmatprep.mubr.msk.f32.mxu0 %vm505_vm0, %v1630_v11  ;;  %v2004_v11 = vld [vmem:[%s5615_s5 + $0x48] sm:$0xff] }
 0x276   : > { %3618 = vmatmul.mubr.msk.f32.gmra.mrb[30].mxu0 %vm505_vm0, %v1631_v12  ;;  %v2003_v12 = vld [vmem:[%s5615_s5 + $0x40] sm:$0xff]  ;;  %vm2126_vm0 = vcmask 588800  }
 0x277   : > { %2075 = vmatprep.mubr.f32.mxu0 %v1996_v38 }
 0x285   : > { %v3598_v13 = vpop.f32.mrb[16].mxu0 }
 0x286   : > { %v1890_v15 = vadd.f32 %v3598_v13, %v4672_v62  ;;  %v1884_v16 = vpop.f32.mrb[17].mxu0  ;;  %v2000_v13 = vld [vmem:[%s5615_s5 + $0x28] sm:$0xff] }
 0x287   : > { %v1885_v17 = vadd.f32 %v4672_v62, %v1884_v16  ;;  %v1999_v16 = vld [vmem:[%s5615_s5 + $0x20] sm:$0xff] }
 0x288   : > { %v1980_v18 = vmax.f32 %v1890_v15, 0.0  ;;  %v2006_v15 = vld [vmem:[%s5615_s5 + $0x58] sm:$0xff] }
 0x289   : > { %v1979_v19 = vmax.f32 %v1885_v17, 0.0  ;;  %v2005_v17 = vld [vmem:[%s5615_s5 + $0x50] sm:$0xff] }
 0x28b   : > { %v3688_v44 = vpack.c.bf16 %v1980_v18, %v1979_v19  ;;  %v2008_v18 = vld [vmem:[%s5615_s5 + $0x68] sm:$0xff]  ;;  %v2007_v19 = vld [vmem:[%s5615_s5 + $0x60] sm:$0xff] }
 0x28d   : > { %3689 = vmatprep.subr.bf16.mxu0 %v3688_v44  ;;  %3792 = vmatprep.subr.bf16.mxu1 %v3688_v44  ;;  %v2010_v44 = vld [vmem:[%s5615_s5 + $0x78] sm:$0xff] }
 0x28e   : > { %3691 = vmatpush3.bf16.msra.mxu0 %v4688_v7  ;;  %3800 = vmatpush3.bf16.msra.mxu1 %v4688_v7 }
 0x2a5   : > { %v3601_v45 = vpop.f32.mrb[18].mxu0 }
 0x2a6   : > { %v1900_v28 = vadd.f32 %v3601_v45, %v4672_v62  ;;  %v1894_v29 = vpop.f32.mrb[19].mxu0  ;;  %v2009_v45 = vld [vmem:[%s5615_s5 + $0x70] sm:$0xff] }
 0x2a7   : > { %v1895_v31 = vadd.f32 %v4672_v62, %v1894_v29 }
 0x2a8   : > { %v1982_v32 = vmax.f32 %v1900_v28, 0.0  ;;  %v5032_v28 = vld [vmem:[#allocation4] sm:$0xff] }
 0x2a9   : > { %v1981_v46 = vmax.f32 %v1895_v31, 0.0  ;;  %2128 = vst.msk [vmem:[#allocation3 + $0x8] sm:$0xff] %vm2126_vm0, %v5032_v28  ;;  %2127 = vst.msk [vmem:[#allocation3] sm:$0xff] %vm2126_vm0, %v5032_v28 }
 0x2aa   : > { %2129 = vst.msk [vmem:[#allocation3 + $0x10] sm:$0xff] %vm2126_vm0, %v5032_v28  ;;  %2130 = vst.msk [vmem:[#allocation3 + $0x18] sm:$0xff] %vm2126_vm0, %v5032_v28 }
 0x2ab   : > { %v3692_v33 = vpack.c.bf16 %v1982_v32, %v1981_v46  ;;  %2131 = vst.msk [vmem:[#allocation3 + $0x20] sm:$0xff] %vm2126_vm0, %v5032_v28  ;;  %2132 = vst.msk [vmem:[#allocation3 + $0x28] sm:$0xff] %vm2126_vm0, %v5032_v28 }
 0x2ac   : > { %2133 = vst.msk [vmem:[#allocation3 + $0x30] sm:$0xff] %vm2126_vm0, %v5032_v28  ;;  %2134 = vst.msk [vmem:[#allocation3 + $0x38] sm:$0xff] %vm2126_vm0, %v5032_v28 }
 0x2ad   : > { %3693 = vmatprep.subr.bf16.mxu0 %v3692_v33  ;;  %3793 = vmatprep.subr.bf16.mxu1 %v3692_v33  ;;  %2684 = vst.msk [vmem:[#allocation4 + $0x8] sm:$0xf] %vm2683_vm12, %v5032_v28  ;;  %2690 = vst.msk [vmem:[#allocation4 + $0x2c] sm:$0xf] %vm2683_vm12, %v5032_v28 }
 0x2ae   : > { %3695 = vmatpush3.bf16.msra.mxu0 %v4742_v36  ;;  %3801 = vmatpush3.bf16.msra.mxu1 %v4742_v36  ;;  %v2002_v36 = vld [vmem:[%s5615_s5 + $0x38] sm:$0xff]  ;;  %2686 = vst.msk [vmem:[#allocation4 + $0x14] sm:$0xf] %vm2683_vm12, %v5032_v28  ;;  %2688 = vst.msk [vmem:[#allocation4 + $0x20] sm:$0xf] %vm2683_vm12, %v5032_v28  ;;  %vm2913_vm12 = vcmask 913152  }
 0x2af   : > { %2090 = vmatprep.mubr.f32.mxu1 %v2002_v36 }
 0x2c5   : > { %v3604_v22 = vpop.f32.mrb[20].mxu0 }
 0x2c6   : > { %v1910_v34 = vadd.f32 %v3604_v22, %v4672_v62  ;;  %v1904_v21 = vpop.f32.mrb[21].mxu0 }
 0x2c7   : > { %v1905_v7 = vadd.f32 %v4672_v62, %v1904_v21 }
 0x2c8   : > { %v1984_v35 = vmax.f32 %v1910_v34, 0.0 }
 0x2c9   : > { %v1983_v25 = vmax.f32 %v1905_v7, 0.0 }
 0x2cb   : > { %v3696_v37 = vpack.c.bf16 %v1984_v35, %v1983_v25 }
 0x2cd   : > { %3697 = vmatprep.subr.bf16.mxu0 %v3696_v37  ;;  %3794 = vmatprep.subr.bf16.mxu1 %v3696_v37 }
 0x2ce   : > { %3699 = vmatpush3.bf16.msra.mxu0 %v4796_v59  ;;  %3802 = vmatpush3.bf16.msra.mxu1 %v4796_v59 }
 0x2e5   : > { %v3607_v39 = vpop.f32.mrb[22].mxu0 }
 0x2e6   : > { %v1920_v40 = vadd.f32 %v3607_v39, %v4672_v62  ;;  %v1914_v41 = vpop.f32.mrb[23].mxu0 }
 0x2e7   : > { %v1915_v42 = vadd.f32 %v4672_v62, %v1914_v41 }
 0x2e8   : > { %v1986_v23 = vmax.f32 %v1920_v40, 0.0 }
 0x2e9   : > { %v1985_v47 = vmax.f32 %v1915_v42, 0.0 }
 0x2eb   : > { %v3700_v0 = vpack.c.bf16 %v1986_v23, %v1985_v47 }
 0x2ed   : > { %3701 = vmatprep.subr.bf16.mxu0 %v3700_v0  ;;  %3795 = vmatprep.subr.bf16.mxu1 %v3700_v0 }
 0x2ee   : > { %3703 = vmatpush3.bf16.msra.mxu0 %v4846_v30  ;;  %3803 = vmatpush3.bf16.msra.mxu1 %v4846_v30 }
 0x305   : > { %v3610_v59 = vpop.f32.mrb[24].mxu0 }
 0x306   : > { %v1930_v1 = vadd.f32 %v3610_v59, %v4672_v62  ;;  %v1924_v48 = vpop.f32.mrb[25].mxu0 }
 0x307   : > { %v1925_v49 = vadd.f32 %v4672_v62, %v1924_v48 }
 0x308   : > { %v1988_v50 = vmax.f32 %v1930_v1, 0.0 }
 0x309   : > { %v1987_v51 = vmax.f32 %v1925_v49, 0.0  ;;  %v2116_v49 = vld [vmem:[%s5616_s6] sm:$0xff] }
 0x30b   : > { %v3704_v53 = vpack.c.bf16 %v1988_v50, %v1987_v51  ;;  %v2117_v50 = vld [vmem:[%s5616_s6 + $0x8] sm:$0xff] }
 0x30c   : > { %v3720_v51 = vpack.c.bf16 %v2117_v50, %v2116_v49 }
 0x30d   : > { %3705 = vmatprep.subr.bf16.mxu0 %v3704_v53  ;;  %3796 = vmatprep.subr.bf16.mxu1 %v3704_v53  ;;  %v2118_v53 = vld [vmem:[%s5616_s6 + $0x10] sm:$0xff] }
 0x30e   : > { %3707 = vmatpush3.bf16.msra.mxu0 %v4878_v52  ;;  %3804 = vmatpush3.bf16.msra.mxu1 %v4878_v52 }
 0x325   : > { %v3613_v54 = vpop.f32.mrb[26].mxu0 }
 0x326   : > { %v1940_v55 = vadd.f32 %v3613_v54, %v4672_v62  ;;  %v1934_v2 = vpop.f32.mrb[27].mxu0  ;;  %v2119_v54 = vld [vmem:[%s5616_s6 + $0x18] sm:$0xff] }
 0x327   : > { %v1935_v30 = vadd.f32 %v4672_v62, %v1934_v2  ;;  %v2120_v2 = vld [vmem:[%s5616_s6 + $0x20] sm:$0xff] }
 0x328   : > { %v1990_v56 = vmax.f32 %v1940_v55, 0.0  ;;  %v3724_v55 = vpack.c.bf16 %v2119_v54, %v2118_v53 }
 0x329   : > { %v1989_v3 = vmax.f32 %v1935_v30, 0.0  ;;  %v2121_v30 = vld [vmem:[%s5616_s6 + $0x28] sm:$0xff] }
 0x32b   : > { %v3708_v57 = vpack.c.bf16 %v1990_v56, %v1989_v3  ;;  %v3728_v56 = vpack.c.bf16 %v2121_v30, %v2120_v2  ;;  %v2122_v3 = vld [vmem:[%s5616_s6 + $0x30] sm:$0xff] }
 0x32d   : > { %3709 = vmatprep.subr.bf16.mxu0 %v3708_v57  ;;  %3797 = vmatprep.subr.bf16.mxu1 %v3708_v57  ;;  %v2123_v57 = vld [vmem:[%s5616_s6 + $0x38] sm:$0xff] }
 0x32e   : > { %3711 = vmatpush3.bf16.msra.mxu0 %v4900_v14  ;;  %3805 = vmatpush3.bf16.msra.mxu1 %v4900_v14 }
 0x339   : > { %v3616_v58 = vpop.f32.mrb[28].mxu0 }
 0x33a   : > { %v1950_v60 = vadd.f32 %v3616_v58, %v4672_v62  ;;  %v1944_v61 = vpop.f32.mrb[29].mxu0  ;;  %v3732_v58 = vpack.c.bf16 %v2123_v57, %v2122_v3 }
 0x33b   : > { %v1945_v52 = vadd.f32 %v4672_v62, %v1944_v61 }
 0x33c   : > { %v1992_v63 = vmax.f32 %v1950_v60, 0.0  ;;  %v2124_v60 = vld [vmem:[%s5616_s6 + $0x40] sm:$0xff] }
 0x33d   : > { %v1991_v24 = vmax.f32 %v1945_v52, 0.0 }
 0x33f   : > { %v3712_v20 = vpack.c.bf16 %v1992_v63, %v1991_v24 }
 0x341   : > { %3713 = vmatprep.subr.bf16.mxu0 %v3712_v20  ;;  %3798 = vmatprep.subr.bf16.mxu1 %v3712_v20 }
 0x342   : > { %3715 = vmatpush3.bf16.msra.mxu0 %v4922_v43  ;;  %3806 = vmatpush3.bf16.msra.mxu1 %v4922_v43  ;;  %v2001_v43 = vld [vmem:[%s5615_s5 + $0x30] sm:$0xff] }
 0x349   : > { %v3619_v26 = vpop.f32.mrb[30].mxu0 }
 0x34a   : > { %v1960_v27 = vadd.f32 %v3619_v26, %v4672_v62  ;;  %v1954_v4 = vpop.f32.mrb[31].mxu0 }
 0x34b   : > { %v1955_v14 = vadd.f32 %v4672_v62, %v1954_v4  ;;  %v1998_v62 = vld [vmem:[%s5615_s5 + $0x18] sm:$0xff] }
 0x34c   : > { %v1994_v5 = vmax.f32 %v1960_v27, 0.0 }
 0x34d   : > { %v1993_v6 = vmax.f32 %v1955_v14, 0.0 }
 0x34f   : > { %v3716_v9 = vpack.c.bf16 %v1994_v5, %v1993_v6 }
 0x351   : > { %3717 = vmatprep.subr.bf16.mxu0 %v3716_v9  ;;  %3799 = vmatprep.subr.bf16.mxu1 %v3716_v9 }
 0x352   : > { %3719 = vmatpush3.bf16.msra.mxu0 %v4946_v8  ;;  %3807 = vmatpush3.bf16.msra.mxu1 %v4946_v8  ;;  %v1997_v8 = vld [vmem:[%s5615_s5 + $0x10] sm:$0xff] }
 0x353   : > { %3721 = vmatprep.subr.bf16.mxu1 %v3720_v51 }
 0x355   : > { %2076 = vmatmul.mubr.f32.vlgmr.msra.gmra.mrb[32].mxu0 %v1995_v10  ;;  %2091 = vmatmul.mubr.f32.vlgmr.msra.gmra.mrb[0].mxu1 %v2001_v43 }
 0x356   : > { %2080 = vmatprep.mubr.f32.mxu0 %v1998_v62  ;;  %2095 = vmatprep.mubr.f32.mxu1 %v2004_v11 }
 0x357   : > { %3723 = vmatpush3.bf16.msra.mxu1 %v3720_v51 }
 0x358   : > { %3725 = vmatprep.subr.bf16.mxu1 %v3724_v55 }
 0x359   : > { %2081 = vmatmul.mubr.f32.gmra.mrb[34].mxu0 %v1997_v8  ;;  %2096 = vmatmul.mubr.f32.gmra.mrb[2].mxu1 %v2003_v12 }
 0x35a   : > { %2085 = vmatprep.mubr.f32.mxu0 %v2000_v13  ;;  %2100 = vmatprep.mubr.f32.mxu1 %v2006_v15 }
 0x35b   : > { %3727 = vmatpush3.bf16.msra.mxu1 %v3724_v55 }
 0x35c   : > { %3729 = vmatprep.subr.bf16.mxu1 %v3728_v56 }
 0x35d   : > { %2086 = vmatmul.mubr.f32.gmra.mrb[36].mxu0 %v1999_v16  ;;  %2101 = vmatmul.mubr.f32.gmra.mrb[4].mxu1 %v2005_v17 }
 0x35e   : > { %2105 = vmatprep.mubr.f32.mxu1 %v2008_v18 }
 0x35f   : > { %3731 = vmatpush3.bf16.msra.mxu1 %v3728_v56 }
 0x360   : > { %3733 = vmatprep.subr.bf16.mxu1 %v3732_v58 }
 0x361   : > { %2106 = vmatmul.mubr.f32.gmra.mrb[6].mxu1 %v2007_v19 }
 0x362   : > { %2110 = vmatprep.mubr.f32.mxu1 %v2010_v44 }
 0x363   : > { %3735 = vmatpush3.bf16.msra.mxu1 %v3732_v58 }
 0x364   : > { %3636 = vmatprep.subr.mxu1 %v2124_v60 }
 0x365   : > { %2111 = vmatmul.mubr.f32.gmra.mrb[8].mxu1 %v2009_v45 }
 0x367   : > { %3637 = vmatpush3.msra.mxu1 %v2124_v60 }
 0x428   : > { %v3467_v29 = vpop.f32.mrb[32].mxu0  ;;  %v3476_v31 = vpop.f32.mrb[0].mxu1 }
 0x429   : > { %v3468_v32 = vpop.f32.mrb[33].mxu0  ;;  %v3477_v46 = vpop.f32.mrb[1].mxu1 }
 0x42a   : > { %v3469_v33 = vadd.f32 %v3468_v32, %v3467_v29  ;;  %v3478_v22 = vadd.f32 %v3477_v46, %v3476_v31 }
 0x42c   : > { %2180 = vrot.lane.b32.xlu1 %v3469_v33, %s3868_s28  ;;  %2151 = vrot.lane.b32.xlu0 %v3469_v33, %s3872_s14  ;;  %v3470_v34 = vpop.f32.mrb[34].mxu0  ;;  %v3479_v21 = vpop.f32.mrb[2].mxu1  ;;  %2137 = vst.msk [vmem:[#allocation3 + $0x9] sm:$0x7f] %vm2136_vm1, %v3469_v33  ;;  %2140 = vst.msk [vmem:[#allocation3 + $0x21] sm:$0x7f] %vm2136_vm1, %v3478_v22 }
 0x42d   : > { %v3471_v7 = vpop.f32.mrb[35].mxu0  ;;  %v3480_v35 = vpop.f32.mrb[3].mxu1 }
 0x42e   : > { %v3472_v25 = vadd.f32 %v3471_v7, %v3470_v34  ;;  %v5054_v37 = vadd.f32 %v3480_v35, %v3479_v21 }
 0x430   : > { %2276 = vrot.lane.b32.xlu1 %v3469_v33, %s3876_s15  ;;  %2210 = vrot.lane.b32.xlu0 %v3469_v33, %s3873_s17  ;;  %v3473_v38 = vpop.f32.mrb[36].mxu0  ;;  %v3482_v36 = vpop.f32.mrb[4].mxu1  ;;  %2138 = vst.msk [vmem:[#allocation3 + $0x11] sm:$0x7f] %vm2136_vm1, %v3472_v25  ;;  %2141 = vst.msk [vmem:[#allocation3 + $0x29] sm:$0x7f] %vm2136_vm1, %v5054_v37 }
 0x431   : > { %v3474_v39 = vpop.f32.mrb[37].mxu0  ;;  %v3483_v40 = vpop.f32.mrb[5].mxu1 }
 0x432   : > { %v5061_v41 = vadd.f32 %v3474_v39, %v3473_v38  ;;  %v5063_v42 = vadd.f32 %v3483_v40, %v3482_v36 }
 0x434   : > { %2249 = vrot.lane.b32.xlu1 %v3478_v22, %s3875_s18  ;;  %2243 = vrot.lane.b32.xlu0 %v3469_v33, %s3875_s18  ;;  %v3485_v23 = vpop.f32.mrb[6].mxu1  ;;  %2139 = vst.msk [vmem:[#allocation3 + $0x19] sm:$0x7f] %vm2136_vm1, %v5061_v41  ;;  %2142 = vst.msk [vmem:[#allocation3 + $0x31] sm:$0x7f] %vm2136_vm1, %v5063_v42 }
 0x435   : > { %v3486_v47 = vpop.f32.mrb[7].mxu1 }
 0x436   : > { %v5071_v0 = vadd.f32 %v3486_v47, %v3485_v23 }
 0x438   : > { %2186 = vrot.lane.b32.xlu1 %v3478_v22, %s3868_s28  ;;  %2216 = vrot.lane.b32.xlu0 %v3478_v22, %s3873_s17  ;;  %v3488_v59 = vpop.f32.mrb[8].mxu1  ;;  %2143 = vst.msk [vmem:[#allocation3 + $0x39] sm:$0x7f] %vm2136_vm1, %v5071_v0  ;;  %vm2727_vm1 = vcmask 388352  }
 0x439   : > { %v3489_v1 = vpop.f32.mrb[9].mxu1 }
 0x43a   : > { %v5077_v48 = vadd.f32 %v3489_v1, %v3488_v59 }
 0x43c   : > { %2313 = vrot.lane.b32.xlu1 %v3478_v22, %s3877_s16  ;;  %2157 = vrot.lane.b32.xlu0 %v3478_v22, %s3872_s14 }
 0x440   : > { %2342 = vrot.lane.b32.xlu1 %v3478_v22, %s3878_s19  ;;  %2282 = vrot.lane.b32.xlu0 %v3478_v22, %s3876_s15 }
 0x444   : > { %2371 = vrot.lane.b32.xlu1 %v3478_v22, %s3879_s20  ;;  %2245 = vrot.lane.b32.xlu0 %v3472_v25, %s3875_s18 }
 0x448   : > { %2212 = vrot.lane.b32.xlu1 %v3472_v25, %s3873_s17  ;;  %2278 = vrot.lane.b32.xlu0 %v3472_v25, %s3876_s15 }
 0x44c   : > { %2153 = vrot.lane.b32.xlu1 %v3472_v25, %s3872_s14  ;;  %2159 = vrot.lane.b32.xlu0 %v5054_v37, %s3872_s14 }
 0x450   : > { %2182 = vrot.lane.b32.xlu1 %v3472_v25, %s3868_s28  ;;  %2188 = vrot.lane.b32.xlu0 %v5054_v37, %s3868_s28 }
 0x454   : > { %2309 = vrot.lane.b32.xlu1 %v3472_v25, %s3877_s16  ;;  %2315 = vrot.lane.b32.xlu0 %v5054_v37, %s3877_s16 }
 0x458   : > { %2338 = vrot.lane.b32.xlu1 %v3472_v25, %s3878_s19  ;;  %2344 = vrot.lane.b32.xlu0 %v5054_v37, %s3878_s19 }
 0x45c   : > { %2367 = vrot.lane.b32.xlu1 %v3472_v25, %s3879_s20  ;;  %2284 = vrot.lane.b32.xlu0 %v5054_v37, %s3876_s15 }
 0x460   : > { %2218 = vrot.lane.b32.xlu1 %v5054_v37, %s3873_s17  ;;  %2155 = vrot.lane.b32.xlu0 %v5061_v41, %s3872_s14 }
 0x464   : > { %2251 = vrot.lane.b32.xlu1 %v5054_v37, %s3875_s18  ;;  %2184 = vrot.lane.b32.xlu0 %v5061_v41, %s3868_s28 }
 0x468   : > { %2373 = vrot.lane.b32.xlu1 %v5054_v37, %s3879_s20  ;;  %2311 = vrot.lane.b32.xlu0 %v5061_v41, %s3877_s16 }
 0x46c   : > { %2214 = vrot.lane.b32.xlu1 %v5061_v41, %s3873_s17  ;;  %2340 = vrot.lane.b32.xlu0 %v5061_v41, %s3878_s19 }
 0x470   : > { %2247 = vrot.lane.b32.xlu1 %v5061_v41, %s3875_s18  ;;  %2280 = vrot.lane.b32.xlu0 %v5061_v41, %s3876_s15 }
 0x474   : > { %2369 = vrot.lane.b32.xlu1 %v5061_v41, %s3879_s20  ;;  %2220 = vrot.lane.b32.xlu0 %v5063_v42, %s3873_s17 }
 0x478   : > { %2253 = vrot.lane.b32.xlu1 %v5063_v42, %s3875_s18  ;;  %2161 = vrot.lane.b32.xlu0 %v5063_v42, %s3872_s14 }
 0x47c   : > { %2286 = vrot.lane.b32.xlu1 %v5063_v42, %s3876_s15  ;;  %2190 = vrot.lane.b32.xlu0 %v5063_v42, %s3868_s28 }
 0x480   : > { %2346 = vrot.lane.b32.xlu1 %v5063_v42, %s3878_s19  ;;  %2317 = vrot.lane.b32.xlu0 %v5063_v42, %s3877_s16 }
 0x484   : > { %2222 = vrot.lane.b32.xlu1 %v5071_v0, %s3873_s17  ;;  %2375 = vrot.lane.b32.xlu0 %v5063_v42, %s3879_s20 }
 0x488   : > { %2348 = vrot.lane.b32.xlu1 %v5071_v0, %s3878_s19  ;;  %2319 = vrot.lane.b32.xlu0 %v5071_v0, %s3877_s16 }
 0x48c   : > { %2163 = vrot.lane.b32.xlu1 %v5071_v0, %s3872_s14  ;;  %2255 = vrot.lane.b32.xlu0 %v5071_v0, %s3875_s18 }
 0x490   : > { %2377 = vrot.lane.b32.xlu1 %v5071_v0, %s3879_s20  ;;  %2288 = vrot.lane.b32.xlu0 %v5071_v0, %s3876_s15 }
 0x494   : > { %2321 = vrot.lane.b32.xlu1 %v5077_v48, %s3877_s16  ;;  %2192 = vrot.lane.b32.xlu0 %v5071_v0, %s3868_s28 }
 0x498   : > { %2350 = vrot.lane.b32.xlu1 %v5077_v48, %s3878_s19  ;;  %2224 = vrot.lane.b32.xlu0 %v5077_v48, %s3873_s17 }
 0x49c   : > { %2379 = vrot.lane.b32.xlu1 %v5077_v48, %s3879_s20  ;;  %2257 = vrot.lane.b32.xlu0 %v5077_v48, %s3875_s18 }
 0x49e   : > { %v2181_v61 = vpop.permute.xlu1 %2180  ;;  %v2152_v52 = vpop.permute.xlu0 %2151 }
 0x49f   : > { %2173 = vst.msk [vmem:[#allocation3 + $0x8] sm:$0xff] %vm2172_vm2, %v2152_v52 }
 0x4a0   : > { %2202 = vst.msk [vmem:[#allocation3 + $0x7] sm:$0xfe] %vm2201_vm4, %v2181_v61  ;;  %2290 = vrot.lane.b32.xlu0 %v5077_v48, %s3876_s15  ;;  %s5267_s15 = sshll.u32 %s5625_s22, 4  ;;  %s3880_s22 = smov 80  }
 0x4a1   : > { %s451_s13 = scalar_lea.vmem %s5611_s1, %s5267_s15  ;;  %s456_s17 = scalar_lea.vmem %s5612_s2, %s5267_s15 }
 0x4a2   : > { %v2277_v63 = vpop.permute.xlu1 %2276  ;;  %v2211_v24 = vpop.permute.xlu0 %2210  ;;  %s461_s30 = scalar_lea.vmem %s5621_s11, %s5267_s15 }
 0x4a3   : > { %2235 = vst.msk [vmem:[#allocation3 + $0x1] sm:$0x7f] %vm2234_vm5, %v2211_v24 }
 0x4a6   : > { %v2250_v20 = vpop.permute.xlu1 %2249  ;;  %v2244_v26 = vpop.permute.xlu0 %2243 }
 0x4a7   : > { %2268 = vst.msk [vmem:[#allocation3] sm:$0xff] %vm2267_vm6, %v2244_v26  ;;  %v2637_v26 = vld [vmem:[%s451_s13] sm:$0xff] }
 0x4a8   : > { %2301 = vst.msk [vmem:[#allocation3 - $0x1] sm:$0xfe] %vm2300_vm7, %v2277_v63  ;;  %2823 = vrot.lane.b32.xlu0 %v2637_v26, %s3868_s28 }
 0x4aa   : > { %v2187_v27 = vpop.permute.xlu1 %2186  ;;  %v2217_v4 = vpop.permute.xlu0 %2216 }
 0x4ae   : > { %v2314_v14 = vpop.permute.xlu1 %2313  ;;  %v2158_v5 = vpop.permute.xlu0 %2157 }
 0x4af   : > { %2176 = vst.msk [vmem:[#allocation3 + $0x20] sm:$0xff] %vm2172_vm2, %v2158_v5  ;;  %v2643_v5 = vcombine.high %v2637_v26, %v2637_v26 }
 0x4b0   : > { %2205 = vst.msk [vmem:[#allocation3 + $0x1f] sm:$0xfe] %vm2201_vm4, %v2187_v27  ;;  %v2702_v27 = vrot.slane %v2637_v26, 7 }
 0x4b2   : > { %v2343_v6 = vpop.permute.xlu1 %2342  ;;  %v2283_v9 = vpop.permute.xlu0 %2282  ;;  %2705 = vrot.lane.b32.xlu1 %v2702_v27, %s3868_s28 }
 0x4b6   : > { %v2372_v10 = vpop.permute.xlu1 %2371  ;;  %v2246_v43 = vpop.permute.xlu0 %2245  ;;  %2825 = vrot.lane.b32.xlu1 %v2643_v5, %s3868_s28 }
 0x4ba   : > { %v2213_v62 = vpop.permute.xlu1 %2212  ;;  %v2279_v11 = vpop.permute.xlu0 %2278  ;;  %2731 = vrot.lane.b32.xlu1 %v2637_v26, %s3877_s16 }
 0x4bb   : > { %2236 = vst.msk [vmem:[#allocation3 + $0x9] sm:$0x7f] %vm2234_vm5, %v2213_v62  ;;  %v2703_v62 = vrot.slane %v2643_v5, 7 }
 0x4bc   : > { %2269 = vst.msk [vmem:[#allocation3 + $0x8] sm:$0xff] %vm2267_vm6, %v2246_v43 }
 0x4bd   : > { %2302 = vst.msk [vmem:[#allocation3 + $0x7] sm:$0xfe] %vm2300_vm7, %v2279_v11 }
 0x4be   : > { %v2154_v8 = vpop.permute.xlu1 %2153  ;;  %v2160_v12 = vpop.permute.xlu0 %2159 }
 0x4bf   : > { %2174 = vst.msk [vmem:[#allocation3 + $0x10] sm:$0xff] %vm2172_vm2, %v2154_v8  ;;  %2177 = vst.msk [vmem:[#allocation3 + $0x28] sm:$0xff] %vm2172_vm2, %v2160_v12 }
 0x4c2   : > { %v2183_v13 = vpop.permute.xlu1 %2182  ;;  %v2189_v15 = vpop.permute.xlu0 %2188 }
 0x4c3   : > { %2203 = vst.msk [vmem:[#allocation3 + $0xf] sm:$0xfe] %vm2201_vm4, %v2183_v13  ;;  %2206 = vst.msk [vmem:[#allocation3 + $0x27] sm:$0xfe] %vm2201_vm4, %v2189_v15  ;;  %v3375_v15 = vld [vmem:[%s5617_s7] ss:$0 sm:$0xff] }
 0x4c6   : > { %v2310_v16 = vpop.permute.xlu1 %2309  ;;  %v2316_v17 = vpop.permute.xlu0 %2315 }
 0x4c7   : > { %2331 = vst.msk [vmem:[#allocation3 + $0x1] sm:$0x7f] %vm2330_vm8, %v2310_v16 }
 0x4ca   : > { %v2339_v18 = vpop.permute.xlu1 %2338  ;;  %v2345_v19 = vpop.permute.xlu0 %2344 }
 0x4cb   : > { %2360 = vst.msk [vmem:[#allocation3] sm:$0xff] %vm2359_vm9, %v2339_v18 }
 0x4ce   : > { %v2368_v44 = vpop.permute.xlu1 %2367  ;;  %v2285_v45 = vpop.permute.xlu0 %2284 }
 0x4cf   : > { %2389 = vst.msk [vmem:[#allocation3 - $0x1] sm:$0xfe] %vm2388_vm10, %v2368_v44 }
 0x4d2   : > { %v2219_v29 = vpop.permute.xlu1 %2218  ;;  %v2156_v31 = vpop.permute.xlu0 %2155 }
 0x4d3   : > { %2239 = vst.msk [vmem:[#allocation3 + $0x21] sm:$0x7f] %vm2234_vm5, %v2219_v29 }
 0x4d4   : > { %2175 = vst.msk [vmem:[#allocation3 + $0x18] sm:$0xff] %vm2172_vm2, %v2156_v31 }
 0x4d6   : > { %v2252_v32 = vpop.permute.xlu1 %2251  ;;  %v2185_v46 = vpop.permute.xlu0 %2184  ;;  %v2396_v33 = vld [vmem:[#allocation3] sm:$0xff] }
 0x4d7   : > { %2272 = vst.msk [vmem:[#allocation3 + $0x20] sm:$0xff] %vm2267_vm6, %v2252_v32  ;;  %3638 = vmatprep.mubr.msk.f32.mxu1 %vm2126_vm0, %v2396_v33 }
 0x4d8   : > { %2204 = vst.msk [vmem:[#allocation3 + $0x17] sm:$0xfe] %vm2201_vm4, %v2185_v46 }
 0x4d9   : > { %2305 = vst.msk [vmem:[#allocation3 + $0x1f] sm:$0xfe] %vm2300_vm7, %v2285_v45 }
 0x4da   : > { %2238 = vst.msk [vmem:[#allocation3 + $0x19] sm:$0x7f] %vm2234_vm5, %v2217_v4  ;;  %v2374_v22 = vpop.permute.xlu1 %2373  ;;  %v2312_v34 = vpop.permute.xlu0 %2311  ;;  %v2763_v4 = vrot.slane %v2637_v26, 5 }
 0x4db   : > { %2271 = vst.msk [vmem:[#allocation3 + $0x18] sm:$0xff] %vm2267_vm6, %v2250_v20  ;;  %v2547_v20 = vld [vmem:[%s5618_s8] sm:$0xff] }
 0x4dc   : > { %2304 = vst.msk [vmem:[#allocation3 + $0x17] sm:$0xfe] %vm2300_vm7, %v2283_v9  ;;  %3666 = vmatprep.mubr.msk.f32.mxu0 %vm2549_vm11, %v2547_v20 }
 0x4dd   : > { %2334 = vst.msk [vmem:[#allocation3 + $0x19] sm:$0x7f] %vm2330_vm8, %v2316_v17  ;;  %2332 = vst.msk [vmem:[#allocation3 + $0x9] sm:$0x7f] %vm2330_vm8, %v2312_v34 }
 0x4de   : > { %2363 = vst.msk [vmem:[#allocation3 + $0x18] sm:$0xff] %vm2359_vm9, %v2345_v19  ;;  %v2215_v21 = vpop.permute.xlu1 %2214  ;;  %v2341_v7 = vpop.permute.xlu0 %2340 }
 0x4df   : > { %2392 = vst.msk [vmem:[#allocation3 + $0x17] sm:$0xfe] %vm2388_vm10, %v2374_v22 }
 0x4e0   : > { %2237 = vst.msk [vmem:[#allocation3 + $0x11] sm:$0x7f] %vm2234_vm5, %v2215_v21 }
 0x4e1   : > { %2361 = vst.msk [vmem:[#allocation3 + $0x8] sm:$0xff] %vm2359_vm9, %v2341_v7 }
 0x4e2   : > { %v2248_v35 = vpop.permute.xlu1 %2247  ;;  %v2281_v25 = vpop.permute.xlu0 %2280 }
 0x4e3   : > { %2270 = vst.msk [vmem:[#allocation3 + $0x10] sm:$0xff] %vm2267_vm6, %v2248_v35 }
 0x4e4   : > { %2303 = vst.msk [vmem:[#allocation3 + $0xf] sm:$0xfe] %vm2300_vm7, %v2281_v25 }
 0x4e5   : > { %2333 = vst.msk [vmem:[#allocation3 + $0x11] sm:$0x7f] %vm2330_vm8, %v2314_v14  ;;  %v2638_v14 = vld [vmem:[%s451_s13 + $0x8] sm:$0xff] }
 0x4e6   : > { %2362 = vst.msk [vmem:[#allocation3 + $0x10] sm:$0xff] %vm2359_vm9, %v2343_v6  ;;  %v2370_v37 = vpop.permute.xlu1 %2369  ;;  %v2221_v38 = vpop.permute.xlu0 %2220  ;;  %v2399_v59 = vld [vmem:[#allocation3 + $0x18] sm:$0xff]  ;;  %v2764_v6 = vrot.slane %v2763_v4, 4  ;;  %v5276_v9 = vrot.slane %v2638_v14, 7  ;;  %v2767_v11 = vrot.slane %v2638_v14, 5  ;;  %v5304_v12 = vcombine.high %v2638_v14, %v2638_v14 }
 0x4e7   : > { %2391 = vst.msk [vmem:[#allocation3 + $0xf] sm:$0xfe] %vm2388_vm10, %v2372_v10  ;;  %2390 = vst.msk [vmem:[#allocation3 + $0x7] sm:$0xfe] %vm2388_vm10, %v2370_v37  ;;  %v2765_v10 = vrot.slane %v2643_v5, 5 }
 0x4e8   : > { %2240 = vst.msk [vmem:[#allocation3 + $0x29] sm:$0x7f] %vm2234_vm5, %v2221_v38  ;;  %2861 = vrot.lane.b32.xlu0 %v2764_v6, %s3877_s16  ;;  %v5293_v8 = vrot.slane %v2767_v11, 4  ;;  %v2800_v13 = vrot.slane %v5304_v12, 7  ;;  %v2662_v11 = vld [vmem:[%s5619_s9 + $0x88] sm:$0xff] }
 0x4e9   : > { %v5282_v43 = vrot.slane %v2765_v10, 4 }
 0x4ea   : > { %v2254_v36 = vpop.permute.xlu1 %2253  ;;  %v2162_v39 = vpop.permute.xlu0 %2161 }
 0x4eb   : > { %2273 = vst.msk [vmem:[#allocation3 + $0x28] sm:$0xff] %vm2267_vm6, %v2254_v36  ;;  %2863 = vrot.lane.b32.xlu1 %v5282_v43, %s3877_s16 }
 0x4ec   : > { %2178 = vst.msk [vmem:[#allocation3 + $0x30] sm:$0xff] %vm2172_vm2, %v2162_v39  ;;  %2709 = vrot.lane.b32.xlu0 %v5276_v9, %s3868_s28 }
 0x4ee   : > { %v2287_v40 = vpop.permute.xlu1 %2286  ;;  %v2191_v41 = vpop.permute.xlu0 %2190  ;;  %v2397_v42 = vld [vmem:[#allocation3 + $0x8] sm:$0xff]  ;;  %v2398_v23 = vld [vmem:[#allocation3 + $0x10] sm:$0xff] }
 0x4ef   : > { %2306 = vst.msk [vmem:[#allocation3 + $0x27] sm:$0xfe] %vm2300_vm7, %v2287_v40  ;;  %3639 = vmatmul.mubr.msk.f32.vlgmr.msra.gmra.mrb[10].mxu1 %vm2126_vm0, %v2397_v42  ;;  %2707 = vrot.lane.b32.xlu1 %v2703_v62, %s3868_s28 }
 0x4f0   : > { %2207 = vst.msk [vmem:[#allocation3 + $0x2f] sm:$0xfe] %vm2201_vm4, %v2191_v41  ;;  %3641 = vmatprep.mubr.msk.f32.mxu1 %vm2126_vm0, %v2398_v23  ;;  %2827 = vrot.lane.b32.xlu0 %v2638_v14, %s3868_s28 }
 0x4f2   : > { %v2347_v47 = vpop.permute.xlu1 %2346  ;;  %v2318_v0 = vpop.permute.xlu0 %2317 }
 0x4f3   : > { %2335 = vst.msk [vmem:[#allocation3 + $0x21] sm:$0x7f] %vm2330_vm8, %v2318_v0  ;;  %3642 = vmatmul.mubr.msk.f32.gmra.mrb[12].mxu1 %vm2126_vm0, %v2399_v59  ;;  %2769 = vrot.lane.b32.xlu1 %v2764_v6, %s3880_s22 }
 0x4f4   : > { %2364 = vst.msk [vmem:[#allocation3 + $0x20] sm:$0xff] %vm2359_vm9, %v2347_v47  ;;  %2893 = vrot.lane.b32.xlu0 %v5276_v9, %s3880_s22 }
 0x4f6   : > { %v2223_v1 = vpop.permute.xlu1 %2222  ;;  %v2376_v48 = vpop.permute.xlu0 %2375 }
 0x4f7   : > { %2241 = vst.msk [vmem:[#allocation3 + $0x31] sm:$0x7f] %vm2234_vm5, %v2223_v1  ;;  %2891 = vrot.lane.b32.xlu1 %v2703_v62, %s3880_s22  ;;  %v2548_v1 = vld [vmem:[%s5618_s8 + $0x8] sm:$0xff] }
 0x4f8   : > { %2393 = vst.msk [vmem:[#allocation3 + $0x1f] sm:$0xfe] %vm2388_vm10, %v2376_v48  ;;  %2733 = vrot.lane.b32.xlu0 %v2643_v5, %s3877_s16 }
 0x4fa   : > { %v2349_v49 = vpop.permute.xlu1 %2348  ;;  %v2320_v50 = vpop.permute.xlu0 %2319 }
 0x4fb   : > { %2336 = vst.msk [vmem:[#allocation3 + $0x29] sm:$0x7f] %vm2330_vm8, %v2320_v50  ;;  %2735 = vrot.lane.b32.xlu1 %v2638_v14, %s3877_s16 }
 0x4fc   : > { %2365 = vst.msk [vmem:[#allocation3 + $0x28] sm:$0xff] %vm2359_vm9, %v2349_v49  ;;  %2801 = vrot.lane.b32.xlu0 %v2702_v27, %s3881_s23 }
 0x4fe   : > { %v2164_v51 = vpop.permute.xlu1 %2163  ;;  %v2256_v53 = vpop.permute.xlu0 %2255 }
 0x4ff   : > { %v2400_v54 = vld [vmem:[#allocation3 + $0x20] sm:$0xff]  ;;  %2179 = vst.msk [vmem:[#allocation3 + $0x38] sm:$0xff] %vm2172_vm2, %v2164_v51  ;;  %2803 = vrot.lane.b32.xlu1 %v2703_v62, %s3881_s23  ;;  %vm2740_vm2 = vcmask 519552  }
 0x500   : > { %2274 = vst.msk [vmem:[#allocation3 + $0x30] sm:$0xff] %vm2267_vm6, %v2256_v53  ;;  %3644 = vmatprep.mubr.msk.f32.mxu1 %vm2126_vm0, %v2400_v54  ;;  %2865 = vrot.lane.b32.xlu0 %v5293_v8, %s3877_s16  ;;  %v2661_v62 = vld [vmem:[%s5619_s9 + $0x80] sm:$0xff] }
 0x502   : > { %v2378_v55 = vpop.permute.xlu1 %2377  ;;  %v2289_v2 = vpop.permute.xlu0 %2288 }
 0x503   : > { %2394 = vst.msk [vmem:[#allocation3 + $0x27] sm:$0xfe] %vm2388_vm10, %v2378_v55  ;;  %2917 = vrot.lane.b32.xlu1 %v2643_v5, %s3881_s23 }
 0x504   : > { %2307 = vst.msk [vmem:[#allocation3 + $0x2f] sm:$0xfe] %vm2300_vm7, %v2289_v2  ;;  %2919 = vrot.lane.b32.xlu0 %v2638_v14, %s3881_s23 }
 0x506   : > { %v2322_v30 = vpop.permute.xlu1 %2321  ;;  %v2193_v56 = vpop.permute.xlu0 %2192 }
 0x507   : > { %2337 = vst.msk [vmem:[#allocation3 + $0x31] sm:$0x7f] %vm2330_vm8, %v2322_v30  ;;  %2773 = vrot.lane.b32.xlu1 %v5293_v8, %s3880_s22  ;;  %vm2759_vm8 = vcmask 649728  }
 0x508   : > { %2208 = vst.msk [vmem:[#allocation3 + $0x37] sm:$0xfe] %vm2201_vm4, %v2193_v56  ;;  %2771 = vrot.lane.b32.xlu0 %v5282_v43, %s3880_s22  ;;  %vm2795_vm4 = vcmask 913153  }
 0x50a   : > { %v2351_v3 = vpop.permute.xlu1 %2350  ;;  %v2225_v57 = vpop.permute.xlu0 %2224  ;;  %v2401_v58 = vld [vmem:[#allocation3 + $0x28] sm:$0xff] }
 0x50b   : > { %2366 = vst.msk [vmem:[#allocation3 + $0x30] sm:$0xff] %vm2359_vm9, %v2351_v3  ;;  %3645 = vmatmul.mubr.msk.f32.gmra.mrb[14].mxu1 %vm2126_vm0, %v2401_v58  ;;  %2895 = vrot.lane.b32.xlu1 %v2800_v13, %s3880_s22  ;;  %vm2887_vm9 = vcmask 650753  }
 0x50c   : > { %2242 = vst.msk [vmem:[#allocation3 + $0x39] sm:$0x7f] %vm2234_vm5, %v2225_v57  ;;  %2829 = vrot.lane.b32.xlu0 %v5304_v12, %s3868_s28  ;;  %vm2813_vm5 = vcmask 1044353  }
 0x50e   : > { %v2380_v60 = vpop.permute.xlu1 %2379  ;;  %v2258_v61 = vpop.permute.xlu0 %2257 }
 0x50f   : > { %2395 = vst.msk [vmem:[#allocation3 + $0x2f] sm:$0xfe] %vm2388_vm10, %v2380_v60  ;;  %vm2778_vm10 = vcmask 780928  }
 0x510   : > { %2275 = vst.msk [vmem:[#allocation3 + $0x38] sm:$0xff] %vm2267_vm6, %v2258_v61  ;;  %vm2854_vm6 = vcmask 387328  }
 0x512   : > { %v2291_v52 = vpop.permute.xlu0 %2290 }
 0x513   : > { %2308 = vst.msk [vmem:[#allocation3 + $0x37] sm:$0xfe] %vm2300_vm7, %v2291_v52  ;;  %vm2873_vm7 = vcmask 518528  }
 0x516   : > { %v2402_v63 = vld [vmem:[#allocation3 + $0x30] sm:$0xff] }
 0x517   : > { %3647 = vmatprep.mubr.msk.f32.mxu1 %vm2126_vm0, %v2402_v63 }
 0x51a   : > { %v2403_v24 = vld [vmem:[#allocation3 + $0x38] sm:$0xff]  ;;  %v2824_v48 = vpop.permute.xlu0 %2823 }
 0x51b   : > { %3648 = vmatmul.mubr.msk.f32.gmra.mrb[16].mxu1 %vm2126_vm0, %v2403_v24  ;;  %vm2933_vm0 = vcmask 124928  }
 0x524   : > { %v2706_v2 = vpop.permute.xlu1 %2705 }
 0x528   : > { %v2826_v56 = vpop.permute.xlu1 %2825 }
 0x52c   : > { %v5337_v57 = vpop.permute.xlu1 %2731 }
 0x55a   : > { %v5325_v49 = vpop.permute.xlu0 %2861 }
 0x55d   : > { %v5341_v60 = vpop.permute.xlu1 %2863 }
 0x55e   : > { %v2710_v50 = vpop.permute.xlu0 %2709 }
 0x562   : > { %v2828_v51 = vpop.permute.xlu0 %2827 }
 0x566   : > { %v5327_v53 = vpop.permute.xlu0 %2893 }
 0x56a   : > { %v5329_v54 = vpop.permute.xlu0 %2733 }
 0x56e   : > { %v5331_v55 = vpop.permute.xlu0 %2801 }
 0x572   : > { %v5333_v30 = vpop.permute.xlu0 %2865 }
 0x576   : > { %v5335_v3 = vpop.permute.xlu0 %2919 }
 0x57a   : > { %v5339_v28 = vpop.permute.xlu0 %2771 }
 0x57e   : > { %v2830_v20 = vpop.permute.xlu0 %2829 }
 0x5c2   : > { %v3640_v16 = vpop.f32.mrb[10].mxu1 }
 0x5c3   : > { %v2506_v17 = vadd.f32 %v3640_v16, %v3375_v15  ;;  %v2500_v18 = vpop.f32.mrb[11].mxu1  ;;  %v2708_v16 = vpop.permute.xlu1 %2707 }
 0x5c4   : > { %v2501_v19 = vadd.f32 %v3375_v15, %v2500_v18  ;;  %v2645_v18 = vld [vmem:[%s5619_s9] sm:$0xff] }
 0x5c5   : > { %v2540_v44 = vmax.f32 %v2506_v17, 0.0  ;;  %v3752_v17 = vpack.c.bf16 %v2662_v11, %v2661_v62  ;;  %v2676_v62 = vld [vmem:[%s5619_s9 + $0xf8] sm:$0xff] }
 0x5c6   : > { %v2539_v45 = vmax.f32 %v2501_v19, 0.0  ;;  %v3643_v29 = vpop.f32.mrb[12].mxu1  ;;  %v2646_v19 = vld [vmem:[%s5619_s9 + $0x8] sm:$0xff] }
 0x5c7   : > { %v2516_v31 = vadd.f32 %v3643_v29, %v3375_v15  ;;  %v2510_v32 = vpop.f32.mrb[13].mxu1  ;;  %3753 = vmatprep.subr.bf16.mxu1 %v3752_v17  ;;  %v2664_v29 = vld [vmem:[%s5619_s9 + $0x98] sm:$0xff] }
 0x5c8   : > { %v3736_v46 = vpack.c.bf16 %v2540_v44, %v2539_v45  ;;  %v2511_v33 = vadd.f32 %v3375_v15, %v2510_v32  ;;  %v3754_v44 = vpack.c.bf16 %v2646_v19, %v2645_v18  ;;  %v2663_v45 = vld [vmem:[%s5619_s9 + $0x90] sm:$0xff]  ;;  %v2677_v18 = vld [vmem:[%s5619_s9 + $0x100] sm:$0xff]  ;;  %v2678_v19 = vld [vmem:[%s5619_s9 + $0x108] sm:$0xff] }
 0x5c9   : > { %v2542_v22 = vmax.f32 %v2516_v31, 0.0  ;;  %v3756_v31 = vpack.c.bf16 %v2664_v29, %v2663_v45  ;;  %v2647_v32 = vld [vmem:[%s5619_s9 + $0x10] sm:$0xff] }
 0x5ca   : > { %v2541_v34 = vmax.f32 %v2511_v33, 0.0  ;;  %3737 = vmatprep.subr.bf16.mxu0 %v3736_v46  ;;  %3755 = vmatpush3.bf16.msra.mxu1 %v3754_v44  ;;  %v5512_v44 = vpack.c.bf16 %v2678_v19, %v2677_v18 }
 0x5cb   : > { %3739 = vmatpush3.bf16.msra.mxu0 %v3736_v46  ;;  %v2648_v46 = vld [vmem:[%s5619_s9 + $0x18] sm:$0xff]  ;;  %3757 = vmatprep.subr.bf16.mxu1 %v3756_v31 }
 0x5cc   : > { %v3740_v21 = vpack.c.bf16 %v2542_v22, %v2541_v34  ;;  %v3758_v33 = vpack.c.bf16 %v2648_v46, %v2647_v32  ;;  %v2665_v22 = vld [vmem:[%s5619_s9 + $0xa0] sm:$0xff]  ;;  %v2666_v34 = vld [vmem:[%s5619_s9 + $0xa8] sm:$0xff] }
 0x5ce   : > { %3741 = vmatprep.subr.bf16.mxu0 %v3740_v21  ;;  %3759 = vmatpush3.bf16.msra.mxu1 %v3758_v33 }
 0x5cf   : > { %3743 = vmatpush3.bf16.msra.mxu0 %v3740_v21  ;;  %v3760_v21 = vpack.c.bf16 %v2666_v34, %v2665_v22 }
 0x5d1   : > { %3761 = vmatprep.subr.bf16.mxu1 %v3760_v21 }
 0x5de   : > { %v3646_v7 = vpop.f32.mrb[14].mxu1 }
 0x5df   : > { %v2526_v35 = vadd.f32 %v3646_v7, %v3375_v15  ;;  %v2520_v25 = vpop.f32.mrb[15].mxu1  ;;  %v2649_v7 = vld [vmem:[%s5619_s9 + $0x20] sm:$0xff] }
 0x5e0   : > { %v2521_v37 = vadd.f32 %v3375_v15, %v2520_v25 }
 0x5e1   : > { %v2544_v38 = vmax.f32 %v2526_v35, 0.0  ;;  %v2650_v35 = vld [vmem:[%s5619_s9 + $0x28] sm:$0xff] }
 0x5e2   : > { %v2543_v36 = vmax.f32 %v2521_v37, 0.0  ;;  %v3762_v25 = vpack.c.bf16 %v2650_v35, %v2649_v7  ;;  %v2667_v37 = vld [vmem:[%s5619_s9 + $0xb0] sm:$0xff] }
 0x5e4   : > { %v3744_v39 = vpack.c.bf16 %v2544_v38, %v2543_v36  ;;  %v2668_v38 = vld [vmem:[%s5619_s9 + $0xb8] sm:$0xff]  ;;  %3763 = vmatpush3.bf16.msra.mxu1 %v3762_v25 }
 0x5e5   : > { %v3764_v36 = vpack.c.bf16 %v2668_v38, %v2667_v37 }
 0x5e6   : > { %3745 = vmatprep.subr.bf16.mxu0 %v3744_v39 }
 0x5e7   : > { %3747 = vmatpush3.bf16.msra.mxu0 %v3744_v39  ;;  %v2651_v39 = vld [vmem:[%s5619_s9 + $0x30] sm:$0xff]  ;;  %3765 = vmatprep.subr.bf16.mxu1 %v3764_v36 }
 0x5ee   : > { %v3649_v40 = vpop.f32.mrb[16].mxu1 }
 0x5ef   : > { %v2536_v41 = vadd.f32 %v3649_v40, %v3375_v15  ;;  %v2530_v42 = vpop.f32.mrb[17].mxu1  ;;  %v2652_v40 = vld [vmem:[%s5619_s9 + $0x38] sm:$0xff] }
 0x5f0   : > { %v2531_v23 = vadd.f32 %v3375_v15, %v2530_v42 }
 0x5f1   : > { %v2546_v47 = vmax.f32 %v2536_v41, 0.0 }
 0x5f2   : > { %v2545_v0 = vmax.f32 %v2531_v23, 0.0  ;;  %v3766_v23 = vpack.c.bf16 %v2652_v40, %v2651_v39 }
 0x5f4   : > { %v3748_v59 = vpack.c.bf16 %v2546_v47, %v2545_v0  ;;  %v2669_v47 = vld [vmem:[%s5619_s9 + $0xc0] sm:$0xff]  ;;  %v2670_v0 = vld [vmem:[%s5619_s9 + $0xc8] sm:$0xff]  ;;  %3767 = vmatpush3.bf16.msra.mxu1 %v3766_v23 }
 0x5f6   : > { %3749 = vmatprep.subr.bf16.mxu0 %v3748_v59 }
 0x5f7   : > { %3751 = vmatpush3.bf16.msra.mxu0 %v3748_v59  ;;  %v3768_v59 = vpack.c.bf16 %v2670_v0, %v2669_v47 }
 0x5f9   : > { %3769 = vmatprep.subr.bf16.mxu1 %v3768_v59 }
 0x5fa   : > { %3667 = vmatmul.mubr.msk.f32.vlgmr.msra.gmra.mrb[38].mxu0 %vm2549_vm11, %v2548_v1  ;;  %v2653_v1 = vld [vmem:[%s5619_s9 + $0x40] sm:$0xff]  ;;  %vm2900_vm11 = vcmask 781953  }
 0x6cd   : > { %v3668_v58 = vpop.f32.mrb[38].mxu0 }
 0x6ce   : > { %2906 = vrot.lane.b32.xlu1 %v3668_v58, %s3882_s29  ;;  %2722 = vrot.lane.b32.xlu0 %v3668_v58, %s3875_s18  ;;  %v5345_v61 = vpop.f32.mrb[39].mxu0  ;;  %v5347_v52 = vcombine.high %v3668_v58, %v3668_v58  ;;  %v2693_v63 = vrot.slane %v3668_v58, 7  ;;  %v2748_v24 = vrot.slane %v3668_v58, 5  ;;  %2821 = vst.msk [vmem:[#allocation4 + $0x1c] sm:$0xf] %vm2818_vm13, %v3668_v58 }
 0x6cf   : > { %v2633_v26 = vcombine.high %v5345_v61, %v5345_v61  ;;  %v2691_v27 = vrot.slane %v5345_v61, 7  ;;  %2819 = vst.msk [vmem:[#allocation4 + $0x4] sm:$0xf] %vm2818_vm13, %v5345_v61  ;;  %v2744_v41 = vrot.slane %v5345_v61, 5 }
 0x6d0   : > { %2838 = vst.msk [vmem:[#allocation4 + $0x1c] sm:$0xf] %vm2835_vm15, %v2828_v51  ;;  %v2749_v4 = vrot.slane %v2748_v24, 4  ;;  %v2840_v14 = vrot.slane %v5347_v52, 5  ;;  %2836 = vst.msk [vmem:[#allocation4 + $0x4] sm:$0xf] %vm2835_vm15, %v2824_v48 }
 0x6d1   : > { %2701 = vst.msk [vmem:[#allocation4 + $0x24] sm:$0xe] %vm2698_vm14, %v2693_v63  ;;  %v5361_v5 = vrot.slane %v2633_v26, 7  ;;  %v2746_v6 = vrot.slane %v2633_v26, 5  ;;  %2699 = vst.msk [vmem:[#allocation4 + $0xc] sm:$0xe] %vm2698_vm14, %v2691_v27 }
 0x6d2   : > { %2822 = vst.msk [vmem:[#allocation4 + $0x28] sm:$0xf] %vm2818_vm13, %v5347_v52  ;;  %2820 = vst.msk [vmem:[#allocation4 + $0x10] sm:$0xf] %vm2818_vm13, %v2633_v26  ;;  %2908 = vrot.lane.b32.xlu1 %v5347_v52, %s3882_s29  ;;  %2718 = vrot.lane.b32.xlu0 %v5345_v61, %s3875_s18  ;;  %v5371_v10 = vrot.slane %v2840_v14, 4  ;;  %v2782_v42 = vrot.slane %v5347_v52, 7 }
 0x6d3   : > { %2717 = vst.msk [vmem:[#allocation4 + $0x24] sm:$0xe] %vm2714_vm3, %v2710_v50  ;;  %2715 = vst.msk [vmem:[#allocation4 + $0xc] sm:$0xe] %vm2714_vm3, %v2706_v2  ;;  %v5382_v15 = vrot.slane %v2746_v6, 4  ;;  %v2654_v48 = vld [vmem:[%s5619_s9 + $0x48] sm:$0xff] }
 0x6d4   : > { %2839 = vst.msk [vmem:[#allocation4 + $0x28] sm:$0xf] %vm2835_vm15, %v2830_v20  ;;  %2837 = vst.msk [vmem:[#allocation4 + $0x10] sm:$0xf] %vm2835_vm15, %v2826_v56  ;;  %v2745_v50 = vrot.slane %v2744_v41, 4  ;;  %v3770_v51 = vpack.c.bf16 %v2654_v48, %v2653_v1  ;;  %v2671_v2 = vld [vmem:[%s5619_s9 + $0xd0] sm:$0xff] }
 0x6d5   : > { %2935 = vst.msk [vmem:[#allocation4 + $0x14] sm:$0x7] %vm2933_vm0, %v2749_v4  ;;  %2936 = vst.msk [vmem:[#allocation4 + $0x20] sm:$0x7] %vm2933_vm0, %v5371_v10  ;;  %v2672_v56 = vld [vmem:[%s5619_s9 + $0xd8] sm:$0xff]  ;;  %v2655_v61 = vld [vmem:[%s5619_s9 + $0x50] sm:$0xff] }
 0x6d6   : > { %2700 = vst.msk [vmem:[#allocation4 + $0x18] sm:$0xe] %vm2698_vm14, %v5361_v5  ;;  %2880 = vrot.lane.b32.xlu0 %v2693_v63, %s3879_s20  ;;  %2720 = vrot.lane.b32.xlu1 %v2633_v26, %s3875_s18  ;;  %v3772_v58 = vpack.c.bf16 %v2672_v56, %v2671_v2  ;;  %v2656_v52 = vld [vmem:[%s5619_s9 + $0x58] sm:$0xff]  ;;  %v2673_v24 = vld [vmem:[%s5619_s9 + $0xe0] sm:$0xff]  ;;  %vm2926_vm13 = vcmask 1044352   ;;  %vm2946_vm14 = vcmask 256128  }
 0x6d7   : > { %2716 = vst.msk [vmem:[#allocation4 + $0x18] sm:$0xe] %vm2714_vm3, %v2708_v16  ;;  %3771 = vmatpush3.bf16.msra.mxu1 %v3770_v51  ;;  %v2674_v20 = vld [vmem:[%s5619_s9 + $0xe8] sm:$0xff]  ;;  %v2675_v6 = vld [vmem:[%s5619_s9 + $0xf0] sm:$0xff]  ;;  %vm2982_vm15 = vcmask 261120   ;;  %vm3201_vm3 = vcmask 130048  }
 0x6d8   : > { %2934 = vst.msk [vmem:[#allocation4 + $0x8] sm:$0x7] %vm2933_vm0, %v5382_v15  ;;  %3773 = vmatprep.subr.bf16.mxu1 %v3772_v58  ;;  %v3780_v11 = vpack.c.bf16 %v2676_v62, %v2675_v6  ;;  %v2659_v16 = vld [vmem:[%s5619_s9 + $0x70] sm:$0xff] }
 0x6da   : > { %2787 = vrot.lane.b32.xlu0 %v2693_v63, %s3882_s29  ;;  %2783 = vrot.lane.b32.xlu1 %v2691_v27, %s3882_s29  ;;  %v3774_v63 = vpack.c.bf16 %v2656_v52, %v2655_v61  ;;  %v2657_v27 = vld [vmem:[%s5619_s9 + $0x60] sm:$0xff] }
 0x6dc   : > { %3775 = vmatpush3.bf16.msra.mxu1 %v3774_v63 }
 0x6de   : > { %2904 = vrot.lane.b32.xlu0 %v2633_v26, %s3882_s29  ;;  %2846 = vrot.lane.b32.xlu1 %v2749_v4, %s3875_s18  ;;  %v3776_v26 = vpack.c.bf16 %v2674_v20, %v2673_v24 }
 0x6e0   : > { %3777 = vmatprep.subr.bf16.mxu1 %v3776_v26  ;;  %v3386_v26 = vld [vmem:[%s5620_s10] ss:$0 sm:$0xff] }
 0x6e2   : > { %2754 = vrot.lane.b32.xlu0 %v2749_v4, %s3879_s20  ;;  %2882 = vrot.lane.b32.xlu1 %v2782_v42, %s3879_s20  ;;  %v2658_v4 = vld [vmem:[%s5619_s9 + $0x68] sm:$0xff] }
 0x6e3   : > { %v3778_v14 = vpack.c.bf16 %v2658_v4, %v2657_v27 }
 0x6e5   : > { %3779 = vmatpush3.bf16.msra.mxu1 %v3778_v14 }
 0x6e6   : > { %2750 = vrot.lane.b32.xlu0 %v2745_v50, %s3879_s20  ;;  %2789 = vrot.lane.b32.xlu1 %v2782_v42, %s3882_s29 }
 0x6e7   : > { %3781 = vmatprep.subr.bf16.mxu1 %v3780_v11 }
 0x6ea   : > { %2842 = vrot.lane.b32.xlu1 %v2745_v50, %s3875_s18  ;;  %2785 = vrot.lane.b32.xlu0 %v5361_v5, %s3882_s29 }
 0x6ee   : > { %2848 = vrot.lane.b32.xlu0 %v5371_v10, %s3875_s18  ;;  %2878 = vrot.lane.b32.xlu1 %v5361_v5, %s3879_s20  ;;  %v2660_v10 = vld [vmem:[%s5619_s9 + $0x78] sm:$0xff]  ;;  %v2859_v5 = vrot.slane %v5304_v12, 5 }
 0x6ef   : > { %v3782_v17 = vpack.c.bf16 %v2660_v10, %v2659_v16 }
 0x6f1   : > { %3783 = vmatpush3.bf16.msra.mxu1 %v3782_v17  ;;  %v2640_v17 = vld [vmem:[%s456_s17 + $0x8] sm:$0xff] }
 0x6f2   : > { %2844 = vrot.lane.b32.xlu0 %v5382_v15, %s3875_s18  ;;  %2807 = vrot.lane.b32.xlu1 %v2800_v13, %s3881_s23  ;;  %v2860_v13 = vrot.slane %v2859_v5, 4  ;;  %v2639_v5 = vld [vmem:[%s456_s17] sm:$0xff]  ;;  %s466_s18 = scalar_lea.vmem %s5622_s12, %s5267_s15 }
 0x6f3   : > { %3785 = vmatprep.subr.bf16.mxu1 %v5512_v44 }
 0x6f6   : > { %2805 = vrot.lane.b32.xlu0 %v5276_v9, %s3881_s23  ;;  %2752 = vrot.lane.b32.xlu1 %v5382_v15, %s3879_s20  ;;  %v2770_v9 = vpop.permute.xlu1 %2769 }
 0x6fa   : > { %2867 = vrot.lane.b32.xlu0 %v2860_v13, %s3877_s16  ;;  %2921 = vrot.lane.b32.xlu1 %v5304_v12, %s3881_s23  ;;  %v2892_v45 = vpop.permute.xlu1 %2891 }
 0x6fe   : > { %2937 = vrot.lane.b32.xlu0 %v5282_v43, %s3868_s28  ;;  %2939 = vrot.lane.b32.xlu1 %v5293_v8, %s3868_s28  ;;  %v2736_v29 = vpop.permute.xlu1 %2735 }
 0x702   : > { %2941 = vrot.lane.b32.xlu0 %v2860_v13, %s3868_s28  ;;  %v2804_v15 = vpop.permute.xlu1 %2803 }
 0x706   : > { %v2918_v31 = vpop.permute.xlu1 %2917 }
 0x70a   : > { %v2774_v32 = vpop.permute.xlu1 %2773 }
 0x70e   : > { %v2896_v46 = vpop.permute.xlu1 %2895 }
 0x740   : > { %v5527_v33 = vpop.permute.xlu1 %2906  ;;  %v2723_v12 = vpop.permute.xlu0 %2722 }
 0x741   : > { %2730 = vst.msk [vmem:[#allocation4 + $0x24] sm:$0xf] %vm2727_vm1, %v2723_v12 }
 0x742   : > { %2743 = vst.msk [vmem:[#allocation4 + $0x24] sm:$0xf] %vm2740_vm2, %v2736_v29 }
 0x744   : > { %v2909_v43 = vpop.permute.xlu1 %2908  ;;  %v2719_v22 = vpop.permute.xlu0 %2718 }
 0x745   : > { %2728 = vst.msk [vmem:[#allocation4 + $0xc] sm:$0xf] %vm2727_vm1, %v2719_v22 }
 0x746   : > { %2741 = vst.msk [vmem:[#allocation4 + $0xc] sm:$0xf] %vm2740_vm2, %v5337_v57 }
 0x748   : > { %v2881_v8 = vpop.permute.xlu0 %2880  ;;  %v2721_v34 = vpop.permute.xlu1 %2720 }
 0x749   : > { %2729 = vst.msk [vmem:[#allocation4 + $0x18] sm:$0xf] %vm2727_vm1, %v2721_v34 }
 0x74a   : > { %2742 = vst.msk [vmem:[#allocation4 + $0x18] sm:$0xf] %vm2740_vm2, %v5329_v54 }
 0x74c   : > { %v2788_v21 = vpop.permute.xlu0 %2787  ;;  %v2784_v7 = vpop.permute.xlu1 %2783 }
 0x74d   : > { %2796 = vst.msk [vmem:[#allocation4] sm:$0xe] %vm2795_vm4, %v2784_v7 }
 0x74e   : > { %2814 = vst.msk [vmem:[#allocation4] sm:$0xe] %vm2813_vm5, %v5331_v55 }
 0x750   : > { %v2905_v35 = vpop.permute.xlu0 %2904  ;;  %v2847_v25 = vpop.permute.xlu1 %2846 }
 0x751   : > { %2857 = vst.msk [vmem:[#allocation4 + $0x1c] sm:$0x7] %vm2854_vm6, %v2847_v25 }
 0x752   : > { %2876 = vst.msk [vmem:[#allocation4 + $0x1c] sm:$0x7] %vm2873_vm7, %v5333_v30 }
 0x754   : > { %v2755_v54 = vpop.permute.xlu0 %2754  ;;  %v2883_v57 = vpop.permute.xlu1 %2882 }
 0x755   : > { %2762 = vst.msk [vmem:[#allocation4 + $0x24] sm:$0x7] %vm2759_vm8, %v2755_v54 }
 0x756   : > { %2890 = vst.msk [vmem:[#allocation4 + $0x1c] sm:$0xe] %vm2887_vm9, %v2883_v57 }
 0x757   : > { %2781 = vst.msk [vmem:[#allocation4 + $0x24] sm:$0x7] %vm2778_vm10, %v2774_v32 }
 0x758   : > { %2903 = vst.msk [vmem:[#allocation4 + $0x1c] sm:$0xe] %vm2900_vm11, %v2896_v46  ;;  %v2751_v55 = vpop.permute.xlu0 %2750  ;;  %v2790_v37 = vpop.permute.xlu1 %2789 }
 0x759   : > { %2916 = vst.msk [vmem:[#allocation4 + $0x1c] sm:$0xf] %vm2913_vm12, %v2909_v43 }
 0x75a   : > { %2760 = vst.msk [vmem:[#allocation4 + $0xc] sm:$0x7] %vm2759_vm8, %v2751_v55 }
 0x75b   : > { %2799 = vst.msk [vmem:[#allocation4 + $0x24] sm:$0xe] %vm2795_vm4, %v2790_v37 }
 0x75c   : > { %2779 = vst.msk [vmem:[#allocation4 + $0xc] sm:$0x7] %vm2778_vm10, %v2770_v9  ;;  %v2843_v30 = vpop.permute.xlu1 %2842  ;;  %v2786_v38 = vpop.permute.xlu0 %2785 }
 0x75d   : > { %2855 = vst.msk [vmem:[#allocation4 + $0x4] sm:$0x7] %vm2854_vm6, %v2843_v30 }
 0x75e   : > { %2797 = vst.msk [vmem:[#allocation4 + $0xc] sm:$0xe] %vm2795_vm4, %v2786_v38 }
 0x75f   : > { %2874 = vst.msk [vmem:[#allocation4 + $0x4] sm:$0x7] %vm2873_vm7, %v5325_v49 }
 0x760   : > { %2815 = vst.msk [vmem:[#allocation4 + $0xc] sm:$0xe] %vm2813_vm5, %v2804_v15  ;;  %v2849_v36 = vpop.permute.xlu0 %2848  ;;  %v2879_v39 = vpop.permute.xlu1 %2878 }
 0x761   : > { %2858 = vst.msk [vmem:[#allocation4 + $0x28] sm:$0x7] %vm2854_vm6, %v2849_v36 }
 0x762   : > { %2888 = vst.msk [vmem:[#allocation4 + $0x4] sm:$0xe] %vm2887_vm9, %v2879_v39 }
 0x763   : > { %2901 = vst.msk [vmem:[#allocation4 + $0x4] sm:$0xe] %vm2900_vm11, %v2892_v45 }
 0x764   : > { %2914 = vst.msk [vmem:[#allocation4 + $0x4] sm:$0xf] %vm2913_vm12, %v2905_v35  ;;  %v2845_v40 = vpop.permute.xlu0 %2844  ;;  %v2808_v41 = vpop.permute.xlu1 %2807 }
 0x765   : > { %2927 = vst.msk [vmem:[#allocation4 + $0x4] sm:$0xf] %vm2926_vm13, %v2918_v31 }
 0x766   : > { %2856 = vst.msk [vmem:[#allocation4 + $0x10] sm:$0x7] %vm2854_vm6, %v2845_v40 }
 0x767   : > { %2817 = vst.msk [vmem:[#allocation4 + $0x24] sm:$0xe] %vm2813_vm5, %v2808_v41  ;;  %v3834_v0 = vld [vmem:[#allocation4] ss:$12 sps:$4 sm:$0xff]  }
 0x768   : > { %2875 = vst.msk [vmem:[#allocation4 + $0x10] sm:$0x7] %vm2873_vm7, %v5341_v60  ;;  %v2806_v49 = vpop.permute.xlu0 %2805  ;;  %v2753_v42 = vpop.permute.xlu1 %2752 }
 0x769   : > { %2889 = vst.msk [vmem:[#allocation4 + $0x10] sm:$0xe] %vm2887_vm9, %v2881_v8 }
 0x76a   : > { %2902 = vst.msk [vmem:[#allocation4 + $0x10] sm:$0xe] %vm2900_vm11, %v5327_v53  ;;  %v2679_v53 = vld [vmem:[%s5619_s9 + $0x110] sm:$0xff] }
 0x76b   : > { %2915 = vst.msk [vmem:[#allocation4 + $0x10] sm:$0xf] %vm2913_vm12, %v5527_v33 }
 0x76c   : > { %2761 = vst.msk [vmem:[#allocation4 + $0x18] sm:$0x7] %vm2759_vm8, %v2753_v42  ;;  %v2868_v60 = vpop.permute.xlu0 %2867  ;;  %v2922_v23 = vpop.permute.xlu1 %2921 }
 0x76d   : > { %2780 = vst.msk [vmem:[#allocation4 + $0x18] sm:$0x7] %vm2778_vm10, %v5339_v28  ;;  %v2680_v28 = vld [vmem:[%s5619_s9 + $0x118] sm:$0xff] }
 0x76e   : > { %2928 = vst.msk [vmem:[#allocation4 + $0x10] sm:$0xf] %vm2926_vm13, %v5335_v3  ;;  %2929 = vst.msk [vmem:[#allocation4 + $0x1c] sm:$0xf] %vm2926_vm13, %v2922_v23  ;;  %v3788_v1 = vpack.c.bf16 %v2680_v28, %v2679_v53 }
 0x76f   : > { %2798 = vst.msk [vmem:[#allocation4 + $0x18] sm:$0xe] %vm2795_vm4, %v2788_v21 }
 0x770   : > { %2816 = vst.msk [vmem:[#allocation4 + $0x18] sm:$0xe] %vm2813_vm5, %v2806_v49  ;;  %v2938_v3 = vpop.permute.xlu0 %2937  ;;  %v2940_v47 = vpop.permute.xlu1 %2939 }
 0x771   : > { %2877 = vst.msk [vmem:[#allocation4 + $0x28] sm:$0x7] %vm2873_vm7, %v2868_v60 }
 0x772   : > { %2947 = vst.msk [vmem:[#allocation4 + $0x8] sm:$0x7] %vm2946_vm14, %v2938_v3  ;;  %2948 = vst.msk [vmem:[#allocation4 + $0x14] sm:$0x7] %vm2946_vm14, %v2940_v47 }
 0x774   : > { %v2942_v48 = vpop.permute.xlu0 %2941 }
 0x775   : > { %v3836_v59 = vld [vmem:[#allocation4 + $0x4] ss:$12 sps:$4 sm:$0xff]   ;;  %2949 = vst.msk [vmem:[#allocation4 + $0x20] sm:$0x7] %vm2946_vm14, %v2942_v48 }
 0x776   : > { %3051 = vmatprep.mubr.f32.mxu1 %v3836_v59 }
 0x777   : > { %3052 = vmatmul.mubr.f32.vlgmr.msra.gmra.mrb[18].mxu1 %v3834_v0  ;;  %v3839_v51 = vld [vmem:[#allocation4 + $0x18] ss:$12 sps:$4 sm:$0xff]  }
 0x778   : > { %v3837_v50 = vld [vmem:[#allocation4 + $0x1c] ss:$12 sps:$4 sm:$0xff]   ;;  %3787 = vmatpush3.bf16.msra.mxu1 %v5512_v44 }
 0x779   : > { %3056 = vmatprep.mubr.f32.mxu1 %v3837_v50  ;;  %3789 = vmatprep.subr.bf16.mxu1 %v3788_v1  ;;  %v3840_v2 = vld [vmem:[#allocation4 + $0x8] ss:$12 sps:$4 sm:$0xff]  }
 0x77b   : > { %3057 = vmatmul.mubr.f32.gmra.mrb[20].mxu1 %v3839_v51 }
 0x77c   : > { %3791 = vmatpush3.bf16.msra.mxu1 %v3788_v1  ;;  %3677 = vmatprep.mubr.msk.f32.mxu1 %vm2982_vm15, %v3840_v2  ;;  %v3841_v56 = vld [vmem:[#allocation4 + $0x20] ss:$12 sps:$4 sm:$0xff]  }
 0x77f   : > { %3678 = vmatmul.mubr.msk.f32.vlgmr.msra.gmra.mrb[22].mxu1 %vm2982_vm15, %v3841_v56 }
 0x84a   : > { %v3550_v58 = vpop.f32.mrb[18].mxu1 }
 0x84b   : > { %v3551_v61 = vpop.f32.mrb[19].mxu1 }
 0x84c   : > { %v3552_v52 = vadd.f32 %v3551_v61, %v3550_v58 }
 0x84e   : > { %v3553_v63 = vpop.f32.mrb[20].mxu1  ;;  %v3054_v14 = vadd.f32 %v3552_v52, %v3386_v26 }
 0x84f   : > { %v3554_v24 = vpop.f32.mrb[21].mxu1 }
 0x850   : > { %v3555_v20 = vadd.f32 %v3554_v24, %v3553_v63 }
 0x852   : > { %v3059_v27 = vadd.f32 %v3555_v20, %v3386_v26  ;;  %v3679_v4 = vpop.f32.mrb[22].mxu1 }
 0x853   : > { %v3128_v62 = vpop.f32.mrb[23].mxu1 }
 0x854   : > { %v3134_v6 = vadd.f32 %v3679_v4, %v3059_v27  ;;  %v3129_v11 = vadd.f32 %v3128_v62, %v3054_v14 }
 0x856   : > { %3842 = vtanh.f32 %v3134_v6  ;;  %v3390_v18 = vmul.f32 -1.442695, %v3134_v6  ;;  %v3389_v19 = vmul.f32 -1.442695, %v3129_v11 }
 0x857   : > { %3844 = vtanh.f32 %v3129_v11 }
 0x858   : > { %3846 = vpow2.f32 %v3390_v18 }
 0x859   : > { %3848 = vpow2.f32 %v3389_v19 }
 0x860   : > { %v3843_v16 = vpop.eup %3842 }
 0x861   : > { %v3845_v10 = vpop.eup %3844  ;;  %3165 = vrot.lane.b32.xlu0 %v3843_v16, %s3880_s22 }
 0x862   : > { %3163 = vrot.lane.b32.xlu1 %v3845_v10, %s3880_s22  ;;  %v3847_v44 = vpop.eup %3846 }
 0x863   : > { %v3849_v13 = vpop.eup %3848  ;;  %v3144_v9 = vadd.f32 1.0, %v3847_v44 }
 0x864   : > { %v3143_v45 = vadd.f32 1.0, %v3849_v13 }
 0x865   : > { %3155 = vrot.lane.b32.xlu0 %v2640_v17, %s3868_s28  ;;  %3850 = vrcp.f32 %v3144_v9 }
 0x866   : > { %3153 = vrot.lane.b32.xlu1 %v2639_v5, %s3868_s28  ;;  %3852 = vrcp.f32 %v3143_v45 }
 0x86f   : > { %v3851_v29 = vpop.eup %3850 }
 0x870   : > { %v3853_v31 = vpop.eup %3852 }
 0x8d3   : > { %v3166_v15 = vpop.permute.xlu0 %3165 }
 0x8d4   : > { %v3170_v32 = vmul.f32 %v3851_v29, %v3166_v15  ;;  %v3164_v46 = vpop.permute.xlu1 %3163 }
 0x8d5   : > { %v3169_v33 = vmul.f32 %v3853_v31, %v3164_v46 }
 0x8d6   : > { %3175 = vrot.lane.b32.xlu0 %v3170_v32, %s3868_s28 }
 0x8d7   : > { %3173 = vrot.lane.b32.xlu1 %v3169_v33, %s3868_s28  ;;  %v3156_v12 = vpop.permute.xlu0 %3155 }
 0x8d8   : > { %v3154_v43 = vpop.permute.xlu1 %3153  ;;  %v3160_v22 = vmul.f32 %v3851_v29, %v3156_v12 }
 0x8d9   : > { %v3159_v8 = vmul.f32 %v3853_v31, %v3154_v43 }
 0x948   : > { %v3176_v34 = vpop.permute.xlu0 %3175 }
 0x949   : > { %v3180_v21 = vadd.f32 %v3176_v34, %v3160_v22  ;;  %v3174_v7 = vpop.permute.xlu1 %3173 }
 0x94a   : > { %v3179_v35 = vadd.f32 %v3174_v7, %v3159_v8 }
 0x94b   : > { %3854 = vtanh.f32 %v3180_v21 }
 0x94c   : > { %3856 = vtanh.f32 %v3179_v35 }
 0x955   : > { %v3855_v25 = vpop.eup %3854 }
 0x956   : > { %v3857_v54 = vpop.eup %3856  ;;  %3187 = vrot.lane.b32.xlu0 %v3855_v25, %s3868_s28 }
 0x957   : > { %3185 = vrot.lane.b32.xlu1 %v3857_v54, %s3868_s28 }
 0x9c8   : > { %v3188_v57 = vpop.permute.xlu0 %3187 }
 0x9c9   : > { %v3192_v55 = vmul.f32 %v3851_v29, %v3188_v57  ;;  %v3186_v37 = vpop.permute.xlu1 %3185 }
 0x9ca   : > { %v3191_v30 = vmul.f32 %v3853_v31, %v3186_v37 }
 0x9cb   : > { %3197 = vrot.lane.b32.xlu0 %v3192_v55, %s3882_s29 }
 0x9cc   : > { %3195 = vrot.lane.b32.xlu1 %v3191_v30, %s3882_s29 }
 0x9cf   : > { %3208 = vrot.lane.b32.xlu0 %v3180_v21, %s3881_s23 }
 0x9d0   : > { %3206 = vrot.lane.b32.xlu1 %v3179_v35, %s3881_s23 }
 0xa3d   : > { %v3198_v38 = vpop.permute.xlu0 %3197 }
 0xa3e   : > { %3203 = vst.msk [vmem:[%s461_s30 + $0x8] sm:$0xff] %vm3201_vm3, %v3198_v38  ;;  %v3196_v36 = vpop.permute.xlu1 %3195 }
 0xa3f   : > { %3202 = vst.msk [vmem:[%s461_s30] sm:$0xff] %vm3201_vm3, %v3196_v36 }
 0xa41   : > { %v3209_v39 = vpop.permute.xlu0 %3208 }
 0xa42   : > { %3213 = vst.msk [vmem:[%s466_s18 + $0x8] sm:$0xff] %vm3201_vm3, %v3209_v39  ;;  %v3207_v40 = vpop.permute.xlu1 %3206 }
 0xa43   : > { %3212 = vst.msk [vmem:[%s466_s18] sm:$0xff] %vm3201_vm3, %v3207_v40 }
 0xa44 PF: > { %s23_s21 = sadd.s32 1, %s3865_s21  }
 0xa45   : > { %p20_p4 = scmp.ge.s32.totalorder %s23_s21, 4  }
 0xa47   :  { %22 = sbr.rel (!%p20_p4) target bundleno = 1 (0x1), region = 115 }

// kernel: closed_call.20
= control target key start
LH: loop header
LB: loop body
LE: loop exit
PB: predicated region body
PF: predicated region fallthrough
CT: control target
= control target key end

     0   :  { %s10289_s0 = inlined_call_operand.vmem [shape: f32[2,16,16,4], index: 0, kind: input, shape index: {}, may-alias: {0,1}]   ;;  %s10290_s1 = inlined_call_operand.vmem [shape: f32[2,16,16,4], index: 1, kind: input, shape index: {}, may-alias: {0,1}]   ;;  %s10291_s2 = inlined_call_operand.vmem [shape: f32[2,16,16], index: 2, kind: input, shape index: {}]   ;;  %s10292_s3 = inlined_call_operand.vmem [shape: f32[2,16,16], index: 3, kind: input, shape index: {}]   ;;  %s10293_s4 = inlined_call_operand.vmem [shape: f32[36,8], index: 4, kind: input, shape index: {}]   ;;  %s10294_s5 = inlined_call_operand.vmem [shape: f32[1,8], index: 5, kind: input, shape index: {}]   ;;  %s10295_s6 = inlined_call_operand.vmem [shape: f32[64,256], index: 6, kind: input, shape index: {}]   ;;  %s10296_s7 = inlined_call_operand.vmem [shape: f32[72,16], index: 7, kind: input, shape index: {}]   ;;  %s10297_s8 = inlined_call_operand.vmem [shape: f32[1,16], index: 8, kind: input, shape index: {}]   ;;  %s10298_s9 = inlined_call_operand.vmem [shape: f32[16,64], index: 9, kind: input, shape index: {}]   ;;  %s10299_s10 = inlined_call_operand.vmem [shape: f32[288,64], index: 10, kind: input, shape index: {}]   ;;  %s10300_s11 = inlined_call_operand.vmem [shape: f32[1,64], index: 11, kind: input, shape index: {}]   ;;  %s10301_s12 = inlined_call_operand.vmem [shape: f32[64,16], index: 12, kind: input, shape index: {}]   ;;  %s10302_s13 = inlined_call_operand.vmem [shape: f32[144,8], index: 13, kind: input, shape index: {}]   ;;  %s10303_s14 = inlined_call_operand.vmem [shape: f32[1,8], index: 14, kind: input, shape index: {}]   ;;  %s10304_s15 = inlined_call_operand.vmem [shape: f32[256,64], index: 15, kind: input, shape index: {}]   ;;  %s10305_s16 = inlined_call_operand.vmem [shape: f32[72,4], index: 16, kind: input, shape index: {}]   ;;  %s10306_s17 = inlined_call_operand.vmem [shape: f32[1,4], index: 17, kind: input, shape index: {}]   ;;  %s10307_s18 = inlined_call_operand.vmem [shape: f32[2,16,16,4], index: 18, kind: output, shape index: {0}]   ;;  %s10308_s19 = inlined_call_operand.vmem [shape: f32[2,16,16], index: 19, kind: output, shape index: {1}]   ;;  %s10309_s20 = inlined_call_operand.vmem [shape: f32[2,16,16], index: 20, kind: output, shape index: {2}]  }
   0x1   :  { %10342 = sst [smem:[#allocation7_spill]] %s10289_s0 }
   0x2   :  { %10343 = sst [smem:[#allocation8_spill]] %s10290_s1  ;;  %s7166_s1 = smov 0  }
   0x3   :  { %10344 = sst [smem:[#allocation9_spill]] %s10291_s2 }
   0x4   :  { %10345 = sst [smem:[#allocation10_spill]] %s10292_s3 }
   0x5   :  { %10346 = sst [smem:[#allocation11_spill]] %s10293_s4 }
   0x6   :  { %10347 = sst [smem:[#allocation12_spill]] %s10294_s5 }
   0x7   :  { %10348 = sst [smem:[#allocation13_spill]] %s10295_s6 }
   0x8   :  { %10349 = sst [smem:[#allocation14_spill]] %s10296_s7 }
   0x9   :  { %10350 = sst [smem:[#allocation15_spill]] %s10297_s8 }
   0xa   :  { %10351 = sst [smem:[#allocation16_spill]] %s10298_s9 }
   0xb   :  { %10352 = sst [smem:[#allocation17_spill]] %s10299_s10 }
   0xc   :  { %10353 = sst [smem:[#allocation18_spill]] %s10300_s11 }
   0xd LB: > { %s6123_s22 = sadd.s32 4294967295, %s7042_s1   ;;  %p6127_p0 = scmp.ge.s32.totalorder %s7042_s1, 1  ;;  %s7042_s1 = sphi %s7166_s1, %s31_s1  }
   0xe   : > { %p597_p1 = scmp.lt.s32.totalorder %s7042_s1, 3 }
  0x10   : > { %p598_p2 = pnand %p6127_p0, %p597_p1 }
  0x11   : > { %p7176_p3 = scmp.lt.s32.totalorder (!%p598_p2), %s6123_s22, 1  ;;  %vm753_vm0 = vcmask (!%p598_p2), 293888   ;;  %v7044_v0 = vmov (!%p598_p2), 0.0   ;;  %vm10330_vm1 = vcmask (!%p598_p2), 31744   ;;  %vm789_vm2 = vcmask (!%p598_p2), 30720   ;;  %s10355_s3 = sld [smem:[#allocation7_spill]] (!%p598_p2) }
  0x12   : > { %601 = sbr.rel (%p598_p2) target bundleno = 4341 (0x10f5), region = 92  ;;  %770 = vst.msk [vmem:[#allocation2 + $0x80] sm:$0xff] (!%p598_p2), %vm753_vm0, %v7044_v0  ;;  %771 = vst.msk [vmem:[#allocation2 + $0x88] sm:$0xff] (!%p598_p2), %vm753_vm0, %v7044_v0  ;;  %s10311_s27 = smov (!%p598_p2), 8   ;;  %vm1982_vm3 = vcmask (!%p598_p2), 1043456   ;;  %vm939_vm4 = vcmask (!%p598_p2), 64544  }
  0x13   : > { %754 = vst.msk [vmem:[#allocation2] sm:$0xff] (!%p598_p2), %vm753_vm0, %v7044_v0  ;;  %755 = vst.msk [vmem:[#allocation2 + $0x8] sm:$0xff] (!%p598_p2), %vm753_vm0, %v7044_v0  ;;  %s7046_s28 = smov (!%p598_p2), 4   ;;  %s7047_s4 = smov (!%p598_p2), 12   ;;  %vm1060_vm5 = vcmask (!%p598_p2), 97345   ;;  %vm1062_vm6 = vcmask (!%p598_p2), 97344  }
  0x14   : > { %756 = vst.msk [vmem:[#allocation2 + $0x10] sm:$0xff] (!%p598_p2), %vm753_vm0, %v7044_v0  ;;  %757 = vst.msk [vmem:[#allocation2 + $0x18] sm:$0xff] (!%p598_p2), %vm753_vm0, %v7044_v0  ;;  %s10319_s29 = smov (!%p598_p2), 16   ;;  %s10315_s30 = smov (!%p598_p2), 20   ;;  %vm1192_vm7 = vcmask (!%p598_p2), 129120   ;;  %vm1190_vm8 = vcmask (!%p598_p2), 130144  }
  0x15   : > { %758 = vst.msk [vmem:[#allocation2 + $0x20] sm:$0xff] (!%p598_p2), %vm753_vm0, %v7044_v0  ;;  %759 = vst.msk [vmem:[#allocation2 + $0x28] sm:$0xff] (!%p598_p2), %vm753_vm0, %v7044_v0  ;;  %s10313_s0 = smov (!%p598_p2), 24   ;;  %s10356_s2 = sld [smem:[#allocation11_spill]] (!%p598_p2)  ;;  %vm1320_vm9 = vcmask (!%p598_p2), 162944   ;;  %vm1451_vm10 = vcmask (!%p598_p2), 195744  }
  0x16   : > { %760 = vst.msk [vmem:[#allocation2 + $0x30] sm:$0xff] (!%p598_p2), %vm753_vm0, %v7044_v0  ;;  %761 = vst.msk [vmem:[#allocation2 + $0x38] sm:$0xff] (!%p598_p2), %vm753_vm0, %v7044_v0  ;;  %s10317_s25 = smov (!%p598_p2), 32   ;;  %s10358_s21 = smov (!%p598_p2), 8   ;;  %vm1449_vm11 = vcmask (!%p598_p2), 195745   ;;  %vm1575_vm12 = vcmask (!%p598_p2), 227520  }
  0x17   : > { %762 = vst.msk [vmem:[#allocation2 + $0x40] sm:$0xff] (!%p598_p2), %vm753_vm0, %v7044_v0  ;;  %763 = vst.msk [vmem:[#allocation2 + $0x48] sm:$0xff] (!%p598_p2), %vm753_vm0, %v7044_v0  ;;  %s10359_s23 = smov (!%p598_p2), 24   ;;  %vm1573_vm13 = vcmask (!%p598_p2), 228544   ;;  %vm1695_vm14 = vcmask (!%p598_p2), 261344   ;;  %vm1818_vm15 = vcmask (!%p598_p2), 294144  }
  0x18   : > { %764 = vst.msk [vmem:[#allocation2 + $0x50] sm:$0xff] (!%p598_p2), %vm753_vm0, %v7044_v0  ;;  %765 = vst.msk [vmem:[#allocation2 + $0x58] sm:$0xff] (!%p598_p2), %vm753_vm0, %v7044_v0  ;;  %s10360_s5 = sld [smem:[#allocation12_spill]] (!%p598_p2)  ;;  %s10361_s6 = sld [smem:[#allocation13_spill]] (!%p598_p2) }
  0x19   : > { %766 = vst.msk [vmem:[#allocation2 + $0x60] sm:$0xff] %vm753_vm0, %v7044_v0  ;;  %767 = vst.msk [vmem:[#allocation2 + $0x68] sm:$0xff] %vm753_vm0, %v7044_v0  ;;  %s10507_s22 = smov (!%p7176_p3, %s6123_s22), 1  ;;  %s10364_s7 = sld [smem:[#allocation14_spill]] }
  0x1a   : > { %768 = vst.msk [vmem:[#allocation2 + $0x70] sm:$0xff] %vm753_vm0, %v7044_v0  ;;  %769 = vst.msk [vmem:[#allocation2 + $0x78] sm:$0xff] %vm753_vm0, %v7044_v0  ;;  %s7219_s24 = sshll.u32 %s10507_s22, 8  ;;  %s10367_s9 = sld [smem:[#allocation16_spill]] }
  0x1b   : > { %772 = vst.msk [vmem:[#allocation2 + $0x90] sm:$0xff] %vm753_vm0, %v7044_v0  ;;  %773 = vst.msk [vmem:[#allocation2 + $0x98] sm:$0xff] %vm753_vm0, %v7044_v0  ;;  %s7225_s26 = scalar_lea.vmem %s10355_s3, %s7219_s24  ;;  %v747_v19 = vld [vmem:[%s10356_s2] sm:$0xff]  ;;  %v748_v20 = vld [vmem:[%s10356_s2 + $0x8] sm:$0xff]  ;;  %s10357_s3 = smov 20  }
  0x1c   : > { %774 = vst.msk [vmem:[#allocation2 + $0xa0] sm:$0xff] %vm753_vm0, %v7044_v0  ;;  %775 = vst.msk [vmem:[#allocation2 + $0xa8] sm:$0xff] %vm753_vm0, %v7044_v0  ;;  %v7228_v1 = vld [vmem:[%s7225_s26 + $0x70] sm:$0xff]  ;;  %v7231_v2 = vld [vmem:[%s7225_s26 + $0x78] sm:$0xff]  ;;  %v6802_v21 = vpack.c.bf16 %v748_v20, %v747_v19  ;;  %s10370_s8 = sld [smem:[#allocation15_spill]]  ;;  %s10371_s10 = sld [smem:[#allocation17_spill]] }
  0x1d   : > { %776 = vst.msk [vmem:[#allocation2 + $0xb0] sm:$0xff] %vm753_vm0, %v7044_v0  ;;  %777 = vst.msk [vmem:[#allocation2 + $0xb8] sm:$0xff] %vm753_vm0, %v7044_v0  ;;  %v7234_v3 = vld [vmem:[%s7225_s26 + $0x88] sm:$0xff]  ;;  %998 = vrot.lane.b32.xlu1 %v7228_v1, %s10311_s27  ;;  %877 = vrot.lane.b32.xlu0 %v7228_v1, %s7046_s28  ;;  %v7241_v4 = vld [vmem:[%s7225_s26 + $0x80] sm:$0xff]  ;;  %s10375_s11 = sld [smem:[#allocation18_spill]] }
  0x1e   : > { %778 = vst.msk [vmem:[#allocation2 + $0xc0] sm:$0xff] %vm753_vm0, %v7044_v0  ;;  %779 = vst.msk [vmem:[#allocation2 + $0xc8] sm:$0xff] %vm753_vm0, %v7044_v0  ;;  %v716_v5 = vld [vmem:[%s7225_s26 + $0x8] sm:$0xff]  ;;  %v715_v6 = vld [vmem:[%s7225_s26] sm:$0xff]  ;;  %6977 = vmatprep.subr.bf16.mxu1 %v6802_v21  ;;  %6803 = vmatprep.subr.bf16.mxu0 %v6802_v21 }
  0x1f   : > { %780 = vst.msk [vmem:[#allocation2 + $0xd0] sm:$0xff] %vm753_vm0, %v7044_v0  ;;  %781 = vst.msk [vmem:[#allocation2 + $0xd8] sm:$0xff] %vm753_vm0, %v7044_v0  ;;  %v7252_v7 = vld [vmem:[%s7225_s26 + $0x98] sm:$0xff]  ;;  %v7255_v8 = vld [vmem:[%s7225_s26 + $0x90] sm:$0xff]  ;;  %6980 = vmatpush3.bf16.msra.mxu1 %v6802_v21  ;;  %6805 = vmatpush3.bf16.msra.mxu0 %v6802_v21 }
  0x20   : > { %782 = vst.msk [vmem:[#allocation2 + $0xe0] sm:$0xff] %vm753_vm0, %v7044_v0  ;;  %783 = vst.msk [vmem:[#allocation2 + $0xe8] sm:$0xff] %vm753_vm0, %v7044_v0  ;;  %v7261_v9 = vld [vmem:[%s7225_s26 + $0x18] sm:$0xff]  ;;  %v7264_v10 = vld [vmem:[%s7225_s26 + $0x10] sm:$0xff] }
  0x21   : > { %784 = vst.msk [vmem:[#allocation2 + $0xf0] sm:$0xff] %vm753_vm0, %v7044_v0  ;;  %785 = vst.msk [vmem:[#allocation2 + $0xf8] sm:$0xff] %vm753_vm0, %v7044_v0  ;;  %v7267_v11 = vld [vmem:[%s7225_s26 + $0xa8] sm:$0xff]  ;;  %v7275_v12 = vld [vmem:[%s7225_s26 + $0xa0] sm:$0xff]  ;;  %1000 = vrot.lane.b32.xlu1 %v7231_v2, %s10311_s27  ;;  %879 = vrot.lane.b32.xlu0 %v7231_v2, %s7046_s28 }
  0x22   : > { %2930 = vst [vmem:[#allocation4] sm:$0xff] %v7044_v0  ;;  %2933 = vst [vmem:[#allocation4 + $0xc] sm:$0xff] %v7044_v0  ;;  %v7284_v13 = vld [vmem:[%s7225_s26 + $0x28] sm:$0xff]  ;;  %v7287_v14 = vld [vmem:[%s7225_s26 + $0x20] sm:$0xff] }
  0x23   : > { %2935 = vst [vmem:[#allocation4 + $0x18] sm:$0xff] %v7044_v0  ;;  %2937 = vst [vmem:[#allocation4 + $0x24] sm:$0xff] %v7044_v0  ;;  %v7328_v15 = vld [vmem:[%s7225_s26 + $0xb8] sm:$0xff]  ;;  %v7331_v16 = vld [vmem:[%s7225_s26 + $0xb0] sm:$0xff] }
  0x24   : > { %3618 = vst [vmem:[#allocation5] sm:$0xff] %v7044_v0  ;;  %3620 = vst [vmem:[#allocation5 + $0x10] sm:$0xff] %v7044_v0  ;;  %v7348_v17 = vld [vmem:[%s7225_s26 + $0x38] sm:$0xff]  ;;  %v7351_v18 = vld [vmem:[%s7225_s26 + $0x30] sm:$0xff] }
  0x25   : > { %3622 = vst [vmem:[#allocation5 + $0x20] sm:$0xff] %v7044_v0  ;;  %3624 = vst [vmem:[#allocation5 + $0x30] sm:$0xff] %v7044_v0  ;;  %1128 = vrot.lane.b32.xlu1 %v7234_v3, %s7047_s4  ;;  %1126 = vrot.lane.b32.xlu0 %v7241_v4, %s7047_s4  ;;  %v749_v22 = vld [vmem:[%s10356_s2 + $0x10] sm:$0xff]  ;;  %v750_v23 = vld [vmem:[%s10356_s2 + $0x18] sm:$0xff] }
  0x26   : > { %3626 = vst [vmem:[#allocation5 + $0x40] sm:$0xff] %v7044_v0  ;;  %3628 = vst [vmem:[#allocation5 + $0x50] sm:$0xff] %v7044_v0  ;;  %v6806_v24 = vpack.c.bf16 %v750_v23, %v749_v22  ;;  %v751_v25 = vld [vmem:[%s10356_s2 + $0x20] sm:$0xf]  ;;  %v7425_v26 = vld [vmem:[%s7225_s26 + $0xc8] sm:$0xff]  ;;  %s10324_s2 = smov 56  }
  0x27   : > { %3630 = vst [vmem:[#allocation5 + $0x60] sm:$0xff] %v7044_v0  ;;  %3632 = vst [vmem:[#allocation5 + $0x70] sm:$0xff] %v7044_v0  ;;  %v7434_v27 = vld [vmem:[%s7225_s26 + $0xc0] sm:$0xff]  ;;  %v7450_v32 = vld [vmem:[%s7225_s26 + $0x48] sm:$0xff] }
  0x28   : > { %803 = vst.msk [vmem:[#allocation2 + $0x81] sm:$0xff] %vm10330_vm1, %v7228_v1  ;;  %805 = vst.msk [vmem:[#allocation2 + $0x91] sm:$0xff] %vm10330_vm1, %v7241_v4  ;;  %6978 = vmatprep.subr.bf16.mxu1 %v6806_v24  ;;  %6807 = vmatprep.subr.bf16.mxu0 %v6806_v24  ;;  %v7460_v33 = vld [vmem:[%s7225_s26 + $0x40] sm:$0xff]  ;;  %v7539_v60 = vld [vmem:[%s7225_s26 + $0xd8] sm:$0xff] }
  0x29   : > { %804 = vst.msk [vmem:[#allocation2 + $0x89] sm:$0x7f] %vm789_vm2, %v7231_v2  ;;  %806 = vst.msk [vmem:[#allocation2 + $0x99] sm:$0x7f] %vm789_vm2, %v7234_v3  ;;  %1096 = vrot.lane.b32.xlu1 %v716_v5, %s7047_s4  ;;  %1094 = vrot.lane.b32.xlu0 %v715_v6, %s7047_s4  ;;  %v7548_v61 = vld [vmem:[%s7225_s26 + $0xd0] sm:$0xff] }
  0x2a   : > { %790 = vst.msk [vmem:[#allocation2 + $0x19] sm:$0x7f] %vm789_vm2, %v716_v5  ;;  %808 = vst.msk [vmem:[#allocation2 + $0xa9] sm:$0x7f] %vm789_vm2, %v7252_v7  ;;  %6981 = vmatpush3.bf16.msra.mxu1 %v6806_v24  ;;  %6809 = vmatpush3.bf16.msra.mxu0 %v6806_v24 }
  0x2b   : > { %788 = vst.msk [vmem:[#allocation2 + $0x11] sm:$0xff] %vm10330_vm1, %v715_v6  ;;  %807 = vst.msk [vmem:[#allocation2 + $0xa1] sm:$0xff] %vm10330_vm1, %v7255_v8  ;;  %6979 = vmatprep.subr.msk.mxu1 %vm1982_vm3, %v751_v25  ;;  %6546 = vmatprep.subr.msk.mxu0 %vm1982_vm3, %v751_v25 }
  0x2c   : > { %791 = vst.msk [vmem:[#allocation2 + $0x21] sm:$0xff] %vm10330_vm1, %v7264_v10  ;;  %809 = vst.msk [vmem:[#allocation2 + $0xb1] sm:$0xff] %vm10330_vm1, %v7275_v12 }
  0x2d   : > { %792 = vst.msk [vmem:[#allocation2 + $0x29] sm:$0x7f] %vm789_vm2, %v7261_v9  ;;  %810 = vst.msk [vmem:[#allocation2 + $0xb9] sm:$0x7f] %vm789_vm2, %v7267_v11  ;;  %1258 = vrot.lane.b32.xlu1 %v7234_v3, %s10319_s29  ;;  %1256 = vrot.lane.b32.xlu0 %v7241_v4, %s10319_s29 }
  0x2e   : > { %794 = vst.msk [vmem:[#allocation2 + $0x39] sm:$0x7f] %vm789_vm2, %v7284_v13  ;;  %812 = vst.msk [vmem:[#allocation2 + $0xc9] sm:$0x7f] %vm789_vm2, %v7328_v15  ;;  %6982 = vmatpush3.msk.msra.mxu1 %vm1982_vm3, %v751_v25  ;;  %6547 = vmatpush3.msk.msra.mxu0 %vm1982_vm3, %v751_v25  ;;  %vm1816_vm3 = vcmask 294145  }
  0x2f   : > { %793 = vst.msk [vmem:[#allocation2 + $0x31] sm:$0xff] %vm10330_vm1, %v7287_v14  ;;  %811 = vst.msk [vmem:[#allocation2 + $0xc1] sm:$0xff] %vm10330_vm1, %v7331_v16 }
  0x30   : > { %796 = vst.msk [vmem:[#allocation2 + $0x49] sm:$0x7f] %vm789_vm2, %v7348_v17  ;;  %814 = vst.msk [vmem:[#allocation2 + $0xd9] sm:$0x7f] %vm789_vm2, %v7425_v26 }
  0x31   : > { %883 = vrot.lane.b32.xlu1 %v7234_v3, %s7046_s28  ;;  %881 = vrot.lane.b32.xlu0 %v7241_v4, %s7046_s28  ;;  %795 = vst.msk [vmem:[#allocation2 + $0x41] sm:$0xff] %vm10330_vm1, %v7351_v18  ;;  %813 = vst.msk [vmem:[#allocation2 + $0xd1] sm:$0xff] %vm10330_vm1, %v7434_v27 }
  0x32   : > { %798 = vst.msk [vmem:[#allocation2 + $0x59] sm:$0x7f] %vm789_vm2, %v7450_v32  ;;  %816 = vst.msk [vmem:[#allocation2 + $0xe9] sm:$0x7f] %vm789_vm2, %v7539_v60 }
  0x33   : > { %797 = vst.msk [vmem:[#allocation2 + $0x51] sm:$0xff] %vm10330_vm1, %v7460_v33  ;;  %815 = vst.msk [vmem:[#allocation2 + $0xe1] sm:$0xff] %vm10330_vm1, %v7548_v61 }
  0x35   : > { %1226 = vrot.lane.b32.xlu1 %v716_v5, %s10319_s29  ;;  %1224 = vrot.lane.b32.xlu0 %v715_v6, %s10319_s29 }
  0x39   : > { %1387 = vrot.lane.b32.xlu1 %v7234_v3, %s10315_s30  ;;  %1385 = vrot.lane.b32.xlu0 %v7241_v4, %s10315_s30 }
  0x3d   : > { %851 = vrot.lane.b32.xlu1 %v716_v5, %s7046_s28  ;;  %849 = vrot.lane.b32.xlu0 %v715_v6, %s7046_s28 }
  0x41   : > { %1004 = vrot.lane.b32.xlu1 %v7234_v3, %s10311_s27  ;;  %1002 = vrot.lane.b32.xlu0 %v7241_v4, %s10311_s27 }
  0x45   : > { %1355 = vrot.lane.b32.xlu1 %v716_v5, %s10315_s30  ;;  %1353 = vrot.lane.b32.xlu0 %v715_v6, %s10315_s30  ;;  %s10365_s30 = smov 56  }
  0x49   : > { %1517 = vrot.lane.b32.xlu1 %v7252_v7, %s10313_s0  ;;  %1515 = vrot.lane.b32.xlu0 %v7255_v8, %s10313_s0 }
  0x4d   : > { %972 = vrot.lane.b32.xlu1 %v716_v5, %s10311_s27  ;;  %970 = vrot.lane.b32.xlu0 %v715_v6, %s10311_s27  ;;  %s7051_s27 = smov 28  }
  0x51   : > { %1132 = vrot.lane.b32.xlu1 %v7252_v7, %s7047_s4  ;;  %1130 = vrot.lane.b32.xlu0 %v7255_v8, %s7047_s4 }
  0x55   : > { %1485 = vrot.lane.b32.xlu1 %v7261_v9, %s10313_s0  ;;  %1483 = vrot.lane.b32.xlu0 %v7264_v10, %s10313_s0  ;;  %s10328_s0 = smov 48  }
  0x59   : > { %1639 = vrot.lane.b32.xlu1 %v7252_v7, %s7051_s27  ;;  %1637 = vrot.lane.b32.xlu0 %v7255_v8, %s7051_s27 }
  0x5d   : > { %1100 = vrot.lane.b32.xlu1 %v7261_v9, %s7047_s4  ;;  %1098 = vrot.lane.b32.xlu0 %v7264_v10, %s7047_s4 }
  0x61   : > { %1262 = vrot.lane.b32.xlu1 %v7252_v7, %s10319_s29  ;;  %1260 = vrot.lane.b32.xlu0 %v7255_v8, %s10319_s29 }
  0x65   : > { %1607 = vrot.lane.b32.xlu1 %v7261_v9, %s7051_s27  ;;  %1605 = vrot.lane.b32.xlu0 %v7264_v10, %s7051_s27 }
  0x69   : > { %1760 = vrot.lane.b32.xlu1 %v7252_v7, %s10317_s25  ;;  %1758 = vrot.lane.b32.xlu0 %v7255_v8, %s10317_s25 }
  0x6d   : > { %887 = vrot.lane.b32.xlu1 %v7252_v7, %s7046_s28  ;;  %885 = vrot.lane.b32.xlu0 %v7255_v8, %s7046_s28 }
  0x71   : > { %1230 = vrot.lane.b32.xlu1 %v7261_v9, %s10319_s29  ;;  %1228 = vrot.lane.b32.xlu0 %v7264_v10, %s10319_s29 }
  0x75   : > { %1391 = vrot.lane.b32.xlu1 %v7252_v7, %s10357_s3  ;;  %1389 = vrot.lane.b32.xlu0 %v7255_v8, %s10357_s3 }
  0x79   : > { %1728 = vrot.lane.b32.xlu1 %v7261_v9, %s10317_s25  ;;  %1726 = vrot.lane.b32.xlu0 %v7264_v10, %s10317_s25 }
  0x7d   : > { %855 = vrot.lane.b32.xlu1 %v7261_v9, %s7046_s28  ;;  %853 = vrot.lane.b32.xlu0 %v7264_v10, %s7046_s28 }
  0x81   : > { %1008 = vrot.lane.b32.xlu1 %v7252_v7, %s10358_s21  ;;  %1006 = vrot.lane.b32.xlu0 %v7255_v8, %s10358_s21  ;;  %v7567_v8 = vld [vmem:[%s7225_s26 + $0x58] sm:$0xff] }
  0x82   : > { %800 = vst.msk [vmem:[#allocation2 + $0x69] sm:$0x7f] %vm789_vm2, %v7567_v8 }
  0x85   : > { %1359 = vrot.lane.b32.xlu1 %v7261_v9, %s10357_s3  ;;  %1357 = vrot.lane.b32.xlu0 %v7264_v10, %s10357_s3 }
  0x89   : > { %1521 = vrot.lane.b32.xlu1 %v7267_v11, %s10359_s23  ;;  %1519 = vrot.lane.b32.xlu0 %v7275_v12, %s10359_s23 }
  0x8d   : > { %976 = vrot.lane.b32.xlu1 %v7261_v9, %s10358_s21  ;;  %974 = vrot.lane.b32.xlu0 %v7264_v10, %s10358_s21  ;;  %v7576_v9 = vld [vmem:[%s7225_s26 + $0x50] sm:$0xff] }
  0x8e   : > { %799 = vst.msk [vmem:[#allocation2 + $0x61] sm:$0xff] %vm10330_vm1, %v7576_v9 }
  0x8f   : > { %v999_v28 = vpop.permute.xlu1 %998  ;;  %v878_v29 = vpop.permute.xlu0 %877 }
  0x90   : > { %954 = vst.msk [vmem:[#allocation2 + $0x80] sm:$0xff] %vm939_vm4, %v878_v29 }
  0x91   : > { %1076 = vst.msk [vmem:[#allocation2 + $0x7f] sm:$0xfe] %vm1060_vm5, %v999_v28  ;;  %1136 = vrot.lane.b32.xlu1 %v7267_v11, %s7047_s4  ;;  %1134 = vrot.lane.b32.xlu0 %v7275_v12, %s7047_s4 }
  0x93   : > { %v1001_v30 = vpop.permute.xlu1 %1000  ;;  %v880_v31 = vpop.permute.xlu0 %879 }
  0x94   : > { %955 = vst.msk [vmem:[#allocation2 + $0x88] sm:$0xff] %vm939_vm4, %v880_v31 }
  0x95   : > { %1489 = vrot.lane.b32.xlu1 %v7284_v13, %s10359_s23  ;;  %1487 = vrot.lane.b32.xlu0 %v7287_v14, %s10359_s23  ;;  %1077 = vst.msk [vmem:[#allocation2 + $0x87] sm:$0xff] %vm1062_vm6, %v1001_v30 }
  0x97   : > { %v1129_v34 = vpop.permute.xlu1 %1128  ;;  %v1127_v35 = vpop.permute.xlu0 %1126 }
  0x98   : > { %1209 = vst.msk [vmem:[#allocation2 + $0x89] sm:$0x7f] %vm1192_vm7, %v1129_v34 }
  0x99   : > { %1208 = vst.msk [vmem:[#allocation2 + $0x81] sm:$0xff] %vm1190_vm8, %v1127_v35  ;;  %1643 = vrot.lane.b32.xlu1 %v7267_v11, %s7051_s27  ;;  %1641 = vrot.lane.b32.xlu0 %v7275_v12, %s7051_s27 }
  0x9b   : > { %v1097_v36 = vpop.permute.xlu1 %1096  ;;  %v1095_v37 = vpop.permute.xlu0 %1094 }
  0x9c   : > { %1193 = vst.msk [vmem:[#allocation2 + $0x9] sm:$0x7f] %vm1192_vm7, %v1097_v36 }
  0x9d   : > { %1191 = vst.msk [vmem:[#allocation2 + $0x1] sm:$0xff] %vm1190_vm8, %v1095_v37  ;;  %1104 = vrot.lane.b32.xlu1 %v7284_v13, %s7047_s4  ;;  %1102 = vrot.lane.b32.xlu0 %v7287_v14, %s7047_s4 }
  0x9f   : > { %v1259_v38 = vpop.permute.xlu1 %1258  ;;  %v1257_v39 = vpop.permute.xlu0 %1256 }
  0xa0   : > { %1338 = vst.msk [vmem:[#allocation2 + $0x88] sm:$0xff] %vm1320_vm9, %v1259_v38  ;;  %1337 = vst.msk [vmem:[#allocation2 + $0x80] sm:$0xff] %vm1320_vm9, %v1257_v39 }
  0xa1   : > { %1266 = vrot.lane.b32.xlu1 %v7267_v11, %s10319_s29  ;;  %1264 = vrot.lane.b32.xlu0 %v7275_v12, %s10319_s29 }
  0xa3   : > { %v884_v40 = vpop.permute.xlu1 %883  ;;  %v882_v41 = vpop.permute.xlu0 %881 }
  0xa4   : > { %957 = vst.msk [vmem:[#allocation2 + $0x98] sm:$0xff] %vm939_vm4, %v884_v40  ;;  %956 = vst.msk [vmem:[#allocation2 + $0x90] sm:$0xff] %vm939_vm4, %v882_v41 }
  0xa5   : > { %1611 = vrot.lane.b32.xlu1 %v7284_v13, %s7051_s27  ;;  %1609 = vrot.lane.b32.xlu0 %v7287_v14, %s7051_s27 }
  0xa7   : > { %v1227_v42 = vpop.permute.xlu1 %1226  ;;  %v1225_v43 = vpop.permute.xlu0 %1224 }
  0xa8   : > { %1322 = vst.msk [vmem:[#allocation2 + $0x8] sm:$0xff] %vm1320_vm9, %v1227_v42  ;;  %1321 = vst.msk [vmem:[#allocation2] sm:$0xff] %vm1320_vm9, %v1225_v43 }
  0xa9   : > { %1764 = vrot.lane.b32.xlu1 %v7267_v11, %s10317_s25  ;;  %1762 = vrot.lane.b32.xlu0 %v7275_v12, %s10317_s25 }
  0xab   : > { %v1388_v44 = vpop.permute.xlu1 %1387  ;;  %v1386_v45 = vpop.permute.xlu0 %1385 }
  0xac   : > { %1468 = vst.msk [vmem:[#allocation2 + $0x87] sm:$0xff] %vm1451_vm10, %v1388_v44 }
  0xad   : > { %1467 = vst.msk [vmem:[#allocation2 + $0x7f] sm:$0xfe] %vm1449_vm11, %v1386_v45  ;;  %891 = vrot.lane.b32.xlu1 %v7267_v11, %s7046_s28  ;;  %889 = vrot.lane.b32.xlu0 %v7275_v12, %s7046_s28 }
  0xaf   : > { %v852_v46 = vpop.permute.xlu1 %851  ;;  %v850_v47 = vpop.permute.xlu0 %849 }
  0xb0   : > { %941 = vst.msk [vmem:[#allocation2 + $0x18] sm:$0xff] %vm939_vm4, %v852_v46  ;;  %940 = vst.msk [vmem:[#allocation2 + $0x10] sm:$0xff] %vm939_vm4, %v850_v47 }
  0xb1   : > { %1234 = vrot.lane.b32.xlu1 %v7284_v13, %s10319_s29  ;;  %1232 = vrot.lane.b32.xlu0 %v7287_v14, %s10319_s29 }
  0xb3   : > { %v1005_v48 = vpop.permute.xlu1 %1004  ;;  %v1003_v49 = vpop.permute.xlu0 %1002 }
  0xb4   : > { %1079 = vst.msk [vmem:[#allocation2 + $0x97] sm:$0xff] %vm1062_vm6, %v1005_v48 }
  0xb5   : > { %1078 = vst.msk [vmem:[#allocation2 + $0x8f] sm:$0xfe] %vm1060_vm5, %v1003_v49  ;;  %1395 = vrot.lane.b32.xlu1 %v7267_v11, %s10357_s3  ;;  %1393 = vrot.lane.b32.xlu0 %v7275_v12, %s10357_s3 }
  0xb7   : > { %v1356_v50 = vpop.permute.xlu1 %1355  ;;  %v1354_v51 = vpop.permute.xlu0 %1353 }
  0xb8   : > { %1452 = vst.msk [vmem:[#allocation2 + $0x7] sm:$0xff] %vm1451_vm10, %v1356_v50 }
  0xb9   : > { %1450 = vst.msk [vmem:[#allocation2 - $0x1] sm:$0xfe] %vm1449_vm11, %v1354_v51  ;;  %1732 = vrot.lane.b32.xlu1 %v7284_v13, %s10317_s25  ;;  %1730 = vrot.lane.b32.xlu0 %v7287_v14, %s10317_s25 }
  0xbb   : > { %v1518_v52 = vpop.permute.xlu1 %1517  ;;  %v1516_v53 = vpop.permute.xlu0 %1515 }
  0xbc   : > { %1592 = vst.msk [vmem:[#allocation2 + $0x89] sm:$0x7f] %vm1575_vm12, %v1518_v52 }
  0xbd   : > { %1591 = vst.msk [vmem:[#allocation2 + $0x81] sm:$0xff] %vm1573_vm13, %v1516_v53  ;;  %859 = vrot.lane.b32.xlu1 %v7284_v13, %s7046_s28  ;;  %857 = vrot.lane.b32.xlu0 %v7287_v14, %s7046_s28 }
  0xbf   : > { %v973_v54 = vpop.permute.xlu1 %972  ;;  %v971_v55 = vpop.permute.xlu0 %970 }
  0xc0   : > { %1063 = vst.msk [vmem:[#allocation2 + $0x17] sm:$0xff] %vm1062_vm6, %v973_v54 }
  0xc1   : > { %1061 = vst.msk [vmem:[#allocation2 + $0xf] sm:$0xfe] %vm1060_vm5, %v971_v55  ;;  %1012 = vrot.lane.b32.xlu1 %v7267_v11, %s10358_s21  ;;  %1010 = vrot.lane.b32.xlu0 %v7275_v12, %s10358_s21 }
  0xc3   : > { %v1133_v56 = vpop.permute.xlu1 %1132  ;;  %v1131_v57 = vpop.permute.xlu0 %1130 }
  0xc4   : > { %1211 = vst.msk [vmem:[#allocation2 + $0x99] sm:$0x7f] %vm1192_vm7, %v1133_v56 }
  0xc5   : > { %1210 = vst.msk [vmem:[#allocation2 + $0x91] sm:$0xff] %vm1190_vm8, %v1131_v57  ;;  %1363 = vrot.lane.b32.xlu1 %v7284_v13, %s10357_s3  ;;  %1361 = vrot.lane.b32.xlu0 %v7287_v14, %s10357_s3 }
  0xc7   : > { %v1486_v58 = vpop.permute.xlu1 %1485  ;;  %v1484_v59 = vpop.permute.xlu0 %1483 }
  0xc8   : > { %1576 = vst.msk [vmem:[#allocation2 + $0x9] sm:$0x7f] %vm1575_vm12, %v1486_v58 }
  0xc9   : > { %1574 = vst.msk [vmem:[#allocation2 + $0x1] sm:$0xff] %vm1573_vm13, %v1484_v59  ;;  %1525 = vrot.lane.b32.xlu1 %v7328_v15, %s10359_s23  ;;  %1523 = vrot.lane.b32.xlu0 %v7331_v16, %s10359_s23 }
  0xcb   : > { %v1640_v62 = vpop.permute.xlu1 %1639  ;;  %v1638_v63 = vpop.permute.xlu0 %1637 }
  0xcc   : > { %1713 = vst.msk [vmem:[#allocation2 + $0x88] sm:$0xff] %vm1695_vm14, %v1640_v62  ;;  %1712 = vst.msk [vmem:[#allocation2 + $0x80] sm:$0xff] %vm1695_vm14, %v1638_v63 }
  0xcd   : > { %980 = vrot.lane.b32.xlu1 %v7284_v13, %s10358_s21  ;;  %978 = vrot.lane.b32.xlu0 %v7287_v14, %s10358_s21 }
  0xcf   : > { %v1101_v0 = vpop.permute.xlu1 %1100  ;;  %v1099_v5 = vpop.permute.xlu0 %1098 }
  0xd0   : > { %1195 = vst.msk [vmem:[#allocation2 + $0x19] sm:$0x7f] %vm1192_vm7, %v1101_v0 }
  0xd1   : > { %1194 = vst.msk [vmem:[#allocation2 + $0x11] sm:$0xff] %vm1190_vm8, %v1099_v5  ;;  %1140 = vrot.lane.b32.xlu1 %v7328_v15, %s7047_s4  ;;  %1138 = vrot.lane.b32.xlu0 %v7331_v16, %s7047_s4 }
  0xd3   : > { %v1263_v6 = vpop.permute.xlu1 %1262  ;;  %v1261_v7 = vpop.permute.xlu0 %1260 }
  0xd4   : > { %1340 = vst.msk [vmem:[#allocation2 + $0x98] sm:$0xff] %vm1320_vm9, %v1263_v6  ;;  %1339 = vst.msk [vmem:[#allocation2 + $0x90] sm:$0xff] %vm1320_vm9, %v1261_v7 }
  0xd5   : > { %1493 = vrot.lane.b32.xlu1 %v7348_v17, %s10359_s23  ;;  %1491 = vrot.lane.b32.xlu0 %v7351_v18, %s10359_s23 }
  0xd7   : > { %v1608_v10 = vpop.permute.xlu1 %1607  ;;  %v1606_v11 = vpop.permute.xlu0 %1605 }
  0xd8   : > { %1697 = vst.msk [vmem:[#allocation2 + $0x8] sm:$0xff] %vm1695_vm14, %v1608_v10  ;;  %1696 = vst.msk [vmem:[#allocation2] sm:$0xff] %vm1695_vm14, %v1606_v11 }
  0xd9   : > { %1647 = vrot.lane.b32.xlu1 %v7328_v15, %s7051_s27  ;;  %1645 = vrot.lane.b32.xlu0 %v7331_v16, %s7051_s27 }
  0xdb   : > { %v1761_v12 = vpop.permute.xlu1 %1760  ;;  %v1759_v13 = vpop.permute.xlu0 %1758 }
  0xdc   : > { %1835 = vst.msk [vmem:[#allocation2 + $0x87] sm:$0xff] %vm1818_vm15, %v1761_v12 }
  0xdd   : > { %1834 = vst.msk [vmem:[#allocation2 + $0x7f] sm:$0xfe] %vm1816_vm3, %v1759_v13  ;;  %1108 = vrot.lane.b32.xlu1 %v7348_v17, %s7047_s4  ;;  %1106 = vrot.lane.b32.xlu0 %v7351_v18, %s7047_s4 }
  0xdf   : > { %v888_v14 = vpop.permute.xlu1 %887  ;;  %v886_v19 = vpop.permute.xlu0 %885 }
  0xe0   : > { %959 = vst.msk [vmem:[#allocation2 + $0xa8] sm:$0xff] %vm939_vm4, %v888_v14  ;;  %958 = vst.msk [vmem:[#allocation2 + $0xa0] sm:$0xff] %vm939_vm4, %v886_v19 }
  0xe1   : > { %1270 = vrot.lane.b32.xlu1 %v7328_v15, %s10319_s29  ;;  %1268 = vrot.lane.b32.xlu0 %v7331_v16, %s10319_s29 }
  0xe3   : > { %v1231_v20 = vpop.permute.xlu1 %1230  ;;  %v1229_v21 = vpop.permute.xlu0 %1228  ;;  %v1865_v23 = vld [vmem:[#allocation2 + $0x88] sm:$0xff] }
  0xe4   : > { %v1864_v22 = vld [vmem:[#allocation2 + $0x80] sm:$0xff]  ;;  %1324 = vst.msk [vmem:[#allocation2 + $0x18] sm:$0xff] %vm1320_vm9, %v1231_v20  ;;  %1323 = vst.msk [vmem:[#allocation2 + $0x10] sm:$0xff] %vm1320_vm9, %v1229_v21 }
  0xe5   : > { %6572 = vmatprep.mubr.msk.f32.mxu1 %vm753_vm0, %v1864_v22  ;;  %1615 = vrot.lane.b32.xlu1 %v7348_v17, %s7051_s27 }
  0xe6   : > { %1613 = vrot.lane.b32.xlu0 %v7351_v18, %s7051_s27  ;;  %6573 = vmatmul.mubr.msk.f32.vlgmr.msra.gmra.mrb[0].mxu1 %vm753_vm0, %v1865_v23 }
  0xe7   : > { %v1392_v24 = vpop.permute.xlu1 %1391  ;;  %v1390_v25 = vpop.permute.xlu0 %1389 }
  0xe8   : > { %1470 = vst.msk [vmem:[#allocation2 + $0x97] sm:$0xff] %vm1451_vm10, %v1392_v24 }
  0xe9   : > { %1469 = vst.msk [vmem:[#allocation2 + $0x8f] sm:$0xfe] %vm1449_vm11, %v1390_v25  ;;  %1768 = vrot.lane.b32.xlu1 %v7328_v15, %s10317_s25 }
  0xea   : > { %1766 = vrot.lane.b32.xlu0 %v7331_v16, %s10317_s25 }
  0xeb   : > { %v1729_v28 = vpop.permute.xlu1 %1728  ;;  %v1727_v29 = vpop.permute.xlu0 %1726 }
  0xec   : > { %1819 = vst.msk [vmem:[#allocation2 + $0x7] sm:$0xff] %vm1818_vm15, %v1729_v28 }
  0xed   : > { %1817 = vst.msk [vmem:[#allocation2 - $0x1] sm:$0xfe] %vm1816_vm3, %v1727_v29  ;;  %895 = vrot.lane.b32.xlu1 %v7328_v15, %s7046_s28 }
  0xee   : > { %893 = vrot.lane.b32.xlu0 %v7331_v16, %s7046_s28 }
  0xef   : > { %v856_v30 = vpop.permute.xlu1 %855  ;;  %v854_v31 = vpop.permute.xlu0 %853 }
  0xf0   : > { %943 = vst.msk [vmem:[#allocation2 + $0x28] sm:$0xff] %vm939_vm4, %v856_v30  ;;  %942 = vst.msk [vmem:[#allocation2 + $0x20] sm:$0xff] %vm939_vm4, %v854_v31 }
  0xf1   : > { %1238 = vrot.lane.b32.xlu1 %v7348_v17, %s10319_s29 }
  0xf2   : > { %1236 = vrot.lane.b32.xlu0 %v7351_v18, %s10319_s29 }
  0xf3   : > { %v1009_v34 = vpop.permute.xlu1 %1008  ;;  %v1007_v35 = vpop.permute.xlu0 %1006  ;;  %v1849_v37 = vld [vmem:[#allocation2 + $0x8] sm:$0xff] }
  0xf4   : > { %v1848_v36 = vld [vmem:[#allocation2] sm:$0xff]  ;;  %1081 = vst.msk [vmem:[#allocation2 + $0xa7] sm:$0xff] %vm1062_vm6, %v1009_v34 }
  0xf5   : > { %1080 = vst.msk [vmem:[#allocation2 + $0x9f] sm:$0xfe] %vm1060_vm5, %v1007_v35  ;;  %6548 = vmatprep.mubr.msk.f32.mxu0 %vm753_vm0, %v1848_v36  ;;  %1399 = vrot.lane.b32.xlu1 %v7328_v15, %s10357_s3 }
  0xf6   : > { %1397 = vrot.lane.b32.xlu0 %v7331_v16, %s10357_s3  ;;  %6549 = vmatmul.mubr.msk.f32.vlgmr.msra.gmra.mrb[0].mxu0 %vm753_vm0, %v1849_v37 }
  0xf7   : > { %v1360_v38 = vpop.permute.xlu1 %1359  ;;  %v1358_v39 = vpop.permute.xlu0 %1357 }
  0xf8   : > { %1454 = vst.msk [vmem:[#allocation2 + $0x17] sm:$0xff] %vm1451_vm10, %v1360_v38 }
  0xf9   : > { %1453 = vst.msk [vmem:[#allocation2 + $0xf] sm:$0xfe] %vm1449_vm11, %v1358_v39  ;;  %1736 = vrot.lane.b32.xlu1 %v7348_v17, %s10317_s25 }
  0xfa   : > { %1734 = vrot.lane.b32.xlu0 %v7351_v18, %s10317_s25 }
  0xfb   : > { %v1522_v40 = vpop.permute.xlu1 %1521  ;;  %v1520_v41 = vpop.permute.xlu0 %1519 }
  0xfc   : > { %1594 = vst.msk [vmem:[#allocation2 + $0x99] sm:$0x7f] %vm1575_vm12, %v1522_v40 }
  0xfd   : > { %1593 = vst.msk [vmem:[#allocation2 + $0x91] sm:$0xff] %vm1573_vm13, %v1520_v41  ;;  %863 = vrot.lane.b32.xlu1 %v7348_v17, %s7046_s28 }
  0xfe   : > { %861 = vrot.lane.b32.xlu0 %v7351_v18, %s7046_s28 }
  0xff   : > { %v977_v42 = vpop.permute.xlu1 %976  ;;  %v975_v43 = vpop.permute.xlu0 %974 }
 0x100   : > { %1065 = vst.msk [vmem:[#allocation2 + $0x27] sm:$0xff] %vm1062_vm6, %v977_v42 }
 0x101   : > { %1064 = vst.msk [vmem:[#allocation2 + $0x1f] sm:$0xfe] %vm1060_vm5, %v975_v43  ;;  %1016 = vrot.lane.b32.xlu1 %v7328_v15, %s10358_s21  ;;  %v7659_v15 = vld [vmem:[%s7225_s26 + $0xe8] sm:$0xff] }
 0x102   : > { %1014 = vrot.lane.b32.xlu0 %v7331_v16, %s10358_s21  ;;  %818 = vst.msk [vmem:[#allocation2 + $0xf9] sm:$0x7f] %vm789_vm2, %v7659_v15  ;;  %v7668_v16 = vld [vmem:[%s7225_s26 + $0xe0] sm:$0xff] }
 0x103   : > { %v1137_v44 = vpop.permute.xlu1 %1136  ;;  %v1135_v45 = vpop.permute.xlu0 %1134  ;;  %817 = vst.msk [vmem:[#allocation2 + $0xf1] sm:$0xff] %vm10330_vm1, %v7668_v16 }
 0x104   : > { %1213 = vst.msk [vmem:[#allocation2 + $0xa9] sm:$0x7f] %vm1192_vm7, %v1137_v44 }
 0x105   : > { %1212 = vst.msk [vmem:[#allocation2 + $0xa1] sm:$0xff] %vm1190_vm8, %v1135_v45  ;;  %1367 = vrot.lane.b32.xlu1 %v7348_v17, %s10357_s3 }
 0x106   : > { %1365 = vrot.lane.b32.xlu0 %v7351_v18, %s10357_s3 }
 0x107   : > { %v1490_v46 = vpop.permute.xlu1 %1489  ;;  %v1488_v47 = vpop.permute.xlu0 %1487 }
 0x108   : > { %1578 = vst.msk [vmem:[#allocation2 + $0x19] sm:$0x7f] %vm1575_vm12, %v1490_v46 }
 0x109   : > { %1577 = vst.msk [vmem:[#allocation2 + $0x11] sm:$0xff] %vm1573_vm13, %v1488_v47  ;;  %1529 = vrot.lane.b32.xlu1 %v7425_v26, %s10359_s23 }
 0x10a   : > { %1527 = vrot.lane.b32.xlu0 %v7434_v27, %s10359_s23 }
 0x10b   : > { %v1644_v48 = vpop.permute.xlu1 %1643  ;;  %v1642_v49 = vpop.permute.xlu0 %1641 }
 0x10c   : > { %1715 = vst.msk [vmem:[#allocation2 + $0x98] sm:$0xff] %vm1695_vm14, %v1644_v48  ;;  %1714 = vst.msk [vmem:[#allocation2 + $0x90] sm:$0xff] %vm1695_vm14, %v1642_v49 }
 0x10d   : > { %984 = vrot.lane.b32.xlu1 %v7348_v17, %s10358_s21  ;;  %v7687_v17 = vld [vmem:[%s7225_s26 + $0x68] sm:$0xff] }
 0x10e   : > { %982 = vrot.lane.b32.xlu0 %v7351_v18, %s10358_s21  ;;  %802 = vst.msk [vmem:[#allocation2 + $0x79] sm:$0x7f] %vm789_vm2, %v7687_v17  ;;  %v7696_v18 = vld [vmem:[%s7225_s26 + $0x60] sm:$0xff]  ;;  %vm2384_vm2 = vcmask 63488  }
 0x10f   : > { %v1105_v50 = vpop.permute.xlu1 %1104  ;;  %v1103_v51 = vpop.permute.xlu0 %1102  ;;  %801 = vst.msk [vmem:[#allocation2 + $0x71] sm:$0xff] %vm10330_vm1, %v7696_v18  ;;  %vm3181_vm1 = vcmask 124928  }
 0x110   : > { %1197 = vst.msk [vmem:[#allocation2 + $0x29] sm:$0x7f] %vm1192_vm7, %v1105_v50 }
 0x111   : > { %1196 = vst.msk [vmem:[#allocation2 + $0x21] sm:$0xff] %vm1190_vm8, %v1103_v51  ;;  %1144 = vrot.lane.b32.xlu1 %v7425_v26, %s7047_s4 }
 0x112   : > { %1142 = vrot.lane.b32.xlu0 %v7434_v27, %s7047_s4 }
 0x113   : > { %v1267_v52 = vpop.permute.xlu1 %1266  ;;  %v1265_v53 = vpop.permute.xlu0 %1264 }
 0x114   : > { %1342 = vst.msk [vmem:[#allocation2 + $0xa8] sm:$0xff] %vm1320_vm9, %v1267_v52  ;;  %1341 = vst.msk [vmem:[#allocation2 + $0xa0] sm:$0xff] %vm1320_vm9, %v1265_v53 }
 0x115   : > { %1497 = vrot.lane.b32.xlu1 %v7450_v32, %s10359_s23 }
 0x116   : > { %1495 = vrot.lane.b32.xlu0 %v7460_v33, %s10359_s23 }
 0x117   : > { %v1612_v54 = vpop.permute.xlu1 %1611  ;;  %v1610_v55 = vpop.permute.xlu0 %1609 }
 0x118   : > { %1699 = vst.msk [vmem:[#allocation2 + $0x18] sm:$0xff] %vm1695_vm14, %v1612_v54  ;;  %1698 = vst.msk [vmem:[#allocation2 + $0x10] sm:$0xff] %vm1695_vm14, %v1610_v55 }
 0x119   : > { %1651 = vrot.lane.b32.xlu1 %v7425_v26, %s7051_s27 }
 0x11a   : > { %1649 = vrot.lane.b32.xlu0 %v7434_v27, %s7051_s27 }
 0x11b   : > { %v1765_v56 = vpop.permute.xlu1 %1764  ;;  %v1763_v57 = vpop.permute.xlu0 %1762 }
 0x11c   : > { %1837 = vst.msk [vmem:[#allocation2 + $0x97] sm:$0xff] %vm1818_vm15, %v1765_v56 }
 0x11d   : > { %1836 = vst.msk [vmem:[#allocation2 + $0x8f] sm:$0xfe] %vm1816_vm3, %v1763_v57  ;;  %1112 = vrot.lane.b32.xlu1 %v7450_v32, %s7047_s4 }
 0x11e   : > { %1110 = vrot.lane.b32.xlu0 %v7460_v33, %s7047_s4 }
 0x11f   : > { %v892_v58 = vpop.permute.xlu1 %891  ;;  %v890_v59 = vpop.permute.xlu0 %889 }
 0x120   : > { %961 = vst.msk [vmem:[#allocation2 + $0xb8] sm:$0xff] %vm939_vm4, %v892_v58  ;;  %960 = vst.msk [vmem:[#allocation2 + $0xb0] sm:$0xff] %vm939_vm4, %v890_v59 }
 0x121   : > { %1274 = vrot.lane.b32.xlu1 %v7425_v26, %s10319_s29 }
 0x122   : > { %1272 = vrot.lane.b32.xlu0 %v7434_v27, %s10319_s29 }
 0x123   : > { %v1235_v62 = vpop.permute.xlu1 %1234  ;;  %v1233_v63 = vpop.permute.xlu0 %1232  ;;  %v1867_v5 = vld [vmem:[#allocation2 + $0x98] sm:$0xff] }
 0x124   : > { %v1866_v0 = vld [vmem:[#allocation2 + $0x90] sm:$0xff]  ;;  %1326 = vst.msk [vmem:[#allocation2 + $0x28] sm:$0xff] %vm1320_vm9, %v1235_v62  ;;  %1325 = vst.msk [vmem:[#allocation2 + $0x20] sm:$0xff] %vm1320_vm9, %v1233_v63 }
 0x125   : > { %6575 = vmatprep.mubr.msk.f32.mxu1 %vm753_vm0, %v1866_v0  ;;  %1619 = vrot.lane.b32.xlu1 %v7450_v32, %s7051_s27 }
 0x126   : > { %1617 = vrot.lane.b32.xlu0 %v7460_v33, %s7051_s27  ;;  %6576 = vmatmul.mubr.msk.f32.gmra.mrb[2].mxu1 %vm753_vm0, %v1867_v5 }
 0x127   : > { %v1396_v6 = vpop.permute.xlu1 %1395  ;;  %v1394_v7 = vpop.permute.xlu0 %1393 }
 0x128   : > { %1472 = vst.msk [vmem:[#allocation2 + $0xa7] sm:$0xff] %vm1451_vm10, %v1396_v6 }
 0x129   : > { %1471 = vst.msk [vmem:[#allocation2 + $0x9f] sm:$0xfe] %vm1449_vm11, %v1394_v7  ;;  %1772 = vrot.lane.b32.xlu1 %v7425_v26, %s10317_s25 }
 0x12a   : > { %1770 = vrot.lane.b32.xlu0 %v7434_v27, %s10317_s25 }
 0x12b   : > { %v1733_v10 = vpop.permute.xlu1 %1732  ;;  %v1731_v11 = vpop.permute.xlu0 %1730 }
 0x12c   : > { %1821 = vst.msk [vmem:[#allocation2 + $0x17] sm:$0xff] %vm1818_vm15, %v1733_v10 }
 0x12d   : > { %1820 = vst.msk [vmem:[#allocation2 + $0xf] sm:$0xfe] %vm1816_vm3, %v1731_v11  ;;  %899 = vrot.lane.b32.xlu1 %v7425_v26, %s7046_s28 }
 0x12e   : > { %897 = vrot.lane.b32.xlu0 %v7434_v27, %s7046_s28 }
 0x12f   : > { %v860_v12 = vpop.permute.xlu1 %859  ;;  %v858_v13 = vpop.permute.xlu0 %857 }
 0x130   : > { %945 = vst.msk [vmem:[#allocation2 + $0x38] sm:$0xff] %vm939_vm4, %v860_v12  ;;  %944 = vst.msk [vmem:[#allocation2 + $0x30] sm:$0xff] %vm939_vm4, %v858_v13 }
 0x131   : > { %1242 = vrot.lane.b32.xlu1 %v7450_v32, %s10319_s29 }
 0x132   : > { %1240 = vrot.lane.b32.xlu0 %v7460_v33, %s10319_s29 }
 0x133   : > { %v1013_v14 = vpop.permute.xlu1 %1012  ;;  %v1011_v19 = vpop.permute.xlu0 %1010  ;;  %v1851_v21 = vld [vmem:[#allocation2 + $0x18] sm:$0xff] }
 0x134   : > { %v1850_v20 = vld [vmem:[#allocation2 + $0x10] sm:$0xff]  ;;  %1083 = vst.msk [vmem:[#allocation2 + $0xb7] sm:$0xff] %vm1062_vm6, %v1013_v14 }
 0x135   : > { %1082 = vst.msk [vmem:[#allocation2 + $0xaf] sm:$0xfe] %vm1060_vm5, %v1011_v19  ;;  %6551 = vmatprep.mubr.msk.f32.mxu0 %vm753_vm0, %v1850_v20  ;;  %1403 = vrot.lane.b32.xlu1 %v7425_v26, %s10357_s3 }
 0x136   : > { %1401 = vrot.lane.b32.xlu0 %v7434_v27, %s10357_s3  ;;  %6552 = vmatmul.mubr.msk.f32.gmra.mrb[2].mxu0 %vm753_vm0, %v1851_v21 }
 0x137   : > { %v1364_v22 = vpop.permute.xlu1 %1363  ;;  %v1362_v23 = vpop.permute.xlu0 %1361 }
 0x138   : > { %1456 = vst.msk [vmem:[#allocation2 + $0x27] sm:$0xff] %vm1451_vm10, %v1364_v22 }
 0x139   : > { %1455 = vst.msk [vmem:[#allocation2 + $0x1f] sm:$0xfe] %vm1449_vm11, %v1362_v23  ;;  %1740 = vrot.lane.b32.xlu1 %v7450_v32, %s10317_s25 }
 0x13a   : > { %1738 = vrot.lane.b32.xlu0 %v7460_v33, %s10317_s25 }
 0x13b   : > { %v1526_v24 = vpop.permute.xlu1 %1525  ;;  %v1524_v25 = vpop.permute.xlu0 %1523 }
 0x13c   : > { %1596 = vst.msk [vmem:[#allocation2 + $0xa9] sm:$0x7f] %vm1575_vm12, %v1526_v24 }
 0x13d   : > { %1595 = vst.msk [vmem:[#allocation2 + $0xa1] sm:$0xff] %vm1573_vm13, %v1524_v25  ;;  %867 = vrot.lane.b32.xlu1 %v7450_v32, %s7046_s28 }
 0x13e   : > { %865 = vrot.lane.b32.xlu0 %v7460_v33, %s7046_s28 }
 0x13f   : > { %v981_v28 = vpop.permute.xlu1 %980  ;;  %v979_v29 = vpop.permute.xlu0 %978 }
 0x140   : > { %1067 = vst.msk [vmem:[#allocation2 + $0x37] sm:$0xff] %vm1062_vm6, %v981_v28 }
 0x141   : > { %1066 = vst.msk [vmem:[#allocation2 + $0x2f] sm:$0xfe] %vm1060_vm5, %v979_v29  ;;  %1020 = vrot.lane.b32.xlu1 %v7425_v26, %s10358_s21 }
 0x142   : > { %1018 = vrot.lane.b32.xlu0 %v7434_v27, %s10358_s21 }
 0x143   : > { %v1141_v30 = vpop.permute.xlu1 %1140  ;;  %v1139_v31 = vpop.permute.xlu0 %1138 }
 0x144   : > { %1215 = vst.msk [vmem:[#allocation2 + $0xb9] sm:$0x7f] %vm1192_vm7, %v1141_v30 }
 0x145   : > { %1214 = vst.msk [vmem:[#allocation2 + $0xb1] sm:$0xff] %vm1190_vm8, %v1139_v31  ;;  %1371 = vrot.lane.b32.xlu1 %v7450_v32, %s10357_s3 }
 0x146   : > { %1369 = vrot.lane.b32.xlu0 %v7460_v33, %s10357_s3 }
 0x147   : > { %v1494_v34 = vpop.permute.xlu1 %1493  ;;  %v1492_v35 = vpop.permute.xlu0 %1491 }
 0x148   : > { %1580 = vst.msk [vmem:[#allocation2 + $0x29] sm:$0x7f] %vm1575_vm12, %v1494_v34 }
 0x149   : > { %1579 = vst.msk [vmem:[#allocation2 + $0x21] sm:$0xff] %vm1573_vm13, %v1492_v35  ;;  %1533 = vrot.lane.b32.xlu1 %v7539_v60, %s10359_s23 }
 0x14a   : > { %1531 = vrot.lane.b32.xlu0 %v7548_v61, %s10359_s23 }
 0x14b   : > { %v1648_v26 = vpop.permute.xlu1 %1647  ;;  %v1646_v27 = vpop.permute.xlu0 %1645 }
 0x14c   : > { %1717 = vst.msk [vmem:[#allocation2 + $0xa8] sm:$0xff] %vm1695_vm14, %v1648_v26  ;;  %1716 = vst.msk [vmem:[#allocation2 + $0xa0] sm:$0xff] %vm1695_vm14, %v1646_v27 }
 0x14d   : > { %988 = vrot.lane.b32.xlu1 %v7450_v32, %s10358_s21 }
 0x14e   : > { %986 = vrot.lane.b32.xlu0 %v7460_v33, %s10358_s21 }
 0x14f   : > { %v1109_v36 = vpop.permute.xlu1 %1108  ;;  %v1107_v37 = vpop.permute.xlu0 %1106 }
 0x150   : > { %1199 = vst.msk [vmem:[#allocation2 + $0x39] sm:$0x7f] %vm1192_vm7, %v1109_v36 }
 0x151   : > { %1198 = vst.msk [vmem:[#allocation2 + $0x31] sm:$0xff] %vm1190_vm8, %v1107_v37  ;;  %1148 = vrot.lane.b32.xlu1 %v7539_v60, %s7047_s4 }
 0x152   : > { %1146 = vrot.lane.b32.xlu0 %v7548_v61, %s7047_s4 }
 0x153   : > { %v1271_v38 = vpop.permute.xlu1 %1270  ;;  %v1269_v39 = vpop.permute.xlu0 %1268 }
 0x154   : > { %1344 = vst.msk [vmem:[#allocation2 + $0xb8] sm:$0xff] %vm1320_vm9, %v1271_v38  ;;  %1343 = vst.msk [vmem:[#allocation2 + $0xb0] sm:$0xff] %vm1320_vm9, %v1269_v39 }
 0x155   : > { %1501 = vrot.lane.b32.xlu1 %v7567_v8, %s10359_s23 }
 0x156   : > { %1499 = vrot.lane.b32.xlu0 %v7576_v9, %s10359_s23 }
 0x157   : > { %v1616_v32 = vpop.permute.xlu1 %1615 }
 0x158   : > { %v1614_v33 = vpop.permute.xlu0 %1613  ;;  %1701 = vst.msk [vmem:[#allocation2 + $0x28] sm:$0xff] %vm1695_vm14, %v1616_v32 }
 0x159   : > { %1700 = vst.msk [vmem:[#allocation2 + $0x20] sm:$0xff] %vm1695_vm14, %v1614_v33  ;;  %1655 = vrot.lane.b32.xlu1 %v7539_v60, %s7051_s27 }
 0x15a   : > { %1653 = vrot.lane.b32.xlu0 %v7548_v61, %s7051_s27 }
 0x15b   : > { %v1769_v40 = vpop.permute.xlu1 %1768 }
 0x15c   : > { %v1767_v41 = vpop.permute.xlu0 %1766  ;;  %1839 = vst.msk [vmem:[#allocation2 + $0xa7] sm:$0xff] %vm1818_vm15, %v1769_v40  ;;  %v7955_v40 = vld [vmem:[%s10360_s5] ss:$0 sm:$0xff] }
 0x15d   : > { %1838 = vst.msk [vmem:[#allocation2 + $0x9f] sm:$0xfe] %vm1816_vm3, %v1767_v41  ;;  %1116 = vrot.lane.b32.xlu1 %v7567_v8, %s7047_s4 }
 0x15e   : > { %1114 = vrot.lane.b32.xlu0 %v7576_v9, %s7047_s4 }
 0x15f   : > { %v896_v42 = vpop.permute.xlu1 %895 }
 0x160   : > { %v894_v43 = vpop.permute.xlu0 %893  ;;  %963 = vst.msk [vmem:[#allocation2 + $0xc8] sm:$0xff] %vm939_vm4, %v896_v42 }
 0x161   : > { %962 = vst.msk [vmem:[#allocation2 + $0xc0] sm:$0xff] %vm939_vm4, %v894_v43  ;;  %1278 = vrot.lane.b32.xlu1 %v7539_v60, %s10319_s29 }
 0x162   : > { %1276 = vrot.lane.b32.xlu0 %v7548_v61, %s10319_s29 }
 0x163   : > { %v1239_v44 = vpop.permute.xlu1 %1238  ;;  %v1869_v47 = vld [vmem:[#allocation2 + $0xa8] sm:$0xff] }
 0x164   : > { %v1237_v45 = vpop.permute.xlu0 %1236  ;;  %v1868_v46 = vld [vmem:[#allocation2 + $0xa0] sm:$0xff]  ;;  %1328 = vst.msk [vmem:[#allocation2 + $0x38] sm:$0xff] %vm1320_vm9, %v1239_v44 }
 0x165   : > { %1327 = vst.msk [vmem:[#allocation2 + $0x30] sm:$0xff] %vm1320_vm9, %v1237_v45  ;;  %6578 = vmatprep.mubr.msk.f32.mxu1 %vm753_vm0, %v1868_v46  ;;  %1623 = vrot.lane.b32.xlu1 %v7567_v8, %s7051_s27 }
 0x166   : > { %1621 = vrot.lane.b32.xlu0 %v7576_v9, %s7051_s27  ;;  %6579 = vmatmul.mubr.msk.f32.gmra.mrb[4].mxu1 %vm753_vm0, %v1869_v47 }
 0x167   : > { %v1400_v48 = vpop.permute.xlu1 %1399 }
 0x168   : > { %v1398_v49 = vpop.permute.xlu0 %1397  ;;  %1474 = vst.msk [vmem:[#allocation2 + $0xb7] sm:$0xff] %vm1451_vm10, %v1400_v48 }
 0x169   : > { %1473 = vst.msk [vmem:[#allocation2 + $0xaf] sm:$0xfe] %vm1449_vm11, %v1398_v49  ;;  %1776 = vrot.lane.b32.xlu1 %v7539_v60, %s10317_s25  ;;  %v7972_v49 = vld [vmem:[%s7225_s26 + $0xf8] sm:$0xff] }
 0x16a   : > { %1774 = vrot.lane.b32.xlu0 %v7548_v61, %s10317_s25 }
 0x16b   : > { %v1737_v50 = vpop.permute.xlu1 %1736 }
 0x16c   : > { %v1735_v51 = vpop.permute.xlu0 %1734  ;;  %1823 = vst.msk [vmem:[#allocation2 + $0x27] sm:$0xff] %vm1818_vm15, %v1737_v50 }
 0x16d   : > { %1822 = vst.msk [vmem:[#allocation2 + $0x1f] sm:$0xfe] %vm1816_vm3, %v1735_v51  ;;  %903 = vrot.lane.b32.xlu1 %v7539_v60, %s7046_s28 }
 0x16e   : > { %901 = vrot.lane.b32.xlu0 %v7548_v61, %s7046_s28 }
 0x16f   : > { %v864_v52 = vpop.permute.xlu1 %863 }
 0x170   : > { %v862_v53 = vpop.permute.xlu0 %861  ;;  %947 = vst.msk [vmem:[#allocation2 + $0x48] sm:$0xff] %vm939_vm4, %v864_v52 }
 0x171   : > { %946 = vst.msk [vmem:[#allocation2 + $0x40] sm:$0xff] %vm939_vm4, %v862_v53  ;;  %1246 = vrot.lane.b32.xlu1 %v7567_v8, %s10319_s29  ;;  %v7975_v53 = vld [vmem:[%s7225_s26 + $0xf0] sm:$0xff]  ;;  %s10366_s26 = smov 40  }
 0x172   : > { %1244 = vrot.lane.b32.xlu0 %v7576_v9, %s10319_s29 }
 0x173   : > { %v1017_v54 = vpop.permute.xlu1 %1016  ;;  %v1853_v57 = vld [vmem:[#allocation2 + $0x28] sm:$0xff] }
 0x174   : > { %v1015_v55 = vpop.permute.xlu0 %1014  ;;  %v1852_v56 = vld [vmem:[#allocation2 + $0x20] sm:$0xff]  ;;  %1085 = vst.msk [vmem:[#allocation2 + $0xc7] sm:$0xff] %vm1062_vm6, %v1017_v54 }
 0x175   : > { %1084 = vst.msk [vmem:[#allocation2 + $0xbf] sm:$0xfe] %vm1060_vm5, %v1015_v55  ;;  %6554 = vmatprep.mubr.msk.f32.mxu0 %vm753_vm0, %v1852_v56  ;;  %1407 = vrot.lane.b32.xlu1 %v7539_v60, %s10357_s3 }
 0x176   : > { %1405 = vrot.lane.b32.xlu0 %v7548_v61, %s10357_s3  ;;  %6555 = vmatmul.mubr.msk.f32.gmra.mrb[4].mxu0 %vm753_vm0, %v1853_v57 }
 0x177   : > { %v1368_v58 = vpop.permute.xlu1 %1367 }
 0x178   : > { %v1366_v59 = vpop.permute.xlu0 %1365  ;;  %1458 = vst.msk [vmem:[#allocation2 + $0x37] sm:$0xff] %vm1451_vm10, %v1368_v58 }
 0x179   : > { %1457 = vst.msk [vmem:[#allocation2 + $0x2f] sm:$0xfe] %vm1449_vm11, %v1366_v59  ;;  %1744 = vrot.lane.b32.xlu1 %v7567_v8, %s10317_s25 }
 0x17a   : > { %1742 = vrot.lane.b32.xlu0 %v7576_v9, %s10317_s25 }
 0x17b   : > { %v1530_v62 = vpop.permute.xlu1 %1529 }
 0x17c   : > { %v1528_v63 = vpop.permute.xlu0 %1527  ;;  %1598 = vst.msk [vmem:[#allocation2 + $0xb9] sm:$0x7f] %vm1575_vm12, %v1530_v62 }
 0x17d   : > { %1597 = vst.msk [vmem:[#allocation2 + $0xb1] sm:$0xff] %vm1573_vm13, %v1528_v63  ;;  %871 = vrot.lane.b32.xlu1 %v7567_v8, %s7046_s28 }
 0x17e   : > { %869 = vrot.lane.b32.xlu0 %v7576_v9, %s7046_s28 }
 0x17f   : > { %v985_v0 = vpop.permute.xlu1 %984 }
 0x180   : > { %v983_v5 = vpop.permute.xlu0 %982  ;;  %1069 = vst.msk [vmem:[#allocation2 + $0x47] sm:$0xff] %vm1062_vm6, %v985_v0 }
 0x181   : > { %1068 = vst.msk [vmem:[#allocation2 + $0x3f] sm:$0xfe] %vm1060_vm5, %v983_v5  ;;  %1024 = vrot.lane.b32.xlu1 %v7539_v60, %s10358_s21 }
 0x182   : > { %1022 = vrot.lane.b32.xlu0 %v7548_v61, %s10358_s21 }
 0x183   : > { %v1145_v6 = vpop.permute.xlu1 %1144 }
 0x184   : > { %v1143_v7 = vpop.permute.xlu0 %1142  ;;  %1217 = vst.msk [vmem:[#allocation2 + $0xc9] sm:$0x7f] %vm1192_vm7, %v1145_v6 }
 0x185   : > { %1216 = vst.msk [vmem:[#allocation2 + $0xc1] sm:$0xff] %vm1190_vm8, %v1143_v7  ;;  %1375 = vrot.lane.b32.xlu1 %v7567_v8, %s10357_s3 }
 0x186   : > { %1373 = vrot.lane.b32.xlu0 %v7576_v9, %s10357_s3 }
 0x187   : > { %v1498_v10 = vpop.permute.xlu1 %1497 }
 0x188   : > { %v1496_v11 = vpop.permute.xlu0 %1495  ;;  %1582 = vst.msk [vmem:[#allocation2 + $0x39] sm:$0x7f] %vm1575_vm12, %v1498_v10 }
 0x189   : > { %1581 = vst.msk [vmem:[#allocation2 + $0x31] sm:$0xff] %vm1573_vm13, %v1496_v11  ;;  %1537 = vrot.lane.b32.xlu1 %v7659_v15, %s10359_s23 }
 0x18a   : > { %1535 = vrot.lane.b32.xlu0 %v7668_v16, %s10359_s23 }
 0x18b   : > { %v1652_v60 = vpop.permute.xlu1 %1651 }
 0x18c   : > { %v1650_v61 = vpop.permute.xlu0 %1649  ;;  %1719 = vst.msk [vmem:[#allocation2 + $0xb8] sm:$0xff] %vm1695_vm14, %v1652_v60 }
 0x18d   : > { %1718 = vst.msk [vmem:[#allocation2 + $0xb0] sm:$0xff] %vm1695_vm14, %v1650_v61  ;;  %992 = vrot.lane.b32.xlu1 %v7567_v8, %s10358_s21 }
 0x18e   : > { %990 = vrot.lane.b32.xlu0 %v7576_v9, %s10358_s21 }
 0x18f   : > { %v1113_v12 = vpop.permute.xlu1 %1112 }
 0x190   : > { %v1111_v13 = vpop.permute.xlu0 %1110  ;;  %1201 = vst.msk [vmem:[#allocation2 + $0x49] sm:$0x7f] %vm1192_vm7, %v1113_v12 }
 0x191   : > { %1200 = vst.msk [vmem:[#allocation2 + $0x41] sm:$0xff] %vm1190_vm8, %v1111_v13  ;;  %1152 = vrot.lane.b32.xlu1 %v7659_v15, %s7047_s4 }
 0x192   : > { %1150 = vrot.lane.b32.xlu0 %v7668_v16, %s7047_s4 }
 0x193   : > { %v1275_v14 = vpop.permute.xlu1 %1274 }
 0x194   : > { %v1273_v19 = vpop.permute.xlu0 %1272  ;;  %1346 = vst.msk [vmem:[#allocation2 + $0xc8] sm:$0xff] %vm1320_vm9, %v1275_v14 }
 0x195   : > { %1345 = vst.msk [vmem:[#allocation2 + $0xc0] sm:$0xff] %vm1320_vm9, %v1273_v19  ;;  %1505 = vrot.lane.b32.xlu1 %v7687_v17, %s10359_s23 }
 0x196   : > { %1503 = vrot.lane.b32.xlu0 %v7696_v18, %s10359_s23 }
 0x197   : > { %v1620_v8 = vpop.permute.xlu1 %1619 }
 0x198   : > { %v1618_v9 = vpop.permute.xlu0 %1617  ;;  %1703 = vst.msk [vmem:[#allocation2 + $0x38] sm:$0xff] %vm1695_vm14, %v1620_v8 }
 0x199   : > { %1702 = vst.msk [vmem:[#allocation2 + $0x30] sm:$0xff] %vm1695_vm14, %v1618_v9  ;;  %1659 = vrot.lane.b32.xlu1 %v7659_v15, %s7051_s27 }
 0x19a   : > { %1657 = vrot.lane.b32.xlu0 %v7668_v16, %s7051_s27 }
 0x19b   : > { %v1773_v20 = vpop.permute.xlu1 %1772 }
 0x19c   : > { %v1771_v21 = vpop.permute.xlu0 %1770  ;;  %1841 = vst.msk [vmem:[#allocation2 + $0xb7] sm:$0xff] %vm1818_vm15, %v1773_v20 }
 0x19d   : > { %1840 = vst.msk [vmem:[#allocation2 + $0xaf] sm:$0xfe] %vm1816_vm3, %v1771_v21  ;;  %1120 = vrot.lane.b32.xlu1 %v7687_v17, %s7047_s4 }
 0x19e   : > { %1118 = vrot.lane.b32.xlu0 %v7696_v18, %s7047_s4 }
 0x19f   : > { %v900_v22 = vpop.permute.xlu1 %899 }
 0x1a0   : > { %v898_v23 = vpop.permute.xlu0 %897  ;;  %965 = vst.msk [vmem:[#allocation2 + $0xd8] sm:$0xff] %vm939_vm4, %v900_v22 }
 0x1a1   : > { %964 = vst.msk [vmem:[#allocation2 + $0xd0] sm:$0xff] %vm939_vm4, %v898_v23  ;;  %1282 = vrot.lane.b32.xlu1 %v7659_v15, %s10319_s29 }
 0x1a2   : > { %1280 = vrot.lane.b32.xlu0 %v7668_v16, %s10319_s29 }
 0x1a3   : > { %v1243_v24 = vpop.permute.xlu1 %1242  ;;  %v1871_v29 = vld [vmem:[#allocation2 + $0xb8] sm:$0xff] }
 0x1a4   : > { %v1241_v25 = vpop.permute.xlu0 %1240  ;;  %v1870_v28 = vld [vmem:[#allocation2 + $0xb0] sm:$0xff]  ;;  %1330 = vst.msk [vmem:[#allocation2 + $0x48] sm:$0xff] %vm1320_vm9, %v1243_v24 }
 0x1a5   : > { %1329 = vst.msk [vmem:[#allocation2 + $0x40] sm:$0xff] %vm1320_vm9, %v1241_v25  ;;  %6581 = vmatprep.mubr.msk.f32.mxu1 %vm753_vm0, %v1870_v28  ;;  %1627 = vrot.lane.b32.xlu1 %v7687_v17, %s7051_s27 }
 0x1a6   : > { %1625 = vrot.lane.b32.xlu0 %v7696_v18, %s7051_s27  ;;  %6582 = vmatmul.mubr.msk.f32.gmra.mrb[6].mxu1 %vm753_vm0, %v1871_v29 }
 0x1a7   : > { %v1404_v30 = vpop.permute.xlu1 %1403 }
 0x1a8   : > { %v1402_v31 = vpop.permute.xlu0 %1401  ;;  %1476 = vst.msk [vmem:[#allocation2 + $0xc7] sm:$0xff] %vm1451_vm10, %v1404_v30 }
 0x1a9   : > { %1475 = vst.msk [vmem:[#allocation2 + $0xbf] sm:$0xfe] %vm1449_vm11, %v1402_v31  ;;  %1780 = vrot.lane.b32.xlu1 %v7659_v15, %s10317_s25 }
 0x1aa   : > { %1778 = vrot.lane.b32.xlu0 %v7668_v16, %s10317_s25 }
 0x1ab   : > { %v1741_v34 = vpop.permute.xlu1 %1740 }
 0x1ac   : > { %v1739_v35 = vpop.permute.xlu0 %1738  ;;  %1825 = vst.msk [vmem:[#allocation2 + $0x37] sm:$0xff] %vm1818_vm15, %v1741_v34 }
 0x1ad   : > { %1824 = vst.msk [vmem:[#allocation2 + $0x2f] sm:$0xfe] %vm1816_vm3, %v1739_v35  ;;  %1250 = vrot.lane.b32.xlu1 %v7687_v17, %s10319_s29 }
 0x1ae   : > { %1248 = vrot.lane.b32.xlu0 %v7696_v18, %s10319_s29 }
 0x1af   : > { %v868_v26 = vpop.permute.xlu1 %867 }
 0x1b0   : > { %v866_v27 = vpop.permute.xlu0 %865  ;;  %949 = vst.msk [vmem:[#allocation2 + $0x58] sm:$0xff] %vm939_vm4, %v868_v26 }
 0x1b1   : > { %948 = vst.msk [vmem:[#allocation2 + $0x50] sm:$0xff] %vm939_vm4, %v866_v27  ;;  %1411 = vrot.lane.b32.xlu1 %v7659_v15, %s10357_s3 }
 0x1b2   : > { %1409 = vrot.lane.b32.xlu0 %v7668_v16, %s10357_s3 }
 0x1b3   : > { %v1021_v36 = vpop.permute.xlu1 %1020  ;;  %v1855_v39 = vld [vmem:[#allocation2 + $0x38] sm:$0xff] }
 0x1b4   : > { %v1019_v37 = vpop.permute.xlu0 %1018  ;;  %v1854_v38 = vld [vmem:[#allocation2 + $0x30] sm:$0xff]  ;;  %1087 = vst.msk [vmem:[#allocation2 + $0xd7] sm:$0xff] %vm1062_vm6, %v1021_v36 }
 0x1b5   : > { %1086 = vst.msk [vmem:[#allocation2 + $0xcf] sm:$0xfe] %vm1060_vm5, %v1019_v37  ;;  %6557 = vmatprep.mubr.msk.f32.mxu0 %vm753_vm0, %v1854_v38  ;;  %1748 = vrot.lane.b32.xlu1 %v7687_v17, %s10317_s25 }
 0x1b6   : > { %1746 = vrot.lane.b32.xlu0 %v7696_v18, %s10317_s25  ;;  %6558 = vmatmul.mubr.msk.f32.gmra.mrb[6].mxu0 %vm753_vm0, %v1855_v39 }
 0x1b7   : > { %v1372_v32 = vpop.permute.xlu1 %1371 }
 0x1b8   : > { %v1370_v33 = vpop.permute.xlu0 %1369  ;;  %1460 = vst.msk [vmem:[#allocation2 + $0x47] sm:$0xff] %vm1451_vm10, %v1372_v32 }
 0x1b9   : > { %1459 = vst.msk [vmem:[#allocation2 + $0x3f] sm:$0xfe] %vm1449_vm11, %v1370_v33  ;;  %v6574_v41 = vpop.f32.mrb[0].mxu1  ;;  %875 = vrot.lane.b32.xlu1 %v7687_v17, %s7046_s28 }
 0x1ba   : > { %873 = vrot.lane.b32.xlu0 %v7696_v18, %s7046_s28  ;;  %v2138_v42 = vadd.f32 %v6574_v41, %v7955_v40  ;;  %v2132_v43 = vpop.f32.mrb[1].mxu1 }
 0x1bb   : > { %v2133_v44 = vadd.f32 %v7955_v40, %v2132_v43  ;;  %v1534_v45 = vpop.permute.xlu1 %1533 }
 0x1bc   : > { %v1532_v46 = vpop.permute.xlu0 %1531  ;;  %v2228_v47 = vmax.f32 %v2138_v42, 0.0  ;;  %1600 = vst.msk [vmem:[#allocation2 + $0xc9] sm:$0x7f] %vm1575_vm12, %v1534_v45 }
 0x1bd   : > { %1599 = vst.msk [vmem:[#allocation2 + $0xc1] sm:$0xff] %vm1573_vm13, %v1532_v46  ;;  %v2227_v48 = vmax.f32 %v2133_v44, 0.0  ;;  %1379 = vrot.lane.b32.xlu1 %v7687_v17, %s10357_s3 }
 0x1be   : > { %1377 = vrot.lane.b32.xlu0 %v7696_v18, %s10357_s3 }
 0x1bf   : > { %v6810_v50 = vpack.c.bf16 %v2228_v47, %v2227_v48  ;;  %v989_v51 = vpop.permute.xlu1 %988 }
 0x1c0   : > { %v987_v52 = vpop.permute.xlu0 %986  ;;  %1071 = vst.msk [vmem:[#allocation2 + $0x57] sm:$0xff] %vm1062_vm6, %v989_v51 }
 0x1c1   : > { %1070 = vst.msk [vmem:[#allocation2 + $0x4f] sm:$0xfe] %vm1060_vm5, %v987_v52  ;;  %6811 = vmatprep.subr.bf16.mxu1 %v6810_v50  ;;  %1541 = vrot.lane.b32.xlu1 %v7972_v49, %s10359_s23 }
 0x1c2   : > { %1539 = vrot.lane.b32.xlu0 %v7975_v53, %s10359_s23 }
 0x1c3   : > { %v1149_v54 = vpop.permute.xlu1 %1148 }
 0x1c4   : > { %v1147_v55 = vpop.permute.xlu0 %1146  ;;  %1219 = vst.msk [vmem:[#allocation2 + $0xd9] sm:$0x7f] %vm1192_vm7, %v1149_v54 }
 0x1c5   : > { %1218 = vst.msk [vmem:[#allocation2 + $0xd1] sm:$0xff] %vm1190_vm8, %v1147_v55  ;;  %996 = vrot.lane.b32.xlu1 %v7687_v17, %s10358_s21 }
 0x1c6   : > { %994 = vrot.lane.b32.xlu0 %v7696_v18, %s10358_s21 }
 0x1c7   : > { %v1502_v56 = vpop.permute.xlu1 %1501 }
 0x1c8   : > { %v1500_v57 = vpop.permute.xlu0 %1499  ;;  %1584 = vst.msk [vmem:[#allocation2 + $0x49] sm:$0x7f] %vm1575_vm12, %v1502_v56 }
 0x1c9   : > { %1583 = vst.msk [vmem:[#allocation2 + $0x41] sm:$0xff] %vm1573_vm13, %v1500_v57  ;;  %v6550_v58 = vpop.f32.mrb[0].mxu0  ;;  %1509 = vrot.lane.b32.xlu1 %v7231_v2, %s10359_s23 }
 0x1ca   : > { %v2058_v59 = vadd.f32 %v6550_v58, %v7955_v40  ;;  %v2052_v62 = vpop.f32.mrb[1].mxu0  ;;  %1507 = vrot.lane.b32.xlu0 %v7228_v1, %s10359_s23 }
 0x1cb   : > { %v2053_v17 = vadd.f32 %v7955_v40, %v2052_v62  ;;  %v1656_v63 = vpop.permute.xlu1 %1655 }
 0x1cc   : > { %v1654_v18 = vpop.permute.xlu0 %1653  ;;  %v2212_v0 = vmax.f32 %v2058_v59, 0.0  ;;  %1721 = vst.msk [vmem:[#allocation2 + $0xc8] sm:$0xff] %vm1695_vm14, %v1656_v63 }
 0x1cd   : > { %1720 = vst.msk [vmem:[#allocation2 + $0xc0] sm:$0xff] %vm1695_vm14, %v1654_v18  ;;  %v2211_v5 = vmax.f32 %v2053_v17, 0.0  ;;  %1663 = vrot.lane.b32.xlu1 %v7972_v49, %s7051_s27 }
 0x1ce   : > { %1661 = vrot.lane.b32.xlu0 %v7975_v53, %s7051_s27 }
 0x1cf   : > { %v6812_v6 = vpack.c.bf16 %v2212_v0, %v2211_v5  ;;  %v1117_v7 = vpop.permute.xlu1 %1116 }
 0x1d0   : > { %v1115_v10 = vpop.permute.xlu0 %1114  ;;  %1203 = vst.msk [vmem:[#allocation2 + $0x59] sm:$0x7f] %vm1192_vm7, %v1117_v7 }
 0x1d1   : > { %1202 = vst.msk [vmem:[#allocation2 + $0x51] sm:$0xff] %vm1190_vm8, %v1115_v10  ;;  %6813 = vmatpush3.bf16.msra.mxu1 %v6812_v6  ;;  %907 = vrot.lane.b32.xlu1 %v7659_v15, %s7046_s28 }
 0x1d2   : > { %905 = vrot.lane.b32.xlu0 %v7668_v16, %s7046_s28  ;;  %s10362_s28 = smov 16  }
 0x1d3   : > { %v1279_v11 = vpop.permute.xlu1 %1278 }
 0x1d4   : > { %v1277_v60 = vpop.permute.xlu0 %1276  ;;  %1348 = vst.msk [vmem:[#allocation2 + $0xd8] sm:$0xff] %vm1320_vm9, %v1279_v11 }
 0x1d5   : > { %1347 = vst.msk [vmem:[#allocation2 + $0xd0] sm:$0xff] %vm1320_vm9, %v1277_v60  ;;  %1124 = vrot.lane.b32.xlu1 %v7231_v2, %s7047_s4 }
 0x1d6   : > { %1122 = vrot.lane.b32.xlu0 %v7228_v1, %s7047_s4 }
 0x1d7   : > { %v1624_v61 = vpop.permute.xlu1 %1623 }
 0x1d8   : > { %v1622_v12 = vpop.permute.xlu0 %1621  ;;  %1705 = vst.msk [vmem:[#allocation2 + $0x48] sm:$0xff] %vm1695_vm14, %v1624_v61 }
 0x1d9   : > { %1704 = vst.msk [vmem:[#allocation2 + $0x40] sm:$0xff] %vm1695_vm14, %v1622_v12  ;;  %1631 = vrot.lane.b32.xlu1 %v7231_v2, %s7051_s27 }
 0x1da   : > { %1629 = vrot.lane.b32.xlu0 %v7228_v1, %s7051_s27 }
 0x1db   : > { %v1777_v13 = vpop.permute.xlu1 %1776 }
 0x1dc   : > { %v1775_v14 = vpop.permute.xlu0 %1774  ;;  %1843 = vst.msk [vmem:[#allocation2 + $0xc7] sm:$0xff] %vm1818_vm15, %v1777_v13 }
 0x1dd   : > { %1842 = vst.msk [vmem:[#allocation2 + $0xbf] sm:$0xfe] %vm1816_vm3, %v1775_v14  ;;  %1784 = vrot.lane.b32.xlu1 %v7972_v49, %s10317_s25 }
 0x1de   : > { %1782 = vrot.lane.b32.xlu0 %v7975_v53, %s10317_s25 }
 0x1df   : > { %v904_v19 = vpop.permute.xlu1 %903 }
 0x1e0   : > { %v902_v8 = vpop.permute.xlu0 %901  ;;  %967 = vst.msk [vmem:[#allocation2 + $0xe8] sm:$0xff] %vm939_vm4, %v904_v19 }
 0x1e1   : > { %966 = vst.msk [vmem:[#allocation2 + $0xe0] sm:$0xff] %vm939_vm4, %v902_v8  ;;  %1028 = vrot.lane.b32.xlu1 %v7659_v15, %s10358_s21 }
 0x1e2   : > { %1026 = vrot.lane.b32.xlu0 %v7668_v16, %s10358_s21 }
 0x1e3   : > { %v1247_v9 = vpop.permute.xlu1 %1246  ;;  %v1873_v22 = vld [vmem:[#allocation2 + $0xc8] sm:$0xff] }
 0x1e4   : > { %v1245_v20 = vpop.permute.xlu0 %1244  ;;  %v1872_v21 = vld [vmem:[#allocation2 + $0xc0] sm:$0xff]  ;;  %1332 = vst.msk [vmem:[#allocation2 + $0x58] sm:$0xff] %vm1320_vm9, %v1247_v9 }
 0x1e5   : > { %1331 = vst.msk [vmem:[#allocation2 + $0x50] sm:$0xff] %vm1320_vm9, %v1245_v20  ;;  %6584 = vmatprep.mubr.msk.f32.mxu1 %vm753_vm0, %v1872_v21  ;;  %1254 = vrot.lane.b32.xlu1 %v7231_v2, %s10319_s29 }
 0x1e6   : > { %6585 = vmatmul.mubr.msk.f32.gmra.mrb[8].mxu1 %vm753_vm0, %v1873_v22  ;;  %1252 = vrot.lane.b32.xlu0 %v7228_v1, %s10319_s29 }
 0x1e7   : > { %v1408_v15 = vpop.permute.xlu1 %1407 }
 0x1e8   : > { %v1406_v16 = vpop.permute.xlu0 %1405  ;;  %1478 = vst.msk [vmem:[#allocation2 + $0xd7] sm:$0xff] %vm1451_vm10, %v1408_v15 }
 0x1e9   : > { %1477 = vst.msk [vmem:[#allocation2 + $0xcf] sm:$0xfe] %vm1449_vm11, %v1406_v16  ;;  %1752 = vrot.lane.b32.xlu1 %v7231_v2, %s10317_s25 }
 0x1ea   : > { %1750 = vrot.lane.b32.xlu0 %v7228_v1, %s10317_s25 }
 0x1eb   : > { %v1745_v23 = vpop.permute.xlu1 %1744 }
 0x1ec   : > { %v1743_v24 = vpop.permute.xlu0 %1742  ;;  %1827 = vst.msk [vmem:[#allocation2 + $0x47] sm:$0xff] %vm1818_vm15, %v1745_v23 }
 0x1ed   : > { %1826 = vst.msk [vmem:[#allocation2 + $0x3f] sm:$0xfe] %vm1816_vm3, %v1743_v24  ;;  %1156 = vrot.lane.b32.xlu1 %v7972_v49, %s7047_s4 }
 0x1ee   : > { %1154 = vrot.lane.b32.xlu0 %v7975_v53, %s7047_s4  ;;  %s10322_s4 = smov 40  }
 0x1ef   : > { %v872_v25 = vpop.permute.xlu1 %871 }
 0x1f0   : > { %v870_v28 = vpop.permute.xlu0 %869  ;;  %951 = vst.msk [vmem:[#allocation2 + $0x68] sm:$0xff] %vm939_vm4, %v872_v25 }
 0x1f1   : > { %950 = vst.msk [vmem:[#allocation2 + $0x60] sm:$0xff] %vm939_vm4, %v870_v28  ;;  %1383 = vrot.lane.b32.xlu1 %v7231_v2, %s10357_s3 }
 0x1f2   : > { %1381 = vrot.lane.b32.xlu0 %v7228_v1, %s10357_s3 }
 0x1f3   : > { %v1025_v29 = vpop.permute.xlu1 %1024  ;;  %v1857_v34 = vld [vmem:[#allocation2 + $0x48] sm:$0xff] }
 0x1f4   : > { %v1023_v30 = vpop.permute.xlu0 %1022  ;;  %v1856_v31 = vld [vmem:[#allocation2 + $0x40] sm:$0xff]  ;;  %1089 = vst.msk [vmem:[#allocation2 + $0xe7] sm:$0xff] %vm1062_vm6, %v1025_v29 }
 0x1f5   : > { %1088 = vst.msk [vmem:[#allocation2 + $0xdf] sm:$0xfe] %vm1060_vm5, %v1023_v30  ;;  %6560 = vmatprep.mubr.msk.f32.mxu0 %vm753_vm0, %v1856_v31  ;;  %1286 = vrot.lane.b32.xlu1 %v7972_v49, %s10319_s29 }
 0x1f6   : > { %6561 = vmatmul.mubr.msk.f32.gmra.mrb[8].mxu0 %vm753_vm0, %v1857_v34  ;;  %1284 = vrot.lane.b32.xlu0 %v7975_v53, %s10319_s29  ;;  %s10326_s29 = smov 64  }
 0x1f7   : > { %v1376_v2 = vpop.permute.xlu1 %1375 }
 0x1f8   : > { %v1374_v1 = vpop.permute.xlu0 %1373  ;;  %1462 = vst.msk [vmem:[#allocation2 + $0x57] sm:$0xff] %vm1451_vm10, %v1376_v2 }
 0x1f9   : > { %1461 = vst.msk [vmem:[#allocation2 + $0x4f] sm:$0xfe] %vm1449_vm11, %v1374_v1  ;;  %v6577_v35 = vpop.f32.mrb[2].mxu1  ;;  %1513 = vrot.lane.b32.xlu1 %v7234_v3, %s10359_s23 }
 0x1fa   : > { %v2148_v26 = vadd.f32 %v6577_v35, %v7955_v40  ;;  %v2142_v27 = vpop.f32.mrb[3].mxu1  ;;  %1511 = vrot.lane.b32.xlu0 %v7241_v4, %s10359_s23 }
 0x1fb   : > { %v2143_v36 = vadd.f32 %v7955_v40, %v2142_v27  ;;  %v1538_v37 = vpop.permute.xlu1 %1537 }
 0x1fc   : > { %v1536_v38 = vpop.permute.xlu0 %1535  ;;  %v2230_v39 = vmax.f32 %v2148_v26, 0.0  ;;  %1602 = vst.msk [vmem:[#allocation2 + $0xd9] sm:$0x7f] %vm1575_vm12, %v1538_v37 }
 0x1fd   : > { %1601 = vst.msk [vmem:[#allocation2 + $0xd1] sm:$0xff] %vm1573_vm13, %v1536_v38  ;;  %v2229_v32 = vmax.f32 %v2143_v36, 0.0  ;;  %1415 = vrot.lane.b32.xlu1 %v7972_v49, %s10357_s3 }
 0x1fe   : > { %1413 = vrot.lane.b32.xlu0 %v7975_v53, %s10357_s3  ;;  %s10363_s3 = smov 32  }
 0x1ff   : > { %v6814_v33 = vpack.c.bf16 %v2230_v39, %v2229_v32  ;;  %v993_v41 = vpop.permute.xlu1 %992 }
 0x200   : > { %v991_v42 = vpop.permute.xlu0 %990  ;;  %1073 = vst.msk [vmem:[#allocation2 + $0x67] sm:$0xff] %vm1062_vm6, %v993_v41 }
 0x201   : > { %1072 = vst.msk [vmem:[#allocation2 + $0x5f] sm:$0xfe] %vm1060_vm5, %v991_v42  ;;  %6815 = vmatprep.subr.bf16.mxu1 %v6814_v33  ;;  %1635 = vrot.lane.b32.xlu1 %v7234_v3, %s7051_s27 }
 0x202   : > { %1633 = vrot.lane.b32.xlu0 %v7241_v4, %s7051_s27  ;;  %s10377_s27 = smov 80  }
 0x203   : > { %v1153_v43 = vpop.permute.xlu1 %1152 }
 0x204   : > { %v1151_v44 = vpop.permute.xlu0 %1150  ;;  %1221 = vst.msk [vmem:[#allocation2 + $0xe9] sm:$0x7f] %vm1192_vm7, %v1153_v43 }
 0x205   : > { %1220 = vst.msk [vmem:[#allocation2 + $0xe1] sm:$0xff] %vm1190_vm8, %v1151_v44  ;;  %1756 = vrot.lane.b32.xlu1 %v7234_v3, %s10317_s25 }
 0x206   : > { %1754 = vrot.lane.b32.xlu0 %v7241_v4, %s10317_s25  ;;  %s8517_s25 = sshll.u32 %s10507_s22, 4  ;;  %s10333_s22 = smov 112  }
 0x207   : > { %v1506_v45 = vpop.permute.xlu1 %1505 }
 0x208   : > { %v1504_v46 = vpop.permute.xlu0 %1503  ;;  %1586 = vst.msk [vmem:[#allocation2 + $0x59] sm:$0x7f] %vm1575_vm12, %v1506_v45 }
 0x209   : > { %1585 = vst.msk [vmem:[#allocation2 + $0x51] sm:$0xff] %vm1573_vm13, %v1504_v46  ;;  %v6553_v47 = vpop.f32.mrb[2].mxu0 }
 0x20a   : > { %v2068_v48 = vadd.f32 %v6553_v47, %v7955_v40  ;;  %v2062_v49 = vpop.f32.mrb[3].mxu0 }
 0x20b   : > { %v2063_v50 = vadd.f32 %v7955_v40, %v2062_v49  ;;  %v1660_v51 = vpop.permute.xlu1 %1659 }
 0x20c   : > { %v1658_v52 = vpop.permute.xlu0 %1657  ;;  %v2214_v53 = vmax.f32 %v2068_v48, 0.0  ;;  %1723 = vst.msk [vmem:[#allocation2 + $0xd8] sm:$0xff] %vm1695_vm14, %v1660_v51 }
 0x20d   : > { %1722 = vst.msk [vmem:[#allocation2 + $0xd0] sm:$0xff] %vm1695_vm14, %v1658_v52  ;;  %v2213_v3 = vmax.f32 %v2063_v50, 0.0 }
 0x20f   : > { %v6816_v4 = vpack.c.bf16 %v2214_v53, %v2213_v3  ;;  %v1121_v54 = vpop.permute.xlu1 %1120 }
 0x210   : > { %v1119_v55 = vpop.permute.xlu0 %1118  ;;  %1205 = vst.msk [vmem:[#allocation2 + $0x69] sm:$0x7f] %vm1192_vm7, %v1121_v54 }
 0x211   : > { %1204 = vst.msk [vmem:[#allocation2 + $0x61] sm:$0xff] %vm1190_vm8, %v1119_v55  ;;  %6817 = vmatpush3.bf16.msra.mxu1 %v6816_v4 }
 0x213   : > { %v1283_v56 = vpop.permute.xlu1 %1282 }
 0x214   : > { %v1281_v57 = vpop.permute.xlu0 %1280  ;;  %1350 = vst.msk [vmem:[#allocation2 + $0xe8] sm:$0xff] %vm1320_vm9, %v1283_v56 }
 0x215   : > { %1349 = vst.msk [vmem:[#allocation2 + $0xe0] sm:$0xff] %vm1320_vm9, %v1281_v57 }
 0x217   : > { %v1628_v58 = vpop.permute.xlu1 %1627 }
 0x218   : > { %v1626_v59 = vpop.permute.xlu0 %1625  ;;  %1707 = vst.msk [vmem:[#allocation2 + $0x58] sm:$0xff] %vm1695_vm14, %v1628_v58 }
 0x219   : > { %1706 = vst.msk [vmem:[#allocation2 + $0x50] sm:$0xff] %vm1695_vm14, %v1626_v59 }
 0x21b   : > { %v1781_v62 = vpop.permute.xlu1 %1780 }
 0x21c   : > { %v1779_v17 = vpop.permute.xlu0 %1778  ;;  %1845 = vst.msk [vmem:[#allocation2 + $0xd7] sm:$0xff] %vm1818_vm15, %v1781_v62 }
 0x21d   : > { %1844 = vst.msk [vmem:[#allocation2 + $0xcf] sm:$0xfe] %vm1816_vm3, %v1779_v17 }
 0x21f   : > { %v1251_v63 = vpop.permute.xlu1 %1250 }
 0x220   : > { %v1249_v18 = vpop.permute.xlu0 %1248  ;;  %1334 = vst.msk [vmem:[#allocation2 + $0x68] sm:$0xff] %vm1320_vm9, %v1251_v63 }
 0x221   : > { %1333 = vst.msk [vmem:[#allocation2 + $0x60] sm:$0xff] %vm1320_vm9, %v1249_v18 }
 0x223   : > { %v1412_v0 = vpop.permute.xlu1 %1411  ;;  %v1875_v7 = vld [vmem:[#allocation2 + $0xd8] sm:$0xff] }
 0x224   : > { %v1410_v5 = vpop.permute.xlu0 %1409  ;;  %v1874_v6 = vld [vmem:[#allocation2 + $0xd0] sm:$0xff]  ;;  %1480 = vst.msk [vmem:[#allocation2 + $0xe7] sm:$0xff] %vm1451_vm10, %v1412_v0 }
 0x225   : > { %1479 = vst.msk [vmem:[#allocation2 + $0xdf] sm:$0xfe] %vm1449_vm11, %v1410_v5  ;;  %6587 = vmatprep.mubr.msk.f32.mxu1 %vm753_vm0, %v1874_v6 }
 0x226   : > { %6588 = vmatmul.mubr.msk.f32.gmra.mrb[10].mxu1 %vm753_vm0, %v1875_v7 }
 0x227   : > { %v1749_v10 = vpop.permute.xlu1 %1748 }
 0x228   : > { %v1747_v11 = vpop.permute.xlu0 %1746  ;;  %1829 = vst.msk [vmem:[#allocation2 + $0x57] sm:$0xff] %vm1818_vm15, %v1749_v10 }
 0x229   : > { %1828 = vst.msk [vmem:[#allocation2 + $0x4f] sm:$0xfe] %vm1816_vm3, %v1747_v11 }
 0x22b   : > { %v876_v60 = vpop.permute.xlu1 %875 }
 0x22c   : > { %v874_v61 = vpop.permute.xlu0 %873  ;;  %953 = vst.msk [vmem:[#allocation2 + $0x78] sm:$0xff] %vm939_vm4, %v876_v60 }
 0x22d   : > { %952 = vst.msk [vmem:[#allocation2 + $0x70] sm:$0xff] %vm939_vm4, %v874_v61 }
 0x22f   : > { %v1380_v12 = vpop.permute.xlu1 %1379  ;;  %v1859_v19 = vld [vmem:[#allocation2 + $0x58] sm:$0xff] }
 0x230   : > { %v1378_v13 = vpop.permute.xlu0 %1377  ;;  %v1858_v14 = vld [vmem:[#allocation2 + $0x50] sm:$0xff]  ;;  %1464 = vst.msk [vmem:[#allocation2 + $0x67] sm:$0xff] %vm1451_vm10, %v1380_v12 }
 0x231   : > { %1463 = vst.msk [vmem:[#allocation2 + $0x5f] sm:$0xfe] %vm1449_vm11, %v1378_v13  ;;  %6563 = vmatprep.mubr.msk.f32.mxu0 %vm753_vm0, %v1858_v14 }
 0x232   : > { %6564 = vmatmul.mubr.msk.f32.gmra.mrb[10].mxu0 %vm753_vm0, %v1859_v19 }
 0x233   : > { %v1542_v8 = vpop.permute.xlu1 %1541 }
 0x234   : > { %1604 = vst.msk [vmem:[#allocation2 + $0xe9] sm:$0x7f] %vm1575_vm12, %v1542_v8  ;;  %v1540_v9 = vpop.permute.xlu0 %1539 }
 0x235   : > { %1603 = vst.msk [vmem:[#allocation2 + $0xe1] sm:$0xff] %vm1573_vm13, %v1540_v9 }
 0x237   : > { %v997_v20 = vpop.permute.xlu1 %996 }
 0x238   : > { %1075 = vst.msk [vmem:[#allocation2 + $0x77] sm:$0xff] %vm1062_vm6, %v997_v20  ;;  %v995_v21 = vpop.permute.xlu0 %994 }
 0x239   : > { %1074 = vst.msk [vmem:[#allocation2 + $0x6f] sm:$0xfe] %vm1060_vm5, %v995_v21  ;;  %v6580_v22 = vpop.f32.mrb[4].mxu1 }
 0x23a   : > { %v2158_v15 = vadd.f32 %v6580_v22, %v7955_v40  ;;  %v2152_v16 = vpop.f32.mrb[5].mxu1 }
 0x23b   : > { %v2153_v23 = vadd.f32 %v7955_v40, %v2152_v16  ;;  %v1510_v24 = vpop.permute.xlu1 %1509 }
 0x23c   : > { %v2232_v25 = vmax.f32 %v2158_v15, 0.0  ;;  %1588 = vst.msk [vmem:[#allocation2 + $0x69] sm:$0x7f] %vm1575_vm12, %v1510_v24  ;;  %v1508_v28 = vpop.permute.xlu0 %1507 }
 0x23d   : > { %v2231_v29 = vmax.f32 %v2153_v23, 0.0  ;;  %1587 = vst.msk [vmem:[#allocation2 + $0x61] sm:$0xff] %vm1573_vm13, %v1508_v28 }
 0x23f   : > { %v6818_v30 = vpack.c.bf16 %v2232_v25, %v2231_v29  ;;  %v1664_v31 = vpop.permute.xlu1 %1663 }
 0x240   : > { %1725 = vst.msk [vmem:[#allocation2 + $0xe8] sm:$0xff] %vm1695_vm14, %v1664_v31  ;;  %v1662_v34 = vpop.permute.xlu0 %1661 }
 0x241   : > { %1724 = vst.msk [vmem:[#allocation2 + $0xe0] sm:$0xff] %vm1695_vm14, %v1662_v34  ;;  %6819 = vmatprep.subr.bf16.mxu1 %v6818_v30 }
 0x243   : > { %v908_v2 = vpop.permute.xlu1 %907 }
 0x244   : > { %969 = vst.msk [vmem:[#allocation2 + $0xf8] sm:$0xff] %vm939_vm4, %v908_v2  ;;  %v906_v1 = vpop.permute.xlu0 %905 }
 0x245   : > { %968 = vst.msk [vmem:[#allocation2 + $0xf0] sm:$0xff] %vm939_vm4, %v906_v1  ;;  %vm2420_vm4 = vcmask 130112  }
 0x247   : > { %v1125_v35 = vpop.permute.xlu1 %1124 }
 0x248   : > { %1207 = vst.msk [vmem:[#allocation2 + $0x79] sm:$0x7f] %vm1192_vm7, %v1125_v35  ;;  %v1123_v26 = vpop.permute.xlu0 %1122 }
 0x249   : > { %1206 = vst.msk [vmem:[#allocation2 + $0x71] sm:$0xff] %vm1190_vm8, %v1123_v26  ;;  %v6556_v27 = vpop.f32.mrb[4].mxu0 }
 0x24a   : > { %v2078_v36 = vadd.f32 %v6556_v27, %v7955_v40  ;;  %v2072_v37 = vpop.f32.mrb[5].mxu0 }
 0x24b   : > { %v2073_v38 = vadd.f32 %v7955_v40, %v2072_v37  ;;  %v1632_v39 = vpop.permute.xlu1 %1631 }
 0x24c   : > { %v2216_v32 = vmax.f32 %v2078_v36, 0.0  ;;  %1709 = vst.msk [vmem:[#allocation2 + $0x68] sm:$0xff] %vm1695_vm14, %v1632_v39  ;;  %v1630_v33 = vpop.permute.xlu0 %1629  ;;  %v2244_v39 = vld [vmem:[%s10361_s6 + $0x8] sm:$0xff] }
 0x24d   : > { %v2215_v41 = vmax.f32 %v2073_v38, 0.0  ;;  %1708 = vst.msk [vmem:[#allocation2 + $0x60] sm:$0xff] %vm1695_vm14, %v1630_v33 }
 0x24f   : > { %v6820_v42 = vpack.c.bf16 %v2216_v32, %v2215_v41  ;;  %v1785_v43 = vpop.permute.xlu1 %1784 }
 0x250   : > { %1847 = vst.msk [vmem:[#allocation2 + $0xe7] sm:$0xff] %vm1818_vm15, %v1785_v43  ;;  %v1783_v44 = vpop.permute.xlu0 %1782 }
 0x251   : > { %1846 = vst.msk [vmem:[#allocation2 + $0xdf] sm:$0xfe] %vm1816_vm3, %v1783_v44  ;;  %6821 = vmatpush3.bf16.msra.mxu1 %v6820_v42 }
 0x253   : > { %v1029_v45 = vpop.permute.xlu1 %1028 }
 0x254   : > { %1091 = vst.msk [vmem:[#allocation2 + $0xf7] sm:$0xff] %vm1062_vm6, %v1029_v45  ;;  %v1027_v46 = vpop.permute.xlu0 %1026  ;;  %vm2482_vm6 = vcmask 260288  }
 0x255   : > { %1090 = vst.msk [vmem:[#allocation2 + $0xef] sm:$0xfe] %vm1060_vm5, %v1027_v46  ;;  %vm2449_vm5 = vcmask 195713  }
 0x257   : > { %v1255_v47 = vpop.permute.xlu1 %1254  ;;  %v1877_v48 = vld [vmem:[#allocation2 + $0xe8] sm:$0xff] }
 0x258   : > { %1336 = vst.msk [vmem:[#allocation2 + $0x78] sm:$0xff] %vm1320_vm9, %v1255_v47  ;;  %v1253_v49 = vpop.permute.xlu0 %1252  ;;  %v1876_v50 = vld [vmem:[#allocation2 + $0xe0] sm:$0xff] }
 0x259   : > { %1335 = vst.msk [vmem:[#allocation2 + $0x70] sm:$0xff] %vm1320_vm9, %v1253_v49  ;;  %6590 = vmatprep.mubr.msk.f32.mxu1 %vm753_vm0, %v1876_v50 }
 0x25a   : > { %6591 = vmatmul.mubr.msk.f32.gmra.mrb[12].mxu1 %vm753_vm0, %v1877_v48 }
 0x25b   : > { %v1753_v51 = vpop.permute.xlu1 %1752 }
 0x25c   : > { %1831 = vst.msk [vmem:[#allocation2 + $0x67] sm:$0xff] %vm1818_vm15, %v1753_v51  ;;  %v1751_v52 = vpop.permute.xlu0 %1750 }
 0x25d   : > { %1830 = vst.msk [vmem:[#allocation2 + $0x5f] sm:$0xfe] %vm1816_vm3, %v1751_v52 }
 0x25f   : > { %v1157_v53 = vpop.permute.xlu1 %1156 }
 0x260   : > { %1223 = vst.msk [vmem:[#allocation2 + $0xf9] sm:$0x7f] %vm1192_vm7, %v1157_v53  ;;  %v1155_v3 = vpop.permute.xlu0 %1154  ;;  %vm2515_vm7 = vcmask 326912  }
 0x261   : > { %1222 = vst.msk [vmem:[#allocation2 + $0xf1] sm:$0xff] %vm1190_vm8, %v1155_v3  ;;  %vm10341_vm8 = vcmask 392513  }
 0x263   : > { %v1384_v4 = vpop.permute.xlu1 %1383  ;;  %v1861_v54 = vld [vmem:[#allocation2 + $0x68] sm:$0xff] }
 0x264   : > { %1466 = vst.msk [vmem:[#allocation2 + $0x77] sm:$0xff] %vm1451_vm10, %v1384_v4  ;;  %v1382_v55 = vpop.permute.xlu0 %1381  ;;  %v1860_v56 = vld [vmem:[#allocation2 + $0x60] sm:$0xff] }
 0x265   : > { %1465 = vst.msk [vmem:[#allocation2 + $0x6f] sm:$0xfe] %vm1449_vm11, %v1382_v55  ;;  %6566 = vmatprep.mubr.msk.f32.mxu0 %vm753_vm0, %v1860_v56 }
 0x266   : > { %6567 = vmatmul.mubr.msk.f32.gmra.mrb[12].mxu0 %vm753_vm0, %v1861_v54 }
 0x267   : > { %v1287_v57 = vpop.permute.xlu1 %1286 }
 0x268   : > { %1352 = vst.msk [vmem:[#allocation2 + $0xf8] sm:$0xff] %vm1320_vm9, %v1287_v57  ;;  %v1285_v58 = vpop.permute.xlu0 %1284 }
 0x269   : > { %1351 = vst.msk [vmem:[#allocation2 + $0xf0] sm:$0xff] %vm1320_vm9, %v1285_v58  ;;  %vm10340_vm9 = vcmask 457088  }
 0x26b   : > { %v1514_v59 = vpop.permute.xlu1 %1513 }
 0x26c   : > { %1590 = vst.msk [vmem:[#allocation2 + $0x79] sm:$0x7f] %vm1575_vm12, %v1514_v59  ;;  %v1512_v62 = vpop.permute.xlu0 %1511  ;;  %vm2797_vm12 = vcmask 523264  }
 0x26d   : > { %1589 = vst.msk [vmem:[#allocation2 + $0x71] sm:$0xff] %vm1573_vm13, %v1512_v62  ;;  %vm2931_vm13 = vcmask 257024  }
 0x26f   : > { %v1416_v17 = vpop.permute.xlu1 %1415 }
 0x270   : > { %1482 = vst.msk [vmem:[#allocation2 + $0xf7] sm:$0xff] %vm1451_vm10, %v1416_v17  ;;  %v1414_v63 = vpop.permute.xlu0 %1413  ;;  %vm10339_vm10 = vcmask 523712  }
 0x271   : > { %1481 = vst.msk [vmem:[#allocation2 + $0xef] sm:$0xfe] %vm1449_vm11, %v1414_v63  ;;  %vm10338_vm11 = vcmask 589313  }
 0x273   : > { %v1636_v18 = vpop.permute.xlu1 %1635 }
 0x274   : > { %1711 = vst.msk [vmem:[#allocation2 + $0x78] sm:$0xff] %vm1695_vm14, %v1636_v18  ;;  %v1634_v0 = vpop.permute.xlu0 %1633 }
 0x275   : > { %1710 = vst.msk [vmem:[#allocation2 + $0x70] sm:$0xff] %vm1695_vm14, %v1634_v0  ;;  %vm3066_vm14 = vcmask 125952  }
 0x277   : > { %v1757_v5 = vpop.permute.xlu1 %1756  ;;  %v1879_v6 = vld [vmem:[#allocation2 + $0xf8] sm:$0xff] }
 0x278   : > { %1833 = vst.msk [vmem:[#allocation2 + $0x77] sm:$0xff] %vm1818_vm15, %v1757_v5  ;;  %v1755_v7 = vpop.permute.xlu0 %1754  ;;  %v1878_v10 = vld [vmem:[#allocation2 + $0xf0] sm:$0xff]  ;;  %vm2946_vm15 = vcmask 125953  }
 0x279   : > { %1832 = vst.msk [vmem:[#allocation2 + $0x6f] sm:$0xfe] %vm1816_vm3, %v1755_v7  ;;  %v6583_v11 = vpop.f32.mrb[6].mxu1  ;;  %6593 = vmatprep.mubr.msk.f32.mxu1 %vm753_vm0, %v1878_v10  ;;  %vm3083_vm3 = vcmask 257152  }
 0x27a   : > { %v2168_v60 = vadd.f32 %v6583_v11, %v7955_v40  ;;  %v2162_v61 = vpop.f32.mrb[7].mxu1  ;;  %6594 = vmatmul.mubr.msk.f32.gmra.mrb[14].mxu1 %vm753_vm0, %v1879_v6 }
 0x27b   : > { %v2163_v12 = vadd.f32 %v7955_v40, %v2162_v61  ;;  %2323 = vmatprep.mubr.f32.mxu1 %v2244_v39 }
 0x27c   : > { %v2234_v13 = vmax.f32 %v2168_v60, 0.0 }
 0x27d   : > { %v2233_v14 = vmax.f32 %v2163_v12, 0.0 }
 0x27f   : > { %v6822_v19 = vpack.c.bf16 %v2234_v13, %v2233_v14  ;;  %v1863_v8 = vld [vmem:[#allocation2 + $0x78] sm:$0xff] }
 0x280   : > { %v1862_v9 = vld [vmem:[#allocation2 + $0x70] sm:$0xff] }
 0x281   : > { %6569 = vmatprep.mubr.msk.f32.mxu0 %vm753_vm0, %v1862_v9  ;;  %6823 = vmatprep.subr.bf16.mxu1 %v6822_v19 }
 0x282   : > { %6570 = vmatmul.mubr.msk.f32.gmra.mrb[14].mxu0 %vm753_vm0, %v1863_v8  ;;  %vm10337_vm0 = vcmask 588800  }
 0x289   : > { %v6559_v20 = vpop.f32.mrb[6].mxu0 }
 0x28a   : > { %v2088_v21 = vadd.f32 %v6559_v20, %v7955_v40  ;;  %v2082_v22 = vpop.f32.mrb[7].mxu0 }
 0x28b   : > { %v2083_v15 = vadd.f32 %v7955_v40, %v2082_v22  ;;  %v2246_v22 = vld [vmem:[%s10361_s6 + $0x18] sm:$0xff] }
 0x28c   : > { %v2218_v16 = vmax.f32 %v2088_v21, 0.0  ;;  %v2243_v21 = vld [vmem:[%s10361_s6] sm:$0xff] }
 0x28d   : > { %v2217_v23 = vmax.f32 %v2083_v15, 0.0  ;;  %v2245_v15 = vld [vmem:[%s10361_s6 + $0x10] sm:$0xff] }
 0x28f   : > { %v6824_v24 = vpack.c.bf16 %v2218_v16, %v2217_v23  ;;  %v2247_v16 = vld [vmem:[%s10361_s6 + $0x20] sm:$0xff]  ;;  %v2250_v23 = vld [vmem:[%s10361_s6 + $0x38] sm:$0xff] }
 0x291   : > { %6825 = vmatpush3.bf16.msra.mxu1 %v6824_v24  ;;  %v2249_v24 = vld [vmem:[%s10361_s6 + $0x30] sm:$0xff] }
 0x2b9   : > { %v6586_v25 = vpop.f32.mrb[8].mxu1 }
 0x2ba   : > { %v2178_v28 = vadd.f32 %v6586_v25, %v7955_v40  ;;  %v2172_v29 = vpop.f32.mrb[9].mxu1  ;;  %v2252_v25 = vld [vmem:[%s10361_s6 + $0x48] sm:$0xff] }
 0x2bb   : > { %v2173_v30 = vadd.f32 %v7955_v40, %v2172_v29  ;;  %v2254_v29 = vld [vmem:[%s10361_s6 + $0x58] sm:$0xff] }
 0x2bc   : > { %v2236_v31 = vmax.f32 %v2178_v28, 0.0  ;;  %v2251_v28 = vld [vmem:[%s10361_s6 + $0x40] sm:$0xff] }
 0x2bd   : > { %v2235_v34 = vmax.f32 %v2173_v30, 0.0  ;;  %v2253_v30 = vld [vmem:[%s10361_s6 + $0x50] sm:$0xff] }
 0x2bf   : > { %v6826_v2 = vpack.c.bf16 %v2236_v31, %v2235_v34  ;;  %v2256_v31 = vld [vmem:[%s10361_s6 + $0x68] sm:$0xff]  ;;  %v2255_v34 = vld [vmem:[%s10361_s6 + $0x60] sm:$0xff] }
 0x2c1   : > { %6827 = vmatprep.subr.bf16.mxu1 %v6826_v2  ;;  %v2258_v2 = vld [vmem:[%s10361_s6 + $0x78] sm:$0xff] }
 0x2c9   : > { %v6562_v1 = vpop.f32.mrb[8].mxu0 }
 0x2ca   : > { %v2098_v35 = vadd.f32 %v6562_v1, %v7955_v40  ;;  %v2092_v26 = vpop.f32.mrb[9].mxu0  ;;  %v2257_v1 = vld [vmem:[%s10361_s6 + $0x70] sm:$0xff] }
 0x2cb   : > { %v2093_v27 = vadd.f32 %v7955_v40, %v2092_v26 }
 0x2cc   : > { %v2220_v36 = vmax.f32 %v2098_v35, 0.0  ;;  %v8237_v35 = vld [vmem:[#allocation4] sm:$0xff] }
 0x2cd   : > { %v2219_v37 = vmax.f32 %v2093_v27, 0.0  ;;  %2376 = vst.msk [vmem:[#allocation3 + $0x8] sm:$0xff] %vm10337_vm0, %v8237_v35  ;;  %2375 = vst.msk [vmem:[#allocation3] sm:$0xff] %vm10337_vm0, %v8237_v35 }
 0x2ce   : > { %2377 = vst.msk [vmem:[#allocation3 + $0x10] sm:$0xff] %vm10337_vm0, %v8237_v35  ;;  %2378 = vst.msk [vmem:[#allocation3 + $0x18] sm:$0xff] %vm10337_vm0, %v8237_v35 }
 0x2cf   : > { %v6828_v38 = vpack.c.bf16 %v2220_v36, %v2219_v37  ;;  %2379 = vst.msk [vmem:[#allocation3 + $0x20] sm:$0xff] %vm10337_vm0, %v8237_v35  ;;  %2380 = vst.msk [vmem:[#allocation3 + $0x28] sm:$0xff] %vm10337_vm0, %v8237_v35 }
 0x2d0   : > { %2381 = vst.msk [vmem:[#allocation3 + $0x30] sm:$0xff] %vm10337_vm0, %v8237_v35  ;;  %2382 = vst.msk [vmem:[#allocation3 + $0x38] sm:$0xff] %vm10337_vm0, %v8237_v35 }
 0x2d1   : > { %6829 = vmatpush3.bf16.msra.mxu1 %v6828_v38  ;;  %4426 = vst.msk [vmem:[#allocation6] sm:$0xff] %vm10337_vm0, %v8237_v35  ;;  %4427 = vst.msk [vmem:[#allocation6 + $0x8] sm:$0xff] %vm10337_vm0, %v8237_v35 }
 0x2d2   : > { %4428 = vst.msk [vmem:[#allocation6 + $0x10] sm:$0xff] %vm10337_vm0, %v8237_v35  ;;  %4429 = vst.msk [vmem:[#allocation6 + $0x18] sm:$0xff] %vm10337_vm0, %v8237_v35 }
 0x2d3   : > { %4430 = vst.msk [vmem:[#allocation6 + $0x20] sm:$0xff] %vm10337_vm0, %v8237_v35  ;;  %4431 = vst.msk [vmem:[#allocation6 + $0x28] sm:$0xff] %vm10337_vm0, %v8237_v35 }
 0x2d4   : > { %4432 = vst.msk [vmem:[#allocation6 + $0x30] sm:$0xff] %vm10337_vm0, %v8237_v35  ;;  %4433 = vst.msk [vmem:[#allocation6 + $0x38] sm:$0xff] %vm10337_vm0, %v8237_v35 }
 0x2d5   : > { %4434 = vst.msk [vmem:[#allocation6 + $0x40] sm:$0xff] %vm10337_vm0, %v8237_v35  ;;  %4435 = vst.msk [vmem:[#allocation6 + $0x48] sm:$0xff] %vm10337_vm0, %v8237_v35 }
 0x2d6   : > { %4436 = vst.msk [vmem:[#allocation6 + $0x50] sm:$0xff] %vm10337_vm0, %v8237_v35  ;;  %4437 = vst.msk [vmem:[#allocation6 + $0x58] sm:$0xff] %vm10337_vm0, %v8237_v35 }
 0x2d7   : > { %4438 = vst.msk [vmem:[#allocation6 + $0x60] sm:$0xff] %vm10337_vm0, %v8237_v35  ;;  %4439 = vst.msk [vmem:[#allocation6 + $0x68] sm:$0xff] %vm10337_vm0, %v8237_v35 }
 0x2d8   : > { %4440 = vst.msk [vmem:[#allocation6 + $0x70] sm:$0xff] %vm10337_vm0, %v8237_v35  ;;  %4441 = vst.msk [vmem:[#allocation6 + $0x78] sm:$0xff] %vm10337_vm0, %v8237_v35 }
 0x2d9   : > { %4442 = vst.msk [vmem:[#allocation6 + $0x80] sm:$0xff] %vm10337_vm0, %v8237_v35  ;;  %4443 = vst.msk [vmem:[#allocation6 + $0x88] sm:$0xff] %vm10337_vm0, %v8237_v35 }
 0x2da   : > { %4444 = vst.msk [vmem:[#allocation6 + $0x90] sm:$0xff] %vm10337_vm0, %v8237_v35  ;;  %4445 = vst.msk [vmem:[#allocation6 + $0x98] sm:$0xff] %vm10337_vm0, %v8237_v35 }
 0x2db   : > { %4446 = vst.msk [vmem:[#allocation6 + $0xa0] sm:$0xff] %vm10337_vm0, %v8237_v35  ;;  %4447 = vst.msk [vmem:[#allocation6 + $0xa8] sm:$0xff] %vm10337_vm0, %v8237_v35 }
 0x2dc   : > { %4448 = vst.msk [vmem:[#allocation6 + $0xb0] sm:$0xff] %vm10337_vm0, %v8237_v35  ;;  %4449 = vst.msk [vmem:[#allocation6 + $0xb8] sm:$0xff] %vm10337_vm0, %v8237_v35 }
 0x2dd   : > { %4450 = vst.msk [vmem:[#allocation6 + $0xc0] sm:$0xff] %vm10337_vm0, %v8237_v35  ;;  %4451 = vst.msk [vmem:[#allocation6 + $0xc8] sm:$0xff] %vm10337_vm0, %v8237_v35 }
 0x2de   : > { %4452 = vst.msk [vmem:[#allocation6 + $0xd0] sm:$0xff] %vm10337_vm0, %v8237_v35  ;;  %4453 = vst.msk [vmem:[#allocation6 + $0xd8] sm:$0xff] %vm10337_vm0, %v8237_v35 }
 0x2df   : > { %4454 = vst.msk [vmem:[#allocation6 + $0xe0] sm:$0xff] %vm10337_vm0, %v8237_v35  ;;  %4455 = vst.msk [vmem:[#allocation6 + $0xe8] sm:$0xff] %vm10337_vm0, %v8237_v35 }
 0x2e0   : > { %4456 = vst.msk [vmem:[#allocation6 + $0xf0] sm:$0xff] %vm10337_vm0, %v8237_v35  ;;  %4457 = vst.msk [vmem:[#allocation6 + $0xf8] sm:$0xff] %vm10337_vm0, %v8237_v35 }
 0x2e1   : > { %2932 = vst.msk [vmem:[#allocation4 + $0x8] sm:$0xf] %vm2931_vm13, %v8237_v35  ;;  %2938 = vst.msk [vmem:[#allocation4 + $0x2c] sm:$0xf] %vm2931_vm13, %v8237_v35 }
 0x2e2   : > { %2934 = vst.msk [vmem:[#allocation4 + $0x14] sm:$0xf] %vm2931_vm13, %v8237_v35  ;;  %2936 = vst.msk [vmem:[#allocation4 + $0x20] sm:$0xf] %vm2931_vm13, %v8237_v35  ;;  %vm2962_vm13 = vcmask 257153  }
 0x2f9   : > { %v6589_v32 = vpop.f32.mrb[10].mxu1 }
 0x2fa   : > { %v2188_v33 = vadd.f32 %v6589_v32, %v7955_v40  ;;  %v2182_v41 = vpop.f32.mrb[11].mxu1 }
 0x2fb   : > { %v2183_v42 = vadd.f32 %v7955_v40, %v2182_v41 }
 0x2fc   : > { %v2238_v43 = vmax.f32 %v2188_v33, 0.0 }
 0x2fd   : > { %v2237_v44 = vmax.f32 %v2183_v42, 0.0 }
 0x2ff   : > { %v6830_v45 = vpack.c.bf16 %v2238_v43, %v2237_v44 }
 0x301   : > { %6831 = vmatprep.subr.bf16.mxu1 %v6830_v45 }
 0x305   : > { %v6565_v46 = vpop.f32.mrb[10].mxu0 }
 0x306   : > { %v2108_v47 = vadd.f32 %v6565_v46, %v7955_v40  ;;  %v2102_v48 = vpop.f32.mrb[11].mxu0 }
 0x307   : > { %v2103_v49 = vadd.f32 %v7955_v40, %v2102_v48  ;;  %v2364_v48 = vld [vmem:[%s10364_s7] sm:$0xff] }
 0x308   : > { %v2222_v50 = vmax.f32 %v2108_v47, 0.0 }
 0x309   : > { %v2221_v51 = vmax.f32 %v2103_v49, 0.0  ;;  %v2365_v49 = vld [vmem:[%s10364_s7 + $0x8] sm:$0xff] }
 0x30b   : > { %v6832_v52 = vpack.c.bf16 %v2222_v50, %v2221_v51  ;;  %v6842_v50 = vpack.c.bf16 %v2365_v49, %v2364_v48 }
 0x30d   : > { %6833 = vmatpush3.bf16.msra.mxu1 %v6832_v52 }
 0x32d   : > { %v6592_v53 = vpop.f32.mrb[12].mxu1 }
 0x32e   : > { %v2198_v3 = vadd.f32 %v6592_v53, %v7955_v40  ;;  %v2192_v4 = vpop.f32.mrb[13].mxu1 }
 0x32f   : > { %v2193_v54 = vadd.f32 %v7955_v40, %v2192_v4  ;;  %v2367_v4 = vld [vmem:[%s10364_s7 + $0x18] sm:$0xff] }
 0x330   : > { %v2240_v55 = vmax.f32 %v2198_v3, 0.0  ;;  %v2366_v3 = vld [vmem:[%s10364_s7 + $0x10] sm:$0xff] }
 0x331   : > { %v2239_v56 = vmax.f32 %v2193_v54, 0.0  ;;  %v6846_v54 = vpack.c.bf16 %v2367_v4, %v2366_v3 }
 0x333   : > { %v6834_v57 = vpack.c.bf16 %v2240_v55, %v2239_v56 }
 0x335   : > { %6835 = vmatprep.subr.bf16.mxu1 %v6834_v57 }
 0x339   : > { %v6568_v58 = vpop.f32.mrb[12].mxu0 }
 0x33a   : > { %v2118_v59 = vadd.f32 %v6568_v58, %v7955_v40  ;;  %v2112_v62 = vpop.f32.mrb[13].mxu0  ;;  %v2368_v58 = vld [vmem:[%s10364_s7 + $0x20] sm:$0xff] }
 0x33b   : > { %v2113_v17 = vadd.f32 %v7955_v40, %v2112_v62 }
 0x33c   : > { %v2224_v63 = vmax.f32 %v2118_v59, 0.0  ;;  %v2369_v59 = vld [vmem:[%s10364_s7 + $0x28] sm:$0xff] }
 0x33d   : > { %v2223_v18 = vmax.f32 %v2113_v17, 0.0  ;;  %v6850_v62 = vpack.c.bf16 %v2369_v59, %v2368_v58 }
 0x33f   : > { %v6836_v0 = vpack.c.bf16 %v2224_v63, %v2223_v18 }
 0x341   : > { %6837 = vmatpush3.bf16.msra.mxu1 %v6836_v0  ;;  %v2370_v0 = vld [vmem:[%s10364_s7 + $0x30] sm:$0xff] }
 0x34d   : > { %v6595_v5 = vpop.f32.mrb[14].mxu1 }
 0x34e   : > { %v2208_v6 = vadd.f32 %v6595_v5, %v7955_v40  ;;  %v2202_v7 = vpop.f32.mrb[15].mxu1  ;;  %v2371_v5 = vld [vmem:[%s10364_s7 + $0x38] sm:$0xff] }
 0x34f   : > { %v2203_v10 = vadd.f32 %v7955_v40, %v2202_v7  ;;  %v2372_v7 = vld [vmem:[%s10364_s7 + $0x40] sm:$0xff]  ;;  %s10376_s7 = sld [smem:[#allocation10_spill]] }
 0x350   : > { %v2242_v11 = vmax.f32 %v2208_v6, 0.0  ;;  %v6854_v6 = vpack.c.bf16 %v2371_v5, %v2370_v0 }
 0x351   : > { %v2241_v60 = vmax.f32 %v2203_v10, 0.0 }
 0x353   : > { %v6838_v61 = vpack.c.bf16 %v2242_v11, %v2241_v60 }
 0x355   : > { %v6571_v12 = vpop.f32.mrb[14].mxu0  ;;  %6839 = vmatprep.subr.bf16.mxu1 %v6838_v61 }
 0x356   : > { %v2128_v13 = vadd.f32 %v6571_v12, %v7955_v40  ;;  %v2122_v14 = vpop.f32.mrb[15].mxu0 }
 0x357   : > { %v2123_v19 = vadd.f32 %v7955_v40, %v2122_v14  ;;  %v2248_v40 = vld [vmem:[%s10361_s6 + $0x28] sm:$0xff] }
 0x358   : > { %v2226_v8 = vmax.f32 %v2128_v13, 0.0 }
 0x359   : > { %v2225_v9 = vmax.f32 %v2123_v19, 0.0 }
 0x35b   : > { %v6840_v20 = vpack.c.bf16 %v2226_v8, %v2225_v9 }
 0x35d   : > { %6841 = vmatpush3.bf16.msra.mxu1 %v6840_v20 }
 0x35e   : > { %6843 = vmatprep.subr.bf16.mxu1 %v6842_v50 }
 0x360   : > { %2324 = vmatmul.mubr.f32.vlgmr.msra.gmra.mrb[16].mxu1 %v2243_v21 }
 0x361   : > { %2328 = vmatprep.mubr.f32.mxu1 %v2246_v22  ;;  %6845 = vmatpush3.bf16.msra.mxu1 %v6842_v50 }
 0x362   : > { %6847 = vmatprep.subr.bf16.mxu1 %v6846_v54 }
 0x364   : > { %2329 = vmatmul.mubr.f32.gmra.mrb[18].mxu1 %v2245_v15 }
 0x365   : > { %2333 = vmatprep.mubr.f32.mxu1 %v2248_v40  ;;  %6849 = vmatpush3.bf16.msra.mxu1 %v6846_v54 }
 0x366   : > { %6851 = vmatprep.subr.bf16.mxu1 %v6850_v62 }
 0x368   : > { %2334 = vmatmul.mubr.f32.gmra.mrb[20].mxu1 %v2247_v16 }
 0x369   : > { %2338 = vmatprep.mubr.f32.mxu1 %v2250_v23  ;;  %6853 = vmatpush3.bf16.msra.mxu1 %v6850_v62 }
 0x36a   : > { %6855 = vmatprep.subr.bf16.mxu1 %v6854_v6 }
 0x36c   : > { %2339 = vmatmul.mubr.f32.gmra.mrb[22].mxu1 %v2249_v24 }
 0x36d   : > { %2343 = vmatprep.mubr.f32.mxu1 %v2252_v25  ;;  %6857 = vmatpush3.bf16.msra.mxu1 %v6854_v6 }
 0x36e   : > { %6612 = vmatprep.subr.mxu1 %v2372_v7 }
 0x370   : > { %2344 = vmatmul.mubr.f32.gmra.mrb[24].mxu1 %v2251_v28 }
 0x371   : > { %2348 = vmatprep.mubr.f32.mxu1 %v2254_v29  ;;  %6613 = vmatpush3.msra.mxu1 %v2372_v7 }
 0x374   : > { %2349 = vmatmul.mubr.f32.gmra.mrb[26].mxu1 %v2253_v30 }
 0x375   : > { %2353 = vmatprep.mubr.f32.mxu1 %v2256_v31 }
 0x378   : > { %2354 = vmatmul.mubr.f32.gmra.mrb[28].mxu1 %v2255_v34 }
 0x379   : > { %2358 = vmatprep.mubr.f32.mxu1 %v2258_v2 }
 0x37c   : > { %2359 = vmatmul.mubr.f32.gmra.mrb[30].mxu1 %v2257_v1 }
 0x433   : > { %v6352_v26 = vpop.f32.mrb[16].mxu1 }
 0x434   : > { %v6353_v27 = vpop.f32.mrb[17].mxu1 }
 0x435   : > { %v6354_v36 = vadd.f32 %v6353_v27, %v6352_v26 }
 0x437   : > { %2428 = vrot.lane.b32.xlu1 %v6354_v36, %s10362_s28  ;;  %2399 = vrot.lane.b32.xlu0 %v6354_v36, %s10358_s21  ;;  %v6355_v37 = vpop.f32.mrb[18].mxu1  ;;  %2385 = vst.msk [vmem:[#allocation3 + $0x9] sm:$0x7f] %vm2384_vm2, %v6354_v36 }
 0x438   : > { %v6356_v38 = vpop.f32.mrb[19].mxu1 }
 0x439   : > { %v6357_v39 = vadd.f32 %v6356_v38, %v6355_v37 }
 0x43b   : > { %2524 = vrot.lane.b32.xlu1 %v6354_v36, %s10322_s4  ;;  %2458 = vrot.lane.b32.xlu0 %v6354_v36, %s10359_s23  ;;  %v6358_v32 = vpop.f32.mrb[20].mxu1  ;;  %2386 = vst.msk [vmem:[#allocation3 + $0x11] sm:$0x7f] %vm2384_vm2, %v6357_v39 }
 0x43c   : > { %v6359_v33 = vpop.f32.mrb[21].mxu1 }
 0x43d   : > { %v6360_v41 = vadd.f32 %v6359_v33, %v6358_v32 }
 0x43f   : > { %2460 = vrot.lane.b32.xlu1 %v6357_v39, %s10359_s23  ;;  %2491 = vrot.lane.b32.xlu0 %v6354_v36, %s10363_s3  ;;  %v6361_v42 = vpop.f32.mrb[22].mxu1  ;;  %2387 = vst.msk [vmem:[#allocation3 + $0x19] sm:$0x7f] %vm2384_vm2, %v6360_v41 }
 0x440   : > { %v6362_v43 = vpop.f32.mrb[23].mxu1 }
 0x441   : > { %v8328_v44 = vadd.f32 %v6362_v43, %v6361_v42 }
 0x443   : > { %2401 = vrot.lane.b32.xlu1 %v6357_v39, %s10358_s21  ;;  %2493 = vrot.lane.b32.xlu0 %v6357_v39, %s10363_s3  ;;  %v6364_v45 = vpop.f32.mrb[24].mxu1  ;;  %2388 = vst.msk [vmem:[#allocation3 + $0x21] sm:$0x7f] %vm2384_vm2, %v8328_v44 }
 0x444   : > { %v6365_v46 = vpop.f32.mrb[25].mxu1 }
 0x445   : > { %v8334_v47 = vadd.f32 %v6365_v46, %v6364_v45 }
 0x447   : > { %2430 = vrot.lane.b32.xlu1 %v6357_v39, %s10362_s28  ;;  %2526 = vrot.lane.b32.xlu0 %v6357_v39, %s10322_s4  ;;  %v6367_v51 = vpop.f32.mrb[26].mxu1  ;;  %2389 = vst.msk [vmem:[#allocation3 + $0x29] sm:$0x7f] %vm2384_vm2, %v8334_v47  ;;  %s10369_s4 = smov 48  }
 0x448   : > { %v6368_v52 = vpop.f32.mrb[27].mxu1 }
 0x449   : > { %v8346_v53 = vadd.f32 %v6368_v52, %v6367_v51 }
 0x44b   : > { %2557 = vrot.lane.b32.xlu1 %v6357_v39, %s10328_s0  ;;  %2403 = vrot.lane.b32.xlu0 %v6360_v41, %s10358_s21  ;;  %v6370_v55 = vpop.f32.mrb[28].mxu1  ;;  %2390 = vst.msk [vmem:[#allocation3 + $0x31] sm:$0x7f] %vm2384_vm2, %v8346_v53 }
 0x44c   : > { %v6371_v56 = vpop.f32.mrb[29].mxu1 }
 0x44d   : > { %v6372_v57 = vadd.f32 %v6371_v56, %v6370_v55 }
 0x44f   : > { %2586 = vrot.lane.b32.xlu1 %v6357_v39, %s10324_s2  ;;  %2432 = vrot.lane.b32.xlu0 %v6360_v41, %s10362_s28  ;;  %v6373_v17 = vpop.f32.mrb[30].mxu1  ;;  %2391 = vst.msk [vmem:[#allocation3 + $0x39] sm:$0x7f] %vm2384_vm2, %v6372_v57 }
 0x450   : > { %v6374_v63 = vpop.f32.mrb[31].mxu1 }
 0x451   : > { %v6375_v18 = vadd.f32 %v6374_v63, %v6373_v17 }
 0x453   : > { %2615 = vrot.lane.b32.xlu1 %v6357_v39, %s10326_s29  ;;  %2559 = vrot.lane.b32.xlu0 %v6360_v41, %s10328_s0 }
 0x457   : > { %2462 = vrot.lane.b32.xlu1 %v6360_v41, %s10359_s23  ;;  %2588 = vrot.lane.b32.xlu0 %v6360_v41, %s10365_s30 }
 0x45b   : > { %2495 = vrot.lane.b32.xlu1 %v6360_v41, %s10363_s3  ;;  %2528 = vrot.lane.b32.xlu0 %v6360_v41, %s10366_s26 }
 0x45f   : > { %2617 = vrot.lane.b32.xlu1 %v6360_v41, %s10326_s29  ;;  %2464 = vrot.lane.b32.xlu0 %v8328_v44, %s10359_s23 }
 0x463   : > { %2497 = vrot.lane.b32.xlu1 %v8328_v44, %s10363_s3  ;;  %2405 = vrot.lane.b32.xlu0 %v8328_v44, %s10358_s21 }
 0x467   : > { %2434 = vrot.lane.b32.xlu1 %v8328_v44, %s10362_s28  ;;  %2530 = vrot.lane.b32.xlu0 %v8328_v44, %s10366_s26 }
 0x46b   : > { %2561 = vrot.lane.b32.xlu1 %v8328_v44, %s10328_s0  ;;  %2407 = vrot.lane.b32.xlu0 %v8334_v47, %s10358_s21 }
 0x46f   : > { %2590 = vrot.lane.b32.xlu1 %v8328_v44, %s10365_s30  ;;  %2436 = vrot.lane.b32.xlu0 %v8334_v47, %s10362_s28 }
 0x473   : > { %2619 = vrot.lane.b32.xlu1 %v8328_v44, %s10326_s29  ;;  %2563 = vrot.lane.b32.xlu0 %v8334_v47, %s10328_s0 }
 0x477   : > { %2466 = vrot.lane.b32.xlu1 %v8334_v47, %s10359_s23  ;;  %2592 = vrot.lane.b32.xlu0 %v8334_v47, %s10365_s30 }
 0x47b   : > { %2499 = vrot.lane.b32.xlu1 %v8334_v47, %s10363_s3  ;;  %2532 = vrot.lane.b32.xlu0 %v8334_v47, %s10366_s26 }
 0x47f   : > { %2621 = vrot.lane.b32.xlu1 %v8334_v47, %s10326_s29  ;;  %2468 = vrot.lane.b32.xlu0 %v8346_v53, %s10359_s23 }
 0x483   : > { %2501 = vrot.lane.b32.xlu1 %v8346_v53, %s10363_s3  ;;  %2409 = vrot.lane.b32.xlu0 %v8346_v53, %s10358_s21 }
 0x487   : > { %2534 = vrot.lane.b32.xlu1 %v8346_v53, %s10366_s26  ;;  %2438 = vrot.lane.b32.xlu0 %v8346_v53, %s10362_s28 }
 0x48b   : > { %2594 = vrot.lane.b32.xlu1 %v8346_v53, %s10365_s30  ;;  %2565 = vrot.lane.b32.xlu0 %v8346_v53, %s10328_s0 }
 0x48f   : > { %2470 = vrot.lane.b32.xlu1 %v6372_v57, %s10359_s23  ;;  %2623 = vrot.lane.b32.xlu0 %v8346_v53, %s10326_s29 }
 0x493   : > { %2596 = vrot.lane.b32.xlu1 %v6372_v57, %s10365_s30  ;;  %2567 = vrot.lane.b32.xlu0 %v6372_v57, %s10328_s0 }
 0x497   : > { %2411 = vrot.lane.b32.xlu1 %v6372_v57, %s10358_s21  ;;  %2503 = vrot.lane.b32.xlu0 %v6372_v57, %s10363_s3 }
 0x49b   : > { %2625 = vrot.lane.b32.xlu1 %v6372_v57, %s10326_s29  ;;  %2536 = vrot.lane.b32.xlu0 %v6372_v57, %s10366_s26 }
 0x49f   : > { %2569 = vrot.lane.b32.xlu1 %v6375_v18, %s10328_s0  ;;  %2440 = vrot.lane.b32.xlu0 %v6372_v57, %s10362_s28  ;;  %s10368_s0 = sld [smem:[#allocation9_spill]] }
 0x4a3   : > { %2598 = vrot.lane.b32.xlu1 %v6375_v18, %s10365_s30  ;;  %2472 = vrot.lane.b32.xlu0 %v6375_v18, %s10359_s23 }
 0x4a5   : > { %s694_s5 = scalar_lea.vmem %s10368_s0, %s8517_s25  ;;  %s10335_s0 = smov 96  }
 0x4a7   : > { %2627 = vrot.lane.b32.xlu1 %v6375_v18, %s10326_s29  ;;  %2505 = vrot.lane.b32.xlu0 %v6375_v18, %s10363_s3  ;;  %s9921_s29 = scalar_lea.vmem %s10307_s18, %s7219_s24 }
 0x4a9   : > { %v2429_v10 = vpop.permute.xlu1 %2428  ;;  %v2400_v11 = vpop.permute.xlu0 %2399 }
 0x4aa   : > { %2421 = vst.msk [vmem:[#allocation3 + $0x8] sm:$0xff] %vm2420_vm4, %v2400_v11 }
 0x4ab   : > { %2450 = vst.msk [vmem:[#allocation3 + $0x7] sm:$0xfe] %vm2449_vm5, %v2429_v10  ;;  %2538 = vrot.lane.b32.xlu0 %v6375_v18, %s10366_s26 }
 0x4ad   : > { %v2525_v60 = vpop.permute.xlu1 %2524  ;;  %v2459_v61 = vpop.permute.xlu0 %2458 }
 0x4ae   : > { %2483 = vst.msk [vmem:[#allocation3 + $0x1] sm:$0x7f] %vm2482_vm6, %v2459_v61 }
 0x4b1   : > { %v2461_v12 = vpop.permute.xlu1 %2460  ;;  %v2492_v13 = vpop.permute.xlu0 %2491 }
 0x4b2   : > { %2484 = vst.msk [vmem:[#allocation3 + $0x9] sm:$0x7f] %vm2482_vm6, %v2461_v12  ;;  %v2795_v12 = vld [vmem:[%s10367_s9] sm:$0xff] }
 0x4b3   : > { %2516 = vst.msk [vmem:[#allocation3] sm:$0xff] %vm2515_vm7, %v2492_v13  ;;  %6642 = vmatprep.mubr.msk.f32.mxu0 %vm2797_vm12, %v2795_v12  ;;  %v2885_v13 = vld [vmem:[%s694_s5] sm:$0xff] }
 0x4b4   : > { %2549 = vst.msk [vmem:[#allocation3 - $0x1] sm:$0xfe] %vm10341_vm8, %v2525_v60  ;;  %3071 = vrot.lane.b32.xlu0 %v2885_v13, %s10362_s28 }
 0x4b5   : > { %v2402_v14 = vpop.permute.xlu1 %2401  ;;  %v2494_v19 = vpop.permute.xlu0 %2493 }
 0x4b6   : > { %2422 = vst.msk [vmem:[#allocation3 + $0x10] sm:$0xff] %vm2420_vm4, %v2402_v14  ;;  %v2950_v14 = vrot.slane %v2885_v13, 7 }
 0x4b7   : > { %2517 = vst.msk [vmem:[#allocation3 + $0x8] sm:$0xff] %vm2515_vm7, %v2494_v19  ;;  %v3011_v19 = vrot.slane %v2885_v13, 5 }
 0x4b8   : > { %2953 = vrot.lane.b32.xlu1 %v2950_v14, %s10362_s28 }
 0x4b9   : > { %v2431_v8 = vpop.permute.xlu1 %2430  ;;  %v2527_v9 = vpop.permute.xlu0 %2526 }
 0x4ba   : > { %2451 = vst.msk [vmem:[#allocation3 + $0xf] sm:$0xfe] %vm2449_vm5, %v2431_v8  ;;  %v2886_v8 = vld [vmem:[%s694_s5 + $0x8] sm:$0xff]  ;;  %s10331_s5 = smov 80  }
 0x4bb   : > { %2550 = vst.msk [vmem:[#allocation3 + $0x7] sm:$0xfe] %vm10341_vm8, %v2527_v9  ;;  %v2891_v9 = vcombine.high %v2885_v13, %v2885_v13 }
 0x4bd   : > { %v2558_v20 = vpop.permute.xlu1 %2557  ;;  %v2404_v21 = vpop.permute.xlu0 %2403  ;;  %3073 = vrot.lane.b32.xlu1 %v2891_v9, %s10362_s28 }
 0x4be   : > { %2579 = vst.msk [vmem:[#allocation3 + $0x1] sm:$0x7f] %vm10340_vm9, %v2558_v20  ;;  %v3012_v20 = vrot.slane %v3011_v19, 4 }
 0x4bf   : > { %2423 = vst.msk [vmem:[#allocation3 + $0x18] sm:$0xff] %vm2420_vm4, %v2404_v21  ;;  %v8526_v21 = vrot.slane %v2886_v8, 7 }
 0x4c0   : > { %3109 = vrot.lane.b32.xlu0 %v3012_v20, %s10369_s4 }
 0x4c1   : > { %v2587_v22 = vpop.permute.xlu1 %2586  ;;  %v2433_v15 = vpop.permute.xlu0 %2432  ;;  %2979 = vrot.lane.b32.xlu1 %v2885_v13, %s10369_s4 }
 0x4c2   : > { %2608 = vst.msk [vmem:[#allocation3] sm:$0xff] %vm10339_vm10, %v2587_v22  ;;  %v3013_v22 = vrot.slane %v2891_v9, 5 }
 0x4c3   : > { %2452 = vst.msk [vmem:[#allocation3 + $0x17] sm:$0xfe] %vm2449_vm5, %v2433_v15 }
 0x4c4   : > { %2957 = vrot.lane.b32.xlu0 %v8526_v21, %s10362_s28  ;;  %v8532_v15 = vrot.slane %v3013_v22, 4  ;;  %v2909_v22 = vld [vmem:[%s10371_s10 + $0x80] sm:$0xff] }
 0x4c5   : > { %v2616_v40 = vpop.permute.xlu1 %2615  ;;  %v2560_v16 = vpop.permute.xlu0 %2559 }
 0x4c6   : > { %2637 = vst.msk [vmem:[#allocation3 - $0x1] sm:$0xfe] %vm10338_vm11, %v2616_v40  ;;  %3111 = vrot.lane.b32.xlu1 %v8532_v15, %s10369_s4  ;;  %v2951_v40 = vrot.slane %v2891_v9, 7 }
 0x4c7   : > { %2580 = vst.msk [vmem:[#allocation3 + $0x9] sm:$0x7f] %vm10340_vm9, %v2560_v16  ;;  %v3015_v16 = vrot.slane %v2886_v8, 5 }
 0x4c8   : > { %3075 = vrot.lane.b32.xlu0 %v2886_v8, %s10362_s28 }
 0x4c9   : > { %v2463_v23 = vpop.permute.xlu1 %2462  ;;  %v2589_v24 = vpop.permute.xlu0 %2588 }
 0x4ca   : > { %2485 = vst.msk [vmem:[#allocation3 + $0x11] sm:$0x7f] %vm2482_vm6, %v2463_v23  ;;  %2955 = vrot.lane.b32.xlu1 %v2951_v40, %s10362_s28  ;;  %v8543_v23 = vrot.slane %v3015_v16, 4 }
 0x4cb   : > { %2609 = vst.msk [vmem:[#allocation3 + $0x8] sm:$0xff] %vm10339_vm10, %v2589_v24  ;;  %v6176_v24 = vld [vmem:[%s10370_s8] ss:$0 sm:$0xff]  ;;  %s699_s8 = scalar_lea.vmem %s10376_s7, %s8517_s25  ;;  %s709_s7 = scalar_lea.vmem %s10308_s19, %s8517_s25 }
 0x4cc   : > { %3141 = vrot.lane.b32.xlu0 %v8526_v21, %s10331_s5 }
 0x4cd   : > { %v2496_v25 = vpop.permute.xlu1 %2495  ;;  %v2529_v28 = vpop.permute.xlu0 %2528  ;;  %v2644_v29 = vld [vmem:[#allocation3] sm:$0xff] }
 0x4ce   : > { %2518 = vst.msk [vmem:[#allocation3 + $0x10] sm:$0xff] %vm2515_vm7, %v2496_v25  ;;  %6614 = vmatprep.mubr.msk.f32.mxu1 %vm10337_vm0, %v2644_v29  ;;  %3017 = vrot.lane.b32.xlu1 %v3012_v20, %s10331_s5 }
 0x4cf   : > { %2551 = vst.msk [vmem:[#allocation3 + $0xf] sm:$0xfe] %vm10341_vm8, %v2529_v28 }
 0x4d0   : > { %2981 = vrot.lane.b32.xlu0 %v2891_v9, %s10369_s4 }
 0x4d1   : > { %v2618_v30 = vpop.permute.xlu1 %2617  ;;  %v2465_v31 = vpop.permute.xlu0 %2464 }
 0x4d2   : > { %2638 = vst.msk [vmem:[#allocation3 + $0x7] sm:$0xfe] %vm10338_vm11, %v2618_v30  ;;  %3139 = vrot.lane.b32.xlu1 %v2951_v40, %s10331_s5  ;;  %v8557_v30 = vcombine.high %v2886_v8, %v2886_v8 }
 0x4d3   : > { %2486 = vst.msk [vmem:[#allocation3 + $0x19] sm:$0x7f] %vm2482_vm6, %v2465_v31 }
 0x4d4   : > { %3049 = vrot.lane.b32.xlu0 %v2950_v14, %s10333_s22 }
 0x4d5   : > { %v2498_v34 = vpop.permute.xlu1 %2497  ;;  %v2406_v2 = vpop.permute.xlu0 %2405 }
 0x4d6   : > { %2519 = vst.msk [vmem:[#allocation3 + $0x18] sm:$0xff] %vm2515_vm7, %v2498_v34  ;;  %2983 = vrot.lane.b32.xlu1 %v2886_v8, %s10369_s4 }
 0x4d7   : > { %2424 = vst.msk [vmem:[#allocation3 + $0x20] sm:$0xff] %vm2420_vm4, %v2406_v2 }
 0x4d8   : > { %3113 = vrot.lane.b32.xlu0 %v8543_v23, %s10369_s4 }
 0x4d9   : > { %v2435_v1 = vpop.permute.xlu1 %2434  ;;  %v2531_v26 = vpop.permute.xlu0 %2530  ;;  %v2645_v27 = vld [vmem:[#allocation3 + $0x8] sm:$0xff] }
 0x4da   : > { %2453 = vst.msk [vmem:[#allocation3 + $0x1f] sm:$0xfe] %vm2449_vm5, %v2435_v1  ;;  %6615 = vmatmul.mubr.msk.f32.vlgmr.msra.gmra.mrb[32].mxu1 %vm10337_vm0, %v2645_v27  ;;  %3051 = vrot.lane.b32.xlu1 %v2951_v40, %s10333_s22  ;;  %v3048_v1 = vrot.slane %v8557_v30, 7  ;;  %v2910_v40 = vld [vmem:[%s10371_s10 + $0x88] sm:$0xff] }
 0x4db   : > { %2552 = vst.msk [vmem:[#allocation3 + $0x17] sm:$0xfe] %vm10341_vm8, %v2531_v26 }
 0x4dc   : > { %3167 = vrot.lane.b32.xlu0 %v2886_v8, %s10333_s22 }
 0x4dd   : > { %v2562_v36 = vpop.permute.xlu1 %2561  ;;  %v2408_v37 = vpop.permute.xlu0 %2407 }
 0x4de   : > { %2581 = vst.msk [vmem:[#allocation3 + $0x11] sm:$0x7f] %vm10340_vm9, %v2562_v36  ;;  %3165 = vrot.lane.b32.xlu1 %v2891_v9, %s10333_s22  ;;  %s10374_s22 = smov 112  }
 0x4df   : > { %2425 = vst.msk [vmem:[#allocation3 + $0x28] sm:$0xff] %vm2420_vm4, %v2408_v37 }
 0x4e0   : > { %3019 = vrot.lane.b32.xlu0 %v8532_v15, %s10331_s5 }
 0x4e1   : > { %v2591_v38 = vpop.permute.xlu1 %2590  ;;  %v2437_v39 = vpop.permute.xlu0 %2436 }
 0x4e2   : > { %2610 = vst.msk [vmem:[#allocation3 + $0x10] sm:$0xff] %vm10339_vm10, %v2591_v38  ;;  %3021 = vrot.lane.b32.xlu1 %v8543_v23, %s10331_s5 }
 0x4e3   : > { %2454 = vst.msk [vmem:[#allocation3 + $0x27] sm:$0xfe] %vm2449_vm5, %v2437_v39 }
 0x4e4   : > { %3077 = vrot.lane.b32.xlu0 %v8557_v30, %s10362_s28 }
 0x4e5   : > { %v2620_v32 = vpop.permute.xlu1 %2619  ;;  %v2564_v33 = vpop.permute.xlu0 %2563 }
 0x4e6   : > { %2639 = vst.msk [vmem:[#allocation3 + $0xf] sm:$0xfe] %vm10338_vm11, %v2620_v32  ;;  %3143 = vrot.lane.b32.xlu1 %v3048_v1, %s10331_s5  ;;  %s10372_s5 = smov 64  }
 0x4e7   : > { %2582 = vst.msk [vmem:[#allocation3 + $0x19] sm:$0x7f] %vm10340_vm9, %v2564_v33 }
 0x4e9   : > { %v2467_v41 = vpop.permute.xlu1 %2466  ;;  %v2593_v42 = vpop.permute.xlu0 %2592 }
 0x4ea   : > { %2487 = vst.msk [vmem:[#allocation3 + $0x21] sm:$0x7f] %vm2482_vm6, %v2467_v41 }
 0x4eb   : > { %2611 = vst.msk [vmem:[#allocation3 + $0x18] sm:$0xff] %vm10339_vm10, %v2593_v42 }
 0x4ed   : > { %v2500_v43 = vpop.permute.xlu1 %2499  ;;  %v2533_v44 = vpop.permute.xlu0 %2532  ;;  %v2646_v45 = vld [vmem:[#allocation3 + $0x10] sm:$0xff] }
 0x4ee   : > { %2520 = vst.msk [vmem:[#allocation3 + $0x20] sm:$0xff] %vm2515_vm7, %v2500_v43  ;;  %6617 = vmatprep.mubr.msk.f32.mxu1 %vm10337_vm0, %v2646_v45 }
 0x4ef   : > { %2553 = vst.msk [vmem:[#allocation3 + $0x1f] sm:$0xfe] %vm10341_vm8, %v2533_v44 }
 0x4f1   : > { %v2622_v46 = vpop.permute.xlu1 %2621  ;;  %v2469_v47 = vpop.permute.xlu0 %2468 }
 0x4f2   : > { %2640 = vst.msk [vmem:[#allocation3 + $0x17] sm:$0xfe] %vm10338_vm11, %v2622_v46 }
 0x4f3   : > { %2488 = vst.msk [vmem:[#allocation3 + $0x29] sm:$0x7f] %vm2482_vm6, %v2469_v47 }
 0x4f5   : > { %v2502_v48 = vpop.permute.xlu1 %2501  ;;  %v2410_v49 = vpop.permute.xlu0 %2409 }
 0x4f6   : > { %2521 = vst.msk [vmem:[#allocation3 + $0x28] sm:$0xff] %vm2515_vm7, %v2502_v48 }
 0x4f7   : > { %2426 = vst.msk [vmem:[#allocation3 + $0x30] sm:$0xff] %vm2420_vm4, %v2410_v49 }
 0x4f9   : > { %v2535_v50 = vpop.permute.xlu1 %2534  ;;  %v2439_v51 = vpop.permute.xlu0 %2438  ;;  %v2647_v52 = vld [vmem:[#allocation3 + $0x18] sm:$0xff] }
 0x4fa   : > { %2554 = vst.msk [vmem:[#allocation3 + $0x27] sm:$0xfe] %vm10341_vm8, %v2535_v50  ;;  %6618 = vmatmul.mubr.msk.f32.gmra.mrb[34].mxu1 %vm10337_vm0, %v2647_v52 }
 0x4fb   : > { %2455 = vst.msk [vmem:[#allocation3 + $0x2f] sm:$0xfe] %vm2449_vm5, %v2439_v51 }
 0x4fd   : > { %v2595_v53 = vpop.permute.xlu1 %2594  ;;  %v2566_v3 = vpop.permute.xlu0 %2565 }
 0x4fe   : > { %2583 = vst.msk [vmem:[#allocation3 + $0x21] sm:$0x7f] %vm10340_vm9, %v2566_v3 }
 0x4ff   : > { %2612 = vst.msk [vmem:[#allocation3 + $0x20] sm:$0xff] %vm10339_vm10, %v2595_v53 }
 0x501   : > { %v2471_v4 = vpop.permute.xlu1 %2470  ;;  %v2624_v54 = vpop.permute.xlu0 %2623 }
 0x502   : > { %2489 = vst.msk [vmem:[#allocation3 + $0x31] sm:$0x7f] %vm2482_vm6, %v2471_v4  ;;  %v2796_v4 = vld [vmem:[%s10367_s9 + $0x8] sm:$0xff]  ;;  %s10373_s9 = smov 96  }
 0x503   : > { %2641 = vst.msk [vmem:[#allocation3 + $0x1f] sm:$0xfe] %vm10338_vm11, %v2624_v54 }
 0x505   : > { %v2597_v55 = vpop.permute.xlu1 %2596  ;;  %v2568_v56 = vpop.permute.xlu0 %2567 }
 0x506   : > { %2584 = vst.msk [vmem:[#allocation3 + $0x29] sm:$0x7f] %vm10340_vm9, %v2568_v56 }
 0x507   : > { %2613 = vst.msk [vmem:[#allocation3 + $0x28] sm:$0xff] %vm10339_vm10, %v2597_v55 }
 0x509   : > { %v2412_v57 = vpop.permute.xlu1 %2411  ;;  %v2504_v58 = vpop.permute.xlu0 %2503 }
 0x50a   : > { %v2648_v59 = vld [vmem:[#allocation3 + $0x20] sm:$0xff]  ;;  %2427 = vst.msk [vmem:[#allocation3 + $0x38] sm:$0xff] %vm2420_vm4, %v2412_v57 }
 0x50b   : > { %2522 = vst.msk [vmem:[#allocation3 + $0x30] sm:$0xff] %vm2515_vm7, %v2504_v58  ;;  %6620 = vmatprep.mubr.msk.f32.mxu1 %vm10337_vm0, %v2648_v59 }
 0x50d   : > { %v2626_v62 = vpop.permute.xlu1 %2625  ;;  %v2537_v17 = vpop.permute.xlu0 %2536 }
 0x50e   : > { %2642 = vst.msk [vmem:[#allocation3 + $0x27] sm:$0xfe] %vm10338_vm11, %v2626_v62 }
 0x50f   : > { %2555 = vst.msk [vmem:[#allocation3 + $0x2f] sm:$0xfe] %vm10341_vm8, %v2537_v17 }
 0x511   : > { %v2570_v63 = vpop.permute.xlu1 %2569  ;;  %v2441_v18 = vpop.permute.xlu0 %2440 }
 0x512   : > { %2585 = vst.msk [vmem:[#allocation3 + $0x31] sm:$0x7f] %vm10340_vm9, %v2570_v63  ;;  %vm3161_vm9 = vcmask 913152  }
 0x513   : > { %2456 = vst.msk [vmem:[#allocation3 + $0x37] sm:$0xfe] %vm2449_vm5, %v2441_v18 }
 0x515   : > { %v2599_v0 = vpop.permute.xlu1 %2598  ;;  %v2473_v5 = vpop.permute.xlu0 %2472  ;;  %v2649_v6 = vld [vmem:[#allocation3 + $0x28] sm:$0xff] }
 0x516   : > { %2614 = vst.msk [vmem:[#allocation3 + $0x30] sm:$0xff] %vm10339_vm10, %v2599_v0  ;;  %6621 = vmatmul.mubr.msk.f32.gmra.mrb[36].mxu1 %vm10337_vm0, %v2649_v6  ;;  %vm3148_vm10 = vcmask 781953  }
 0x517   : > { %2490 = vst.msk [vmem:[#allocation3 + $0x39] sm:$0x7f] %vm2482_vm6, %v2473_v5 }
 0x519   : > { %v2628_v7 = vpop.permute.xlu1 %2627  ;;  %v2506_v10 = vpop.permute.xlu0 %2505 }
 0x51a   : > { %2643 = vst.msk [vmem:[#allocation3 + $0x2f] sm:$0xfe] %vm10338_vm11, %v2628_v7  ;;  %vm3135_vm11 = vcmask 650753  }
 0x51b   : > { %2523 = vst.msk [vmem:[#allocation3 + $0x38] sm:$0xff] %vm2515_vm7, %v2506_v10 }
 0x51d   : > { %v2539_v11 = vpop.permute.xlu0 %2538 }
 0x51e   : > { %2556 = vst.msk [vmem:[#allocation3 + $0x37] sm:$0xfe] %vm10341_vm8, %v2539_v11  ;;  %vm3174_vm8 = vcmask 1044352  }
 0x521   : > { %v2650_v60 = vld [vmem:[#allocation3 + $0x30] sm:$0xff] }
 0x522   : > { %6623 = vmatprep.mubr.msk.f32.mxu1 %vm10337_vm0, %v2650_v60 }
 0x525   : > { %v2651_v61 = vld [vmem:[#allocation3 + $0x38] sm:$0xff] }
 0x526   : > { %6624 = vmatmul.mubr.msk.f32.gmra.mrb[38].mxu1 %vm10337_vm0, %v2651_v61  ;;  %v3072_v54 = vpop.permute.xlu0 %3071  ;;  %vm3121_vm0 = vcmask 518528  }
 0x52a   : > { %v2954_v17 = vpop.permute.xlu1 %2953 }
 0x52f   : > { %v3074_v18 = vpop.permute.xlu1 %3073 }
 0x532   : > { %v8575_v55 = vpop.permute.xlu0 %3109 }
 0x533   : > { %v8587_v5 = vpop.permute.xlu1 %2979 }
 0x536   : > { %v2958_v56 = vpop.permute.xlu0 %2957 }
 0x538   : > { %v8591_v7 = vpop.permute.xlu1 %3111 }
 0x53a   : > { %v3076_v57 = vpop.permute.xlu0 %3075 }
 0x53e   : > { %v8577_v58 = vpop.permute.xlu0 %3141 }
 0x542   : > { %v8579_v59 = vpop.permute.xlu0 %2981 }
 0x546   : > { %v8581_v62 = vpop.permute.xlu0 %3049 }
 0x54a   : > { %v8583_v63 = vpop.permute.xlu0 %3113 }
 0x54e   : > { %v8585_v0 = vpop.permute.xlu0 %3167 }
 0x552   : > { %v8589_v35 = vpop.permute.xlu0 %3019 }
 0x556   : > { %v3078_v12 = vpop.permute.xlu0 %3077 }
 0x5ad   : > { %v6616_v25 = vpop.f32.mrb[32].mxu1 }
 0x5ae   : > { %v2754_v28 = vadd.f32 %v6616_v25, %v6176_v24  ;;  %v2748_v29 = vpop.f32.mrb[33].mxu1  ;;  %v2893_v25 = vld [vmem:[%s10371_s10] sm:$0xff] }
 0x5af   : > { %v2749_v31 = vadd.f32 %v6176_v24, %v2748_v29 }
 0x5b0   : > { %v2788_v34 = vmax.f32 %v2754_v28, 0.0  ;;  %v2894_v28 = vld [vmem:[%s10371_s10 + $0x8] sm:$0xff] }
 0x5b1   : > { %v2787_v2 = vmax.f32 %v2749_v31, 0.0  ;;  %v2956_v31 = vpop.permute.xlu1 %2955 }
 0x5b3   : > { %v6858_v26 = vpack.c.bf16 %v2788_v34, %v2787_v2  ;;  %v6876_v34 = vpack.c.bf16 %v2894_v28, %v2893_v25  ;;  %v2911_v2 = vld [vmem:[%s10371_s10 + $0x90] sm:$0xff]  ;;  %v2908_v25 = vld [vmem:[%s10371_s10 + $0x78] sm:$0xff] }
 0x5b5   : > { %6859 = vmatprep.subr.bf16.mxu0 %v6858_v26 }
 0x5b6   : > { %6861 = vmatpush3.bf16.msra.mxu0 %v6858_v26  ;;  %v2912_v26 = vld [vmem:[%s10371_s10 + $0x98] sm:$0xff] }
 0x5cd   : > { %v6619_v27 = vpop.f32.mrb[34].mxu1 }
 0x5ce   : > { %v2764_v36 = vadd.f32 %v6619_v27, %v6176_v24  ;;  %v2758_v37 = vpop.f32.mrb[35].mxu1  ;;  %v6878_v27 = vpack.c.bf16 %v2912_v26, %v2911_v2  ;;  %v2928_v26 = vld [vmem:[%s10371_s10 + $0x118] sm:$0xff] }
 0x5cf   : > { %v2759_v38 = vadd.f32 %v6176_v24, %v2758_v37  ;;  %v2896_v37 = vld [vmem:[%s10371_s10 + $0x18] sm:$0xff] }
 0x5d0   : > { %v2790_v39 = vmax.f32 %v2764_v36, 0.0  ;;  %v2895_v36 = vld [vmem:[%s10371_s10 + $0x10] sm:$0xff] }
 0x5d1   : > { %v2789_v32 = vmax.f32 %v2759_v38, 0.0  ;;  %v6880_v38 = vpack.c.bf16 %v2896_v37, %v2895_v36 }
 0x5d3   : > { %v6862_v33 = vpack.c.bf16 %v2790_v39, %v2789_v32  ;;  %v2913_v39 = vld [vmem:[%s10371_s10 + $0xa0] sm:$0xff]  ;;  %v2914_v32 = vld [vmem:[%s10371_s10 + $0xa8] sm:$0xff] }
 0x5d5   : > { %6863 = vmatprep.subr.bf16.mxu0 %v6862_v33 }
 0x5d6   : > { %6865 = vmatpush3.bf16.msra.mxu0 %v6862_v33  ;;  %v6882_v33 = vpack.c.bf16 %v2914_v32, %v2913_v39 }
 0x5e9   : > { %v6622_v41 = vpop.f32.mrb[36].mxu1 }
 0x5ea   : > { %v2774_v42 = vadd.f32 %v6622_v41, %v6176_v24  ;;  %v2768_v43 = vpop.f32.mrb[37].mxu1  ;;  %v2897_v41 = vld [vmem:[%s10371_s10 + $0x20] sm:$0xff] }
 0x5eb   : > { %v2769_v44 = vadd.f32 %v6176_v24, %v2768_v43 }
 0x5ec   : > { %v2792_v45 = vmax.f32 %v2774_v42, 0.0  ;;  %v2898_v42 = vld [vmem:[%s10371_s10 + $0x28] sm:$0xff] }
 0x5ed   : > { %v2791_v46 = vmax.f32 %v2769_v44, 0.0  ;;  %v6884_v43 = vpack.c.bf16 %v2898_v42, %v2897_v41  ;;  %v2915_v44 = vld [vmem:[%s10371_s10 + $0xb0] sm:$0xff] }
 0x5ef   : > { %v6866_v47 = vpack.c.bf16 %v2792_v45, %v2791_v46  ;;  %v2916_v45 = vld [vmem:[%s10371_s10 + $0xb8] sm:$0xff] }
 0x5f0   : > { %v6886_v46 = vpack.c.bf16 %v2916_v45, %v2915_v44 }
 0x5f1   : > { %6867 = vmatprep.subr.bf16.mxu0 %v6866_v47 }
 0x5f2   : > { %6869 = vmatpush3.bf16.msra.mxu0 %v6866_v47  ;;  %v2899_v47 = vld [vmem:[%s10371_s10 + $0x30] sm:$0xff] }
 0x5f9   : > { %v6625_v48 = vpop.f32.mrb[38].mxu1 }
 0x5fa   : > { %v2784_v49 = vadd.f32 %v6625_v48, %v6176_v24  ;;  %v2778_v50 = vpop.f32.mrb[39].mxu1  ;;  %v2900_v48 = vld [vmem:[%s10371_s10 + $0x38] sm:$0xff] }
 0x5fb   : > { %v2779_v51 = vadd.f32 %v6176_v24, %v2778_v50  ;;  %v6874_v24 = vpack.c.bf16 %v2910_v40, %v2909_v22  ;;  %v2924_v22 = vld [vmem:[%s10371_s10 + $0xf8] sm:$0xff] }
 0x5fc   : > { %v2794_v52 = vmax.f32 %v2784_v49, 0.0  ;;  %v6888_v49 = vpack.c.bf16 %v2900_v48, %v2899_v47 }
 0x5fd   : > { %v2793_v53 = vmax.f32 %v2779_v51, 0.0  ;;  %6875 = vmatprep.subr.bf16.mxu1 %v6874_v24  ;;  %v2907_v24 = vld [vmem:[%s10371_s10 + $0x70] sm:$0xff] }
 0x5fe   : > { %6877 = vmatpush3.bf16.msra.mxu1 %v6876_v34  ;;  %v6904_v28 = vpack.c.bf16 %v2908_v25, %v2907_v24 }
 0x5ff   : > { %v6870_v3 = vpack.c.bf16 %v2794_v52, %v2793_v53  ;;  %6879 = vmatprep.subr.bf16.mxu1 %v6878_v27  ;;  %v2917_v52 = vld [vmem:[%s10371_s10 + $0xc0] sm:$0xff]  ;;  %v2918_v53 = vld [vmem:[%s10371_s10 + $0xc8] sm:$0xff] }
 0x601   : > { %6871 = vmatprep.subr.bf16.mxu0 %v6870_v3 }
 0x602   : > { %6873 = vmatpush3.bf16.msra.mxu0 %v6870_v3  ;;  %6881 = vmatpush3.bf16.msra.mxu1 %v6880_v38  ;;  %v6890_v3 = vpack.c.bf16 %v2918_v53, %v2917_v52 }
 0x603   : > { %6883 = vmatprep.subr.bf16.mxu1 %v6882_v33 }
 0x605   : > { %6643 = vmatmul.mubr.msk.f32.vlgmr.msra.gmra.mrb[16].mxu0 %vm2797_vm12, %v2796_v4  ;;  %v2901_v4 = vld [vmem:[%s10371_s10 + $0x40] sm:$0xff] }
 0x606   : > { %6885 = vmatpush3.bf16.msra.mxu1 %v6884_v43 }
 0x607   : > { %6887 = vmatprep.subr.bf16.mxu1 %v6886_v46 }
 0x60a   : > { %6889 = vmatpush3.bf16.msra.mxu1 %v6888_v49 }
 0x60b   : > { %6891 = vmatprep.subr.bf16.mxu1 %v6890_v3 }
 0x6d8   : > { %v6644_v6 = vpop.f32.mrb[16].mxu0 }
 0x6d9   : > { %3154 = vrot.lane.b32.xlu1 %v6644_v6, %s10335_s0  ;;  %2970 = vrot.lane.b32.xlu0 %v6644_v6, %s10363_s3  ;;  %v8595_v10 = vpop.f32.mrb[17].mxu0  ;;  %v8597_v11 = vcombine.high %v6644_v6, %v6644_v6  ;;  %v2941_v60 = vrot.slane %v6644_v6, 7  ;;  %v2996_v61 = vrot.slane %v6644_v6, 5  ;;  %3069 = vst.msk [vmem:[#allocation4 + $0x1c] sm:$0xf] %vm3066_vm14, %v6644_v6 }
 0x6da   : > { %v2881_v13 = vcombine.high %v8595_v10, %v8595_v10  ;;  %v2939_v14 = vrot.slane %v8595_v10, 7  ;;  %3067 = vst.msk [vmem:[#allocation4 + $0x4] sm:$0xf] %vm3066_vm14, %v8595_v10  ;;  %v2992_v51 = vrot.slane %v8595_v10, 5 }
 0x6db   : > { %3086 = vst.msk [vmem:[#allocation4 + $0x1c] sm:$0xf] %vm3083_vm3, %v3076_v57  ;;  %v8606_v19 = vrot.slane %v2996_v61, 4  ;;  %v3088_v8 = vrot.slane %v8597_v11, 5  ;;  %3084 = vst.msk [vmem:[#allocation4 + $0x4] sm:$0xf] %vm3083_vm3, %v3072_v54 }
 0x6dc   : > { %2949 = vst.msk [vmem:[#allocation4 + $0x24] sm:$0xe] %vm2946_vm15, %v2941_v60  ;;  %v8613_v9 = vrot.slane %v2881_v13, 7  ;;  %v2994_v20 = vrot.slane %v2881_v13, 5  ;;  %2947 = vst.msk [vmem:[#allocation4 + $0xc] sm:$0xe] %vm2946_vm15, %v2939_v14 }
 0x6dd   : > { %3070 = vst.msk [vmem:[#allocation4 + $0x28] sm:$0xf] %vm3066_vm14, %v8597_v11  ;;  %3068 = vst.msk [vmem:[#allocation4 + $0x10] sm:$0xf] %vm3066_vm14, %v2881_v13  ;;  %3156 = vrot.lane.b32.xlu1 %v8597_v11, %s10335_s0  ;;  %2966 = vrot.lane.b32.xlu0 %v8595_v10, %s10363_s3  ;;  %v8629_v16 = vrot.slane %v3088_v8, 4  ;;  %v3030_v50 = vrot.slane %v8597_v11, 7 }
 0x6de   : > { %2965 = vst.msk [vmem:[#allocation4 + $0x24] sm:$0xe] %vm2962_vm13, %v2958_v56  ;;  %2963 = vst.msk [vmem:[#allocation4 + $0xc] sm:$0xe] %vm2962_vm13, %v2954_v17  ;;  %v8641_v29 = vrot.slane %v2994_v20, 4  ;;  %v2902_v54 = vld [vmem:[%s10371_s10 + $0x48] sm:$0xff] }
 0x6df   : > { %3087 = vst.msk [vmem:[#allocation4 + $0x28] sm:$0xf] %vm3083_vm3, %v3078_v12  ;;  %3085 = vst.msk [vmem:[#allocation4 + $0x10] sm:$0xf] %vm3083_vm3, %v3074_v18  ;;  %v6892_v56 = vpack.c.bf16 %v2902_v54, %v2901_v4  ;;  %v2993_v57 = vrot.slane %v2992_v51, 4  ;;  %v2919_v17 = vld [vmem:[%s10371_s10 + $0xd0] sm:$0xff] }
 0x6e0   : > { %3183 = vst.msk [vmem:[#allocation4 + $0x14] sm:$0x7] %vm3181_vm1, %v8606_v19  ;;  %3184 = vst.msk [vmem:[#allocation4 + $0x20] sm:$0x7] %vm3181_vm1, %v8629_v16  ;;  %v2920_v18 = vld [vmem:[%s10371_s10 + $0xd8] sm:$0xff]  ;;  %v2903_v10 = vld [vmem:[%s10371_s10 + $0x50] sm:$0xff] }
 0x6e1   : > { %2948 = vst.msk [vmem:[#allocation4 + $0x18] sm:$0xe] %vm2946_vm15, %v8613_v9  ;;  %3128 = vrot.lane.b32.xlu0 %v2941_v60, %s10372_s5  ;;  %2968 = vrot.lane.b32.xlu1 %v2881_v13, %s10363_s3  ;;  %v6894_v6 = vpack.c.bf16 %v2920_v18, %v2919_v17  ;;  %v2904_v11 = vld [vmem:[%s10371_s10 + $0x58] sm:$0xff]  ;;  %v2921_v61 = vld [vmem:[%s10371_s10 + $0xe0] sm:$0xff]  ;;  %vm2988_vm14 = vcmask 519552   ;;  %vm3043_vm15 = vcmask 913153  }
 0x6e2   : > { %2964 = vst.msk [vmem:[#allocation4 + $0x18] sm:$0xe] %vm2962_vm13, %v2956_v31  ;;  %6893 = vmatpush3.bf16.msra.mxu1 %v6892_v56  ;;  %v2922_v12 = vld [vmem:[%s10371_s10 + $0xe8] sm:$0xff]  ;;  %v2923_v20 = vld [vmem:[%s10371_s10 + $0xf0] sm:$0xff]  ;;  %vm3061_vm3 = vcmask 1044353   ;;  %vm3102_vm13 = vcmask 387328  }
 0x6e3   : > { %3182 = vst.msk [vmem:[#allocation4 + $0x8] sm:$0x7] %vm3181_vm1, %v8641_v29  ;;  %6895 = vmatprep.subr.bf16.mxu1 %v6894_v6  ;;  %v6902_v40 = vpack.c.bf16 %v2924_v22, %v2923_v20  ;;  %v2926_v31 = vld [vmem:[%s10371_s10 + $0x108] sm:$0xff]  ;;  %vm2975_vm1 = vcmask 388352  }
 0x6e5   : > { %3035 = vrot.lane.b32.xlu0 %v2941_v60, %s10373_s9  ;;  %3031 = vrot.lane.b32.xlu1 %v2939_v14, %s10373_s9  ;;  %v6896_v60 = vpack.c.bf16 %v2904_v11, %v2903_v10  ;;  %v2905_v14 = vld [vmem:[%s10371_s10 + $0x60] sm:$0xff] }
 0x6e7   : > { %6897 = vmatpush3.bf16.msra.mxu1 %v6896_v60 }
 0x6e9   : > { %3152 = vrot.lane.b32.xlu0 %v2881_v13, %s10373_s9  ;;  %3094 = vrot.lane.b32.xlu1 %v8606_v19, %s10363_s3  ;;  %v6898_v13 = vpack.c.bf16 %v2922_v12, %v2921_v61 }
 0x6eb   : > { %6899 = vmatprep.subr.bf16.mxu1 %v6898_v13  ;;  %v6187_v13 = vld [vmem:[%s10375_s11] ss:$0 sm:$0xff] }
 0x6ed   : > { %3002 = vrot.lane.b32.xlu0 %v8606_v19, %s10372_s5  ;;  %3130 = vrot.lane.b32.xlu1 %v3030_v50, %s10372_s5  ;;  %v2906_v19 = vld [vmem:[%s10371_s10 + $0x68] sm:$0xff] }
 0x6ee   : > { %v6900_v8 = vpack.c.bf16 %v2906_v19, %v2905_v14 }
 0x6f0   : > { %6901 = vmatpush3.bf16.msra.mxu1 %v6900_v8 }
 0x6f1   : > { %2998 = vrot.lane.b32.xlu0 %v2993_v57, %s10372_s5  ;;  %3037 = vrot.lane.b32.xlu1 %v3030_v50, %s10373_s9 }
 0x6f2   : > { %6903 = vmatprep.subr.bf16.mxu1 %v6902_v40 }
 0x6f4   : > { %6905 = vmatpush3.bf16.msra.mxu1 %v6904_v28  ;;  %v2888_v28 = vld [vmem:[%s699_s8 + $0x8] sm:$0xff] }
 0x6f5   : > { %3090 = vrot.lane.b32.xlu1 %v2993_v57, %s10363_s3  ;;  %3033 = vrot.lane.b32.xlu0 %v8613_v9, %s10373_s9 }
 0x6f9   : > { %3096 = vrot.lane.b32.xlu0 %v8629_v16, %s10363_s3  ;;  %3126 = vrot.lane.b32.xlu1 %v8613_v9, %s10372_s5  ;;  %v3107_v9 = vrot.slane %v8557_v30, 5  ;;  %v2925_v16 = vld [vmem:[%s10371_s10 + $0x100] sm:$0xff] }
 0x6fa   : > { %v6906_v34 = vpack.c.bf16 %v2926_v31, %v2925_v16 }
 0x6fb   : > { %v3108_v2 = vrot.slane %v3107_v9, 4  ;;  %v2887_v9 = vld [vmem:[%s699_s8] sm:$0xff] }
 0x6fc   : > { %6907 = vmatprep.subr.bf16.mxu0 %v6906_v34 }
 0x6fd   : > { %3092 = vrot.lane.b32.xlu0 %v8641_v29, %s10363_s3  ;;  %3055 = vrot.lane.b32.xlu1 %v3048_v1, %s10374_s22  ;;  %v2927_v1 = vld [vmem:[%s10371_s10 + $0x110] sm:$0xff] }
 0x6fe   : > { %6909 = vmatpush3.bf16.msra.mxu0 %v6906_v34  ;;  %v6910_v27 = vpack.c.bf16 %v2928_v26, %v2927_v1 }
 0x700   : > { %6911 = vmatprep.subr.bf16.mxu0 %v6910_v27 }
 0x701   : > { %3053 = vrot.lane.b32.xlu0 %v8526_v21, %s10374_s22  ;;  %3000 = vrot.lane.b32.xlu1 %v8641_v29, %s10372_s5  ;;  %v3018_v21 = vpop.permute.xlu1 %3017 }
 0x702   : > { %6913 = vmatpush3.bf16.msra.mxu0 %v6910_v27 }
 0x705   : > { %3115 = vrot.lane.b32.xlu0 %v3108_v2, %s10369_s4  ;;  %3169 = vrot.lane.b32.xlu1 %v8557_v30, %s10374_s22  ;;  %v3140_v29 = vpop.permute.xlu1 %3139 }
 0x709   : > { %3185 = vrot.lane.b32.xlu0 %v8532_v15, %s10362_s28  ;;  %3187 = vrot.lane.b32.xlu1 %v8543_v23, %s10362_s28  ;;  %v2984_v36 = vpop.permute.xlu1 %2983 }
 0x70d   : > { %3189 = vrot.lane.b32.xlu0 %v3108_v2, %s10362_s28  ;;  %v3052_v37 = vpop.permute.xlu1 %3051 }
 0x711   : > { %v3166_v38 = vpop.permute.xlu1 %3165 }
 0x715   : > { %v3022_v39 = vpop.permute.xlu1 %3021 }
 0x719   : > { %v3144_v32 = vpop.permute.xlu1 %3143 }
 0x74b   : > { %v8785_v30 = vpop.permute.xlu1 %3154  ;;  %v2971_v33 = vpop.permute.xlu0 %2970 }
 0x74c   : > { %2978 = vst.msk [vmem:[#allocation4 + $0x24] sm:$0xf] %vm2975_vm1, %v2971_v33 }
 0x74d   : > { %2991 = vst.msk [vmem:[#allocation4 + $0x24] sm:$0xf] %vm2988_vm14, %v2984_v36 }
 0x74f   : > { %v3157_v15 = vpop.permute.xlu1 %3156  ;;  %v2967_v41 = vpop.permute.xlu0 %2966 }
 0x750   : > { %2976 = vst.msk [vmem:[#allocation4 + $0xc] sm:$0xf] %vm2975_vm1, %v2967_v41 }
 0x751   : > { %2989 = vst.msk [vmem:[#allocation4 + $0xc] sm:$0xf] %vm2988_vm14, %v8587_v5 }
 0x753   : > { %v3129_v23 = vpop.permute.xlu0 %3128  ;;  %v2969_v42 = vpop.permute.xlu1 %2968 }
 0x754   : > { %2977 = vst.msk [vmem:[#allocation4 + $0x18] sm:$0xf] %vm2975_vm1, %v2969_v42  ;;  %vm3007_vm1 = vcmask 649728  }
 0x755   : > { %2990 = vst.msk [vmem:[#allocation4 + $0x18] sm:$0xf] %vm2988_vm14, %v8579_v59  ;;  %vm3026_vm14 = vcmask 780928  }
 0x757   : > { %v3036_v43 = vpop.permute.xlu0 %3035  ;;  %v3032_v44 = vpop.permute.xlu1 %3031 }
 0x758   : > { %3044 = vst.msk [vmem:[#allocation4] sm:$0xe] %vm3043_vm15, %v3032_v44 }
 0x759   : > { %3062 = vst.msk [vmem:[#allocation4] sm:$0xe] %vm3061_vm3, %v8581_v62 }
 0x75b   : > { %v3153_v45 = vpop.permute.xlu0 %3152  ;;  %v3095_v46 = vpop.permute.xlu1 %3094 }
 0x75c   : > { %3105 = vst.msk [vmem:[#allocation4 + $0x1c] sm:$0x7] %vm3102_vm13, %v3095_v46  ;;  %v3462_v46 = vld [vmem:[%s10301_s12] sm:$0xff] }
 0x75d   : > { %3124 = vst.msk [vmem:[#allocation4 + $0x1c] sm:$0x7] %vm3121_vm0, %v8583_v63 }
 0x75f   : > { %v3003_v59 = vpop.permute.xlu0 %3002  ;;  %v3131_v5 = vpop.permute.xlu1 %3130 }
 0x760   : > { %3010 = vst.msk [vmem:[#allocation4 + $0x24] sm:$0x7] %vm3007_vm1, %v3003_v59 }
 0x761   : > { %3138 = vst.msk [vmem:[#allocation4 + $0x1c] sm:$0xe] %vm3135_vm11, %v3131_v5 }
 0x762   : > { %3029 = vst.msk [vmem:[#allocation4 + $0x24] sm:$0x7] %vm3026_vm14, %v3022_v39 }
 0x763   : > { %3151 = vst.msk [vmem:[#allocation4 + $0x1c] sm:$0xe] %vm3148_vm10, %v3144_v32  ;;  %v2999_v62 = vpop.permute.xlu0 %2998  ;;  %v3038_v47 = vpop.permute.xlu1 %3037 }
 0x764   : > { %3164 = vst.msk [vmem:[#allocation4 + $0x1c] sm:$0xf] %vm3161_vm9, %v3157_v15 }
 0x765   : > { %3008 = vst.msk [vmem:[#allocation4 + $0xc] sm:$0x7] %vm3007_vm1, %v2999_v62 }
 0x766   : > { %3047 = vst.msk [vmem:[#allocation4 + $0x24] sm:$0xe] %vm3043_vm15, %v3038_v47 }
 0x767   : > { %3027 = vst.msk [vmem:[#allocation4 + $0xc] sm:$0x7] %vm3026_vm14, %v3018_v21  ;;  %v3091_v63 = vpop.permute.xlu1 %3090  ;;  %v3034_v48 = vpop.permute.xlu0 %3033 }
 0x768   : > { %3103 = vst.msk [vmem:[#allocation4 + $0x4] sm:$0x7] %vm3102_vm13, %v3091_v63 }
 0x769   : > { %3045 = vst.msk [vmem:[#allocation4 + $0xc] sm:$0xe] %vm3043_vm15, %v3034_v48 }
 0x76a   : > { %3122 = vst.msk [vmem:[#allocation4 + $0x4] sm:$0x7] %vm3121_vm0, %v8575_v55 }
 0x76b   : > { %3063 = vst.msk [vmem:[#allocation4 + $0xc] sm:$0xe] %vm3061_vm3, %v3052_v37  ;;  %v3097_v49 = vpop.permute.xlu0 %3096  ;;  %v3127_v50 = vpop.permute.xlu1 %3126 }
 0x76c   : > { %3106 = vst.msk [vmem:[#allocation4 + $0x28] sm:$0x7] %vm3102_vm13, %v3097_v49 }
 0x76d   : > { %3136 = vst.msk [vmem:[#allocation4 + $0x4] sm:$0xe] %vm3135_vm11, %v3127_v50  ;;  %v3463_v50 = vld [vmem:[%s10301_s12 + $0x8] sm:$0xff] }
 0x76e   : > { %3149 = vst.msk [vmem:[#allocation4 + $0x4] sm:$0xe] %vm3148_vm10, %v3140_v29 }
 0x76f   : > { %3162 = vst.msk [vmem:[#allocation4 + $0x4] sm:$0xf] %vm3161_vm9, %v3153_v45  ;;  %v3093_v51 = vpop.permute.xlu0 %3092  ;;  %v3056_v52 = vpop.permute.xlu1 %3055 }
 0x770   : > { %3175 = vst.msk [vmem:[#allocation4 + $0x4] sm:$0xf] %vm3174_vm8, %v3166_v38 }
 0x771   : > { %3104 = vst.msk [vmem:[#allocation4 + $0x10] sm:$0x7] %vm3102_vm13, %v3093_v51  ;;  %v3464_v51 = vld [vmem:[%s10301_s12 + $0x10] sm:$0xff]  ;;  %vm3755_vm13 = vcmask 523649  }
 0x772   : > { %3065 = vst.msk [vmem:[#allocation4 + $0x24] sm:$0xe] %vm3061_vm3, %v3056_v52  ;;  %v7010_v54 = vld [vmem:[#allocation4] ss:$12 sps:$4 sm:$0xff]   ;;  %v3465_v52 = vld [vmem:[%s10301_s12 + $0x18] sm:$0xff] }
 0x773   : > { %3123 = vst.msk [vmem:[#allocation4 + $0x10] sm:$0x7] %vm3121_vm0, %v8591_v7  ;;  %v3054_v55 = vpop.permute.xlu0 %3053  ;;  %v3001_v53 = vpop.permute.xlu1 %3000 }
 0x774   : > { %3137 = vst.msk [vmem:[#allocation4 + $0x10] sm:$0xe] %vm3135_vm11, %v3129_v23  ;;  %vm3656_vm11 = vcmask 130049  }
 0x775   : > { %3150 = vst.msk [vmem:[#allocation4 + $0x10] sm:$0xe] %vm3148_vm10, %v8577_v58  ;;  %vm3194_vm10 = vcmask 256128  }
 0x776   : > { %3163 = vst.msk [vmem:[#allocation4 + $0x10] sm:$0xf] %vm3161_vm9, %v8785_v30  ;;  %vm3230_vm9 = vcmask 261120  }
 0x777   : > { %3009 = vst.msk [vmem:[#allocation4 + $0x18] sm:$0x7] %vm3007_vm1, %v3001_v53  ;;  %v3116_v7 = vpop.permute.xlu0 %3115  ;;  %v3170_v3 = vpop.permute.xlu1 %3169  ;;  %v3467_v53 = vld [vmem:[%s10301_s12 + $0x28] sm:$0xff]  ;;  %vm3788_vm1 = vcmask 654848  }
 0x778   : > { %3028 = vst.msk [vmem:[#allocation4 + $0x18] sm:$0x7] %vm3026_vm14, %v8589_v35  ;;  %vm3822_vm14 = vcmask 785024  }
 0x779   : > { %3176 = vst.msk [vmem:[#allocation4 + $0x10] sm:$0xf] %vm3174_vm8, %v8585_v0  ;;  %3177 = vst.msk [vmem:[#allocation4 + $0x1c] sm:$0xf] %vm3174_vm8, %v3170_v3  ;;  %v3469_v3 = vld [vmem:[%s10301_s12 + $0x38] sm:$0xff]  ;;  %vm3896_vm8 = vcmask 129024  }
 0x77a   : > { %3046 = vst.msk [vmem:[#allocation4 + $0x18] sm:$0xe] %vm3043_vm15, %v3036_v43  ;;  %v7035_v43 = vld [vmem:[#allocation5] sm:$0xff]  ;;  %vm3685_vm15 = vcmask 261248  }
 0x77b   : > { %3064 = vst.msk [vmem:[#allocation4 + $0x18] sm:$0xe] %vm3061_vm3, %v3054_v55  ;;  %v3186_v58 = vpop.permute.xlu0 %3185  ;;  %v3188_v4 = vpop.permute.xlu1 %3187  ;;  %v3466_v55 = vld [vmem:[%s10301_s12 + $0x20] sm:$0xff]  ;;  %vm3721_vm3 = vcmask 391424  }
 0x77c   : > { %3125 = vst.msk [vmem:[#allocation4 + $0x28] sm:$0x7] %vm3121_vm0, %v3116_v7  ;;  %vm3449_vm0 = vcmask 130048   ;;  %v3468_v7 = vld [vmem:[%s10301_s12 + $0x30] sm:$0xff] }
 0x77d   : > { %3195 = vst.msk [vmem:[#allocation4 + $0x8] sm:$0x7] %vm3194_vm10, %v3186_v58  ;;  %3196 = vst.msk [vmem:[#allocation4 + $0x14] sm:$0x7] %vm3194_vm10, %v3188_v4  ;;  %v3599_v58 = vld [vmem:[%s10302_s13] sm:$0xff]  ;;  %v3600_v4 = vld [vmem:[%s10302_s13 + $0x8] sm:$0xff] }
 0x77e   : > { %3619 = vst.msk [vmem:[#allocation5 + $0x8] sm:$0xff] %vm3449_vm0, %v7035_v43  ;;  %3621 = vst.msk [vmem:[#allocation5 + $0x18] sm:$0xff] %vm3449_vm0, %v7035_v43 }
 0x77f   : > { %v3190_v56 = vpop.permute.xlu0 %3189  ;;  %3623 = vst.msk [vmem:[#allocation5 + $0x28] sm:$0xff] %vm3449_vm0, %v7035_v43  ;;  %3625 = vst.msk [vmem:[#allocation5 + $0x38] sm:$0xff] %vm3449_vm0, %v7035_v43 }
 0x780   : > { %v7012_v35 = vld [vmem:[#allocation4 + $0x4] ss:$12 sps:$4 sm:$0xff]   ;;  %3197 = vst.msk [vmem:[#allocation4 + $0x20] sm:$0x7] %vm3194_vm10, %v3190_v56  ;;  %v6919_v56 = vpack.c.bf16 %v3600_v4, %v3599_v58  ;;  %vm3852_vm10 = vcmask 917249  }
 0x781   : > { %3299 = vmatprep.mubr.f32.mxu1 %v7012_v35  ;;  %3627 = vst.msk [vmem:[#allocation5 + $0x48] sm:$0xff] %vm3449_vm0, %v7035_v43  ;;  %3629 = vst.msk [vmem:[#allocation5 + $0x58] sm:$0xff] %vm3449_vm0, %v7035_v43  ;;  %v7060_v35 = vmov 0.0|0.0  }
 0x782   : > { %3300 = vmatmul.mubr.f32.vlgmr.msra.gmra.mrb[40].mxu1 %v7010_v54  ;;  %v7015_v57 = vld [vmem:[#allocation4 + $0x18] ss:$12 sps:$4 sm:$0xff]   ;;  %3631 = vst.msk [vmem:[#allocation5 + $0x68] sm:$0xff] %vm3449_vm0, %v7035_v43  ;;  %3633 = vst.msk [vmem:[#allocation5 + $0x78] sm:$0xff] %vm3449_vm0, %v7035_v43  ;;  %v3601_v54 = vld [vmem:[%s10302_s13 + $0x10] sm:$0xff] }
 0x783   : > { %v7013_v0 = vld [vmem:[#allocation4 + $0x1c] ss:$12 sps:$4 sm:$0xff]  }
 0x784   : > { %3304 = vmatprep.mubr.f32.mxu1 %v7013_v0  ;;  %v7016_v17 = vld [vmem:[#allocation4 + $0x8] ss:$12 sps:$4 sm:$0xff]   ;;  %v3602_v0 = vld [vmem:[%s10302_s13 + $0x18] sm:$0xff] }
 0x785   : > { %6653 = vmatprep.mubr.msk.f32.mxu0 %vm3230_vm9, %v7016_v17  ;;  %v3603_v17 = vld [vmem:[%s10302_s13 + $0x20] sm:$0xff]  ;;  %v3616_v43 = vld [vmem:[%s10302_s13 + $0x88] sm:$0xff] }
 0x786   : > { %3305 = vmatmul.mubr.f32.gmra.mrb[42].mxu1 %v7015_v57  ;;  %v6922_v57 = vpack.c.bf16 %v3602_v0, %v3601_v54 }
 0x787   : > { %v7017_v18 = vld [vmem:[#allocation4 + $0x20] ss:$12 sps:$4 sm:$0xff]  }
 0x788   : > { %6654 = vmatmul.mubr.msk.f32.vlgmr.msra.gmra.mrb[18].mxu0 %vm3230_vm9, %v7017_v18  ;;  %v3604_v18 = vld [vmem:[%s10302_s13 + $0x28] sm:$0xff]  ;;  %vm3881_vm9 = vcmask 1048448  }
 0x789   : > { %6660 = vmatprep.mubr.msk.f32.mxu0 %vm3449_vm0, %v3462_v46 }
 0x855   : > { %v6435_v6 = vpop.f32.mrb[40].mxu1 }
 0x856   : > { %v6436_v10 = vpop.f32.mrb[41].mxu1 }
 0x857   : > { %v6437_v11 = vadd.f32 %v6436_v10, %v6435_v6  ;;  %v6925_v6 = vpack.c.bf16 %v3604_v18, %v3603_v17  ;;  %v3605_v10 = vld [vmem:[%s10302_s13 + $0x30] sm:$0xff] }
 0x859   : > { %v6438_v60 = vpop.f32.mrb[42].mxu1  ;;  %v3302_v8 = vadd.f32 %v6437_v11, %v6187_v13  ;;  %v3606_v11 = vld [vmem:[%s10302_s13 + $0x38] sm:$0xff] }
 0x85a   : > { %v6439_v61 = vpop.f32.mrb[43].mxu1 }
 0x85b   : > { %v6440_v12 = vadd.f32 %v6439_v61, %v6438_v60  ;;  %v6655_v19 = vpop.f32.mrb[18].mxu0  ;;  %v6928_v60 = vpack.c.bf16 %v3606_v11, %v3605_v10  ;;  %v3607_v61 = vld [vmem:[%s10302_s13 + $0x40] sm:$0xff] }
 0x85c   : > { %v3376_v22 = vpop.f32.mrb[19].mxu0 }
 0x85d   : > { %v3307_v14 = vadd.f32 %v6440_v12, %v6187_v13  ;;  %v3377_v40 = vadd.f32 %v3376_v22, %v3302_v8  ;;  %v3608_v12 = vld [vmem:[%s10302_s13 + $0x48] sm:$0xff] }
 0x85e   : > { %v6931_v13 = vpack.c.bf16 %v3608_v12, %v3607_v61 }
 0x85f   : > { %v3382_v20 = vadd.f32 %v6655_v19, %v3307_v14  ;;  %v6190_v31 = vmul.f32 -1.442695, %v3377_v40  ;;  %v3609_v14 = vld [vmem:[%s10302_s13 + $0x50] sm:$0xff]  ;;  %v3610_v19 = vld [vmem:[%s10302_s13 + $0x58] sm:$0xff] }
 0x861   : > { %7018 = vtanh.f32 %v3382_v20  ;;  %v6191_v16 = vmul.f32 -1.442695, %v3382_v20  ;;  %v6934_v20 = vpack.c.bf16 %v3610_v19, %v3609_v14 }
 0x862   : > { %7020 = vtanh.f32 %v3377_v40 }
 0x863   : > { %7022 = vpow2.f32 %v6191_v16  ;;  %v3612_v16 = vld [vmem:[%s10302_s13 + $0x68] sm:$0xff] }
 0x864   : > { %7024 = vpow2.f32 %v6190_v31 }
 0x86b   : > { %v7019_v24 = vpop.eup %7018 }
 0x86c   : > { %v7021_v25 = vpop.eup %7020  ;;  %3413 = vrot.lane.b32.xlu0 %v7019_v24, %s10377_s27 }
 0x86d   : > { %3411 = vrot.lane.b32.xlu1 %v7021_v25, %s10377_s27  ;;  %v7023_v34 = vpop.eup %7022 }
 0x86e   : > { %v7025_v2 = vpop.eup %7024  ;;  %v3392_v1 = vadd.f32 1.0, %v7023_v34 }
 0x86f   : > { %v3391_v26 = vadd.f32 1.0, %v7025_v2 }
 0x870   : > { %3403 = vrot.lane.b32.xlu0 %v2888_v28, %s10362_s28  ;;  %7026 = vrcp.f32 %v3392_v1 }
 0x871   : > { %3401 = vrot.lane.b32.xlu1 %v2887_v9, %s10362_s28  ;;  %7028 = vrcp.f32 %v3391_v26  ;;  %v3611_v9 = vld [vmem:[%s10302_s13 + $0x60] sm:$0xff] }
 0x872   : > { %v6937_v1 = vpack.c.bf16 %v3612_v16, %v3611_v9 }
 0x87a   : > { %v7027_v27 = vpop.eup %7026 }
 0x87b   : > { %v7029_v29 = vpop.eup %7028 }
 0x8de   : > { %v3414_v21 = vpop.permute.xlu0 %3413 }
 0x8df   : > { %v3418_v36 = vmul.f32 %v7027_v27, %v3414_v21  ;;  %v3412_v37 = vpop.permute.xlu1 %3411 }
 0x8e0   : > { %v3417_v38 = vmul.f32 %v7029_v29, %v3412_v37 }
 0x8e1   : > { %3423 = vrot.lane.b32.xlu0 %v3418_v36, %s10362_s28 }
 0x8e2   : > { %3421 = vrot.lane.b32.xlu1 %v3417_v38, %s10362_s28  ;;  %v3404_v39 = vpop.permute.xlu0 %3403  ;;  %v3613_v38 = vld [vmem:[%s10302_s13 + $0x70] sm:$0xff] }
 0x8e3   : > { %v3402_v32 = vpop.permute.xlu1 %3401  ;;  %v3408_v30 = vmul.f32 %v7027_v27, %v3404_v39  ;;  %v3614_v39 = vld [vmem:[%s10302_s13 + $0x78] sm:$0xff] }
 0x8e4   : > { %v3407_v33 = vmul.f32 %v7029_v29, %v3402_v32 }
 0x953   : > { %v3424_v15 = vpop.permute.xlu0 %3423 }
 0x954   : > { %v8844_v41 = vadd.f32 %v3424_v15, %v3408_v30  ;;  %v3422_v23 = vpop.permute.xlu1 %3421  ;;  %v6940_v15 = vpack.c.bf16 %v3614_v39, %v3613_v38 }
 0x955   : > { %v8846_v42 = vadd.f32 %v3422_v23, %v3407_v33  ;;  %v3615_v23 = vld [vmem:[%s10302_s13 + $0x80] sm:$0xff] }
 0x956   : > { %7030 = vtanh.f32 %v8844_v41 }
 0x957   : > { %7032 = vtanh.f32 %v8846_v42 }
 0x960   : > { %v7031_v44 = vpop.eup %7030 }
 0x961   : > { %v7033_v45 = vpop.eup %7032  ;;  %3435 = vrot.lane.b32.xlu0 %v7031_v44, %s10362_s28 }
 0x962   : > { %3433 = vrot.lane.b32.xlu1 %v7033_v45, %s10362_s28  ;;  %v6943_v45 = vpack.c.bf16 %v3616_v43, %v3615_v23 }
 0x9d3   : > { %v3436_v59 = vpop.permute.xlu0 %3435 }
 0x9d4   : > { %v3440_v5 = vmul.f32 %v7027_v27, %v3436_v59  ;;  %v3434_v62 = vpop.permute.xlu1 %3433 }
 0x9d5   : > { %v3439_v47 = vmul.f32 %v7029_v29, %v3434_v62 }
 0x9d6   : > { %3445 = vrot.lane.b32.xlu0 %v3440_v5, %s10373_s9 }
 0x9d7   : > { %3443 = vrot.lane.b32.xlu1 %v3439_v47, %s10373_s9 }
 0xa48   : > { %v3446_v63 = vpop.permute.xlu0 %3445 }
 0xa49   : > { %3451 = vst.msk [vmem:[%s709_s7 + $0x8] sm:$0xff] %vm3449_vm0, %v3446_v63  ;;  %v3444_v48 = vpop.permute.xlu1 %3443 }
 0xa4a   : > { %3450 = vst.msk [vmem:[%s709_s7] sm:$0xff] %vm3449_vm0, %v3444_v48  ;;  %v6914_v49 = vpack.c.bf16 %v3446_v63, %v3444_v48 }
 0xa4c   : > { %6915 = vmatprep.subr.bf16.mxu0 %v6914_v49 }
 0xa4d   : > { %6917 = vmatpush3.bf16.msra.mxu0 %v6914_v49 }
 0xa4e   : > { %6918 = vmatprep.subr.bf16.mxu0 %v7060_v35 }
 0xa50   : > { %6661 = vmatmul.mubr.msk.f32.vlgmr.msra.gmra.mrb[20].mxu0 %vm3449_vm0, %v3463_v50 }
 0xa51   : > { %6663 = vmatprep.mubr.msk.f32.mxu0 %vm3449_vm0, %v3464_v51  ;;  %6920 = vmatpush1.bf16.msra.mxu0 %v6919_v56 }
 0xa52   : > { %6921 = vmatprep.subr.bf16.mxu0 %v7060_v35 }
 0xa54   : > { %6664 = vmatmul.mubr.msk.f32.gmra.mrb[22].mxu0 %vm3449_vm0, %v3465_v52 }
 0xa55   : > { %6666 = vmatprep.mubr.msk.f32.mxu0 %vm3449_vm0, %v3466_v55  ;;  %6923 = vmatpush1.bf16.msra.mxu0 %v6922_v57 }
 0xa56   : > { %6924 = vmatprep.subr.bf16.mxu0 %v7060_v35 }
 0xa58   : > { %6667 = vmatmul.mubr.msk.f32.gmra.mrb[24].mxu0 %vm3449_vm0, %v3467_v53 }
 0xa59   : > { %6669 = vmatprep.mubr.msk.f32.mxu0 %vm3449_vm0, %v3468_v7  ;;  %6926 = vmatpush1.bf16.msra.mxu0 %v6925_v6 }
 0xa5a   : > { %6927 = vmatprep.subr.bf16.mxu0 %v7060_v35 }
 0xa5c   : > { %6670 = vmatmul.mubr.msk.f32.gmra.mrb[26].mxu0 %vm3449_vm0, %v3469_v3 }
 0xa5d   : > { %6929 = vmatpush1.bf16.msra.mxu0 %v6928_v60 }
 0xa5e   : > { %6930 = vmatprep.subr.bf16.mxu0 %v7060_v35 }
 0xa61   : > { %6932 = vmatpush1.bf16.msra.mxu0 %v6931_v13 }
 0xa62   : > { %6933 = vmatprep.subr.bf16.mxu0 %v7060_v35 }
 0xa65   : > { %6935 = vmatpush1.bf16.msra.mxu0 %v6934_v20 }
 0xa66   : > { %6936 = vmatprep.subr.bf16.mxu0 %v7060_v35 }
 0xa69   : > { %6938 = vmatpush1.bf16.msra.mxu0 %v6937_v1 }
 0xa6a   : > { %6939 = vmatprep.subr.bf16.mxu0 %v7060_v35 }
 0xa6d   : > { %6941 = vmatpush1.bf16.msra.mxu0 %v6940_v15 }
 0xa6e   : > { %6942 = vmatprep.subr.bf16.mxu0 %v7060_v35 }
 0xa71   : > { %6944 = vmatpush1.bf16.msra.mxu0 %v6943_v45 }
 0xb23   : > { %v6662_v8 = vpop.f32.mrb[20].mxu0 }
 0xb24   : > { %3766 = vrot.lane.b32.xlu1 %v6662_v8, %s10372_s5  ;;  %3860 = vrot.lane.b32.xlu0 %v6662_v8, %s10374_s22  ;;  %v8944_v22 = vpop.f32.mrb[21].mxu0  ;;  %v3642_v40 = vrot.slane %v6662_v8, 7  ;;  %v3694_v24 = vrot.slane %v6662_v8, 1 }
 0xb25   : > { %v3641_v25 = vrot.slane %v8944_v22, 7  ;;  %v3693_v47 = vrot.slane %v8944_v22, 1 }
 0xb26   : > { %3897 = vst.msk [vmem:[#allocation5 + $0x8] sm:$0x7f] %vm3896_vm8, %v3694_v24 }
 0xb27   : > { %3658 = vst.msk [vmem:[#allocation5 + $0x20] sm:$0xfe] %vm3656_vm11, %v3642_v40  ;;  %v6665_v28 = vpop.f32.mrb[22].mxu0  ;;  %3657 = vst.msk [vmem:[#allocation5 + $0x10] sm:$0xfe] %vm3656_vm11, %v3641_v25 }
 0xb28   : > { %3666 = vrot.lane.b32.xlu0 %v6662_v8, %s10362_s28  ;;  %3664 = vrot.lane.b32.xlu1 %v8944_v22, %s10362_s28  ;;  %v3570_v31 = vpop.f32.mrb[23].mxu0  ;;  %v3644_v34 = vrot.slane %v6665_v28, 7  ;;  %v3696_v2 = vrot.slane %v6665_v28, 1 }
 0xb29   : > { %v3643_v26 = vrot.slane %v3570_v31, 7  ;;  %v3695_v27 = vrot.slane %v3570_v31, 1 }
 0xb2a   : > { %3899 = vst.msk [vmem:[#allocation5 + $0x28] sm:$0x7f] %vm3896_vm8, %v3696_v2 }
 0xb2b   : > { %3660 = vst.msk [vmem:[#allocation5 + $0x40] sm:$0xfe] %vm3656_vm11, %v3644_v34  ;;  %v6668_v21 = vpop.f32.mrb[24].mxu0  ;;  %3659 = vst.msk [vmem:[#allocation5 + $0x30] sm:$0xfe] %vm3656_vm11, %v3643_v26 }
 0xb2c   : > { %3898 = vst.msk [vmem:[#allocation5 + $0x18] sm:$0x7f] %vm3896_vm8, %v3695_v27  ;;  %3733 = vrot.lane.b32.xlu1 %v3642_v40, %s10369_s4  ;;  %3764 = vrot.lane.b32.xlu0 %v8944_v22, %s10372_s5  ;;  %v3580_v29 = vpop.f32.mrb[25].mxu0  ;;  %v3646_v36 = vrot.slane %v6668_v21, 7  ;;  %v3698_v37 = vrot.slane %v6668_v21, 1 }
 0xb2d   : > { %v3905_v32 = vld [vmem:[#allocation5 + $0x8] sm:$0xff]  ;;  %v3645_v30 = vrot.slane %v3580_v29, 7  ;;  %v3697_v33 = vrot.slane %v3580_v29, 1 }
 0xb2e   : > { %6201 = vmatprep.mubr.msk.f32.mxu0 %vm3449_vm0, %v3905_v32  ;;  %3901 = vst.msk [vmem:[#allocation5 + $0x48] sm:$0x7f] %vm3896_vm8, %v3698_v37 }
 0xb2f   : > { %3662 = vst.msk [vmem:[#allocation5 + $0x60] sm:$0xfe] %vm3656_vm11, %v3646_v36  ;;  %v6671_v44 = vpop.f32.mrb[26].mxu0  ;;  %3661 = vst.msk [vmem:[#allocation5 + $0x50] sm:$0xfe] %vm3656_vm11, %v3645_v30 }
 0xb30   : > { %3900 = vst.msk [vmem:[#allocation5 + $0x38] sm:$0x7f] %vm3896_vm8, %v3697_v33  ;;  %3800 = vrot.lane.b32.xlu1 %v3694_v24, %s10377_s27  ;;  %3831 = vrot.lane.b32.xlu0 %v3642_v40, %s10373_s9  ;;  %v3797_v46 = vrot.slane %v6671_v44, 1  ;;  %v3590_v59 = vpop.f32.mrb[27].mxu0  ;;  %v3730_v63 = vrot.slane %v6671_v44, 7 }
 0xb31   : > { %v3647_v5 = vrot.slane %v3590_v59, 7  ;;  %v3699_v62 = vrot.slane %v3590_v59, 1  ;;  %v3909_v22 = vld [vmem:[#allocation5 + $0x28] sm:$0xff] }
 0xb32   : > { %3903 = vst.msk [vmem:[#allocation5 + $0x68] sm:$0x7f] %vm3896_vm8, %v3797_v46 }
 0xb33   : > { %3902 = vst.msk [vmem:[#allocation5 + $0x58] sm:$0x7f] %vm3896_vm8, %v3699_v62  ;;  %v3907_v57 = vld [vmem:[#allocation5 + $0x18] sm:$0xff]  ;;  %vm4731_vm8 = vcmask 195712  }
 0xb34   : > { %3663 = vst.msk [vmem:[#allocation5 + $0x70] sm:$0xfe] %vm3656_vm11, %v3647_v5  ;;  %3702 = vrot.lane.b32.xlu0 %v3694_v24, %s10363_s3  ;;  %3731 = vrot.lane.b32.xlu1 %v3641_v25, %s10369_s4  ;;  %vm4859_vm11 = vcmask 261312  }
 0xb35   : > { %v3913_v39 = vld [vmem:[#allocation5 + $0x48] sm:$0xff] }
 0xb38   : > { %3798 = vrot.lane.b32.xlu0 %v3693_v47, %s10377_s27  ;;  %3700 = vrot.lane.b32.xlu1 %v3693_v47, %s10363_s3 }
 0xb3a   : > { %v3915_v15 = vld [vmem:[#allocation5 + $0x58] sm:$0xff] }
 0xb3c   : > { %3770 = vrot.lane.b32.xlu1 %v6665_v28, %s10372_s5  ;;  %3864 = vrot.lane.b32.xlu0 %v6665_v28, %s10374_s22 }
 0xb40   : > { %3670 = vrot.lane.b32.xlu0 %v6665_v28, %s10362_s28  ;;  %3862 = vrot.lane.b32.xlu1 %v3570_v31, %s10374_s22  ;;  %v3911_v28 = vld [vmem:[#allocation5 + $0x38] sm:$0xff] }
 0xb44   : > { %3768 = vrot.lane.b32.xlu0 %v3570_v31, %s10372_s5  ;;  %3668 = vrot.lane.b32.xlu1 %v3570_v31, %s10362_s28 }
 0xb48   : > { %3835 = vrot.lane.b32.xlu0 %v3644_v34, %s10373_s9  ;;  %3737 = vrot.lane.b32.xlu1 %v3644_v34, %s10369_s4 }
 0xb4c   : > { %3706 = vrot.lane.b32.xlu0 %v3696_v2, %s10363_s3  ;;  %3804 = vrot.lane.b32.xlu1 %v3696_v2, %s10377_s27 }
 0xb50   : > { %3735 = vrot.lane.b32.xlu0 %v3643_v26, %s10369_s4  ;;  %3833 = vrot.lane.b32.xlu1 %v3643_v26, %s10373_s9 }
 0xb54   : > { %3802 = vrot.lane.b32.xlu0 %v3695_v27, %s10377_s27  ;;  %3704 = vrot.lane.b32.xlu1 %v3695_v27, %s10363_s3 }
 0xb58   : > { %3774 = vrot.lane.b32.xlu1 %v6668_v21, %s10372_s5  ;;  %3868 = vrot.lane.b32.xlu0 %v6668_v21, %s10374_s22 }
 0xb5c   : > { %3674 = vrot.lane.b32.xlu0 %v6668_v21, %s10362_s28  ;;  %3866 = vrot.lane.b32.xlu1 %v3580_v29, %s10374_s22 }
 0xb60   : > { %3772 = vrot.lane.b32.xlu0 %v3580_v29, %s10372_s5  ;;  %3672 = vrot.lane.b32.xlu1 %v3580_v29, %s10362_s28 }
 0xb64   : > { %3839 = vrot.lane.b32.xlu0 %v3646_v36, %s10373_s9  ;;  %3741 = vrot.lane.b32.xlu1 %v3646_v36, %s10369_s4 }
 0xb68   : > { %3710 = vrot.lane.b32.xlu0 %v3698_v37, %s10363_s3  ;;  %3808 = vrot.lane.b32.xlu1 %v3698_v37, %s10377_s27 }
 0xb6c   : > { %3739 = vrot.lane.b32.xlu0 %v3645_v30, %s10369_s4  ;;  %3837 = vrot.lane.b32.xlu1 %v3645_v30, %s10373_s9 }
 0xb70   : > { %3806 = vrot.lane.b32.xlu0 %v3697_v33, %s10377_s27  ;;  %3708 = vrot.lane.b32.xlu1 %v3697_v33, %s10363_s3 }
 0xb74   : > { %3872 = vrot.lane.b32.xlu0 %v6671_v44, %s10374_s22  ;;  %3870 = vrot.lane.b32.xlu1 %v3590_v59, %s10374_s22 }
 0xb78   : > { %3776 = vrot.lane.b32.xlu0 %v3590_v59, %s10372_s5  ;;  %3676 = vrot.lane.b32.xlu1 %v3590_v59, %s10362_s28 }
 0xb7c   : > { %3843 = vrot.lane.b32.xlu0 %v3730_v63, %s10373_s9  ;;  %3841 = vrot.lane.b32.xlu1 %v3647_v5, %s10373_s9 }
 0xb80   : > { %3743 = vrot.lane.b32.xlu0 %v3647_v5, %s10369_s4  ;;  %3810 = vrot.lane.b32.xlu1 %v3699_v62, %s10377_s27 }
 0xb84   : > { %3745 = vrot.lane.b32.xlu0 %v3730_v63, %s10369_s4  ;;  %3712 = vrot.lane.b32.xlu1 %v3699_v62, %s10363_s3  ;;  %v3917_v62 = vld [vmem:[#allocation5 + $0x68] sm:$0xff] }
 0xb88   : > { %3812 = vrot.lane.b32.xlu0 %v3797_v46, %s10377_s27  ;;  %3778 = vrot.lane.b32.xlu1 %v6671_v44, %s10372_s5  ;;  %s714_s27 = scalar_lea.vmem %s10309_s20, %s8517_s25  ;;  %s10422_s25 = sld [smem:[#allocation8_spill]] }
 0xb8c   : > { %3456 = vrot.lane.b32.xlu0 %v8844_v41, %s10374_s22  ;;  %3454 = vrot.lane.b32.xlu1 %v8846_v42, %s10374_s22 }
 0xb8e   : > { %s9901_s6 = scalar_lea.vmem %s10422_s25, %s7219_s24 }
 0xb96   : > { %v3767_v48 = vpop.permute.xlu1 %3766  ;;  %v3861_v49 = vpop.permute.xlu0 %3860 }
 0xb9a   : > { %v3667_v50 = vpop.permute.xlu0 %3666  ;;  %v3665_v51 = vpop.permute.xlu1 %3664 }
 0xb9b   : > { %3687 = vst.msk [vmem:[#allocation5 + $0x20] sm:$0xff] %vm3685_vm15, %v3667_v50  ;;  %3686 = vst.msk [vmem:[#allocation5 + $0x10] sm:$0xff] %vm3685_vm15, %v3665_v51 }
 0xb9e   : > { %v3734_v52 = vpop.permute.xlu1 %3733  ;;  %v3765_v55 = vpop.permute.xlu0 %3764 }
 0xba2   : > { %v3801_v53 = vpop.permute.xlu1 %3800  ;;  %v3832_v7 = vpop.permute.xlu0 %3831 }
 0xba6   : > { %v3703_v41 = vpop.permute.xlu0 %3702  ;;  %v3732_v3 = vpop.permute.xlu1 %3731 }
 0xba7   : > { %3723 = vst.msk [vmem:[#allocation5 + $0x20] sm:$0x7f] %vm3721_vm3, %v3703_v41  ;;  %v6200_v41 = vld [vmem:[%s10303_s14] ss:$0 sm:$0xff] }
 0xba8   : > { %3756 = vst.msk [vmem:[#allocation5] sm:$0xfe] %vm3755_vm13, %v3732_v3 }
 0xba9   : > { %3789 = vst.msk [vmem:[#allocation5] sm:$0xff] %vm3788_vm1, %v3765_v55  ;;  %v4063_v55 = vld [vmem:[%s10304_s15] sm:$0xff] }
 0xbaa   : > { %v3799_v42 = vpop.permute.xlu0 %3798  ;;  %v3701_v58 = vpop.permute.xlu1 %3700  ;;  %6688 = vmatprep.mubr.msk.f32.mxu1 %vm2797_vm12, %v4063_v55 }
 0xbab   : > { %3823 = vst.msk [vmem:[#allocation5] sm:$0x7f] %vm3822_vm14, %v3799_v42 }
 0xbac   : > { %3722 = vst.msk [vmem:[#allocation5 + $0x10] sm:$0x7f] %vm3721_vm3, %v3701_v58 }
 0xbad   : > { %3853 = vst.msk [vmem:[#allocation5] sm:$0xfe] %vm3852_vm10, %v3832_v7 }
 0xbae   : > { %3757 = vst.msk [vmem:[#allocation5 + $0x10] sm:$0xfe] %vm3755_vm13, %v3734_v52  ;;  %v3771_v4 = vpop.permute.xlu1 %3770  ;;  %v3865_v54 = vpop.permute.xlu0 %3864 }
 0xbaf   : > { %3882 = vst.msk [vmem:[#allocation5] sm:$0xff] %vm3881_vm9, %v3861_v49 }
 0xbb0   : > { %3790 = vst.msk [vmem:[#allocation5 + $0x10] sm:$0xff] %vm3788_vm1, %v3767_v48  ;;  %v3919_v48 = vld [vmem:[#allocation5 + $0x78] sm:$0xff] }
 0xbb1   : > { %3824 = vst.msk [vmem:[#allocation5 + $0x10] sm:$0x7f] %vm3822_vm14, %v3801_v53 }
 0xbb2   : > { %v3671_v35 = vpop.permute.xlu0 %3670  ;;  %v3863_v56 = vpop.permute.xlu1 %3862 }
 0xbb3   : > { %3689 = vst.msk [vmem:[#allocation5 + $0x40] sm:$0xff] %vm3685_vm15, %v3671_v35 }
 0xbb6   : > { %v3904_v0 = vld [vmem:[#allocation5] sm:$0xff]  ;;  %v3769_v17 = vpop.permute.xlu0 %3768  ;;  %v3669_v18 = vpop.permute.xlu1 %3668 }
 0xbb7   : > { %4015 = vmatmul.mubr.f32.vlgmr.msra.gmra.mrb[28].mxu0 %v3904_v0  ;;  %3688 = vst.msk [vmem:[#allocation5 + $0x30] sm:$0xff] %vm3685_vm15, %v3669_v18 }
 0xbb8   : > { %6202 = vmatprep.mubr.msk.f32.mxu0 %vm3449_vm0, %v3907_v57 }
 0xbba   : > { %v3836_v6 = vpop.permute.xlu0 %3835  ;;  %v3738_v10 = vpop.permute.xlu1 %3737 }
 0xbbe   : > { %v3707_v11 = vpop.permute.xlu0 %3706  ;;  %v3805_v60 = vpop.permute.xlu1 %3804 }
 0xbbf   : > { %3725 = vst.msk [vmem:[#allocation5 + $0x40] sm:$0x7f] %vm3721_vm3, %v3707_v11 }
 0xbc2   : > { %v3736_v61 = vpop.permute.xlu0 %3735  ;;  %v3834_v12 = vpop.permute.xlu1 %3833 }
 0xbc3   : > { %3758 = vst.msk [vmem:[#allocation5 + $0x20] sm:$0xfe] %vm3755_vm13, %v3736_v61 }
 0xbc4   : > { %3854 = vst.msk [vmem:[#allocation5 + $0x10] sm:$0xfe] %vm3852_vm10, %v3834_v12 }
 0xbc5   : > { %3791 = vst.msk [vmem:[#allocation5 + $0x20] sm:$0xff] %vm3788_vm1, %v3769_v17 }
 0xbc6   : > { %3883 = vst.msk [vmem:[#allocation5 + $0x10] sm:$0xff] %vm3881_vm9, %v3863_v56  ;;  %v3803_v13 = vpop.permute.xlu0 %3802  ;;  %v3705_v14 = vpop.permute.xlu1 %3704 }
 0xbc7   : > { %3825 = vst.msk [vmem:[#allocation5 + $0x20] sm:$0x7f] %vm3822_vm14, %v3803_v13 }
 0xbc8   : > { %3724 = vst.msk [vmem:[#allocation5 + $0x30] sm:$0x7f] %vm3721_vm3, %v3705_v14 }
 0xbc9   : > { %3855 = vst.msk [vmem:[#allocation5 + $0x20] sm:$0xfe] %vm3852_vm10, %v3836_v6 }
 0xbca   : > { %3759 = vst.msk [vmem:[#allocation5 + $0x30] sm:$0xfe] %vm3755_vm13, %v3738_v10  ;;  %v3775_v19 = vpop.permute.xlu1 %3774  ;;  %v3869_v8 = vpop.permute.xlu0 %3868 }
 0xbcb   : > { %3884 = vst.msk [vmem:[#allocation5 + $0x20] sm:$0xff] %vm3881_vm9, %v3865_v54 }
 0xbcc   : > { %3792 = vst.msk [vmem:[#allocation5 + $0x30] sm:$0xff] %vm3788_vm1, %v3771_v4 }
 0xbcd   : > { %3826 = vst.msk [vmem:[#allocation5 + $0x30] sm:$0x7f] %vm3822_vm14, %v3805_v60  ;;  %v3906_v20 = vld [vmem:[#allocation5 + $0x10] sm:$0xff] }
 0xbce   : > { %4020 = vmatmul.mubr.f32.gmra.mrb[30].mxu0 %v3906_v20  ;;  %v3675_v40 = vpop.permute.xlu0 %3674  ;;  %v3867_v24 = vpop.permute.xlu1 %3866 }
 0xbcf   : > { %6203 = vmatprep.mubr.msk.f32.mxu0 %vm3449_vm0, %v3909_v22  ;;  %3691 = vst.msk [vmem:[#allocation5 + $0x60] sm:$0xff] %vm3685_vm15, %v3675_v40 }
 0xbd2   : > { %v3908_v25 = vld [vmem:[#allocation5 + $0x20] sm:$0xff]  ;;  %v3773_v9 = vpop.permute.xlu0 %3772  ;;  %v3673_v16 = vpop.permute.xlu1 %3672 }
 0xbd3   : > { %4025 = vmatmul.mubr.f32.gmra.mrb[32].mxu0 %v3908_v25  ;;  %3690 = vst.msk [vmem:[#allocation5 + $0x50] sm:$0xff] %vm3685_vm15, %v3673_v16 }
 0xbd4   : > { %6204 = vmatprep.mubr.msk.f32.mxu0 %vm3449_vm0, %v3911_v28 }
 0xbd6   : > { %v3840_v31 = vpop.permute.xlu0 %3839  ;;  %v3742_v34 = vpop.permute.xlu1 %3741 }
 0xbda   : > { %v3711_v2 = vpop.permute.xlu0 %3710  ;;  %v3809_v1 = vpop.permute.xlu1 %3808 }
 0xbdb   : > { %3727 = vst.msk [vmem:[#allocation5 + $0x60] sm:$0x7f] %vm3721_vm3, %v3711_v2 }
 0xbde   : > { %v3740_v26 = vpop.permute.xlu0 %3739  ;;  %v3838_v27 = vpop.permute.xlu1 %3837 }
 0xbdf   : > { %3760 = vst.msk [vmem:[#allocation5 + $0x40] sm:$0xfe] %vm3755_vm13, %v3740_v26 }
 0xbe0   : > { %3856 = vst.msk [vmem:[#allocation5 + $0x30] sm:$0xfe] %vm3852_vm10, %v3838_v27  ;;  %v4064_v27 = vld [vmem:[%s10304_s15 + $0x8] sm:$0xff] }
 0xbe1   : > { %3793 = vst.msk [vmem:[#allocation5 + $0x40] sm:$0xff] %vm3788_vm1, %v3773_v9 }
 0xbe2   : > { %3885 = vst.msk [vmem:[#allocation5 + $0x30] sm:$0xff] %vm3881_vm9, %v3867_v24  ;;  %v3807_v21 = vpop.permute.xlu0 %3806  ;;  %v3709_v29 = vpop.permute.xlu1 %3708 }
 0xbe3   : > { %3827 = vst.msk [vmem:[#allocation5 + $0x40] sm:$0x7f] %vm3822_vm14, %v3807_v21  ;;  %v4065_v21 = vld [vmem:[%s10304_s15 + $0x10] sm:$0xff] }
 0xbe4   : > { %3726 = vst.msk [vmem:[#allocation5 + $0x50] sm:$0x7f] %vm3721_vm3, %v3709_v29  ;;  %v4066_v29 = vld [vmem:[%s10304_s15 + $0x18] sm:$0xff] }
 0xbe5   : > { %3857 = vst.msk [vmem:[#allocation5 + $0x40] sm:$0xfe] %vm3852_vm10, %v3840_v31 }
 0xbe6   : > { %3761 = vst.msk [vmem:[#allocation5 + $0x50] sm:$0xfe] %vm3755_vm13, %v3742_v34  ;;  %v3873_v36 = vpop.permute.xlu0 %3872  ;;  %v3871_v37 = vpop.permute.xlu1 %3870 }
 0xbe7   : > { %3886 = vst.msk [vmem:[#allocation5 + $0x40] sm:$0xff] %vm3881_vm9, %v3869_v8 }
 0xbe8   : > { %3794 = vst.msk [vmem:[#allocation5 + $0x50] sm:$0xff] %vm3788_vm1, %v3775_v19 }
 0xbe9   : > { %3828 = vst.msk [vmem:[#allocation5 + $0x50] sm:$0x7f] %vm3822_vm14, %v3809_v1  ;;  %v3910_v38 = vld [vmem:[#allocation5 + $0x30] sm:$0xff] }
 0xbea   : > { %4030 = vmatmul.mubr.f32.gmra.mrb[34].mxu0 %v3910_v38  ;;  %v3777_v32 = vpop.permute.xlu0 %3776  ;;  %v3677_v30 = vpop.permute.xlu1 %3676  ;;  %v4069_v38 = vld [vmem:[%s10304_s15 + $0x30] sm:$0xff] }
 0xbeb   : > { %6205 = vmatprep.mubr.msk.f32.mxu0 %vm3449_vm0, %v3913_v39  ;;  %3692 = vst.msk [vmem:[#allocation5 + $0x70] sm:$0xff] %vm3685_vm15, %v3677_v30  ;;  %v4070_v39 = vld [vmem:[%s10304_s15 + $0x38] sm:$0xff]  ;;  %v4072_v30 = vld [vmem:[%s10304_s15 + $0x48] sm:$0xff]  ;;  %vm5117_vm15 = vcmask 392512  }
 0xbee   : > { %v3912_v33 = vld [vmem:[#allocation5 + $0x40] sm:$0xff]  ;;  %v3844_v23 = vpop.permute.xlu0 %3843  ;;  %v3842_v43 = vpop.permute.xlu1 %3841 }
 0xbef   : > { %4035 = vmatmul.mubr.f32.gmra.mrb[36].mxu0 %v3912_v33  ;;  %3858 = vst.msk [vmem:[#allocation5 + $0x50] sm:$0xfe] %vm3852_vm10, %v3842_v43  ;;  %v4073_v33 = vld [vmem:[%s10304_s15 + $0x50] sm:$0xff]  ;;  %v4076_v43 = vld [vmem:[%s10304_s15 + $0x68] sm:$0xff] }
 0xbf0   : > { %6206 = vmatprep.mubr.msk.f32.mxu0 %vm3449_vm0, %v3915_v15  ;;  %3887 = vst.msk [vmem:[#allocation5 + $0x50] sm:$0xff] %vm3881_vm9, %v3871_v37  ;;  %v4068_v37 = vld [vmem:[%s10304_s15 + $0x28] sm:$0xff]  ;;  %v4074_v15 = vld [vmem:[%s10304_s15 + $0x58] sm:$0xff] }
 0xbf2   : > { %v3744_v44 = vpop.permute.xlu0 %3743  ;;  %v3811_v45 = vpop.permute.xlu1 %3810 }
 0xbf3   : > { %3762 = vst.msk [vmem:[#allocation5 + $0x60] sm:$0xfe] %vm3755_vm13, %v3744_v44  ;;  %v4077_v44 = vld [vmem:[%s10304_s15 + $0x70] sm:$0xff] }
 0xbf4   : > { %3795 = vst.msk [vmem:[#allocation5 + $0x60] sm:$0xff] %vm3788_vm1, %v3777_v32  ;;  %v4071_v32 = vld [vmem:[%s10304_s15 + $0x40] sm:$0xff] }
 0xbf5   : > { %3829 = vst.msk [vmem:[#allocation5 + $0x60] sm:$0x7f] %vm3822_vm14, %v3811_v45  ;;  %v4078_v45 = vld [vmem:[%s10304_s15 + $0x78] sm:$0xff] }
 0xbf6   : > { %3859 = vst.msk [vmem:[#allocation5 + $0x60] sm:$0xfe] %vm3852_vm10, %v3844_v23  ;;  %v3746_v46 = vpop.permute.xlu0 %3745  ;;  %v3713_v59 = vpop.permute.xlu1 %3712  ;;  %v4075_v23 = vld [vmem:[%s10304_s15 + $0x60] sm:$0xff]  ;;  %vm5481_vm10 = vcmask 589312  }
 0xbf7   : > { %3888 = vst.msk [vmem:[#allocation5 + $0x60] sm:$0xff] %vm3881_vm9, %v3873_v36  ;;  %v3914_v5 = vld [vmem:[#allocation5 + $0x50] sm:$0xff]  ;;  %vm10382_vm9 = vcmask 589313  }
 0xbf8   : > { %3728 = vst.msk [vmem:[#allocation5 + $0x70] sm:$0x7f] %vm3721_vm3, %v3713_v59  ;;  %4040 = vmatmul.mubr.f32.gmra.mrb[38].mxu0 %v3914_v5  ;;  %v4067_v36 = vld [vmem:[%s10304_s15 + $0x20] sm:$0xff]  ;;  %v4080_v59 = vld [vmem:[%s10304_s15 + $0x88] sm:$0xff]  ;;  %v4081_v5 = vld [vmem:[%s10304_s15 + $0x90] sm:$0xff]  ;;  %vm10378_vm3 = vcmask 392513  }
 0xbf9   : > { %3763 = vst.msk [vmem:[#allocation5 + $0x70] sm:$0xfe] %vm3755_vm13, %v3746_v46  ;;  %6207 = vmatprep.mubr.msk.f32.mxu0 %vm3449_vm0, %v3917_v62  ;;  %v4079_v46 = vld [vmem:[%s10304_s15 + $0x80] sm:$0xff]  ;;  %v4082_v62 = vld [vmem:[%s10304_s15 + $0x98] sm:$0xff]  ;;  %vm10379_vm13 = vcmask 457088  }
 0xbfa   : > { %v3813_v47 = vpop.permute.xlu0 %3812  ;;  %v3779_v63 = vpop.permute.xlu1 %3778 }
 0xbfb   : > { %3796 = vst.msk [vmem:[#allocation5 + $0x70] sm:$0xff] %vm3788_vm1, %v3779_v63  ;;  %v4084_v63 = vld [vmem:[%s10304_s15 + $0xa8] sm:$0xff]  ;;  %vm10380_vm1 = vcmask 523712  }
 0xbfc   : > { %3830 = vst.msk [vmem:[#allocation5 + $0x70] sm:$0x7f] %vm3822_vm14, %v3813_v47  ;;  %v4083_v47 = vld [vmem:[%s10304_s15 + $0xa0] sm:$0xff]  ;;  %vm10381_vm14 = vmmov %vm10380_vm1 }
 0xbfe   : > { %v3457_v49 = vpop.permute.xlu0 %3456  ;;  %v3455_v50 = vpop.permute.xlu1 %3454  ;;  %v3916_v51 = vld [vmem:[#allocation5 + $0x60] sm:$0xff] }
 0xbff   : > { %3461 = vst.msk [vmem:[%s714_s27 + $0x8] sm:$0xff] %vm3449_vm0, %v3457_v49  ;;  %3460 = vst.msk [vmem:[%s714_s27] sm:$0xff] %vm3449_vm0, %v3455_v50  ;;  %4045 = vmatmul.mubr.f32.gmra.mrb[40].mxu0 %v3916_v51  ;;  %v4086_v50 = vld [vmem:[%s10304_s15 + $0xb8] sm:$0xff] }
 0xc00   : > { %6208 = vmatprep.mubr.msk.f32.mxu0 %vm3449_vm0, %v3919_v48  ;;  %vm4459_vm0 = vcmask 64512   ;;  %v4085_v48 = vld [vmem:[%s10304_s15 + $0xb0] sm:$0xff] }
 0xc03   : > { %v3918_v52 = vld [vmem:[#allocation5 + $0x70] sm:$0xff] }
 0xc04   : > { %4050 = vmatmul.mubr.f32.gmra.mrb[42].mxu0 %v3918_v52 }
 0xc8a   : > { %v4016_v53 = vpop.f32.mrb[28].mxu0 }
 0xc8b   : > { %v4018_v7 = vpop.f32.mrb[29].mxu0  ;;  %v4017_v3 = vadd.f32 %v6200_v41, %v4016_v53 }
 0xc8d   : > { %v4055_v54 = vmax.f32 %v4017_v3, 0.0 }
 0xca1   : > { %v4021_v42 = vpop.f32.mrb[30].mxu0 }
 0xca2   : > { %v4022_v58 = vadd.f32 %v6200_v41, %v4021_v42  ;;  %v4023_v4 = vpop.f32.mrb[31].mxu0 }
 0xca4   : > { %v4056_v35 = vmax.f32 %v4022_v58, 0.0 }
 0xca6   : > { %v6945_v56 = vpack.c.bf16 %v4056_v35, %v4055_v54  ;;  %v4026_v0 = vpop.f32.mrb[32].mxu0  ;;  %v4416_v35 = vld [vmem:[%s10305_s16] sm:$0xff] }
 0xca7   : > { %v4028_v57 = vpop.f32.mrb[33].mxu0  ;;  %v4027_v17 = vadd.f32 %v6200_v41, %v4026_v0 }
 0xca8   : > { %6946 = vmatprep.subr.bf16.mxu1 %v6945_v56  ;;  %v4418_v57 = vld [vmem:[%s10305_s16 + $0x10] sm:$0xff] }
 0xca9   : > { %6948 = vmatpush3.bf16.msra.mxu1 %v6945_v56  ;;  %v4057_v11 = vmax.f32 %v4027_v17, 0.0  ;;  %v4417_v56 = vld [vmem:[%s10305_s16 + $0x8] sm:$0xff]  ;;  %v4419_v17 = vld [vmem:[%s10305_s16 + $0x18] sm:$0xff] }
 0xcaa   : > { %v6961_v0 = vpack.c.bf16 %v4417_v56, %v4416_v35 }
 0xcac   : > { %6962 = vmatprep.subr.bf16.mxu0 %v6961_v0 }
 0xcad   : > { %6964 = vmatpush3.bf16.msra.mxu0 %v6961_v0 }
 0xcbd   : > { %v4031_v18 = vpop.f32.mrb[34].mxu0 }
 0xcbe   : > { %v4032_v6 = vadd.f32 %v6200_v41, %v4031_v18  ;;  %v4033_v10 = vpop.f32.mrb[35].mxu0  ;;  %v6965_v18 = vpack.c.bf16 %v4419_v17, %v4418_v57 }
 0xcbf   : > { %v4421_v10 = vld [vmem:[%s10305_s16 + $0x28] sm:$0xff] }
 0xcc0   : > { %v4058_v60 = vmax.f32 %v4032_v6, 0.0  ;;  %6966 = vmatprep.subr.bf16.mxu0 %v6965_v18  ;;  %v4420_v6 = vld [vmem:[%s10305_s16 + $0x20] sm:$0xff] }
 0xcc1   : > { %6968 = vmatpush3.bf16.msra.mxu0 %v6965_v18 }
 0xcc2   : > { %v6949_v61 = vpack.c.bf16 %v4058_v60, %v4057_v11  ;;  %v4036_v12 = vpop.f32.mrb[36].mxu0  ;;  %v4087_v11 = vld [vmem:[%s10304_s15 + $0xc0] sm:$0xff]  ;;  %v6969_v60 = vpack.c.bf16 %v4421_v10, %v4420_v6 }
 0xcc3   : > { %v4038_v13 = vpop.f32.mrb[37].mxu0  ;;  %v4037_v14 = vadd.f32 %v6200_v41, %v4036_v12  ;;  %v4422_v12 = vld [vmem:[%s10305_s16 + $0x30] sm:$0xff] }
 0xcc4   : > { %6950 = vmatprep.subr.bf16.mxu1 %v6949_v61  ;;  %6970 = vmatprep.subr.bf16.mxu0 %v6969_v60  ;;  %v4423_v13 = vld [vmem:[%s10305_s16 + $0x38] sm:$0xff] }
 0xcc5   : > { %6952 = vmatpush3.bf16.msra.mxu1 %v6949_v61  ;;  %v4059_v22 = vmax.f32 %v4037_v14, 0.0  ;;  %v4088_v61 = vld [vmem:[%s10304_s15 + $0xc8] sm:$0xff]  ;;  %6972 = vmatpush3.bf16.msra.mxu0 %v6969_v60  ;;  %v6973_v14 = vpack.c.bf16 %v4423_v13, %v4422_v12 }
 0xcc7   : > { %6974 = vmatprep.subr.bf16.mxu0 %v6973_v14 }
 0xcc9   : > { %6976 = vmatpush3.bf16.msra.mxu0 %v6973_v14 }
 0xccb   : > { %v4041_v19 = vpop.f32.mrb[38].mxu0 }
 0xccc   : > { %v4042_v8 = vadd.f32 %v6200_v41, %v4041_v19  ;;  %v4043_v20 = vpop.f32.mrb[39].mxu0  ;;  %v4424_v19 = vld [vmem:[%s10305_s16 + $0x40] sm:$0xff] }
 0xccd   : > { %6752 = vmatprep.subr.mxu0 %v4424_v19 }
 0xcce   : > { %v4060_v40 = vmax.f32 %v4042_v8, 0.0  ;;  %6753 = vmatpush3.msra.mxu0 %v4424_v19 }
 0xcd0   : > { %v6953_v24 = vpack.c.bf16 %v4060_v40, %v4059_v22  ;;  %v4089_v22 = vld [vmem:[%s10304_s15 + $0xd0] sm:$0xff]  ;;  %v4090_v40 = vld [vmem:[%s10304_s15 + $0xd8] sm:$0xff] }
 0xcd2   : > { %v4046_v25 = vpop.f32.mrb[40].mxu0  ;;  %6954 = vmatprep.subr.bf16.mxu1 %v6953_v24 }
 0xcd3   : > { %v4048_v28 = vpop.f32.mrb[41].mxu0  ;;  %6956 = vmatpush3.bf16.msra.mxu1 %v6953_v24  ;;  %v4047_v9 = vadd.f32 %v6200_v41, %v4046_v25 }
 0xcd4   : > { %v4091_v28 = vld [vmem:[%s10304_s15 + $0xe0] sm:$0xff] }
 0xcd5   : > { %v4061_v2 = vmax.f32 %v4047_v9, 0.0  ;;  %v4092_v9 = vld [vmem:[%s10304_s15 + $0xe8] sm:$0xff] }
 0xcd7   : > { %v4051_v16 = vpop.f32.mrb[42].mxu0 }
 0xcd8   : > { %v4052_v31 = vadd.f32 %v6200_v41, %v4051_v16  ;;  %v4053_v34 = vpop.f32.mrb[43].mxu0 }
 0xcda   : > { %v4062_v1 = vmax.f32 %v4052_v31, 0.0 }
 0xcdc   : > { %v6957_v26 = vpack.c.bf16 %v4062_v1, %v4061_v2 }
 0xcde   : > { %6958 = vmatprep.subr.bf16.mxu1 %v6957_v26 }
 0xcdf   : > { %6960 = vmatpush3.bf16.msra.mxu1 %v6957_v26 }
 0xce2   : > { %6689 = vmatmul.mubr.msk.f32.vlgmr.msra.gmra.mrb[44].mxu1 %vm2797_vm12, %v4064_v27 }
 0xce3   : > { %6691 = vmatprep.mubr.msk.f32.mxu1 %vm2797_vm12, %v4065_v21 }
 0xce6   : > { %6692 = vmatmul.mubr.msk.f32.gmra.mrb[46].mxu1 %vm2797_vm12, %v4066_v29 }
 0xce7   : > { %6694 = vmatprep.mubr.msk.f32.mxu1 %vm2797_vm12, %v4067_v36  ;;  %v4093_v36 = vld [vmem:[%s10304_s15 + $0xf0] sm:$0xff] }
 0xcea   : > { %6695 = vmatmul.mubr.msk.f32.gmra.mrb[48].mxu1 %vm2797_vm12, %v4068_v37 }
 0xceb   : > { %6697 = vmatprep.mubr.msk.f32.mxu1 %vm2797_vm12, %v4069_v38  ;;  %v4094_v38 = vld [vmem:[%s10304_s15 + $0xf8] sm:$0xff] }
 0xcee   : > { %6698 = vmatmul.mubr.msk.f32.gmra.mrb[50].mxu1 %vm2797_vm12, %v4070_v39 }
 0xcef   : > { %6700 = vmatprep.mubr.msk.f32.mxu1 %vm2797_vm12, %v4071_v32 }
 0xcf2   : > { %6701 = vmatmul.mubr.msk.f32.gmra.mrb[52].mxu1 %vm2797_vm12, %v4072_v30 }
 0xcf3   : > { %6703 = vmatprep.mubr.msk.f32.mxu1 %vm2797_vm12, %v4073_v33 }
 0xcf6   : > { %6704 = vmatmul.mubr.msk.f32.gmra.mrb[54].mxu1 %vm2797_vm12, %v4074_v15 }
 0xcf7   : > { %6706 = vmatprep.mubr.msk.f32.mxu1 %vm2797_vm12, %v4075_v23 }
 0xcfa   : > { %6707 = vmatmul.mubr.msk.f32.gmra.mrb[56].mxu1 %vm2797_vm12, %v4076_v43 }
 0xcfb   : > { %6709 = vmatprep.mubr.msk.f32.mxu1 %vm2797_vm12, %v4077_v44 }
 0xcfe   : > { %6710 = vmatmul.mubr.msk.f32.gmra.mrb[58].mxu1 %vm2797_vm12, %v4078_v45 }
 0xcff   : > { %6712 = vmatprep.mubr.msk.f32.mxu1 %vm2797_vm12, %v4079_v46 }
 0xd02   : > { %6713 = vmatmul.mubr.msk.f32.gmra.mrb[60].mxu1 %vm2797_vm12, %v4080_v59 }
 0xd03   : > { %6715 = vmatprep.mubr.msk.f32.mxu1 %vm2797_vm12, %v4081_v5 }
 0xd06   : > { %6716 = vmatmul.mubr.msk.f32.gmra.mrb[62].mxu1 %vm2797_vm12, %v4082_v62 }
 0xd07   : > { %6718 = vmatprep.mubr.msk.f32.mxu1 %vm2797_vm12, %v4083_v47 }
 0xd0a   : > { %6719 = vmatmul.mubr.msk.f32.gmra.mrb[64].mxu1 %vm2797_vm12, %v4084_v63 }
 0xd0b   : > { %6721 = vmatprep.mubr.msk.f32.mxu1 %vm2797_vm12, %v4085_v48 }
 0xd0e   : > { %6722 = vmatmul.mubr.msk.f32.gmra.mrb[66].mxu1 %vm2797_vm12, %v4086_v50 }
 0xd0f   : > { %6724 = vmatprep.mubr.msk.f32.mxu1 %vm2797_vm12, %v4087_v11 }
 0xd12   : > { %6725 = vmatmul.mubr.msk.f32.gmra.mrb[68].mxu1 %vm2797_vm12, %v4088_v61 }
 0xd13   : > { %6727 = vmatprep.mubr.msk.f32.mxu1 %vm2797_vm12, %v4089_v22 }
 0xd16   : > { %6728 = vmatmul.mubr.msk.f32.gmra.mrb[70].mxu1 %vm2797_vm12, %v4090_v40 }
 0xd17   : > { %6730 = vmatprep.mubr.msk.f32.mxu1 %vm2797_vm12, %v4091_v28 }
 0xd1a   : > { %6731 = vmatmul.mubr.msk.f32.gmra.mrb[72].mxu1 %vm2797_vm12, %v4092_v9 }
 0xd1b   : > { %6733 = vmatprep.mubr.msk.f32.mxu1 %vm2797_vm12, %v4093_v36 }
 0xd1e   : > { %6734 = vmatmul.mubr.msk.f32.gmra.mrb[74].mxu1 %vm2797_vm12, %v4094_v38  ;;  %vm5239_vm12 = vcmask 458112  }
 0xdb5   : > { %v6690_v49 = vpop.f32.mrb[44].mxu1 }
 0xdb6   : > { %4461 = vst.msk [vmem:[#allocation6 + $0x19] sm:$0x7f] %vm2384_vm2, %v6690_v49  ;;  %4522 = vrot.lane.b32.xlu0 %v6690_v49, %s10358_s21  ;;  %v4257_v51 = vpop.f32.mrb[45].mxu1 }
 0xdb7   : > { %4520 = vrot.lane.b32.xlu1 %v4257_v51, %s10358_s21  ;;  %4460 = vst.msk [vmem:[#allocation6 + $0x11] sm:$0xff] %vm4459_vm0, %v4257_v51 }
 0xdb9   : > { %v9208_v52 = vpop.f32.mrb[46].mxu1 }
 0xdba   : > { %4642 = vrot.lane.b32.xlu0 %v6690_v49, %s10362_s28  ;;  %4463 = vst.msk [vmem:[#allocation6 + $0x29] sm:$0x7f] %vm2384_vm2, %v9208_v52  ;;  %v9213_v55 = vpop.f32.mrb[47].mxu1 }
 0xdbb   : > { %4640 = vrot.lane.b32.xlu1 %v4257_v51, %s10362_s28  ;;  %4462 = vst.msk [vmem:[#allocation6 + $0x21] sm:$0xff] %vm4459_vm0, %v9213_v55 }
 0xdbd   : > { %v9218_v53 = vpop.f32.mrb[48].mxu1 }
 0xdbe   : > { %4765 = vrot.lane.b32.xlu0 %v6690_v49, %s10359_s23  ;;  %4465 = vst.msk [vmem:[#allocation6 + $0x39] sm:$0x7f] %vm2384_vm2, %v9218_v53  ;;  %v9223_v7 = vpop.f32.mrb[49].mxu1 }
 0xdbf   : > { %4763 = vrot.lane.b32.xlu1 %v4257_v51, %s10359_s23  ;;  %4464 = vst.msk [vmem:[#allocation6 + $0x31] sm:$0xff] %vm4459_vm0, %v9223_v7 }
 0xdc1   : > { %v9228_v41 = vpop.f32.mrb[50].mxu1 }
 0xdc2   : > { %4894 = vrot.lane.b32.xlu0 %v6690_v49, %s10363_s3  ;;  %4467 = vst.msk [vmem:[#allocation6 + $0x49] sm:$0x7f] %vm2384_vm2, %v9228_v41  ;;  %v9233_v3 = vpop.f32.mrb[51].mxu1 }
 0xdc3   : > { %4892 = vrot.lane.b32.xlu1 %v4257_v51, %s10363_s3  ;;  %4466 = vst.msk [vmem:[#allocation6 + $0x41] sm:$0xff] %vm4459_vm0, %v9233_v3 }
 0xdc5   : > { %v9238_v42 = vpop.f32.mrb[52].mxu1 }
 0xdc6   : > { %5022 = vrot.lane.b32.xlu0 %v6690_v49, %s10366_s26  ;;  %4469 = vst.msk [vmem:[#allocation6 + $0x59] sm:$0x7f] %vm2384_vm2, %v9238_v42  ;;  %v9243_v58 = vpop.f32.mrb[53].mxu1 }
 0xdc7   : > { %5020 = vrot.lane.b32.xlu1 %v4257_v51, %s10366_s26  ;;  %4468 = vst.msk [vmem:[#allocation6 + $0x51] sm:$0xff] %vm4459_vm0, %v9243_v58 }
 0xdc9   : > { %v9248_v4 = vpop.f32.mrb[54].mxu1 }
 0xdca   : > { %4526 = vrot.lane.b32.xlu0 %v9208_v52, %s10358_s21  ;;  %4471 = vst.msk [vmem:[#allocation6 + $0x69] sm:$0x7f] %vm2384_vm2, %v9248_v4  ;;  %v9254_v54 = vpop.f32.mrb[55].mxu1 }
 0xdcb   : > { %4524 = vrot.lane.b32.xlu1 %v9213_v55, %s10358_s21  ;;  %4470 = vst.msk [vmem:[#allocation6 + $0x61] sm:$0xff] %vm4459_vm0, %v9254_v54 }
 0xdcd   : > { %v9323_v8 = vpop.f32.mrb[56].mxu1 }
 0xdce   : > { %4646 = vrot.lane.b32.xlu0 %v9208_v52, %s10362_s28  ;;  %4473 = vst.msk [vmem:[#allocation6 + $0x79] sm:$0x7f] %vm2384_vm2, %v9323_v8  ;;  %v9329_v20 = vpop.f32.mrb[57].mxu1 }
 0xdcf   : > { %4644 = vrot.lane.b32.xlu1 %v9213_v55, %s10362_s28  ;;  %4472 = vst.msk [vmem:[#allocation6 + $0x71] sm:$0xff] %vm4459_vm0, %v9329_v20 }
 0xdd1   : > { %v9371_v24 = vpop.f32.mrb[58].mxu1 }
 0xdd2   : > { %4769 = vrot.lane.b32.xlu0 %v9208_v52, %s10359_s23  ;;  %4475 = vst.msk [vmem:[#allocation6 + $0x89] sm:$0x7f] %vm2384_vm2, %v9371_v24  ;;  %v9377_v25 = vpop.f32.mrb[59].mxu1 }
 0xdd3   : > { %4767 = vrot.lane.b32.xlu1 %v9213_v55, %s10359_s23  ;;  %4474 = vst.msk [vmem:[#allocation6 + $0x81] sm:$0xff] %vm4459_vm0, %v9377_v25 }
 0xdd5   : > { %v9420_v34 = vpop.f32.mrb[60].mxu1 }
 0xdd6   : > { %5151 = vrot.lane.b32.xlu0 %v9208_v52, %s10369_s4  ;;  %4477 = vst.msk [vmem:[#allocation6 + $0x99] sm:$0x7f] %vm2384_vm2, %v9420_v34  ;;  %v9427_v2 = vpop.f32.mrb[61].mxu1 }
 0xdd7   : > { %5149 = vrot.lane.b32.xlu1 %v9213_v55, %s10369_s4  ;;  %4476 = vst.msk [vmem:[#allocation6 + $0x91] sm:$0xff] %vm4459_vm0, %v9427_v2 }
 0xdd9   : > { %v9484_v59 = vpop.f32.mrb[62].mxu1 }
 0xdda   : > { %5272 = vrot.lane.b32.xlu0 %v9208_v52, %s10365_s30  ;;  %4479 = vst.msk [vmem:[#allocation6 + $0xa9] sm:$0x7f] %vm2384_vm2, %v9484_v59  ;;  %v9491_v5 = vpop.f32.mrb[63].mxu1 }
 0xddb   : > { %5270 = vrot.lane.b32.xlu1 %v9213_v55, %s10365_s30  ;;  %4478 = vst.msk [vmem:[#allocation6 + $0xa1] sm:$0xff] %vm4459_vm0, %v9491_v5 }
 0xddd   : > { %v9542_v57 = vpop.f32.mrb[64].mxu1 }
 0xdde   : > { %4898 = vrot.lane.b32.xlu0 %v9208_v52, %s10363_s3  ;;  %4481 = vst.msk [vmem:[#allocation6 + $0xb9] sm:$0x7f] %vm2384_vm2, %v9542_v57  ;;  %v9549_v17 = vpop.f32.mrb[65].mxu1 }
 0xddf   : > { %4896 = vrot.lane.b32.xlu1 %v9213_v55, %s10363_s3  ;;  %4480 = vst.msk [vmem:[#allocation6 + $0xb1] sm:$0xff] %vm4459_vm0, %v9549_v17 }
 0xde2   : > { %5392 = vrot.lane.b32.xlu0 %v9208_v52, %s10372_s5 }
 0xde3   : > { %5390 = vrot.lane.b32.xlu1 %v9213_v55, %s10372_s5 }
 0xde6   : > { %5026 = vrot.lane.b32.xlu0 %v9208_v52, %s10366_s26 }
 0xde7   : > { %5024 = vrot.lane.b32.xlu1 %v9213_v55, %s10366_s26 }
 0xdea   : > { %4530 = vrot.lane.b32.xlu0 %v9218_v53, %s10358_s21 }
 0xdeb   : > { %4528 = vrot.lane.b32.xlu1 %v9223_v7, %s10358_s21 }
 0xdee   : > { %4650 = vrot.lane.b32.xlu0 %v9218_v53, %s10362_s28 }
 0xdef   : > { %4648 = vrot.lane.b32.xlu1 %v9223_v7, %s10362_s28 }
 0xdf2   : > { %4773 = vrot.lane.b32.xlu0 %v9218_v53, %s10359_s23 }
 0xdf3   : > { %4771 = vrot.lane.b32.xlu1 %v9223_v7, %s10359_s23 }
 0xdf6   : > { %5155 = vrot.lane.b32.xlu0 %v9218_v53, %s10369_s4 }
 0xdf7   : > { %5153 = vrot.lane.b32.xlu1 %v9223_v7, %s10369_s4 }
 0xdfa   : > { %5276 = vrot.lane.b32.xlu0 %v9218_v53, %s10365_s30 }
 0xdfb   : > { %5274 = vrot.lane.b32.xlu1 %v9223_v7, %s10365_s30 }
 0xdfe   : > { %4902 = vrot.lane.b32.xlu0 %v9218_v53, %s10363_s3 }
 0xdff   : > { %4900 = vrot.lane.b32.xlu1 %v9223_v7, %s10363_s3 }
 0xe02   : > { %5396 = vrot.lane.b32.xlu0 %v9218_v53, %s10372_s5 }
 0xe03   : > { %5394 = vrot.lane.b32.xlu1 %v9223_v7, %s10372_s5 }
 0xe06   : > { %5030 = vrot.lane.b32.xlu0 %v9218_v53, %s10366_s26 }
 0xe07   : > { %5028 = vrot.lane.b32.xlu1 %v9223_v7, %s10366_s26 }
 0xe0a   : > { %4534 = vrot.lane.b32.xlu0 %v9228_v41, %s10358_s21 }
 0xe0b   : > { %4532 = vrot.lane.b32.xlu1 %v9233_v3, %s10358_s21 }
 0xe0e   : > { %4654 = vrot.lane.b32.xlu0 %v9228_v41, %s10362_s28 }
 0xe0f   : > { %4652 = vrot.lane.b32.xlu1 %v9233_v3, %s10362_s28 }
 0xe12   : > { %4777 = vrot.lane.b32.xlu0 %v9228_v41, %s10359_s23 }
 0xe13   : > { %4775 = vrot.lane.b32.xlu1 %v9233_v3, %s10359_s23 }
 0xe16   : > { %5159 = vrot.lane.b32.xlu0 %v9228_v41, %s10369_s4 }
 0xe17   : > { %5157 = vrot.lane.b32.xlu1 %v9233_v3, %s10369_s4 }
 0xe1a   : > { %5280 = vrot.lane.b32.xlu0 %v9228_v41, %s10365_s30 }
 0xe1b   : > { %5278 = vrot.lane.b32.xlu1 %v9233_v3, %s10365_s30 }
 0xe1e   : > { %4906 = vrot.lane.b32.xlu0 %v9228_v41, %s10363_s3 }
 0xe1f   : > { %4904 = vrot.lane.b32.xlu1 %v9233_v3, %s10363_s3 }
 0xe22   : > { %5400 = vrot.lane.b32.xlu0 %v9228_v41, %s10372_s5 }
 0xe23   : > { %5398 = vrot.lane.b32.xlu1 %v9233_v3, %s10372_s5 }
 0xe26   : > { %5034 = vrot.lane.b32.xlu0 %v9228_v41, %s10366_s26 }
 0xe27   : > { %5032 = vrot.lane.b32.xlu1 %v9233_v3, %s10366_s26 }
 0xe28   : > { %v4523_v16 = vpop.permute.xlu0 %4522 }
 0xe29   : > { %4611 = vst.msk [vmem:[#allocation6 + $0x18] sm:$0xff] %vm2420_vm4, %v4523_v16  ;;  %v4521_v31 = vpop.permute.xlu1 %4520 }
 0xe2a   : > { %4610 = vst.msk [vmem:[#allocation6 + $0x10] sm:$0xff] %vm2420_vm4, %v4521_v31  ;;  %4538 = vrot.lane.b32.xlu0 %v9238_v42, %s10358_s21 }
 0xe2b   : > { %4536 = vrot.lane.b32.xlu1 %v9243_v58, %s10358_s21 }
 0xe2c   : > { %v4643_v1 = vpop.permute.xlu0 %4642 }
 0xe2d   : > { %4732 = vst.msk [vmem:[#allocation6 + $0x17] sm:$0xff] %vm4731_vm8, %v4643_v1  ;;  %v4641_v26 = vpop.permute.xlu1 %4640  ;;  %v9600_v1 = vpop.f32.mrb[66].mxu1 }
 0xe2e   : > { %4730 = vst.msk [vmem:[#allocation6 + $0xf] sm:$0xfe] %vm2449_vm5, %v4641_v26  ;;  %4658 = vrot.lane.b32.xlu0 %v9238_v42, %s10362_s28  ;;  %v9607_v26 = vpop.f32.mrb[67].mxu1 }
 0xe2f   : > { %4656 = vrot.lane.b32.xlu1 %v9243_v58, %s10362_s28  ;;  %4483 = vst.msk [vmem:[#allocation6 + $0xc9] sm:$0x7f] %vm2384_vm2, %v9600_v1 }
 0xe30   : > { %v4766_v27 = vpop.permute.xlu0 %4765  ;;  %4482 = vst.msk [vmem:[#allocation6 + $0xc1] sm:$0xff] %vm4459_vm0, %v9607_v26 }
 0xe31   : > { %4861 = vst.msk [vmem:[#allocation6 + $0x9] sm:$0x7f] %vm2482_vm6, %v4766_v27  ;;  %v4764_v21 = vpop.permute.xlu1 %4763 }
 0xe32   : > { %4860 = vst.msk [vmem:[#allocation6 + $0x1] sm:$0xff] %vm4859_vm11, %v4764_v21  ;;  %4781 = vrot.lane.b32.xlu0 %v9238_v42, %s10359_s23 }
 0xe33   : > { %4779 = vrot.lane.b32.xlu1 %v9243_v58, %s10359_s23 }
 0xe34   : > { %v4895_v29 = vpop.permute.xlu0 %4894 }
 0xe35   : > { %4989 = vst.msk [vmem:[#allocation6 + $0x8] sm:$0xff] %vm2515_vm7, %v4895_v29  ;;  %v4893_v37 = vpop.permute.xlu1 %4892 }
 0xe36   : > { %4988 = vst.msk [vmem:[#allocation6] sm:$0xff] %vm2515_vm7, %v4893_v37  ;;  %5163 = vrot.lane.b32.xlu0 %v9238_v42, %s10369_s4 }
 0xe37   : > { %5161 = vrot.lane.b32.xlu1 %v9243_v58, %s10369_s4 }
 0xe38   : > { %v5023_v39 = vpop.permute.xlu0 %5022 }
 0xe39   : > { %5118 = vst.msk [vmem:[#allocation6 + $0x7] sm:$0xff] %vm5117_vm15, %v5023_v39  ;;  %v5021_v32 = vpop.permute.xlu1 %5020 }
 0xe3a   : > { %5116 = vst.msk [vmem:[#allocation6 - $0x1] sm:$0xfe] %vm10378_vm3, %v5021_v32  ;;  %5284 = vrot.lane.b32.xlu0 %v9238_v42, %s10365_s30 }
 0xe3b   : > { %5282 = vrot.lane.b32.xlu1 %v9243_v58, %s10365_s30 }
 0xe3c   : > { %v4527_v30 = vpop.permute.xlu0 %4526 }
 0xe3d   : > { %4613 = vst.msk [vmem:[#allocation6 + $0x28] sm:$0xff] %vm2420_vm4, %v4527_v30  ;;  %v4525_v33 = vpop.permute.xlu1 %4524 }
 0xe3e   : > { %4612 = vst.msk [vmem:[#allocation6 + $0x20] sm:$0xff] %vm2420_vm4, %v4525_v33  ;;  %4910 = vrot.lane.b32.xlu0 %v9238_v42, %s10363_s3 }
 0xe3f   : > { %4908 = vrot.lane.b32.xlu1 %v9243_v58, %s10363_s3 }
 0xe40   : > { %v4647_v15 = vpop.permute.xlu0 %4646 }
 0xe41   : > { %4734 = vst.msk [vmem:[#allocation6 + $0x27] sm:$0xff] %vm4731_vm8, %v4647_v15  ;;  %v4645_v23 = vpop.permute.xlu1 %4644 }
 0xe42   : > { %4733 = vst.msk [vmem:[#allocation6 + $0x1f] sm:$0xfe] %vm2449_vm5, %v4645_v23  ;;  %5404 = vrot.lane.b32.xlu0 %v9238_v42, %s10372_s5 }
 0xe43   : > { %5402 = vrot.lane.b32.xlu1 %v9243_v58, %s10372_s5 }
 0xe44   : > { %v4770_v43 = vpop.permute.xlu0 %4769 }
 0xe45   : > { %4863 = vst.msk [vmem:[#allocation6 + $0x19] sm:$0x7f] %vm2482_vm6, %v4770_v43  ;;  %v4768_v44 = vpop.permute.xlu1 %4767 }
 0xe46   : > { %4862 = vst.msk [vmem:[#allocation6 + $0x11] sm:$0xff] %vm4859_vm11, %v4768_v44  ;;  %5038 = vrot.lane.b32.xlu0 %v9238_v42, %s10366_s26 }
 0xe47   : > { %5036 = vrot.lane.b32.xlu1 %v9243_v58, %s10366_s26 }
 0xe48   : > { %v5152_v45 = vpop.permute.xlu0 %5151 }
 0xe49   : > { %5241 = vst.msk [vmem:[#allocation6 + $0x9] sm:$0x7f] %vm10379_vm13, %v5152_v45  ;;  %v5150_v46 = vpop.permute.xlu1 %5149  ;;  %vm10383_vm13 = vcmask 588800  }
 0xe4a   : > { %5240 = vst.msk [vmem:[#allocation6 + $0x1] sm:$0xff] %vm5239_vm12, %v5150_v46  ;;  %4542 = vrot.lane.b32.xlu0 %v9248_v4, %s10358_s21 }
 0xe4b   : > { %4540 = vrot.lane.b32.xlu1 %v9254_v54, %s10358_s21 }
 0xe4c   : > { %v5273_v62 = vpop.permute.xlu0 %5272 }
 0xe4d   : > { %5361 = vst.msk [vmem:[#allocation6 + $0x8] sm:$0xff] %vm10380_vm1, %v5273_v62  ;;  %v5271_v47 = vpop.permute.xlu1 %5270  ;;  %vm10384_vm1 = vmmov %vm10383_vm13  ;;  %v9661_v62 = vpop.f32.mrb[68].mxu1 }
 0xe4e   : > { %5360 = vst.msk [vmem:[#allocation6] sm:$0xff] %vm10381_vm14, %v5271_v47  ;;  %4662 = vrot.lane.b32.xlu0 %v9248_v4, %s10362_s28  ;;  %vm10385_vm14 = vcmask 457088  }
 0xe4f   : > { %4660 = vrot.lane.b32.xlu1 %v9254_v54, %s10362_s28  ;;  %4485 = vst.msk [vmem:[#allocation6 + $0xd9] sm:$0x7f] %vm2384_vm2, %v9661_v62 }
 0xe50   : > { %v4899_v63 = vpop.permute.xlu0 %4898 }
 0xe51   : > { %4991 = vst.msk [vmem:[#allocation6 + $0x18] sm:$0xff] %vm2515_vm7, %v4899_v63  ;;  %v4897_v48 = vpop.permute.xlu1 %4896 }
 0xe52   : > { %4990 = vst.msk [vmem:[#allocation6 + $0x10] sm:$0xff] %vm2515_vm7, %v4897_v48  ;;  %4785 = vrot.lane.b32.xlu0 %v9248_v4, %s10359_s23 }
 0xe53   : > { %4783 = vrot.lane.b32.xlu1 %v9254_v54, %s10359_s23 }
 0xe54   : > { %v5393_v49 = vpop.permute.xlu0 %5392 }
 0xe55   : > { %5482 = vst.msk [vmem:[#allocation6 + $0x7] sm:$0xff] %vm5481_vm10, %v5393_v49  ;;  %v5391_v50 = vpop.permute.xlu1 %5390 }
 0xe56   : > { %5480 = vst.msk [vmem:[#allocation6 - $0x1] sm:$0xfe] %vm10382_vm9, %v5391_v50  ;;  %5167 = vrot.lane.b32.xlu0 %v9248_v4, %s10369_s4  ;;  %vm10386_vm9 = vcmask 523712  }
 0xe57   : > { %5165 = vrot.lane.b32.xlu1 %v9254_v54, %s10369_s4 }
 0xe58   : > { %v5027_v51 = vpop.permute.xlu0 %5026 }
 0xe59   : > { %5120 = vst.msk [vmem:[#allocation6 + $0x17] sm:$0xff] %vm5117_vm15, %v5027_v51  ;;  %v5025_v52 = vpop.permute.xlu1 %5024 }
 0xe5a   : > { %5119 = vst.msk [vmem:[#allocation6 + $0xf] sm:$0xfe] %vm10378_vm3, %v5025_v52  ;;  %5288 = vrot.lane.b32.xlu0 %v9248_v4, %s10365_s30  ;;  %vm10387_vm3 = vmmov %vm10386_vm9 }
 0xe5b   : > { %5286 = vrot.lane.b32.xlu1 %v9254_v54, %s10365_s30 }
 0xe5c   : > { %v4531_v55 = vpop.permute.xlu0 %4530  ;;  %v5512_v41 = vld [vmem:[#allocation6 + $0x8] sm:$0xff] }
 0xe5d   : > { %4615 = vst.msk [vmem:[#allocation6 + $0x38] sm:$0xff] %vm2420_vm4, %v4531_v55  ;;  %v4529_v53 = vpop.permute.xlu1 %4528  ;;  %v5511_v7 = vld [vmem:[#allocation6] sm:$0xff] }
 0xe5e   : > { %4614 = vst.msk [vmem:[#allocation6 + $0x30] sm:$0xff] %vm2420_vm4, %v4529_v53  ;;  %6754 = vmatprep.mubr.msk.f32.mxu0 %vm10383_vm13, %v5511_v7  ;;  %4914 = vrot.lane.b32.xlu0 %v9248_v4, %s10363_s3  ;;  %vm10388_vm13 = vcmask 589313  }
 0xe5f   : > { %6755 = vmatmul.mubr.msk.f32.vlgmr.msra.gmra.mrb[44].mxu0 %vm10384_vm1, %v5512_v41  ;;  %4912 = vrot.lane.b32.xlu1 %v9254_v54, %s10363_s3  ;;  %vm10389_vm1 = vcmask 392513  }
 0xe60   : > { %v4651_v3 = vpop.permute.xlu0 %4650 }
 0xe61   : > { %4736 = vst.msk [vmem:[#allocation6 + $0x37] sm:$0xff] %vm4731_vm8, %v4651_v3  ;;  %v4649_v42 = vpop.permute.xlu1 %4648 }
 0xe62   : > { %4735 = vst.msk [vmem:[#allocation6 + $0x2f] sm:$0xfe] %vm2449_vm5, %v4649_v42  ;;  %5408 = vrot.lane.b32.xlu0 %v9248_v4, %s10372_s5 }
 0xe63   : > { %5406 = vrot.lane.b32.xlu1 %v9254_v54, %s10372_s5 }
 0xe64   : > { %v4774_v58 = vpop.permute.xlu0 %4773 }
 0xe65   : > { %4865 = vst.msk [vmem:[#allocation6 + $0x29] sm:$0x7f] %vm2482_vm6, %v4774_v58  ;;  %v4772_v35 = vpop.permute.xlu1 %4771 }
 0xe66   : > { %4864 = vst.msk [vmem:[#allocation6 + $0x21] sm:$0xff] %vm4859_vm11, %v4772_v35  ;;  %5042 = vrot.lane.b32.xlu0 %v9248_v4, %s10366_s26 }
 0xe67   : > { %5040 = vrot.lane.b32.xlu1 %v9254_v54, %s10366_s26 }
 0xe68   : > { %v5156_v56 = vpop.permute.xlu0 %5155 }
 0xe69   : > { %5243 = vst.msk [vmem:[#allocation6 + $0x19] sm:$0x7f] %vm10385_vm14, %v5156_v56  ;;  %v5154_v0 = vpop.permute.xlu1 %5153  ;;  %vm10390_vm14 = vcmask 588800  }
 0xe6a   : > { %5242 = vst.msk [vmem:[#allocation6 + $0x11] sm:$0xff] %vm5239_vm12, %v5154_v0  ;;  %4546 = vrot.lane.b32.xlu0 %v9323_v8, %s10358_s21 }
 0xe6b   : > { %4544 = vrot.lane.b32.xlu1 %v9329_v20, %s10358_s21 }
 0xe6c   : > { %v5277_v4 = vpop.permute.xlu0 %5276 }
 0xe6d   : > { %5363 = vst.msk [vmem:[#allocation6 + $0x18] sm:$0xff] %vm10386_vm9, %v5277_v4  ;;  %v5275_v54 = vpop.permute.xlu1 %5274  ;;  %vm10391_vm9 = vmmov %vm10390_vm14 }
 0xe6e   : > { %5362 = vst.msk [vmem:[#allocation6 + $0x10] sm:$0xff] %vm10387_vm3, %v5275_v54  ;;  %4666 = vrot.lane.b32.xlu0 %v9323_v8, %s10362_s28  ;;  %vm10392_vm3 = vcmask 457088  }
 0xe6f   : > { %4664 = vrot.lane.b32.xlu1 %v9329_v20, %s10362_s28 }
 0xe70   : > { %v4903_v18 = vpop.permute.xlu0 %4902 }
 0xe71   : > { %4993 = vst.msk [vmem:[#allocation6 + $0x28] sm:$0xff] %vm2515_vm7, %v4903_v18  ;;  %v4901_v6 = vpop.permute.xlu1 %4900 }
 0xe72   : > { %4992 = vst.msk [vmem:[#allocation6 + $0x20] sm:$0xff] %vm2515_vm7, %v4901_v6  ;;  %5171 = vrot.lane.b32.xlu0 %v9323_v8, %s10369_s4 }
 0xe73   : > { %5169 = vrot.lane.b32.xlu1 %v9329_v20, %s10369_s4 }
 0xe74   : > { %v5397_v10 = vpop.permute.xlu0 %5396 }
 0xe75   : > { %5484 = vst.msk [vmem:[#allocation6 + $0x17] sm:$0xff] %vm5481_vm10, %v5397_v10  ;;  %v5395_v11 = vpop.permute.xlu1 %5394 }
 0xe76   : > { %5483 = vst.msk [vmem:[#allocation6 + $0xf] sm:$0xfe] %vm10388_vm13, %v5395_v11  ;;  %4789 = vrot.lane.b32.xlu0 %v9323_v8, %s10359_s23  ;;  %vm10393_vm13 = vcmask 523712  }
 0xe77   : > { %4787 = vrot.lane.b32.xlu1 %v9329_v20, %s10359_s23 }
 0xe78   : > { %v5031_v60 = vpop.permute.xlu0 %5030 }
 0xe79   : > { %5122 = vst.msk [vmem:[#allocation6 + $0x27] sm:$0xff] %vm5117_vm15, %v5031_v60  ;;  %v5029_v61 = vpop.permute.xlu1 %5028 }
 0xe7a   : > { %5121 = vst.msk [vmem:[#allocation6 + $0x1f] sm:$0xfe] %vm10389_vm1, %v5029_v61  ;;  %5292 = vrot.lane.b32.xlu0 %v9323_v8, %s10365_s30  ;;  %vm10394_vm1 = vmmov %vm10393_vm13 }
 0xe7b   : > { %5290 = vrot.lane.b32.xlu1 %v9329_v20, %s10365_s30 }
 0xe7c   : > { %v4535_v12 = vpop.permute.xlu0 %4534  ;;  %v5514_v19 = vld [vmem:[#allocation6 + $0x18] sm:$0xff] }
 0xe7d   : > { %4617 = vst.msk [vmem:[#allocation6 + $0x48] sm:$0xff] %vm2420_vm4, %v4535_v12  ;;  %v4533_v13 = vpop.permute.xlu1 %4532  ;;  %v5513_v14 = vld [vmem:[#allocation6 + $0x10] sm:$0xff] }
 0xe7e   : > { %4616 = vst.msk [vmem:[#allocation6 + $0x40] sm:$0xff] %vm2420_vm4, %v4533_v13  ;;  %6757 = vmatprep.mubr.msk.f32.mxu0 %vm10390_vm14, %v5513_v14  ;;  %4918 = vrot.lane.b32.xlu0 %v9323_v8, %s10363_s3  ;;  %vm10395_vm14 = vcmask 589313  }
 0xe7f   : > { %6758 = vmatmul.mubr.msk.f32.gmra.mrb[46].mxu0 %vm10391_vm9, %v5514_v19  ;;  %4916 = vrot.lane.b32.xlu1 %v9329_v20, %s10363_s3  ;;  %vm10396_vm9 = vcmask 392513  }
 0xe80   : > { %v4655_v22 = vpop.permute.xlu0 %4654 }
 0xe81   : > { %4738 = vst.msk [vmem:[#allocation6 + $0x47] sm:$0xff] %vm4731_vm8, %v4655_v22  ;;  %v4653_v40 = vpop.permute.xlu1 %4652 }
 0xe82   : > { %4737 = vst.msk [vmem:[#allocation6 + $0x3f] sm:$0xfe] %vm2449_vm5, %v4653_v40  ;;  %5412 = vrot.lane.b32.xlu0 %v9323_v8, %s10372_s5 }
 0xe83   : > { %5410 = vrot.lane.b32.xlu1 %v9329_v20, %s10372_s5 }
 0xe84   : > { %v4778_v28 = vpop.permute.xlu0 %4777 }
 0xe85   : > { %4867 = vst.msk [vmem:[#allocation6 + $0x39] sm:$0x7f] %vm2482_vm6, %v4778_v28  ;;  %v4776_v9 = vpop.permute.xlu1 %4775 }
 0xe86   : > { %4866 = vst.msk [vmem:[#allocation6 + $0x31] sm:$0xff] %vm4859_vm11, %v4776_v9  ;;  %5046 = vrot.lane.b32.xlu0 %v9323_v8, %s10366_s26 }
 0xe87   : > { %5044 = vrot.lane.b32.xlu1 %v9329_v20, %s10366_s26 }
 0xe88   : > { %v5160_v16 = vpop.permute.xlu0 %5159 }
 0xe89   : > { %5245 = vst.msk [vmem:[#allocation6 + $0x29] sm:$0x7f] %vm10392_vm3, %v5160_v16  ;;  %v5158_v31 = vpop.permute.xlu1 %5157  ;;  %vm10397_vm3 = vcmask 588800  }
 0xe8a   : > { %5244 = vst.msk [vmem:[#allocation6 + $0x21] sm:$0xff] %vm5239_vm12, %v5158_v31  ;;  %4550 = vrot.lane.b32.xlu0 %v9371_v24, %s10358_s21 }
 0xe8b   : > { %4548 = vrot.lane.b32.xlu1 %v9377_v25, %s10358_s21 }
 0xe8c   : > { %v5281_v8 = vpop.permute.xlu0 %5280 }
 0xe8d   : > { %5365 = vst.msk [vmem:[#allocation6 + $0x28] sm:$0xff] %vm10393_vm13, %v5281_v8  ;;  %v5279_v20 = vpop.permute.xlu1 %5278  ;;  %vm10398_vm13 = vmmov %vm10397_vm3 }
 0xe8e   : > { %5364 = vst.msk [vmem:[#allocation6 + $0x20] sm:$0xff] %vm10394_vm1, %v5279_v20  ;;  %4670 = vrot.lane.b32.xlu0 %v9371_v24, %s10362_s28  ;;  %vm10399_vm1 = vcmask 457088  }
 0xe8f   : > { %4668 = vrot.lane.b32.xlu1 %v9377_v25, %s10362_s28 }
 0xe90   : > { %v4907_v27 = vpop.permute.xlu0 %4906 }
 0xe91   : > { %4995 = vst.msk [vmem:[#allocation6 + $0x38] sm:$0xff] %vm2515_vm7, %v4907_v27  ;;  %v4905_v21 = vpop.permute.xlu1 %4904 }
 0xe92   : > { %4994 = vst.msk [vmem:[#allocation6 + $0x30] sm:$0xff] %vm2515_vm7, %v4905_v21  ;;  %5175 = vrot.lane.b32.xlu0 %v9371_v24, %s10369_s4 }
 0xe93   : > { %5173 = vrot.lane.b32.xlu1 %v9377_v25, %s10369_s4 }
 0xe94   : > { %v5401_v29 = vpop.permute.xlu0 %5400 }
 0xe95   : > { %5486 = vst.msk [vmem:[#allocation6 + $0x27] sm:$0xff] %vm5481_vm10, %v5401_v29  ;;  %v5399_v36 = vpop.permute.xlu1 %5398 }
 0xe96   : > { %5485 = vst.msk [vmem:[#allocation6 + $0x1f] sm:$0xfe] %vm10395_vm14, %v5399_v36  ;;  %4793 = vrot.lane.b32.xlu0 %v9371_v24, %s10359_s23  ;;  %vm10400_vm14 = vcmask 523712  }
 0xe97   : > { %4791 = vrot.lane.b32.xlu1 %v9377_v25, %s10359_s23 }
 0xe98   : > { %v5035_v37 = vpop.permute.xlu0 %5034 }
 0xe99   : > { %5124 = vst.msk [vmem:[#allocation6 + $0x37] sm:$0xff] %vm5117_vm15, %v5035_v37  ;;  %v5033_v38 = vpop.permute.xlu1 %5032 }
 0xe9a   : > { %5123 = vst.msk [vmem:[#allocation6 + $0x2f] sm:$0xfe] %vm10396_vm9, %v5033_v38  ;;  %5296 = vrot.lane.b32.xlu0 %v9371_v24, %s10365_s30  ;;  %vm10401_vm9 = vmmov %vm10400_vm14 }
 0xe9b   : > { %5294 = vrot.lane.b32.xlu1 %v9377_v25, %s10365_s30 }
 0xe9c   : > { %v4539_v39 = vpop.permute.xlu0 %4538  ;;  %v5516_v33 = vld [vmem:[#allocation6 + $0x28] sm:$0xff] }
 0xe9d   : > { %4619 = vst.msk [vmem:[#allocation6 + $0x58] sm:$0xff] %vm2420_vm4, %v4539_v39  ;;  %v4537_v32 = vpop.permute.xlu1 %4536  ;;  %v5515_v30 = vld [vmem:[#allocation6 + $0x20] sm:$0xff] }
 0xe9e   : > { %4618 = vst.msk [vmem:[#allocation6 + $0x50] sm:$0xff] %vm2420_vm4, %v4537_v32  ;;  %6760 = vmatprep.mubr.msk.f32.mxu0 %vm10397_vm3, %v5515_v30  ;;  %4922 = vrot.lane.b32.xlu0 %v9371_v24, %s10363_s3  ;;  %vm10402_vm3 = vcmask 589313  }
 0xe9f   : > { %6761 = vmatmul.mubr.msk.f32.gmra.mrb[48].mxu0 %vm10398_vm13, %v5516_v33  ;;  %4920 = vrot.lane.b32.xlu1 %v9377_v25, %s10363_s3  ;;  %vm10403_vm13 = vcmask 392513  }
 0xea0   : > { %v4659_v15 = vpop.permute.xlu0 %4658 }
 0xea1   : > { %4740 = vst.msk [vmem:[#allocation6 + $0x57] sm:$0xff] %vm4731_vm8, %v4659_v15  ;;  %v4657_v23 = vpop.permute.xlu1 %4656 }
 0xea2   : > { %4739 = vst.msk [vmem:[#allocation6 + $0x4f] sm:$0xfe] %vm2449_vm5, %v4657_v23  ;;  %5416 = vrot.lane.b32.xlu0 %v9371_v24, %s10372_s5 }
 0xea3   : > { %5414 = vrot.lane.b32.xlu1 %v9377_v25, %s10372_s5 }
 0xea4   : > { %v4782_v43 = vpop.permute.xlu0 %4781 }
 0xea5   : > { %4869 = vst.msk [vmem:[#allocation6 + $0x49] sm:$0x7f] %vm2482_vm6, %v4782_v43  ;;  %v4780_v44 = vpop.permute.xlu1 %4779 }
 0xea6   : > { %4868 = vst.msk [vmem:[#allocation6 + $0x41] sm:$0xff] %vm4859_vm11, %v4780_v44  ;;  %5050 = vrot.lane.b32.xlu0 %v9371_v24, %s10366_s26  ;;  %v9667_v24 = vpop.f32.mrb[69].mxu1 }
 0xea7   : > { %5048 = vrot.lane.b32.xlu1 %v9377_v25, %s10366_s26  ;;  %4484 = vst.msk [vmem:[#allocation6 + $0xd1] sm:$0xff] %vm4459_vm0, %v9667_v24  ;;  %v9716_v4 = vpop.f32.mrb[70].mxu1 }
 0xea8   : > { %v5164_v45 = vpop.permute.xlu0 %5163  ;;  %4487 = vst.msk [vmem:[#allocation6 + $0xe9] sm:$0x7f] %vm2384_vm2, %v9716_v4  ;;  %v9723_v54 = vpop.f32.mrb[71].mxu1 }
 0xea9   : > { %5247 = vst.msk [vmem:[#allocation6 + $0x39] sm:$0x7f] %vm10399_vm1, %v5164_v45  ;;  %v5162_v46 = vpop.permute.xlu1 %5161  ;;  %vm10404_vm1 = vcmask 588800   ;;  %v9774_v8 = vpop.f32.mrb[72].mxu1 }
 0xeaa   : > { %5246 = vst.msk [vmem:[#allocation6 + $0x31] sm:$0xff] %vm5239_vm12, %v5162_v46  ;;  %4554 = vrot.lane.b32.xlu0 %v9420_v34, %s10358_s21  ;;  %v9781_v20 = vpop.f32.mrb[73].mxu1 }
 0xeab   : > { %4552 = vrot.lane.b32.xlu1 %v9427_v2, %s10358_s21  ;;  %4486 = vst.msk [vmem:[#allocation6 + $0xe1] sm:$0xff] %vm4459_vm0, %v9723_v54  ;;  %4488 = vst.msk [vmem:[#allocation6 + $0xf1] sm:$0xff] %vm4459_vm0, %v9781_v20  ;;  %vm10417_vm0 = vcmask 392513  }
 0xeac   : > { %v5285_v25 = vpop.permute.xlu0 %5284  ;;  %4489 = vst.msk [vmem:[#allocation6 + $0xf9] sm:$0x7f] %vm2384_vm2, %v9774_v8  ;;  %vm10416_vm2 = vcmask 589313  }
 0xead   : > { %5367 = vst.msk [vmem:[#allocation6 + $0x38] sm:$0xff] %vm10400_vm14, %v5285_v25  ;;  %v5283_v47 = vpop.permute.xlu1 %5282  ;;  %vm10405_vm14 = vmmov %vm10404_vm1  ;;  %v9832_v25 = vpop.f32.mrb[74].mxu1 }
 0xeae   : > { %5366 = vst.msk [vmem:[#allocation6 + $0x30] sm:$0xff] %vm10401_vm9, %v5283_v47  ;;  %4674 = vrot.lane.b32.xlu0 %v9420_v34, %s10362_s28  ;;  %vm10406_vm9 = vcmask 457088   ;;  %v9837_v47 = vpop.f32.mrb[75].mxu1 }
 0xeaf   : > { %4672 = vrot.lane.b32.xlu1 %v9427_v2, %s10362_s28 }
 0xeb0   : > { %v4911_v63 = vpop.permute.xlu0 %4910 }
 0xeb1   : > { %4997 = vst.msk [vmem:[#allocation6 + $0x48] sm:$0xff] %vm2515_vm7, %v4911_v63  ;;  %v4909_v48 = vpop.permute.xlu1 %4908 }
 0xeb2   : > { %4996 = vst.msk [vmem:[#allocation6 + $0x40] sm:$0xff] %vm2515_vm7, %v4909_v48  ;;  %5179 = vrot.lane.b32.xlu0 %v9420_v34, %s10369_s4 }
 0xeb3   : > { %5177 = vrot.lane.b32.xlu1 %v9427_v2, %s10369_s4 }
 0xeb4   : > { %v5405_v49 = vpop.permute.xlu0 %5404 }
 0xeb5   : > { %5488 = vst.msk [vmem:[#allocation6 + $0x37] sm:$0xff] %vm5481_vm10, %v5405_v49  ;;  %v5403_v50 = vpop.permute.xlu1 %5402 }
 0xeb6   : > { %5487 = vst.msk [vmem:[#allocation6 + $0x2f] sm:$0xfe] %vm10402_vm3, %v5403_v50  ;;  %4797 = vrot.lane.b32.xlu0 %v9420_v34, %s10359_s23  ;;  %vm10407_vm3 = vcmask 523712  }
 0xeb7   : > { %4795 = vrot.lane.b32.xlu1 %v9427_v2, %s10359_s23 }
 0xeb8   : > { %v5039_v51 = vpop.permute.xlu0 %5038 }
 0xeb9   : > { %5126 = vst.msk [vmem:[#allocation6 + $0x47] sm:$0xff] %vm5117_vm15, %v5039_v51  ;;  %v5037_v52 = vpop.permute.xlu1 %5036 }
 0xeba   : > { %5125 = vst.msk [vmem:[#allocation6 + $0x3f] sm:$0xfe] %vm10403_vm13, %v5037_v52  ;;  %5300 = vrot.lane.b32.xlu0 %v9420_v34, %s10365_s30  ;;  %vm10408_vm13 = vmmov %vm10407_vm3 }
 0xebb   : > { %5298 = vrot.lane.b32.xlu1 %v9427_v2, %s10365_s30 }
 0xebc   : > { %v4543_v55 = vpop.permute.xlu0 %4542  ;;  %v5518_v41 = vld [vmem:[#allocation6 + $0x38] sm:$0xff] }
 0xebd   : > { %4621 = vst.msk [vmem:[#allocation6 + $0x68] sm:$0xff] %vm2420_vm4, %v4543_v55  ;;  %v4541_v53 = vpop.permute.xlu1 %4540  ;;  %v5517_v7 = vld [vmem:[#allocation6 + $0x30] sm:$0xff] }
 0xebe   : > { %4620 = vst.msk [vmem:[#allocation6 + $0x60] sm:$0xff] %vm2420_vm4, %v4541_v53  ;;  %6763 = vmatprep.mubr.msk.f32.mxu0 %vm10404_vm1, %v5517_v7  ;;  %4926 = vrot.lane.b32.xlu0 %v9420_v34, %s10363_s3  ;;  %vm10409_vm1 = vcmask 589313  }
 0xebf   : > { %6764 = vmatmul.mubr.msk.f32.gmra.mrb[50].mxu0 %vm10405_vm14, %v5518_v41  ;;  %4924 = vrot.lane.b32.xlu1 %v9427_v2, %s10363_s3  ;;  %vm10410_vm14 = vcmask 392513  }
 0xec0   : > { %v4663_v3 = vpop.permute.xlu0 %4662 }
 0xec1   : > { %4742 = vst.msk [vmem:[#allocation6 + $0x67] sm:$0xff] %vm4731_vm8, %v4663_v3  ;;  %v4661_v42 = vpop.permute.xlu1 %4660 }
 0xec2   : > { %4741 = vst.msk [vmem:[#allocation6 + $0x5f] sm:$0xfe] %vm2449_vm5, %v4661_v42  ;;  %5420 = vrot.lane.b32.xlu0 %v9420_v34, %s10372_s5 }
 0xec3   : > { %5418 = vrot.lane.b32.xlu1 %v9427_v2, %s10372_s5 }
 0xec4   : > { %v4786_v58 = vpop.permute.xlu0 %4785 }
 0xec5   : > { %4871 = vst.msk [vmem:[#allocation6 + $0x59] sm:$0x7f] %vm2482_vm6, %v4786_v58  ;;  %v4784_v35 = vpop.permute.xlu1 %4783 }
 0xec6   : > { %4870 = vst.msk [vmem:[#allocation6 + $0x51] sm:$0xff] %vm4859_vm11, %v4784_v35  ;;  %5054 = vrot.lane.b32.xlu0 %v9420_v34, %s10366_s26 }
 0xec7   : > { %5052 = vrot.lane.b32.xlu1 %v9427_v2, %s10366_s26 }
 0xec8   : > { %v5168_v56 = vpop.permute.xlu0 %5167 }
 0xec9   : > { %5249 = vst.msk [vmem:[#allocation6 + $0x49] sm:$0x7f] %vm10406_vm9, %v5168_v56  ;;  %v5166_v0 = vpop.permute.xlu1 %5165  ;;  %vm10411_vm9 = vcmask 588800  }
 0xeca   : > { %5248 = vst.msk [vmem:[#allocation6 + $0x41] sm:$0xff] %vm5239_vm12, %v5166_v0  ;;  %4558 = vrot.lane.b32.xlu0 %v9484_v59, %s10358_s21 }
 0xecb   : > { %4556 = vrot.lane.b32.xlu1 %v9491_v5, %s10358_s21 }
 0xecc   : > { %v5289_v34 = vpop.permute.xlu0 %5288 }
 0xecd   : > { %5369 = vst.msk [vmem:[#allocation6 + $0x48] sm:$0xff] %vm10407_vm3, %v5289_v34  ;;  %v5287_v2 = vpop.permute.xlu1 %5286  ;;  %vm10412_vm3 = vmmov %vm10411_vm9 }
 0xece   : > { %5368 = vst.msk [vmem:[#allocation6 + $0x40] sm:$0xff] %vm10408_vm13, %v5287_v2  ;;  %4678 = vrot.lane.b32.xlu0 %v9484_v59, %s10362_s28  ;;  %vm10413_vm13 = vcmask 457088  }
 0xecf   : > { %4676 = vrot.lane.b32.xlu1 %v9491_v5, %s10362_s28 }
 0xed0   : > { %v4915_v18 = vpop.permute.xlu0 %4914 }
 0xed1   : > { %4999 = vst.msk [vmem:[#allocation6 + $0x58] sm:$0xff] %vm2515_vm7, %v4915_v18  ;;  %v4913_v6 = vpop.permute.xlu1 %4912 }
 0xed2   : > { %4998 = vst.msk [vmem:[#allocation6 + $0x50] sm:$0xff] %vm2515_vm7, %v4913_v6  ;;  %5183 = vrot.lane.b32.xlu0 %v9484_v59, %s10369_s4 }
 0xed3   : > { %5181 = vrot.lane.b32.xlu1 %v9491_v5, %s10369_s4 }
 0xed4   : > { %v5409_v10 = vpop.permute.xlu0 %5408 }
 0xed5   : > { %5490 = vst.msk [vmem:[#allocation6 + $0x47] sm:$0xff] %vm5481_vm10, %v5409_v10  ;;  %v5407_v11 = vpop.permute.xlu1 %5406  ;;  %v5871_v10 = vld [vmem:[%s9901_s6 + $0x8] sm:$0xff] }
 0xed6   : > { %5489 = vst.msk [vmem:[#allocation6 + $0x3f] sm:$0xfe] %vm10409_vm1, %v5407_v11  ;;  %4801 = vrot.lane.b32.xlu0 %v9484_v59, %s10359_s23  ;;  %vm10414_vm1 = vcmask 523712  }
 0xed7   : > { %4799 = vrot.lane.b32.xlu1 %v9491_v5, %s10359_s23 }
 0xed8   : > { %v5043_v60 = vpop.permute.xlu0 %5042 }
 0xed9   : > { %5128 = vst.msk [vmem:[#allocation6 + $0x57] sm:$0xff] %vm5117_vm15, %v5043_v60  ;;  %v5041_v61 = vpop.permute.xlu1 %5040 }
 0xeda   : > { %5127 = vst.msk [vmem:[#allocation6 + $0x4f] sm:$0xfe] %vm10410_vm14, %v5041_v61  ;;  %5304 = vrot.lane.b32.xlu0 %v9484_v59, %s10365_s30  ;;  %vm10415_vm14 = vmmov %vm10414_vm1  ;;  %v5870_v61 = vld [vmem:[%s9901_s6] sm:$0xff] }
 0xedb   : > { %5302 = vrot.lane.b32.xlu1 %v9491_v5, %s10365_s30 }
 0xedc   : > { %v4547_v12 = vpop.permute.xlu0 %4546  ;;  %v5520_v19 = vld [vmem:[#allocation6 + $0x48] sm:$0xff] }
 0xedd   : > { %4623 = vst.msk [vmem:[#allocation6 + $0x78] sm:$0xff] %vm2420_vm4, %v4547_v12  ;;  %v4545_v13 = vpop.permute.xlu1 %4544  ;;  %v5519_v14 = vld [vmem:[#allocation6 + $0x40] sm:$0xff] }
 0xede   : > { %4622 = vst.msk [vmem:[#allocation6 + $0x70] sm:$0xff] %vm2420_vm4, %v4545_v13  ;;  %6766 = vmatprep.mubr.msk.f32.mxu0 %vm10411_vm9, %v5519_v14  ;;  %4930 = vrot.lane.b32.xlu0 %v9484_v59, %s10363_s3  ;;  %vm10418_vm9 = vmmov %vm10412_vm3 }
 0xedf   : > { %6767 = vmatmul.mubr.msk.f32.gmra.mrb[52].mxu0 %vm10412_vm3, %v5520_v19  ;;  %4928 = vrot.lane.b32.xlu1 %v9491_v5, %s10363_s3 }
 0xee0   : > { %v4667_v22 = vpop.permute.xlu0 %4666 }
 0xee1   : > { %4744 = vst.msk [vmem:[#allocation6 + $0x77] sm:$0xff] %vm4731_vm8, %v4667_v22  ;;  %v4665_v40 = vpop.permute.xlu1 %4664 }
 0xee2   : > { %4743 = vst.msk [vmem:[#allocation6 + $0x6f] sm:$0xfe] %vm2449_vm5, %v4665_v40  ;;  %5424 = vrot.lane.b32.xlu0 %v9484_v59, %s10372_s5 }
 0xee3   : > { %5422 = vrot.lane.b32.xlu1 %v9491_v5, %s10372_s5 }
 0xee4   : > { %v5172_v28 = vpop.permute.xlu0 %5171 }
 0xee5   : > { %5251 = vst.msk [vmem:[#allocation6 + $0x59] sm:$0x7f] %vm10413_vm13, %v5172_v28  ;;  %v5170_v9 = vpop.permute.xlu1 %5169 }
 0xee6   : > { %5250 = vst.msk [vmem:[#allocation6 + $0x51] sm:$0xff] %vm5239_vm12, %v5170_v9  ;;  %5058 = vrot.lane.b32.xlu0 %v9484_v59, %s10366_s26 }
 0xee7   : > { %5056 = vrot.lane.b32.xlu1 %v9491_v5, %s10366_s26 }
 0xee8   : > { %v4790_v16 = vpop.permute.xlu0 %4789 }
 0xee9   : > { %4873 = vst.msk [vmem:[#allocation6 + $0x69] sm:$0x7f] %vm2482_vm6, %v4790_v16  ;;  %v4788_v31 = vpop.permute.xlu1 %4787 }
 0xeea   : > { %4872 = vst.msk [vmem:[#allocation6 + $0x61] sm:$0xff] %vm4859_vm11, %v4788_v31  ;;  %4562 = vrot.lane.b32.xlu0 %v9542_v57, %s10358_s21 }
 0xeeb   : > { %4560 = vrot.lane.b32.xlu1 %v9549_v17, %s10358_s21 }
 0xeec   : > { %v5293_v59 = vpop.permute.xlu0 %5292 }
 0xeed   : > { %5371 = vst.msk [vmem:[#allocation6 + $0x58] sm:$0xff] %vm10414_vm1, %v5293_v59  ;;  %v5291_v5 = vpop.permute.xlu1 %5290 }
 0xeee   : > { %5370 = vst.msk [vmem:[#allocation6 + $0x50] sm:$0xff] %vm10415_vm14, %v5291_v5  ;;  %4682 = vrot.lane.b32.xlu0 %v9542_v57, %s10362_s28  ;;  %vm10419_vm14 = vmmov %vm10414_vm1 }
 0xeef   : > { %4680 = vrot.lane.b32.xlu1 %v9549_v17, %s10362_s28 }
 0xef0   : > { %v4919_v27 = vpop.permute.xlu0 %4918 }
 0xef1   : > { %5001 = vst.msk [vmem:[#allocation6 + $0x68] sm:$0xff] %vm2515_vm7, %v4919_v27  ;;  %v4917_v21 = vpop.permute.xlu1 %4916 }
 0xef2   : > { %5000 = vst.msk [vmem:[#allocation6 + $0x60] sm:$0xff] %vm2515_vm7, %v4917_v21  ;;  %5187 = vrot.lane.b32.xlu0 %v9542_v57, %s10369_s4 }
 0xef3   : > { %5185 = vrot.lane.b32.xlu1 %v9549_v17, %s10369_s4 }
 0xef4   : > { %v5413_v29 = vpop.permute.xlu0 %5412 }
 0xef5   : > { %5492 = vst.msk [vmem:[#allocation6 + $0x57] sm:$0xff] %vm5481_vm10, %v5413_v29  ;;  %v5411_v36 = vpop.permute.xlu1 %5410 }
 0xef6   : > { %5491 = vst.msk [vmem:[#allocation6 + $0x4f] sm:$0xfe] %vm10416_vm2, %v5411_v36  ;;  %4805 = vrot.lane.b32.xlu0 %v9542_v57, %s10359_s23 }
 0xef7   : > { %4803 = vrot.lane.b32.xlu1 %v9549_v17, %s10359_s23 }
 0xef8   : > { %v5047_v37 = vpop.permute.xlu0 %5046 }
 0xef9   : > { %5130 = vst.msk [vmem:[#allocation6 + $0x67] sm:$0xff] %vm5117_vm15, %v5047_v37  ;;  %v5045_v38 = vpop.permute.xlu1 %5044 }
 0xefa   : > { %5129 = vst.msk [vmem:[#allocation6 + $0x5f] sm:$0xfe] %vm10417_vm0, %v5045_v38  ;;  %5308 = vrot.lane.b32.xlu0 %v9542_v57, %s10365_s30 }
 0xefb   : > { %5306 = vrot.lane.b32.xlu1 %v9549_v17, %s10365_s30 }
 0xefc   : > { %v4551_v39 = vpop.permute.xlu0 %4550  ;;  %v5522_v33 = vld [vmem:[#allocation6 + $0x58] sm:$0xff] }
 0xefd   : > { %4625 = vst.msk [vmem:[#allocation6 + $0x88] sm:$0xff] %vm2420_vm4, %v4551_v39  ;;  %v4549_v32 = vpop.permute.xlu1 %4548  ;;  %v5521_v30 = vld [vmem:[#allocation6 + $0x50] sm:$0xff] }
 0xefe   : > { %4624 = vst.msk [vmem:[#allocation6 + $0x80] sm:$0xff] %vm2420_vm4, %v4549_v32  ;;  %6769 = vmatprep.mubr.msk.f32.mxu0 %vm10418_vm9, %v5521_v30  ;;  %4934 = vrot.lane.b32.xlu0 %v9542_v57, %s10363_s3  ;;  %vm10420_vm9 = vmmov %vm10412_vm3  ;;  %v5873_v30 = vld [vmem:[%s9901_s6 + $0x18] sm:$0xff] }
 0xeff   : > { %6770 = vmatmul.mubr.msk.f32.gmra.mrb[54].mxu0 %vm10412_vm3, %v5522_v33  ;;  %4932 = vrot.lane.b32.xlu1 %v9549_v17, %s10363_s3 }
 0xf00   : > { %v4671_v15 = vpop.permute.xlu0 %4670 }
 0xf01   : > { %4746 = vst.msk [vmem:[#allocation6 + $0x87] sm:$0xff] %vm4731_vm8, %v4671_v15  ;;  %v4669_v23 = vpop.permute.xlu1 %4668 }
 0xf02   : > { %4745 = vst.msk [vmem:[#allocation6 + $0x7f] sm:$0xfe] %vm2449_vm5, %v4669_v23  ;;  %5428 = vrot.lane.b32.xlu0 %v9542_v57, %s10372_s5  ;;  %v5872_v23 = vld [vmem:[%s9901_s6 + $0x10] sm:$0xff] }
 0xf03   : > { %5426 = vrot.lane.b32.xlu1 %v9549_v17, %s10372_s5 }
 0xf04   : > { %v5176_v43 = vpop.permute.xlu0 %5175 }
 0xf05   : > { %5253 = vst.msk [vmem:[#allocation6 + $0x69] sm:$0x7f] %vm10413_vm13, %v5176_v43  ;;  %v5174_v44 = vpop.permute.xlu1 %5173 }
 0xf06   : > { %5252 = vst.msk [vmem:[#allocation6 + $0x61] sm:$0xff] %vm5239_vm12, %v5174_v44  ;;  %5062 = vrot.lane.b32.xlu0 %v9542_v57, %s10366_s26 }
 0xf07   : > { %5060 = vrot.lane.b32.xlu1 %v9549_v17, %s10366_s26 }
 0xf08   : > { %v4794_v45 = vpop.permute.xlu0 %4793 }
 0xf09   : > { %4875 = vst.msk [vmem:[#allocation6 + $0x79] sm:$0x7f] %vm2482_vm6, %v4794_v45  ;;  %v4792_v46 = vpop.permute.xlu1 %4791 }
 0xf0a   : > { %4874 = vst.msk [vmem:[#allocation6 + $0x71] sm:$0xff] %vm4859_vm11, %v4792_v46  ;;  %4566 = vrot.lane.b32.xlu0 %v9600_v1, %s10358_s21 }
 0xf0b   : > { %4564 = vrot.lane.b32.xlu1 %v9607_v26, %s10358_s21 }
 0xf0c   : > { %v5297_v57 = vpop.permute.xlu0 %5296 }
 0xf0d   : > { %5373 = vst.msk [vmem:[#allocation6 + $0x68] sm:$0xff] %vm10414_vm1, %v5297_v57  ;;  %v5295_v17 = vpop.permute.xlu1 %5294 }
 0xf0e   : > { %5372 = vst.msk [vmem:[#allocation6 + $0x60] sm:$0xff] %vm10419_vm14, %v5295_v17  ;;  %4686 = vrot.lane.b32.xlu0 %v9600_v1, %s10362_s28  ;;  %vm10421_vm14 = vmmov %vm10414_vm1 }
 0xf0f   : > { %4684 = vrot.lane.b32.xlu1 %v9607_v26, %s10362_s28 }
 0xf10   : > { %v4923_v63 = vpop.permute.xlu0 %4922 }
 0xf11   : > { %5003 = vst.msk [vmem:[#allocation6 + $0x78] sm:$0xff] %vm2515_vm7, %v4923_v63  ;;  %v4921_v48 = vpop.permute.xlu1 %4920 }
 0xf12   : > { %5002 = vst.msk [vmem:[#allocation6 + $0x70] sm:$0xff] %vm2515_vm7, %v4921_v48  ;;  %5191 = vrot.lane.b32.xlu0 %v9600_v1, %s10369_s4 }
 0xf13   : > { %5189 = vrot.lane.b32.xlu1 %v9607_v26, %s10369_s4 }
 0xf14   : > { %v5417_v49 = vpop.permute.xlu0 %5416 }
 0xf15   : > { %5494 = vst.msk [vmem:[#allocation6 + $0x67] sm:$0xff] %vm5481_vm10, %v5417_v49  ;;  %v5415_v50 = vpop.permute.xlu1 %5414 }
 0xf16   : > { %5493 = vst.msk [vmem:[#allocation6 + $0x5f] sm:$0xfe] %vm10416_vm2, %v5415_v50  ;;  %4809 = vrot.lane.b32.xlu0 %v9600_v1, %s10359_s23 }
 0xf17   : > { %4807 = vrot.lane.b32.xlu1 %v9607_v26, %s10359_s23 }
 0xf18   : > { %v5051_v51 = vpop.permute.xlu0 %5050 }
 0xf19   : > { %5132 = vst.msk [vmem:[#allocation6 + $0x77] sm:$0xff] %vm5117_vm15, %v5051_v51  ;;  %v5049_v52 = vpop.permute.xlu1 %5048 }
 0xf1a   : > { %5131 = vst.msk [vmem:[#allocation6 + $0x6f] sm:$0xfe] %vm10417_vm0, %v5049_v52  ;;  %5312 = vrot.lane.b32.xlu0 %v9600_v1, %s10365_s30  ;;  %vm10423_vm0 = vcmask 31744  }
 0xf1b   : > { %5310 = vrot.lane.b32.xlu1 %v9607_v26, %s10365_s30 }
 0xf1c   : > { %v4555_v55 = vpop.permute.xlu0 %4554  ;;  %v5524_v41 = vld [vmem:[#allocation6 + $0x68] sm:$0xff] }
 0xf1d   : > { %4627 = vst.msk [vmem:[#allocation6 + $0x98] sm:$0xff] %vm2420_vm4, %v4555_v55  ;;  %v4553_v53 = vpop.permute.xlu1 %4552  ;;  %v5523_v7 = vld [vmem:[#allocation6 + $0x60] sm:$0xff] }
 0xf1e   : > { %4626 = vst.msk [vmem:[#allocation6 + $0x90] sm:$0xff] %vm2420_vm4, %v4553_v53  ;;  %6772 = vmatprep.mubr.msk.f32.mxu0 %vm10420_vm9, %v5523_v7  ;;  %4938 = vrot.lane.b32.xlu0 %v9600_v1, %s10363_s3  ;;  %vm10424_vm9 = vmmov %vm10423_vm0 }
 0xf1f   : > { %6773 = vmatmul.mubr.msk.f32.gmra.mrb[56].mxu0 %vm10412_vm3, %v5524_v41  ;;  %4936 = vrot.lane.b32.xlu1 %v9607_v26, %s10363_s3  ;;  %vm10425_vm3 = vcmask 392513  }
 0xf20   : > { %v4675_v3 = vpop.permute.xlu0 %4674 }
 0xf21   : > { %4748 = vst.msk [vmem:[#allocation6 + $0x97] sm:$0xff] %vm4731_vm8, %v4675_v3  ;;  %v4673_v42 = vpop.permute.xlu1 %4672 }
 0xf22   : > { %4747 = vst.msk [vmem:[#allocation6 + $0x8f] sm:$0xfe] %vm2449_vm5, %v4673_v42  ;;  %5432 = vrot.lane.b32.xlu0 %v9600_v1, %s10372_s5 }
 0xf23   : > { %5430 = vrot.lane.b32.xlu1 %v9607_v26, %s10372_s5 }
 0xf24   : > { %v5180_v58 = vpop.permute.xlu0 %5179 }
 0xf25   : > { %5255 = vst.msk [vmem:[#allocation6 + $0x79] sm:$0x7f] %vm10413_vm13, %v5180_v58  ;;  %v5178_v35 = vpop.permute.xlu1 %5177  ;;  %vm10426_vm13 = vcmask 588800  }
 0xf26   : > { %5254 = vst.msk [vmem:[#allocation6 + $0x71] sm:$0xff] %vm5239_vm12, %v5178_v35  ;;  %5066 = vrot.lane.b32.xlu0 %v9600_v1, %s10366_s26 }
 0xf27   : > { %5064 = vrot.lane.b32.xlu1 %v9607_v26, %s10366_s26  ;;  %v9906_v26 = vld [vmem:[%s10306_s17] ss:$0 sm:$0xff] }
 0xf28   : > { %v4798_v56 = vpop.permute.xlu0 %4797 }
 0xf29   : > { %4877 = vst.msk [vmem:[#allocation6 + $0x89] sm:$0x7f] %vm2482_vm6, %v4798_v56  ;;  %v4796_v0 = vpop.permute.xlu1 %4795  ;;  %v5875_v56 = vld [vmem:[%s9901_s6 + $0x28] sm:$0xff] }
 0xf2a   : > { %4876 = vst.msk [vmem:[#allocation6 + $0x81] sm:$0xff] %vm4859_vm11, %v4796_v0  ;;  %4570 = vrot.lane.b32.xlu0 %v9661_v62, %s10358_s21 }
 0xf2b   : > { %4568 = vrot.lane.b32.xlu1 %v9667_v24, %s10358_s21 }
 0xf2c   : > { %v5301_v34 = vpop.permute.xlu0 %5300 }
 0xf2d   : > { %5375 = vst.msk [vmem:[#allocation6 + $0x78] sm:$0xff] %vm10414_vm1, %v5301_v34  ;;  %v5299_v2 = vpop.permute.xlu1 %5298  ;;  %vm10427_vm1 = vmmov %vm10426_vm13 }
 0xf2e   : > { %5374 = vst.msk [vmem:[#allocation6 + $0x70] sm:$0xff] %vm10421_vm14, %v5299_v2  ;;  %4690 = vrot.lane.b32.xlu0 %v9661_v62, %s10362_s28  ;;  %vm10428_vm14 = vcmask 457088   ;;  %v5874_v2 = vld [vmem:[%s9901_s6 + $0x20] sm:$0xff] }
 0xf2f   : > { %4688 = vrot.lane.b32.xlu1 %v9667_v24, %s10362_s28 }
 0xf30   : > { %v4927_v1 = vpop.permute.xlu0 %4926 }
 0xf31   : > { %5005 = vst.msk [vmem:[#allocation6 + $0x88] sm:$0xff] %vm2515_vm7, %v4927_v1  ;;  %v4925_v18 = vpop.permute.xlu1 %4924 }
 0xf32   : > { %5004 = vst.msk [vmem:[#allocation6 + $0x80] sm:$0xff] %vm2515_vm7, %v4925_v18  ;;  %v6756_v6 = vpop.f32.mrb[44].mxu0  ;;  %5195 = vrot.lane.b32.xlu0 %v9661_v62, %s10369_s4 }
 0xf33   : > { %v5717_v11 = vadd.f32 %v6756_v6, %v9906_v26  ;;  %v5711_v60 = vpop.f32.mrb[45].mxu0  ;;  %5193 = vrot.lane.b32.xlu1 %v9667_v24, %s10369_s4 }
 0xf34   : > { %v5712_v12 = vadd.f32 %v9906_v26, %v5711_v60  ;;  %v5421_v13 = vpop.permute.xlu0 %5420 }
 0xf35   : > { %v5903_v14 = vadd.f32 %v5871_v10, %v5717_v11  ;;  %5496 = vst.msk [vmem:[#allocation6 + $0x77] sm:$0xff] %vm5481_vm10, %v5421_v13  ;;  %v5419_v19 = vpop.permute.xlu1 %5418 }
 0xf36   : > { %v5902_v22 = vadd.f32 %v5870_v61, %v5712_v12  ;;  %5495 = vst.msk [vmem:[#allocation6 + $0x6f] sm:$0xfe] %vm10416_vm2, %v5419_v19  ;;  %4813 = vrot.lane.b32.xlu0 %v9661_v62, %s10359_s23  ;;  %vm10429_vm2 = vcmask 523712  }
 0xf37   : > { %5935 = vst.msk [vmem:[%s9921_s29 + $0x8] sm:$0xff] %vm10423_vm0, %v5903_v14  ;;  %4811 = vrot.lane.b32.xlu1 %v9667_v24, %s10359_s23  ;;  %vm10430_vm0 = vmmov %vm10429_vm2 }
 0xf38   : > { %5934 = vst.msk [vmem:[%s9921_s29] sm:$0xff] %vm10424_vm9, %v5902_v22  ;;  %v5055_v40 = vpop.permute.xlu0 %5054  ;;  %vm10431_vm9 = vcmask 589313  }
 0xf39   : > { %5134 = vst.msk [vmem:[#allocation6 + $0x87] sm:$0xff] %vm5117_vm15, %v5055_v40  ;;  %v5053_v28 = vpop.permute.xlu1 %5052 }
 0xf3a   : > { %5133 = vst.msk [vmem:[#allocation6 + $0x7f] sm:$0xfe] %vm10425_vm3, %v5053_v28  ;;  %5316 = vrot.lane.b32.xlu0 %v9661_v62, %s10365_s30  ;;  %vm10432_vm3 = vcmask 31744  }
 0xf3b   : > { %5314 = vrot.lane.b32.xlu1 %v9667_v24, %s10365_s30 }
 0xf3c   : > { %v4559_v9 = vpop.permute.xlu0 %4558  ;;  %v5526_v59 = vld [vmem:[#allocation6 + $0x78] sm:$0xff] }
 0xf3d   : > { %4629 = vst.msk [vmem:[#allocation6 + $0xa8] sm:$0xff] %vm2420_vm4, %v4559_v9  ;;  %v4557_v16 = vpop.permute.xlu1 %4556  ;;  %v5525_v31 = vld [vmem:[#allocation6 + $0x70] sm:$0xff] }
 0xf3e   : > { %4628 = vst.msk [vmem:[#allocation6 + $0xa0] sm:$0xff] %vm2420_vm4, %v4557_v16  ;;  %6775 = vmatprep.mubr.msk.f32.mxu0 %vm10426_vm13, %v5525_v31  ;;  %4942 = vrot.lane.b32.xlu0 %v9661_v62, %s10363_s3  ;;  %vm10433_vm13 = vmmov %vm10432_vm3 }
 0xf3f   : > { %6776 = vmatmul.mubr.msk.f32.gmra.mrb[58].mxu0 %vm10427_vm1, %v5526_v59  ;;  %4940 = vrot.lane.b32.xlu1 %v9667_v24, %s10363_s3  ;;  %vm10434_vm1 = vcmask 392513  }
 0xf40   : > { %v4679_v5 = vpop.permute.xlu0 %4678 }
 0xf41   : > { %4750 = vst.msk [vmem:[#allocation6 + $0xa7] sm:$0xff] %vm4731_vm8, %v4679_v5  ;;  %v4677_v27 = vpop.permute.xlu1 %4676 }
 0xf42   : > { %4749 = vst.msk [vmem:[#allocation6 + $0x9f] sm:$0xfe] %vm2449_vm5, %v4677_v27  ;;  %5436 = vrot.lane.b32.xlu0 %v9661_v62, %s10372_s5 }
 0xf43   : > { %5434 = vrot.lane.b32.xlu1 %v9667_v24, %s10372_s5 }
 0xf44   : > { %v5184_v21 = vpop.permute.xlu0 %5183 }
 0xf45   : > { %5257 = vst.msk [vmem:[#allocation6 + $0x89] sm:$0x7f] %vm10428_vm14, %v5184_v21  ;;  %v5182_v29 = vpop.permute.xlu1 %5181  ;;  %vm10435_vm14 = vcmask 588800   ;;  %v5877_v21 = vld [vmem:[%s9901_s6 + $0x38] sm:$0xff] }
 0xf46   : > { %5256 = vst.msk [vmem:[#allocation6 + $0x81] sm:$0xff] %vm5239_vm12, %v5182_v29  ;;  %5070 = vrot.lane.b32.xlu0 %v9661_v62, %s10366_s26 }
 0xf47   : > { %5068 = vrot.lane.b32.xlu1 %v9667_v24, %s10366_s26 }
 0xf48   : > { %v4802_v36 = vpop.permute.xlu0 %4801 }
 0xf49   : > { %4879 = vst.msk [vmem:[#allocation6 + $0x99] sm:$0x7f] %vm2482_vm6, %v4802_v36  ;;  %v4800_v37 = vpop.permute.xlu1 %4799 }
 0xf4a   : > { %4878 = vst.msk [vmem:[#allocation6 + $0x91] sm:$0xff] %vm4859_vm11, %v4800_v37  ;;  %4574 = vrot.lane.b32.xlu0 %v9716_v4, %s10358_s21  ;;  %v5876_v37 = vld [vmem:[%s9901_s6 + $0x30] sm:$0xff] }
 0xf4b   : > { %4572 = vrot.lane.b32.xlu1 %v9723_v54, %s10358_s21 }
 0xf4c   : > { %v5305_v38 = vpop.permute.xlu0 %5304 }
 0xf4d   : > { %5377 = vst.msk [vmem:[#allocation6 + $0x88] sm:$0xff] %vm10429_vm2, %v5305_v38  ;;  %v5303_v62 = vpop.permute.xlu1 %5302  ;;  %vm10436_vm2 = vmmov %vm10435_vm14 }
 0xf4e   : > { %5376 = vst.msk [vmem:[#allocation6 + $0x80] sm:$0xff] %vm10430_vm0, %v5303_v62  ;;  %4694 = vrot.lane.b32.xlu0 %v9716_v4, %s10362_s28  ;;  %vm10437_vm0 = vcmask 457088  }
 0xf4f   : > { %4692 = vrot.lane.b32.xlu1 %v9723_v54, %s10362_s28 }
 0xf50   : > { %v4931_v24 = vpop.permute.xlu0 %4930 }
 0xf51   : > { %5007 = vst.msk [vmem:[#allocation6 + $0x98] sm:$0xff] %vm2515_vm7, %v4931_v24  ;;  %v4929_v39 = vpop.permute.xlu1 %4928 }
 0xf52   : > { %5006 = vst.msk [vmem:[#allocation6 + $0x90] sm:$0xff] %vm2515_vm7, %v4929_v39  ;;  %v6759_v32 = vpop.f32.mrb[46].mxu0  ;;  %5199 = vrot.lane.b32.xlu0 %v9716_v4, %s10369_s4 }
 0xf53   : > { %v5727_v33 = vadd.f32 %v6759_v32, %v9906_v26  ;;  %v5721_v15 = vpop.f32.mrb[47].mxu0  ;;  %5197 = vrot.lane.b32.xlu1 %v9723_v54, %s10369_s4 }
 0xf54   : > { %v5722_v43 = vadd.f32 %v9906_v26, %v5721_v15  ;;  %v5425_v44 = vpop.permute.xlu0 %5424 }
 0xf55   : > { %v5905_v45 = vadd.f32 %v5873_v30, %v5727_v33  ;;  %5498 = vst.msk [vmem:[#allocation6 + $0x87] sm:$0xff] %vm5481_vm10, %v5425_v44  ;;  %v5423_v46 = vpop.permute.xlu1 %5422 }
 0xf56   : > { %v5904_v57 = vadd.f32 %v5872_v23, %v5722_v43  ;;  %5497 = vst.msk [vmem:[#allocation6 + $0x7f] sm:$0xfe] %vm10431_vm9, %v5423_v46  ;;  %4817 = vrot.lane.b32.xlu0 %v9716_v4, %s10359_s23  ;;  %vm10438_vm9 = vcmask 523712  }
 0xf57   : > { %5937 = vst.msk [vmem:[%s9921_s29 + $0x18] sm:$0xff] %vm10432_vm3, %v5905_v45  ;;  %4815 = vrot.lane.b32.xlu1 %v9723_v54, %s10359_s23  ;;  %vm10439_vm3 = vmmov %vm10438_vm9 }
 0xf58   : > { %5936 = vst.msk [vmem:[%s9921_s29 + $0x10] sm:$0xff] %vm10433_vm13, %v5904_v57  ;;  %v5059_v17 = vpop.permute.xlu0 %5058  ;;  %vm10440_vm13 = vcmask 589313  }
 0xf59   : > { %5136 = vst.msk [vmem:[#allocation6 + $0x97] sm:$0xff] %vm5117_vm15, %v5059_v17  ;;  %v5057_v63 = vpop.permute.xlu1 %5056 }
 0xf5a   : > { %5135 = vst.msk [vmem:[#allocation6 + $0x8f] sm:$0xfe] %vm10434_vm1, %v5057_v63  ;;  %5320 = vrot.lane.b32.xlu0 %v9716_v4, %s10365_s30  ;;  %vm10441_vm1 = vcmask 31744  }
 0xf5b   : > { %5318 = vrot.lane.b32.xlu1 %v9723_v54, %s10365_s30 }
 0xf5c   : > { %v4563_v48 = vpop.permute.xlu0 %4562  ;;  %v5528_v51 = vld [vmem:[#allocation6 + $0x88] sm:$0xff] }
 0xf5d   : > { %4631 = vst.msk [vmem:[#allocation6 + $0xb8] sm:$0xff] %vm2420_vm4, %v4563_v48  ;;  %v4561_v49 = vpop.permute.xlu1 %4560  ;;  %v5527_v50 = vld [vmem:[#allocation6 + $0x80] sm:$0xff] }
 0xf5e   : > { %4630 = vst.msk [vmem:[#allocation6 + $0xb0] sm:$0xff] %vm2420_vm4, %v4561_v49  ;;  %6778 = vmatprep.mubr.msk.f32.mxu0 %vm10435_vm14, %v5527_v50  ;;  %4946 = vrot.lane.b32.xlu0 %v9716_v4, %s10363_s3  ;;  %vm10442_vm14 = vmmov %vm10441_vm1 }
 0xf5f   : > { %6779 = vmatmul.mubr.msk.f32.gmra.mrb[60].mxu0 %vm10436_vm2, %v5528_v51  ;;  %4944 = vrot.lane.b32.xlu1 %v9723_v54, %s10363_s3  ;;  %vm10443_vm2 = vcmask 392513  }
 0xf60   : > { %v4683_v52 = vpop.permute.xlu0 %4682 }
 0xf61   : > { %4752 = vst.msk [vmem:[#allocation6 + $0xb7] sm:$0xff] %vm4731_vm8, %v4683_v52  ;;  %v4681_v55 = vpop.permute.xlu1 %4680  ;;  %v5879_v52 = vld [vmem:[%s9901_s6 + $0x48] sm:$0xff] }
 0xf62   : > { %4751 = vst.msk [vmem:[#allocation6 + $0xaf] sm:$0xfe] %vm2449_vm5, %v4681_v55  ;;  %5440 = vrot.lane.b32.xlu0 %v9716_v4, %s10372_s5 }
 0xf63   : > { %5438 = vrot.lane.b32.xlu1 %v9723_v54, %s10372_s5 }
 0xf64   : > { %v5188_v53 = vpop.permute.xlu0 %5187 }
 0xf65   : > { %5259 = vst.msk [vmem:[#allocation6 + $0x99] sm:$0x7f] %vm10437_vm0, %v5188_v53  ;;  %v5186_v7 = vpop.permute.xlu1 %5185  ;;  %vm10444_vm0 = vcmask 588800  }
 0xf66   : > { %5258 = vst.msk [vmem:[#allocation6 + $0x91] sm:$0xff] %vm5239_vm12, %v5186_v7  ;;  %5074 = vrot.lane.b32.xlu0 %v9716_v4, %s10366_s26  ;;  %v5878_v7 = vld [vmem:[%s9901_s6 + $0x40] sm:$0xff] }
 0xf67   : > { %5072 = vrot.lane.b32.xlu1 %v9723_v54, %s10366_s26 }
 0xf68   : > { %v4806_v41 = vpop.permute.xlu0 %4805 }
 0xf69   : > { %4881 = vst.msk [vmem:[#allocation6 + $0xa9] sm:$0x7f] %vm2482_vm6, %v4806_v41  ;;  %v4804_v3 = vpop.permute.xlu1 %4803 }
 0xf6a   : > { %4880 = vst.msk [vmem:[#allocation6 + $0xa1] sm:$0xff] %vm4859_vm11, %v4804_v3  ;;  %4578 = vrot.lane.b32.xlu0 %v9774_v8, %s10358_s21 }
 0xf6b   : > { %4576 = vrot.lane.b32.xlu1 %v9781_v20, %s10358_s21 }
 0xf6c   : > { %v5309_v42 = vpop.permute.xlu0 %5308 }
 0xf6d   : > { %5379 = vst.msk [vmem:[#allocation6 + $0x98] sm:$0xff] %vm10438_vm9, %v5309_v42  ;;  %v5307_v4 = vpop.permute.xlu1 %5306  ;;  %vm10445_vm9 = vmmov %vm10444_vm0 }
 0xf6e   : > { %5378 = vst.msk [vmem:[#allocation6 + $0x90] sm:$0xff] %vm10439_vm3, %v5307_v4  ;;  %4698 = vrot.lane.b32.xlu0 %v9774_v8, %s10362_s28  ;;  %vm10446_vm3 = vcmask 457088  }
 0xf6f   : > { %4696 = vrot.lane.b32.xlu1 %v9781_v20, %s10362_s28 }
 0xf70   : > { %v4935_v54 = vpop.permute.xlu0 %4934 }
 0xf71   : > { %5009 = vst.msk [vmem:[#allocation6 + $0xa8] sm:$0xff] %vm2515_vm7, %v4935_v54  ;;  %v4933_v58 = vpop.permute.xlu1 %4932 }
 0xf72   : > { %5008 = vst.msk [vmem:[#allocation6 + $0xa0] sm:$0xff] %vm2515_vm7, %v4933_v58  ;;  %v6762_v35 = vpop.f32.mrb[48].mxu0  ;;  %5203 = vrot.lane.b32.xlu0 %v9774_v8, %s10369_s4 }
 0xf73   : > { %v5737_v0 = vadd.f32 %v6762_v35, %v9906_v26  ;;  %v5731_v34 = vpop.f32.mrb[49].mxu0  ;;  %5201 = vrot.lane.b32.xlu1 %v9781_v20, %s10369_s4 }
 0xf74   : > { %v5732_v1 = vadd.f32 %v9906_v26, %v5731_v34  ;;  %v5429_v18 = vpop.permute.xlu0 %5428 }
 0xf75   : > { %v5907_v6 = vadd.f32 %v5875_v56, %v5737_v0  ;;  %5500 = vst.msk [vmem:[#allocation6 + $0x97] sm:$0xff] %vm5481_vm10, %v5429_v18  ;;  %v5427_v10 = vpop.permute.xlu1 %5426 }
 0xf76   : > { %v5906_v11 = vadd.f32 %v5874_v2, %v5732_v1  ;;  %5499 = vst.msk [vmem:[#allocation6 + $0x8f] sm:$0xfe] %vm10440_vm13, %v5427_v10  ;;  %4821 = vrot.lane.b32.xlu0 %v9774_v8, %s10359_s23  ;;  %vm10447_vm13 = vcmask 523712  }
 0xf77   : > { %5939 = vst.msk [vmem:[%s9921_s29 + $0x28] sm:$0xff] %vm10441_vm1, %v5907_v6  ;;  %4819 = vrot.lane.b32.xlu1 %v9781_v20, %s10359_s23  ;;  %vm10448_vm1 = vmmov %vm10447_vm13 }
 0xf78   : > { %5938 = vst.msk [vmem:[%s9921_s29 + $0x20] sm:$0xff] %vm10442_vm14, %v5906_v11  ;;  %v5063_v60 = vpop.permute.xlu0 %5062  ;;  %vm10449_vm14 = vcmask 589313  }
 0xf79   : > { %5138 = vst.msk [vmem:[#allocation6 + $0xa7] sm:$0xff] %vm5117_vm15, %v5063_v60  ;;  %v5061_v61 = vpop.permute.xlu1 %5060 }
 0xf7a   : > { %5137 = vst.msk [vmem:[#allocation6 + $0x9f] sm:$0xfe] %vm10443_vm2, %v5061_v61  ;;  %5324 = vrot.lane.b32.xlu0 %v9774_v8, %s10365_s30  ;;  %vm10450_vm2 = vcmask 31744  }
 0xf7b   : > { %5322 = vrot.lane.b32.xlu1 %v9781_v20, %s10365_s30 }
 0xf7c   : > { %v4567_v12 = vpop.permute.xlu0 %4566  ;;  %v5530_v19 = vld [vmem:[#allocation6 + $0x98] sm:$0xff] }
 0xf7d   : > { %4633 = vst.msk [vmem:[#allocation6 + $0xc8] sm:$0xff] %vm2420_vm4, %v4567_v12  ;;  %v4565_v13 = vpop.permute.xlu1 %4564  ;;  %v5529_v14 = vld [vmem:[#allocation6 + $0x90] sm:$0xff] }
 0xf7e   : > { %4632 = vst.msk [vmem:[#allocation6 + $0xc0] sm:$0xff] %vm2420_vm4, %v4565_v13  ;;  %6781 = vmatprep.mubr.msk.f32.mxu0 %vm10444_vm0, %v5529_v14  ;;  %4950 = vrot.lane.b32.xlu0 %v9774_v8, %s10363_s3  ;;  %vm10451_vm0 = vmmov %vm10450_vm2 }
 0xf7f   : > { %6782 = vmatmul.mubr.msk.f32.gmra.mrb[62].mxu0 %vm10445_vm9, %v5530_v19  ;;  %4948 = vrot.lane.b32.xlu1 %v9781_v20, %s10363_s3  ;;  %vm10452_vm9 = vcmask 392513  }
 0xf80   : > { %v4687_v22 = vpop.permute.xlu0 %4686 }
 0xf81   : > { %4754 = vst.msk [vmem:[#allocation6 + $0xc7] sm:$0xff] %vm4731_vm8, %v4687_v22  ;;  %v4685_v40 = vpop.permute.xlu1 %4684  ;;  %v5881_v22 = vld [vmem:[%s9901_s6 + $0x58] sm:$0xff] }
 0xf82   : > { %4753 = vst.msk [vmem:[#allocation6 + $0xbf] sm:$0xfe] %vm2449_vm5, %v4685_v40  ;;  %5444 = vrot.lane.b32.xlu0 %v9774_v8, %s10372_s5 }
 0xf83   : > { %5442 = vrot.lane.b32.xlu1 %v9781_v20, %s10372_s5 }
 0xf84   : > { %v5192_v28 = vpop.permute.xlu0 %5191 }
 0xf85   : > { %5261 = vst.msk [vmem:[#allocation6 + $0xa9] sm:$0x7f] %vm10446_vm3, %v5192_v28  ;;  %v5190_v9 = vpop.permute.xlu1 %5189  ;;  %vm10453_vm3 = vcmask 588800  }
 0xf86   : > { %5260 = vst.msk [vmem:[#allocation6 + $0xa1] sm:$0xff] %vm5239_vm12, %v5190_v9  ;;  %5078 = vrot.lane.b32.xlu0 %v9774_v8, %s10366_s26  ;;  %v5880_v9 = vld [vmem:[%s9901_s6 + $0x50] sm:$0xff] }
 0xf87   : > { %5076 = vrot.lane.b32.xlu1 %v9781_v20, %s10366_s26 }
 0xf88   : > { %v4810_v16 = vpop.permute.xlu0 %4809 }
 0xf89   : > { %4883 = vst.msk [vmem:[#allocation6 + $0xb9] sm:$0x7f] %vm2482_vm6, %v4810_v16  ;;  %v4808_v31 = vpop.permute.xlu1 %4807 }
 0xf8a   : > { %4882 = vst.msk [vmem:[#allocation6 + $0xb1] sm:$0xff] %vm4859_vm11, %v4808_v31  ;;  %5207 = vrot.lane.b32.xlu0 %v9832_v25, %s10369_s4 }
 0xf8b   : > { %5205 = vrot.lane.b32.xlu1 %v9837_v47, %s10369_s4 }
 0xf8c   : > { %v5313_v59 = vpop.permute.xlu0 %5312 }
 0xf8d   : > { %5381 = vst.msk [vmem:[#allocation6 + $0xa8] sm:$0xff] %vm10447_vm13, %v5313_v59  ;;  %v5311_v8 = vpop.permute.xlu1 %5310  ;;  %vm10454_vm13 = vmmov %vm10453_vm3 }
 0xf8e   : > { %5380 = vst.msk [vmem:[#allocation6 + $0xa0] sm:$0xff] %vm10448_vm1, %v5311_v8  ;;  %5328 = vrot.lane.b32.xlu0 %v9832_v25, %s10365_s30  ;;  %vm10455_vm1 = vcmask 457088  }
 0xf8f   : > { %5326 = vrot.lane.b32.xlu1 %v9837_v47, %s10365_s30 }
 0xf90   : > { %v4939_v20 = vpop.permute.xlu0 %4938 }
 0xf91   : > { %5011 = vst.msk [vmem:[#allocation6 + $0xb8] sm:$0xff] %vm2515_vm7, %v4939_v20  ;;  %v4937_v5 = vpop.permute.xlu1 %4936 }
 0xf92   : > { %5010 = vst.msk [vmem:[#allocation6 + $0xb0] sm:$0xff] %vm2515_vm7, %v4937_v5  ;;  %v6765_v27 = vpop.f32.mrb[50].mxu0  ;;  %5448 = vrot.lane.b32.xlu0 %v9832_v25, %s10372_s5 }
 0xf93   : > { %v5747_v29 = vadd.f32 %v6765_v27, %v9906_v26  ;;  %v5741_v36 = vpop.f32.mrb[51].mxu0  ;;  %5446 = vrot.lane.b32.xlu1 %v9837_v47, %s10372_s5 }
 0xf94   : > { %v5742_v38 = vadd.f32 %v9906_v26, %v5741_v36  ;;  %v5433_v62 = vpop.permute.xlu0 %5432 }
 0xf95   : > { %v5909_v24 = vadd.f32 %v5877_v21, %v5747_v29  ;;  %5502 = vst.msk [vmem:[#allocation6 + $0xa7] sm:$0xff] %vm5481_vm10, %v5433_v62  ;;  %v5431_v39 = vpop.permute.xlu1 %5430 }
 0xf96   : > { %v5908_v32 = vadd.f32 %v5876_v37, %v5742_v38  ;;  %5501 = vst.msk [vmem:[#allocation6 + $0x9f] sm:$0xfe] %vm10449_vm14, %v5431_v39  ;;  %4825 = vrot.lane.b32.xlu0 %v9832_v25, %s10359_s23  ;;  %vm10456_vm14 = vcmask 523712  }
 0xf97   : > { %5941 = vst.msk [vmem:[%s9921_s29 + $0x38] sm:$0xff] %vm10450_vm2, %v5909_v24  ;;  %4823 = vrot.lane.b32.xlu1 %v9837_v47, %s10359_s23  ;;  %vm10457_vm2 = vmmov %vm10456_vm14 }
 0xf98   : > { %5940 = vst.msk [vmem:[%s9921_s29 + $0x30] sm:$0xff] %vm10451_vm0, %v5908_v32  ;;  %v5067_v30 = vpop.permute.xlu0 %5066  ;;  %vm10458_vm0 = vcmask 589313  }
 0xf99   : > { %5140 = vst.msk [vmem:[#allocation6 + $0xb7] sm:$0xff] %vm5117_vm15, %v5067_v30  ;;  %v5065_v33 = vpop.permute.xlu1 %5064 }
 0xf9a   : > { %5139 = vst.msk [vmem:[#allocation6 + $0xaf] sm:$0xfe] %vm10452_vm9, %v5065_v33  ;;  %4954 = vrot.lane.b32.xlu0 %v9832_v25, %s10363_s3  ;;  %vm10459_vm9 = vcmask 31744  }
 0xf9b   : > { %4952 = vrot.lane.b32.xlu1 %v9837_v47, %s10363_s3 }
 0xf9c   : > { %v4571_v15 = vpop.permute.xlu0 %4570  ;;  %v5532_v44 = vld [vmem:[#allocation6 + $0xa8] sm:$0xff] }
 0xf9d   : > { %4635 = vst.msk [vmem:[#allocation6 + $0xd8] sm:$0xff] %vm2420_vm4, %v4571_v15  ;;  %v4569_v23 = vpop.permute.xlu1 %4568  ;;  %v5531_v43 = vld [vmem:[#allocation6 + $0xa0] sm:$0xff] }
 0xf9e   : > { %4634 = vst.msk [vmem:[#allocation6 + $0xd0] sm:$0xff] %vm2420_vm4, %v4569_v23  ;;  %6784 = vmatprep.mubr.msk.f32.mxu0 %vm10453_vm3, %v5531_v43  ;;  %5082 = vrot.lane.b32.xlu0 %v9832_v25, %s10366_s26  ;;  %vm10460_vm3 = vmmov %vm10459_vm9 }
 0xf9f   : > { %6785 = vmatmul.mubr.msk.f32.gmra.mrb[64].mxu0 %vm10454_vm13, %v5532_v44  ;;  %5080 = vrot.lane.b32.xlu1 %v9837_v47, %s10366_s26  ;;  %vm10461_vm13 = vcmask 392513  }
 0xfa0   : > { %v4691_v45 = vpop.permute.xlu0 %4690 }
 0xfa1   : > { %4756 = vst.msk [vmem:[#allocation6 + $0xd7] sm:$0xff] %vm4731_vm8, %v4691_v45  ;;  %v4689_v46 = vpop.permute.xlu1 %4688  ;;  %v5883_v45 = vld [vmem:[%s9901_s6 + $0x68] sm:$0xff] }
 0xfa2   : > { %4755 = vst.msk [vmem:[#allocation6 + $0xcf] sm:$0xfe] %vm2449_vm5, %v4689_v46 }
 0xfa4   : > { %v5196_v57 = vpop.permute.xlu0 %5195 }
 0xfa5   : > { %5263 = vst.msk [vmem:[#allocation6 + $0xb9] sm:$0x7f] %vm10455_vm1, %v5196_v57  ;;  %v5194_v17 = vpop.permute.xlu1 %5193  ;;  %vm10462_vm1 = vcmask 588800  }
 0xfa6   : > { %5262 = vst.msk [vmem:[#allocation6 + $0xb1] sm:$0xff] %vm5239_vm12, %v5194_v17  ;;  %v5882_v17 = vld [vmem:[%s9901_s6 + $0x60] sm:$0xff] }
 0xfa8   : > { %v4814_v25 = vpop.permute.xlu0 %4813 }
 0xfa9   : > { %4885 = vst.msk [vmem:[#allocation6 + $0xc9] sm:$0x7f] %vm2482_vm6, %v4814_v25  ;;  %v4812_v63 = vpop.permute.xlu1 %4811 }
 0xfaa   : > { %4884 = vst.msk [vmem:[#allocation6 + $0xc1] sm:$0xff] %vm4859_vm11, %v4812_v63 }
 0xfac   : > { %v5317_v47 = vpop.permute.xlu0 %5316 }
 0xfad   : > { %5383 = vst.msk [vmem:[#allocation6 + $0xb8] sm:$0xff] %vm10456_vm14, %v5317_v47  ;;  %v5315_v48 = vpop.permute.xlu1 %5314  ;;  %vm10463_vm14 = vmmov %vm10462_vm1 }
 0xfae   : > { %5382 = vst.msk [vmem:[#allocation6 + $0xb0] sm:$0xff] %vm10457_vm2, %v5315_v48  ;;  %vm10464_vm2 = vcmask 457088  }
 0xfb0   : > { %v4943_v49 = vpop.permute.xlu0 %4942 }
 0xfb1   : > { %5013 = vst.msk [vmem:[#allocation6 + $0xc8] sm:$0xff] %vm2515_vm7, %v4943_v49  ;;  %v4941_v50 = vpop.permute.xlu1 %4940 }
 0xfb2   : > { %5012 = vst.msk [vmem:[#allocation6 + $0xc0] sm:$0xff] %vm2515_vm7, %v4941_v50  ;;  %v6768_v51 = vpop.f32.mrb[52].mxu0 }
 0xfb3   : > { %v5757_v55 = vadd.f32 %v6768_v51, %v9906_v26  ;;  %v5751_v53 = vpop.f32.mrb[53].mxu0 }
 0xfb4   : > { %v5752_v41 = vadd.f32 %v9906_v26, %v5751_v53  ;;  %v5437_v3 = vpop.permute.xlu0 %5436 }
 0xfb5   : > { %v5911_v42 = vadd.f32 %v5879_v52, %v5757_v55  ;;  %5504 = vst.msk [vmem:[#allocation6 + $0xb7] sm:$0xff] %vm5481_vm10, %v5437_v3  ;;  %v5435_v4 = vpop.permute.xlu1 %5434 }
 0xfb6   : > { %v5910_v54 = vadd.f32 %v5878_v7, %v5752_v41  ;;  %5503 = vst.msk [vmem:[#allocation6 + $0xaf] sm:$0xfe] %vm10458_vm0, %v5435_v4  ;;  %vm10465_vm0 = vcmask 523712  }
 0xfb7   : > { %5943 = vst.msk [vmem:[%s9921_s29 + $0x48] sm:$0xff] %vm10459_vm9, %v5911_v42  ;;  %vm10466_vm9 = vmmov %vm10465_vm0 }
 0xfb8   : > { %5942 = vst.msk [vmem:[%s9921_s29 + $0x40] sm:$0xff] %vm10460_vm3, %v5910_v54  ;;  %v5071_v58 = vpop.permute.xlu0 %5070  ;;  %vm10467_vm3 = vcmask 589313  }
 0xfb9   : > { %5142 = vst.msk [vmem:[#allocation6 + $0xc7] sm:$0xff] %vm5117_vm15, %v5071_v58  ;;  %v5069_v35 = vpop.permute.xlu1 %5068 }
 0xfba   : > { %5141 = vst.msk [vmem:[#allocation6 + $0xbf] sm:$0xfe] %vm10461_vm13, %v5069_v35  ;;  %vm10468_vm13 = vcmask 31744  }
 0xfbc   : > { %v4575_v56 = vpop.permute.xlu0 %4574  ;;  %v5534_v2 = vld [vmem:[#allocation6 + $0xb8] sm:$0xff] }
 0xfbd   : > { %4637 = vst.msk [vmem:[#allocation6 + $0xe8] sm:$0xff] %vm2420_vm4, %v4575_v56  ;;  %v4573_v0 = vpop.permute.xlu1 %4572  ;;  %v5533_v34 = vld [vmem:[#allocation6 + $0xb0] sm:$0xff] }
 0xfbe   : > { %4636 = vst.msk [vmem:[#allocation6 + $0xe0] sm:$0xff] %vm2420_vm4, %v4573_v0  ;;  %6787 = vmatprep.mubr.msk.f32.mxu0 %vm10462_vm1, %v5533_v34  ;;  %vm10469_vm1 = vmmov %vm10468_vm13 }
 0xfbf   : > { %6788 = vmatmul.mubr.msk.f32.gmra.mrb[66].mxu0 %vm10463_vm14, %v5534_v2  ;;  %vm10470_vm14 = vcmask 392513  }
 0xfc0   : > { %v4695_v1 = vpop.permute.xlu0 %4694 }
 0xfc1   : > { %4758 = vst.msk [vmem:[#allocation6 + $0xe7] sm:$0xff] %vm4731_vm8, %v4695_v1  ;;  %v4693_v18 = vpop.permute.xlu1 %4692 }
 0xfc2   : > { %4757 = vst.msk [vmem:[#allocation6 + $0xdf] sm:$0xfe] %vm2449_vm5, %v4693_v18 }
 0xfc4   : > { %v5200_v6 = vpop.permute.xlu0 %5199 }
 0xfc5   : > { %5265 = vst.msk [vmem:[#allocation6 + $0xc9] sm:$0x7f] %vm10464_vm2, %v5200_v6  ;;  %v5198_v10 = vpop.permute.xlu1 %5197  ;;  %vm10471_vm2 = vcmask 588800   ;;  %v5885_v6 = vld [vmem:[%s9901_s6 + $0x78] sm:$0xff] }
 0xfc6   : > { %5264 = vst.msk [vmem:[#allocation6 + $0xc1] sm:$0xff] %vm5239_vm12, %v5198_v10 }
 0xfc8   : > { %v4818_v11 = vpop.permute.xlu0 %4817 }
 0xfc9   : > { %4887 = vst.msk [vmem:[#allocation6 + $0xd9] sm:$0x7f] %vm2482_vm6, %v4818_v11  ;;  %v4816_v60 = vpop.permute.xlu1 %4815 }
 0xfca   : > { %4886 = vst.msk [vmem:[#allocation6 + $0xd1] sm:$0xff] %vm4859_vm11, %v4816_v60  ;;  %v5884_v60 = vld [vmem:[%s9901_s6 + $0x70] sm:$0xff] }
 0xfcc   : > { %v5321_v61 = vpop.permute.xlu0 %5320 }
 0xfcd   : > { %5385 = vst.msk [vmem:[#allocation6 + $0xc8] sm:$0xff] %vm10465_vm0, %v5321_v61  ;;  %v5319_v12 = vpop.permute.xlu1 %5318  ;;  %vm10472_vm0 = vmmov %vm10471_vm2 }
 0xfce   : > { %5384 = vst.msk [vmem:[#allocation6 + $0xc0] sm:$0xff] %vm10466_vm9, %v5319_v12  ;;  %vm10473_vm9 = vcmask 457088  }
 0xfd0   : > { %v4947_v13 = vpop.permute.xlu0 %4946 }
 0xfd1   : > { %5015 = vst.msk [vmem:[#allocation6 + $0xd8] sm:$0xff] %vm2515_vm7, %v4947_v13  ;;  %v4945_v14 = vpop.permute.xlu1 %4944 }
 0xfd2   : > { %5014 = vst.msk [vmem:[#allocation6 + $0xd0] sm:$0xff] %vm2515_vm7, %v4945_v14  ;;  %v6771_v19 = vpop.f32.mrb[54].mxu0 }
 0xfd3   : > { %v5767_v40 = vadd.f32 %v6771_v19, %v9906_v26  ;;  %v5761_v28 = vpop.f32.mrb[55].mxu0 }
 0xfd4   : > { %v5762_v16 = vadd.f32 %v9906_v26, %v5761_v28  ;;  %v5441_v31 = vpop.permute.xlu0 %5440 }
 0xfd5   : > { %v5913_v59 = vadd.f32 %v5881_v22, %v5767_v40  ;;  %5506 = vst.msk [vmem:[#allocation6 + $0xc7] sm:$0xff] %vm5481_vm10, %v5441_v31  ;;  %v5439_v8 = vpop.permute.xlu1 %5438  ;;  %v5887_v40 = vld [vmem:[%s9901_s6 + $0x88] sm:$0xff] }
 0xfd6   : > { %v5912_v20 = vadd.f32 %v5880_v9, %v5762_v16  ;;  %5505 = vst.msk [vmem:[#allocation6 + $0xbf] sm:$0xfe] %vm10467_vm3, %v5439_v8  ;;  %v5886_v16 = vld [vmem:[%s9901_s6 + $0x80] sm:$0xff] }
 0xfd7   : > { %5945 = vst.msk [vmem:[%s9921_s29 + $0x58] sm:$0xff] %vm10468_vm13, %v5913_v59  ;;  %vm10478_vm13 = vmmov %vm10469_vm1 }
 0xfd8   : > { %5944 = vst.msk [vmem:[%s9921_s29 + $0x50] sm:$0xff] %vm10469_vm1, %v5912_v20  ;;  %v5075_v5 = vpop.permute.xlu0 %5074 }
 0xfd9   : > { %5144 = vst.msk [vmem:[#allocation6 + $0xd7] sm:$0xff] %vm5117_vm15, %v5075_v5  ;;  %v5073_v27 = vpop.permute.xlu1 %5072  ;;  %v5889_v5 = vld [vmem:[%s9901_s6 + $0x98] sm:$0xff] }
 0xfda   : > { %5143 = vst.msk [vmem:[#allocation6 + $0xcf] sm:$0xfe] %vm10470_vm14, %v5073_v27 }
 0xfdc   : > { %v4579_v21 = vpop.permute.xlu0 %4578  ;;  %v5536_v37 = vld [vmem:[#allocation6 + $0xc8] sm:$0xff] }
 0xfdd   : > { %4639 = vst.msk [vmem:[#allocation6 + $0xf8] sm:$0xff] %vm2420_vm4, %v4579_v21  ;;  %v4577_v29 = vpop.permute.xlu1 %4576  ;;  %v5535_v36 = vld [vmem:[#allocation6 + $0xc0] sm:$0xff] }
 0xfde   : > { %4638 = vst.msk [vmem:[#allocation6 + $0xf0] sm:$0xff] %vm2420_vm4, %v4577_v29  ;;  %6790 = vmatprep.mubr.msk.f32.mxu0 %vm10471_vm2, %v5535_v36  ;;  %vm10474_vm4 = vcmask 523712   ;;  %vm10481_vm2 = vmmov %vm10472_vm0  ;;  %v5888_v29 = vld [vmem:[%s9901_s6 + $0x90] sm:$0xff] }
 0xfdf   : > { %6791 = vmatmul.mubr.msk.f32.gmra.mrb[68].mxu0 %vm10472_vm0, %v5536_v37 }
 0xfe0   : > { %v4699_v38 = vpop.permute.xlu0 %4698 }
 0xfe1   : > { %4760 = vst.msk [vmem:[#allocation6 + $0xf7] sm:$0xff] %vm4731_vm8, %v4699_v38  ;;  %v4697_v62 = vpop.permute.xlu1 %4696  ;;  %vm10475_vm8 = vmmov %vm10474_vm4 }
 0xfe2   : > { %4759 = vst.msk [vmem:[#allocation6 + $0xef] sm:$0xfe] %vm2449_vm5, %v4697_v62  ;;  %vm10476_vm5 = vmmov %vm10467_vm3 }
 0xfe3   : > { %vm10477_vm3 = vmmov %vm10469_vm1 }
 0xfe4   : > { %v5204_v24 = vpop.permute.xlu0 %5203  ;;  %vm10479_vm1 = vmmov %vm10470_vm14 }
 0xfe5   : > { %5267 = vst.msk [vmem:[#allocation6 + $0xd9] sm:$0x7f] %vm10473_vm9, %v5204_v24  ;;  %v5202_v39 = vpop.permute.xlu1 %5201  ;;  %vm10480_vm14 = vmmov %vm10473_vm9  ;;  %v5891_v24 = vld [vmem:[%s9901_s6 + $0xa8] sm:$0xff] }
 0xfe6   : > { %5266 = vst.msk [vmem:[#allocation6 + $0xd1] sm:$0xff] %vm5239_vm12, %v5202_v39  ;;  %vm10482_vm9 = vmmov %vm10474_vm4 }
 0xfe8   : > { %v4822_v32 = vpop.permute.xlu0 %4821 }
 0xfe9   : > { %4889 = vst.msk [vmem:[#allocation6 + $0xe9] sm:$0x7f] %vm2482_vm6, %v4822_v32  ;;  %v4820_v30 = vpop.permute.xlu1 %4819 }
 0xfea   : > { %4888 = vst.msk [vmem:[#allocation6 + $0xe1] sm:$0xff] %vm4859_vm11, %v4820_v30  ;;  %v5890_v30 = vld [vmem:[%s9901_s6 + $0xa0] sm:$0xff] }
 0xfec   : > { %v5325_v33 = vpop.permute.xlu0 %5324 }
 0xfed   : > { %5387 = vst.msk [vmem:[#allocation6 + $0xd8] sm:$0xff] %vm10474_vm4, %v5325_v33  ;;  %v5323_v15 = vpop.permute.xlu1 %5322 }
 0xfee   : > { %5386 = vst.msk [vmem:[#allocation6 + $0xd0] sm:$0xff] %vm10475_vm8, %v5323_v15  ;;  %vm10483_vm8 = vmmov %vm10476_vm5 }
 0xff0   : > { %v4951_v23 = vpop.permute.xlu0 %4950 }
 0xff1   : > { %5017 = vst.msk [vmem:[#allocation6 + $0xe8] sm:$0xff] %vm2515_vm7, %v4951_v23  ;;  %v4949_v43 = vpop.permute.xlu1 %4948 }
 0xff2   : > { %5016 = vst.msk [vmem:[#allocation6 + $0xe0] sm:$0xff] %vm2515_vm7, %v4949_v43  ;;  %v6774_v44 = vpop.f32.mrb[56].mxu0 }
 0xff3   : > { %v5777_v46 = vadd.f32 %v6774_v44, %v9906_v26  ;;  %v5771_v57 = vpop.f32.mrb[57].mxu0  ;;  %v5893_v44 = vld [vmem:[%s9901_s6 + $0xb8] sm:$0xff] }
 0xff4   : > { %v5772_v25 = vadd.f32 %v9906_v26, %v5771_v57  ;;  %v5445_v63 = vpop.permute.xlu0 %5444  ;;  %v5892_v57 = vld [vmem:[%s9901_s6 + $0xb0] sm:$0xff] }
 0xff5   : > { %v5915_v47 = vadd.f32 %v5883_v45, %v5777_v46  ;;  %5508 = vst.msk [vmem:[#allocation6 + $0xd7] sm:$0xff] %vm5481_vm10, %v5445_v63  ;;  %v5443_v48 = vpop.permute.xlu1 %5442 }
 0xff6   : > { %v5914_v49 = vadd.f32 %v5882_v17, %v5772_v25  ;;  %5507 = vst.msk [vmem:[#allocation6 + $0xcf] sm:$0xfe] %vm10476_vm5, %v5443_v48  ;;  %vm10490_vm5 = vmmov %vm10472_vm0  ;;  %v5895_v48 = vld [vmem:[%s9901_s6 + $0xc8] sm:$0xff] }
 0xff7   : > { %5947 = vst.msk [vmem:[%s9921_s29 + $0x68] sm:$0xff] %vm10477_vm3, %v5915_v47 }
 0xff8   : > { %5946 = vst.msk [vmem:[%s9921_s29 + $0x60] sm:$0xff] %vm10478_vm13, %v5914_v49  ;;  %v5079_v50 = vpop.permute.xlu0 %5078  ;;  %vm10491_vm13 = vmmov %vm10477_vm3 }
 0xff9   : > { %5146 = vst.msk [vmem:[#allocation6 + $0xe7] sm:$0xff] %vm5117_vm15, %v5079_v50  ;;  %v5077_v51 = vpop.permute.xlu1 %5076 }
 0xffa   : > { %5145 = vst.msk [vmem:[#allocation6 + $0xdf] sm:$0xfe] %vm10479_vm1, %v5077_v51  ;;  %v5894_v51 = vld [vmem:[%s9901_s6 + $0xc0] sm:$0xff] }
 0xffc   : > { %v5208_v52 = vpop.permute.xlu0 %5207  ;;  %v5538_v7 = vld [vmem:[#allocation6 + $0xd8] sm:$0xff] }
 0xffd   : > { %5269 = vst.msk [vmem:[#allocation6 + $0xe9] sm:$0x7f] %vm10480_vm14, %v5208_v52  ;;  %v5206_v55 = vpop.permute.xlu1 %5205  ;;  %v5537_v53 = vld [vmem:[#allocation6 + $0xd0] sm:$0xff] }
 0xffe   : > { %5268 = vst.msk [vmem:[#allocation6 + $0xe1] sm:$0xff] %vm5239_vm12, %v5206_v55  ;;  %6793 = vmatprep.mubr.msk.f32.mxu0 %vm10481_vm2, %v5537_v53  ;;  %vm10484_vm12 = vmmov %vm10472_vm0 }
 0xfff   : > { %6794 = vmatmul.mubr.msk.f32.gmra.mrb[70].mxu0 %vm10472_vm0, %v5538_v7 }
0x1000   : > { %v5329_v41 = vpop.permute.xlu0 %5328 }
0x1001   : > { %5389 = vst.msk [vmem:[#allocation6 + $0xe8] sm:$0xff] %vm10482_vm9, %v5329_v41  ;;  %v5327_v3 = vpop.permute.xlu1 %5326  ;;  %v5897_v41 = vld [vmem:[%s9901_s6 + $0xd8] sm:$0xff] }
0x1002   : > { %5388 = vst.msk [vmem:[#allocation6 + $0xe0] sm:$0xff] %vm10474_vm4, %v5327_v3 }
0x1004   : > { %v5449_v42 = vpop.permute.xlu0 %5448 }
0x1005   : > { %5510 = vst.msk [vmem:[#allocation6 + $0xe7] sm:$0xff] %vm5481_vm10, %v5449_v42  ;;  %v5447_v4 = vpop.permute.xlu1 %5446  ;;  %vm10485_vm10 = vmmov %vm10472_vm0 }
0x1006   : > { %5509 = vst.msk [vmem:[#allocation6 + $0xdf] sm:$0xfe] %vm10483_vm8, %v5447_v4  ;;  %v5896_v4 = vld [vmem:[%s9901_s6 + $0xd0] sm:$0xff] }
0x1008   : > { %v4826_v54 = vpop.permute.xlu0 %4825 }
0x1009   : > { %4891 = vst.msk [vmem:[#allocation6 + $0xf9] sm:$0x7f] %vm2482_vm6, %v4826_v54  ;;  %v4824_v58 = vpop.permute.xlu1 %4823  ;;  %vm10486_vm6 = vmmov %vm10479_vm1 }
0x100a   : > { %4890 = vst.msk [vmem:[#allocation6 + $0xf1] sm:$0xff] %vm4859_vm11, %v4824_v58  ;;  %vm10488_vm11 = vmmov %vm10477_vm3 }
0x100b   : > { %vm10492_vm1 = vmmov %vm10477_vm3 }
0x100c   : > { %v4955_v35 = vpop.permute.xlu0 %4954  ;;  %v5540_v34 = vld [vmem:[#allocation6 + $0xe8] sm:$0xff]  ;;  %vm10493_vm14 = vmmov %vm10492_vm1 }
0x100d   : > { %5019 = vst.msk [vmem:[#allocation6 + $0xf8] sm:$0xff] %vm2515_vm7, %v4955_v35  ;;  %v4953_v56 = vpop.permute.xlu1 %4952  ;;  %v5539_v0 = vld [vmem:[#allocation6 + $0xe0] sm:$0xff]  ;;  %vm10494_vm2 = vmmov %vm10492_vm1 }
0x100e   : > { %5018 = vst.msk [vmem:[#allocation6 + $0xf0] sm:$0xff] %vm2515_vm7, %v4953_v56  ;;  %6796 = vmatprep.mubr.msk.f32.mxu0 %vm10484_vm12, %v5539_v0  ;;  %vm10487_vm7 = vmmov %vm10477_vm3  ;;  %v5899_v0 = vld [vmem:[%s9901_s6 + $0xe8] sm:$0xff] }
0x100f   : > { %6797 = vmatmul.mubr.msk.f32.gmra.mrb[72].mxu0 %vm10485_vm10, %v5540_v34 }
0x1010   : > { %v5083_v2 = vpop.permute.xlu0 %5082 }
0x1011   : > { %5148 = vst.msk [vmem:[#allocation6 + $0xf7] sm:$0xff] %vm5117_vm15, %v5083_v2  ;;  %v5081_v1 = vpop.permute.xlu1 %5080  ;;  %vm10489_vm15 = vmmov %vm10472_vm0 }
0x1012   : > { %5147 = vst.msk [vmem:[#allocation6 + $0xef] sm:$0xfe] %vm10486_vm6, %v5081_v1  ;;  %v6777_v18 = vpop.f32.mrb[58].mxu0  ;;  %vm10495_vm0 = vmmov %vm10492_vm1  ;;  %v5898_v1 = vld [vmem:[%s9901_s6 + $0xe0] sm:$0xff] }
0x1013   : > { %v5787_v10 = vadd.f32 %v6777_v18, %v9906_v26  ;;  %v5781_v11 = vpop.f32.mrb[59].mxu0  ;;  %vm10496_vm9 = vmmov %vm10495_vm0 }
0x1014   : > { %v5782_v61 = vadd.f32 %v9906_v26, %v5781_v11  ;;  %vm10497_vm4 = vmmov %vm10495_vm0 }
0x1015   : > { %v5917_v12 = vadd.f32 %v5885_v6, %v5787_v10  ;;  %vm10498_vm8 = vmmov %vm10495_vm0 }
0x1016   : > { %v5916_v13 = vadd.f32 %v5884_v60, %v5782_v61  ;;  %vm10499_vm12 = vmmov %vm10495_vm0  ;;  %v5901_v60 = vld [vmem:[%s9901_s6 + $0xf8] sm:$0xff] }
0x1017   : > { %5949 = vst.msk [vmem:[%s9921_s29 + $0x78] sm:$0xff] %vm10487_vm7, %v5917_v12  ;;  %vm10500_vm10 = vmmov %vm10495_vm0 }
0x1018   : > { %5948 = vst.msk [vmem:[%s9921_s29 + $0x70] sm:$0xff] %vm10488_vm11, %v5916_v13  ;;  %v5542_v19 = vld [vmem:[#allocation6 + $0xf8] sm:$0xff]  ;;  %vm10501_vm6 = vmmov %vm10495_vm0  ;;  %v5900_v13 = vld [vmem:[%s9901_s6 + $0xf0] sm:$0xff] }
0x1019   : > { %v5541_v14 = vld [vmem:[#allocation6 + $0xf0] sm:$0xff]  ;;  %vm10502_vm7 = vmmov %vm10495_vm0 }
0x101a   : > { %6799 = vmatprep.mubr.msk.f32.mxu0 %vm10489_vm15, %v5541_v14  ;;  %vm10503_vm11 = vmmov %vm10495_vm0 }
0x101b   : > { %6800 = vmatmul.mubr.msk.f32.gmra.mrb[74].mxu0 %vm10490_vm5, %v5542_v19  ;;  %vm10504_vm15 = vmmov %vm10495_vm0 }
0x101c   : > { %vm10505_vm5 = vmmov %vm10495_vm0 }
0x1032   : > { %v6780_v22 = vpop.f32.mrb[60].mxu0 }
0x1033   : > { %v5797_v28 = vadd.f32 %v6780_v22, %v9906_v26  ;;  %v5791_v9 = vpop.f32.mrb[61].mxu0 }
0x1034   : > { %v5792_v31 = vadd.f32 %v9906_v26, %v5791_v9 }
0x1035   : > { %v5919_v59 = vadd.f32 %v5887_v40, %v5797_v28 }
0x1036   : > { %v5918_v8 = vadd.f32 %v5886_v16, %v5792_v31 }
0x1037   : > { %5951 = vst.msk [vmem:[%s9921_s29 + $0x88] sm:$0xff] %vm10477_vm3, %v5919_v59 }
0x1038   : > { %5950 = vst.msk [vmem:[%s9921_s29 + $0x80] sm:$0xff] %vm10491_vm13, %v5918_v8 }
0x1052   : > { %v6783_v20 = vpop.f32.mrb[62].mxu0 }
0x1053   : > { %v5807_v27 = vadd.f32 %v6783_v20, %v9906_v26  ;;  %v5801_v21 = vpop.f32.mrb[63].mxu0 }
0x1054   : > { %v5802_v36 = vadd.f32 %v9906_v26, %v5801_v21 }
0x1055   : > { %v5921_v37 = vadd.f32 %v5889_v5, %v5807_v27 }
0x1056   : > { %v5920_v38 = vadd.f32 %v5888_v29, %v5802_v36 }
0x1057   : > { %5953 = vst.msk [vmem:[%s9921_s29 + $0x98] sm:$0xff] %vm10492_vm1, %v5921_v37 }
0x1058   : > { %5952 = vst.msk [vmem:[%s9921_s29 + $0x90] sm:$0xff] %vm10493_vm14, %v5920_v38 }
0x1072   : > { %v6786_v62 = vpop.f32.mrb[64].mxu0 }
0x1073   : > { %v5817_v39 = vadd.f32 %v6786_v62, %v9906_v26  ;;  %v5811_v32 = vpop.f32.mrb[65].mxu0 }
0x1074   : > { %v5812_v33 = vadd.f32 %v9906_v26, %v5811_v32 }
0x1075   : > { %v5923_v15 = vadd.f32 %v5891_v24, %v5817_v39 }
0x1076   : > { %v5922_v23 = vadd.f32 %v5890_v30, %v5812_v33 }
0x1077   : > { %5955 = vst.msk [vmem:[%s9921_s29 + $0xa8] sm:$0xff] %vm10494_vm2, %v5923_v15 }
0x1078   : > { %5954 = vst.msk [vmem:[%s9921_s29 + $0xa0] sm:$0xff] %vm10495_vm0, %v5922_v23 }
0x1092   : > { %v6789_v43 = vpop.f32.mrb[66].mxu0 }
0x1093   : > { %v5827_v45 = vadd.f32 %v6789_v43, %v9906_v26  ;;  %v5821_v46 = vpop.f32.mrb[67].mxu0 }
0x1094   : > { %v5822_v17 = vadd.f32 %v9906_v26, %v5821_v46 }
0x1095   : > { %v5925_v25 = vadd.f32 %v5893_v44, %v5827_v45 }
0x1096   : > { %v5924_v63 = vadd.f32 %v5892_v57, %v5822_v17 }
0x1097   : > { %5957 = vst.msk [vmem:[%s9921_s29 + $0xb8] sm:$0xff] %vm10496_vm9, %v5925_v25 }
0x1098   : > { %5956 = vst.msk [vmem:[%s9921_s29 + $0xb0] sm:$0xff] %vm10497_vm4, %v5924_v63 }
0x10b2   : > { %v6792_v47 = vpop.f32.mrb[68].mxu0 }
0x10b3   : > { %v5837_v49 = vadd.f32 %v6792_v47, %v9906_v26  ;;  %v5831_v50 = vpop.f32.mrb[69].mxu0 }
0x10b4   : > { %v5832_v52 = vadd.f32 %v9906_v26, %v5831_v50 }
0x10b5   : > { %v5927_v55 = vadd.f32 %v5895_v48, %v5837_v49 }
0x10b6   : > { %v5926_v53 = vadd.f32 %v5894_v51, %v5832_v52 }
0x10b7   : > { %5959 = vst.msk [vmem:[%s9921_s29 + $0xc8] sm:$0xff] %vm10498_vm8, %v5927_v55 }
0x10b8   : > { %5958 = vst.msk [vmem:[%s9921_s29 + $0xc0] sm:$0xff] %vm10499_vm12, %v5926_v53 }
0x10d2   : > { %v6795_v7 = vpop.f32.mrb[70].mxu0 }
0x10d3   : > { %v5847_v3 = vadd.f32 %v6795_v7, %v9906_v26  ;;  %v5841_v42 = vpop.f32.mrb[71].mxu0 }
0x10d4   : > { %v5842_v54 = vadd.f32 %v9906_v26, %v5841_v42 }
0x10d5   : > { %v5929_v58 = vadd.f32 %v5897_v41, %v5847_v3 }
0x10d6   : > { %v5928_v35 = vadd.f32 %v5896_v4, %v5842_v54 }
0x10d7   : > { %5961 = vst.msk [vmem:[%s9921_s29 + $0xd8] sm:$0xff] %vm10500_vm10, %v5929_v58 }
0x10d8   : > { %5960 = vst.msk [vmem:[%s9921_s29 + $0xd0] sm:$0xff] %vm10501_vm6, %v5928_v35 }
0x10e2   : > { %v6798_v56 = vpop.f32.mrb[72].mxu0 }
0x10e3   : > { %v5857_v34 = vadd.f32 %v6798_v56, %v9906_v26  ;;  %v5851_v2 = vpop.f32.mrb[73].mxu0 }
0x10e4   : > { %v5852_v18 = vadd.f32 %v9906_v26, %v5851_v2 }
0x10e5   : > { %v5931_v6 = vadd.f32 %v5899_v0, %v5857_v34 }
0x10e6   : > { %v5930_v10 = vadd.f32 %v5898_v1, %v5852_v18 }
0x10e7   : > { %5963 = vst.msk [vmem:[%s9921_s29 + $0xe8] sm:$0xff] %vm10502_vm7, %v5931_v6 }
0x10e8   : > { %5962 = vst.msk [vmem:[%s9921_s29 + $0xe0] sm:$0xff] %vm10503_vm11, %v5930_v10 }
0x10ee   : > { %v6801_v11 = vpop.f32.mrb[74].mxu0 }
0x10ef   : > { %v5867_v61 = vadd.f32 %v6801_v11, %v9906_v26  ;;  %v5861_v12 = vpop.f32.mrb[75].mxu0 }
0x10f0   : > { %v5862_v14 = vadd.f32 %v9906_v26, %v5861_v12 }
0x10f1   : > { %v5933_v19 = vadd.f32 %v5901_v60, %v5867_v61 }
0x10f2   : > { %v5932_v22 = vadd.f32 %v5900_v13, %v5862_v14 }
0x10f3   : > { %5965 = vst.msk [vmem:[%s9921_s29 + $0xf8] sm:$0xff] %vm10504_vm15, %v5933_v19 }
0x10f4   : > { %5964 = vst.msk [vmem:[%s9921_s29 + $0xf0] sm:$0xff] %vm10505_vm5, %v5932_v22 }
0x10f5 PF: > { %s31_s1 = sadd.s32 1, %s7042_s1  }
0x10f6   : > { %p28_p4 = scmp.ge.s32.totalorder %s31_s1, 4  }
0x10f8   :  { %30 = sbr.rel (!%p28_p4) target bundleno = 13 (0xd), region = 160 }

</bundles_post_ra>
